<compile_context>
chip_gen: v7x
topology: tpu7x:2x2x1
jax: 0.10.0
libtpu: 0.0.40
codegen_flags: <defaults>
</compile_context>

<pallas_src>
import jax
import jax.numpy as jnp
from jax.experimental import pallas as pl
from jax.experimental.pallas import tpu as pltpu

IN_FEATURES = 111628  # from nn.Linear(111628, 1)
OUT_FEATURES = 1


def linear_kernel(x_ref, w_ref, b_ref, o_ref):
    # x_ref: (B, K) f32 in VMEM, w_ref: (1, K) f32 in VMEM, b_ref: (1, 1) f32 in SMEM.
    prod = x_ref[...] * w_ref[...]                    # (B, K)  VPU elementwise
    acc = jnp.sum(prod, axis=-1, keepdims=True)       # (B, 1)  XLU lane reduce, f32
    o_ref[...] = (acc + b_ref[0, 0]).astype(o_ref.dtype)


@jax.jit
def linear_forward(x, w, b):
    """x: (B, K) f32, w: (1, K) f32, b: (1, 1) f32 -> (B, 1) f32."""
    B, _ = x.shape
    return pl.pallas_call(
        linear_kernel,
        out_shape=jax.ShapeDtypeStruct((B, OUT_FEATURES), x.dtype),
        in_specs=[
            pl.BlockSpec(memory_space=pltpu.MemorySpace.VMEM),  # x, full array
            pl.BlockSpec(memory_space=pltpu.MemorySpace.VMEM),  # w, full array
            pl.BlockSpec(memory_space=pltpu.MemorySpace.SMEM),  # bias scalar
        ],
        out_specs=pl.BlockSpec(memory_space=pltpu.MemorySpace.VMEM),
    )(x, w, b)


if __name__ == "__main__":
    key = jax.random.PRNGKey(0)
    kx, kw, kb = jax.random.split(key, 3)

    B = 2
    # Deterministic parameter init mirroring torch.nn.Linear default:
    # U(-1/sqrt(in_features), 1/sqrt(in_features))
    bound = 1.0 / (IN_FEATURES ** 0.5)
    w = jax.random.uniform(
        kw, (OUT_FEATURES, IN_FEATURES), jnp.float32, minval=-bound, maxval=bound
    )
    b = jax.random.uniform(
        kb, (1, OUT_FEATURES), jnp.float32, minval=-bound, maxval=bound
    )
    x = jax.random.normal(kx, (B, IN_FEATURES), jnp.float32)

    y = linear_forward(x, w, b)
    jax.block_until_ready(y)

    # Reference check against plain JAX (HIGHEST precision so the reference is true f32,
    # matching the kernel's exact f32 multiply + reduce).
    y_ref = jnp.dot(x, w.T, precision=jax.lax.Precision.HIGHEST) + b
    assert y.shape == (B, OUT_FEATURES)
    assert jnp.allclose(y, y_ref, rtol=1e-4, atol=1e-4), (y, y_ref)

    print("KERNEL_OK")
</pallas_src>

<mosaic_0001>
module attributes {stable_mosaic.version = 11 : i64} {
  func.func @linear_kernel(%arg0: memref<2x111628xf32, #tpu.memory_space<vmem>>, %arg1: memref<1x111628xf32, #tpu.memory_space<vmem>>, %arg2: memref<1x1xf32, #tpu.memory_space<smem>>, %arg3: memref<2x1xf32, #tpu.memory_space<vmem>>) attributes {dimension_semantics = [], scalar_prefetch = 0 : i64, scratch_operands = 0 : i64, tpu.core_type = #tpu.core_type<tc>} {
    %c0 = arith.constant 0 : index
    %c0_0 = arith.constant 0 : index
    %0 = vector.load %arg0[%c0, %c0_0] : memref<2x111628xf32, #tpu.memory_space<vmem>>, vector<2x111628xf32>
    %c0_1 = arith.constant 0 : index
    %c0_2 = arith.constant 0 : index
    %1 = vector.load %arg1[%c0_1, %c0_2] : memref<1x111628xf32, #tpu.memory_space<vmem>>, vector<1x111628xf32>
    %2 = vector.broadcast %1 : vector<1x111628xf32> to vector<2x111628xf32>
    %3 = arith.mulf %0, %2 : vector<2x111628xf32>
    %cst = arith.constant dense<0.000000e+00> : vector<2xf32>
    %4 = vector.multi_reduction <add>, %3, %cst [1] : vector<2x111628xf32> to vector<2xf32>
    %5 = vector.shape_cast %4 : vector<2xf32> to vector<2x1xf32>
    %c0_3 = arith.constant 0 : index
    %c0_4 = arith.constant 0 : index
    %6 = memref.load %arg2[%c0_3, %c0_4] : memref<1x1xf32, #tpu.memory_space<smem>>
    %7 = vector.broadcast %6 : f32 to vector<2x1xf32>
    %8 = arith.addf %5, %7 : vector<2x1xf32>
    %c0_5 = arith.constant 0 : index
    %c0_6 = arith.constant 0 : index
    %9 = vector.load %arg3[%c0_5, %c0_6] : memref<2x1xf32, #tpu.memory_space<vmem>>, vector<2x1xf32>
    tpu.vector_store %arg3[%c0_5, %c0_6], %8 {strides = array<i32>} : memref<2x1xf32, #tpu.memory_space<vmem>>, vector<2x1xf32>,
    return
  }
}

</mosaic_0001>

<bundles_post_ra>
// kernel: linear_forward.1
= control target key start
LH: loop header
LB: loop body
LE: loop exit
PB: predicated region body
PF: predicated region fallthrough
CT: control target
= control target key end

     0   :  { %9 = vsyncpa [#allocation4], 0  ;;  %s17427_s0 = inlined_call_operand.hbm [shape: f32[2,111628], index: 0, kind: input, shape index: {}]   ;;  %s17428_s1 = inlined_call_operand.hbm [shape: f32[1,111628], index: 1, kind: input, shape index: {}]   ;;  %s17429_s2 = inlined_call_operand.<no memory space> [shape: f32[1,1], index: 2, kind: input, shape index: {}]   ;;  %s17430_s3 = inlined_call_operand.vmem [shape: f32[2,1], index: 3, kind: output, shape index: {}]  }
   0x1   :  { %10 = vsyncpa [#allocation6], 0  ;;  %s14738_s12 = smov [#allocation3]   ;;  %s14739_s14 = smov [#allocation5]  }
   0x2   :  { %s17_s13 = sshll.u32 %s14738_s12, 4  ;;  %s27_s15 = sshll.u32 %s14739_s14, 4  ;;  %s18_s13 = int_to_ptr.vmem [resolvable:$true] %s17_s13  ;;  %s28_s15 = int_to_ptr.vmem [resolvable:$true] %s27_s15 }
   0x3   :  { %s14690_s18 = scalar_lea.hbm %s17427_s0, 27936 }
   0x4   :  { %p14691_p0 = scmp.ne.s32.totalorder %s17427_s0, %s14690_s18  ;;  %p14694_p1 = scmp.lt.u32.totalorder %s14690_s18, %s17427_s0 }
   0x6   :  { %p14696_p2 = pnand %p14694_p1, %p14691_p0 }
   0x8   :  { %14699 = shalt.err (!%p14696_p2)
}
   0x9   :  { %s14700_s23 = scalar_lea.vmem %s18_s13, 27936  ;;  %p14705_p4 = scmp.lt.s32.totalorder %s18_s13, %s18_s13 }
   0xa   :  { %p14701_p3 = scmp.ne.s32.totalorder %s18_s13, %s14700_s23  ;;  %p14706_p5 = scmp.lt.s32.totalorder %s14700_s23, %s14700_s23 }
   0xc   :  { %p14707_p6 = por %p14706_p5, %p14705_p4 }
   0xe   :  { %p14708_p7 = pnand %p14707_p6, %p14701_p3 }
  0x10   :  { %14711 = shalt.err (!%p14708_p7)
}
  0x11   :  { %20 = dma.hbm_to_vmem [thread:$0]  %s17427_s0, 27936, %s18_s13, [#allocation4]  }
  0x12   :  { %s14712_s28 = scalar_lea.hbm %s17428_s1, 13968 }
  0x13   :  { %p14713_p8 = scmp.ne.s32.totalorder %s17428_s1, %s14712_s28  ;;  %p14716_p9 = scmp.lt.u32.totalorder %s14712_s28, %s17428_s1 }
  0x15   :  { %p14718_p10 = pnand %p14716_p9, %p14713_p8 }
  0x17   :  { %14721 = shalt.err (!%p14718_p10)
}
  0x18   :  { %s14722_s6 = scalar_lea.vmem %s28_s15, 13968  ;;  %s14726_s7 = scalar_lea.vmem %s28_s15, 13984 }
  0x19   :  { %p14723_p11 = scmp.ne.s32.totalorder %s28_s15, %s14722_s6  ;;  %p14727_p12 = scmp.lt.s32.totalorder %s28_s15, %s28_s15 }
  0x1a   :  { %p14728_p13 = scmp.lt.s32.totalorder %s14726_s7, %s14722_s6 }
  0x1c   :  { %p14729_p0 = por %p14728_p13, %p14727_p12 }
  0x1e   :  { %p14730_p1 = pnand %p14729_p0, %p14723_p11 }
  0x20   :  { %14733 = shalt.err (!%p14730_p1)
}
  0x21   :  { %30 = dma.hbm_to_vmem [thread:$0]  %s17428_s1, 13968, %s28_s15, [#allocation6]  }
  0x22   :  { %14734 = dma.done.wait [#allocation4], 27936  }
  0x23   :  { %14735 = vsyncadd [#allocation4], 4294939360 }
  0x24   :  { %14736 = dma.done.wait [#allocation6], 13968  }
  0x25   :  { %14737 = vsyncadd [#allocation6], 4294953328  ;;  %v478_v0 = vlaneseq  ;;  %v258_v3 = vld [vmem:[#allocation5] sm:$0xff]  ;;  %v14740_v7 = vmov 1983009808   ;;  %v259_v27 = vld [vmem:[#allocation5 + $0x8] sm:$0xff] }
  0x26   :  { %v3973_v8 = vunpack.c.l.s4 %v14740_v7  ;;  %v39_v31 = vld [vmem:[#allocation3] sm:$0xff]  ;;  %v40_v43 = vld [vmem:[#allocation3 + $0x8] sm:$0xff]  ;;  %v41_v61 = vld [vmem:[#allocation3 + $0x10] sm:$0xff]  ;;  %vm12926_vm0 = vcmask 1041408   ;;  %vm14670_vm1 = vcmask 91136   ;;  %vm14678_vm2 = vcmask 1024  }
  0x27   :  { %v479_v1 = vshrl.u32 %v478_v0, 7  ;;  %v260_v53 = vld [vmem:[#allocation5 + $0x10] sm:$0xff] }
  0x28   :  { %v3974_v13 = vunpack.c.0.s8 %v3973_v8 }
  0x29   :  { %v14785_v2 = vsub.s32 0, %v479_v1  ;;  %v14787_v4 = vsub.s32 1, %v479_v1  ;;  %v14789_v5 = vsub.s32 2, %v479_v1  ;;  %v14791_v6 = vsub.s32 3, %v479_v1 }
  0x2a   :  { %v14797_v14 = vsub.s32 4, %v479_v1  ;;  %v14799_v15 = vsub.s32 5, %v479_v1  ;;  %v14801_v16 = vsub.s32 6, %v479_v1  ;;  %v14803_v17 = vsub.s32 7, %v479_v1 }
  0x2b   :  { %v481_v9 = vrot.slane %v258_v3, %v14785_v2  ;;  %v485_v10 = vrot.slane %v258_v3, %v14787_v4  ;;  %v489_v11 = vrot.slane %v258_v3, %v14789_v5  ;;  %v493_v12 = vrot.slane %v258_v3, %v14791_v6 }
  0x2c   :  { %v14805_v20 = vsub.s32 %v3974_v13, %v479_v1  ;;  %v497_v21 = vrot.slane %v258_v3, %v14797_v14  ;;  %v501_v22 = vrot.slane %v258_v3, %v14799_v15  ;;  %v505_v23 = vrot.slane %v258_v3, %v14801_v16 }
  0x2d   :  { %v3970_v18 = vcombine.low %v481_v9, %v485_v10  ;;  %v3971_v19 = vcombine.low %v489_v11, %v493_v12  ;;  %v509_v24 = vrot.slane %v258_v3, %v14803_v17  ;;  %v513_v32 = vrot.slane %v259_v27, %v14785_v2 }
  0x2e   :  { %v3987_v28 = vcombine.low %v497_v21, %v501_v22  ;;  %v517_v33 = vrot.slane %v259_v27, %v14787_v4  ;;  %v521_v34 = vrot.slane %v259_v27, %v14789_v5  ;;  %v525_v35 = vrot.slane %v259_v27, %v14791_v6 }
  0x2f   :  { %v3978_v25 = vrot.slane %v3970_v18, %v14805_v20  ;;  %v3985_v26 = vrot.slane %v3971_v19, %v14805_v20  ;;  %v3988_v29 = vcombine.low %v505_v23, %v509_v24  ;;  %v529_v45 = vrot.slane %v259_v27, %v14797_v14 }
  0x30   :  { %v3995_v36 = vrot.slane %v3987_v28, %v14805_v20  ;;  %v4004_v40 = vcombine.low %v513_v32, %v517_v33  ;;  %v4005_v41 = vcombine.low %v521_v34, %v525_v35  ;;  %v533_v46 = vrot.slane %v259_v27, %v14799_v15 }
  0x31   :  { %v3986_v30 = vcombine.low %v3978_v25, %v3985_v26  ;;  %v4002_v37 = vrot.slane %v3988_v29, %v14805_v20  ;;  %v537_v47 = vrot.slane %v259_v27, %v14801_v16  ;;  %v541_v48 = vrot.slane %v259_v27, %v14803_v17 }
  0x32   :  { %v4012_v49 = vrot.slane %v4004_v40, %v14805_v20  ;;  %v4019_v50 = vrot.slane %v4005_v41, %v14805_v20  ;;  %v4021_v55 = vcombine.low %v529_v45, %v533_v46  ;;  %v545_v62 = vrot.slane %v260_v53, %v14785_v2 }
  0x33   :  { %v7902_v38 = vmul.f32 %v3986_v30, %v39_v31  ;;  %v4003_v39 = vcombine.low %v3995_v36, %v4002_v37  ;;  %v4022_v56 = vcombine.low %v537_v47, %v541_v48  ;;  %v549_v63 = vrot.slane %v260_v53, %v14787_v4  ;;  %v42_v31 = vld [vmem:[#allocation3 + $0x18] sm:$0xff]  ;;  %v261_v47 = vld [vmem:[#allocation5 + $0x18] sm:$0xff] }
  0x34   :  { %v4020_v57 = vcombine.low %v4012_v49, %v4019_v50  ;;  %v553_v0 = vrot.slane %v260_v53, %v14789_v5  ;;  %v557_v1 = vrot.slane %v260_v53, %v14791_v6  ;;  %v4029_v8 = vrot.slane %v4021_v55, %v14805_v20 }
  0x35   :  { %v8340_v42 = vcombine.high %v7902_v38, %v7902_v38  ;;  %v8347_v44 = vrot.slane %v7902_v38, %v14805_v20  ;;  %v7903_v51 = vmul.f32 %v4003_v39, %v40_v43  ;;  %v4036_v9 = vrot.slane %v4022_v56, %v14805_v20  ;;  %v43_v56 = vld [vmem:[#allocation3 + $0x20] sm:$0xff] }
  0x36   :  { %v7904_v12 = vmul.f32 %v4020_v57, %v41_v61  ;;  %v4038_v24 = vcombine.low %v545_v62, %v549_v63  ;;  %v4039_v25 = vcombine.low %v553_v0, %v557_v1  ;;  %v561_v33 = vrot.slane %v260_v53, %v14797_v14 }
  0x37   :  { %v8354_v52 = vrot.slane %v8340_v42, %v14805_v20  ;;  %v8355_v54 = vcombine.high %v8347_v44, %v8347_v44  ;;  %v8357_v59 = vcombine.high %v7903_v51, %v7903_v51  ;;  %v8364_v60 = vrot.slane %v7903_v51, %v14805_v20 }
  0x38   :  { %v12927_v3 = vsel %vm12926_vm0, %v8347_v44, 0.0  ;;  %v4037_v23 = vcombine.low %v4029_v8, %v4036_v9  ;;  %v8374_v28 = vcombine.high %v7904_v12, %v7904_v12  ;;  %v8381_v29 = vrot.slane %v7904_v12, %v14805_v20 }
  0x39   :  { %v8356_v58 = vcombine.high %v8354_v52, %v8354_v52  ;;  %v12928_v7 = vsel %vm12926_vm0, %v8355_v54, 0.0  ;;  %v12930_v11 = vsel %vm12926_vm0, %v8354_v52, 0.0  ;;  %v8371_v13 = vrot.slane %v8357_v59, %v14805_v20 }
  0x3a   :  { %v12929_v10 = vadd.f32 %v12928_v7, %v12927_v3  ;;  %v8372_v18 = vcombine.high %v8364_v60, %v8364_v60  ;;  %v12934_v22 = vsel %vm12926_vm0, %v8364_v60, 0.0  ;;  %v565_v34 = vrot.slane %v260_v53, %v14799_v15 }
  0x3b   :  { %v12932_v19 = vsel %vm12926_vm0, %v8356_v58, 0.0  ;;  %v8373_v27 = vcombine.high %v8371_v13, %v8371_v13  ;;  %v569_v35 = vrot.slane %v260_v53, %v14801_v16  ;;  %v12938_v36 = vsel %vm12926_vm0, %v8371_v13, 0.0 }
  0x3c   :  { %v12931_v21 = vadd.f32 %v12930_v11, %v12929_v10  ;;  %v12936_v30 = vsel %vm12926_vm0, %v8372_v18, 0.0  ;;  %v573_v37 = vrot.slane %v260_v53, %v14803_v17  ;;  %v4046_v38 = vrot.slane %v4038_v24, %v14805_v20 }
  0x3d   :  { %v4053_v39 = vrot.slane %v4039_v25, %v14805_v20  ;;  %v7905_v41 = vmul.f32 %v4037_v23, %v42_v31  ;;  %v8388_v42 = vrot.slane %v8374_v28, %v14805_v20  ;;  %v8389_v43 = vcombine.high %v8381_v29, %v8381_v29  ;;  %v44_v25 = vld [vmem:[#allocation3 + $0x28] sm:$0xff] }
  0x3e   :  { %v12933_v26 = vadd.f32 %v12932_v19, %v12931_v21  ;;  %v12940_v44 = vsel %vm12926_vm0, %v8373_v27, 0.0  ;;  %v12942_v46 = vsel %vm12926_vm0, %v8381_v29, 0.0  ;;  %v4055_v49 = vcombine.low %v561_v33, %v565_v34 }
  0x3f   :  { %v4054_v48 = vcombine.low %v4046_v38, %v4053_v39  ;;  %v4056_v50 = vcombine.low %v569_v35, %v573_v37  ;;  %v8390_v52 = vcombine.high %v8388_v42, %v8388_v42  ;;  %v8391_v53 = vcombine.high %v7905_v41, %v7905_v41 }
  0x40   :  { %v12935_v32 = vadd.f32 %v12934_v22, %v12933_v26  ;;  %v8398_v54 = vrot.slane %v7905_v41, %v14805_v20  ;;  %v12944_v55 = vsel %vm12926_vm0, %v8389_v43, 0.0  ;;  %v577_v58 = vrot.slane %v261_v47, %v14785_v2  ;;  %v262_v41 = vld [vmem:[#allocation5 + $0x20] sm:$0xff] }
  0x41   :  { %v581_v59 = vrot.slane %v261_v47, %v14787_v4  ;;  %v585_v60 = vrot.slane %v261_v47, %v14789_v5  ;;  %v12946_v61 = vsel %vm12926_vm0, %v8388_v42, 0.0  ;;  %v589_v62 = vrot.slane %v261_v47, %v14791_v6 }
  0x42   :  { %v12937_v40 = vadd.f32 %v12936_v30, %v12935_v32  ;;  %v4063_v63 = vrot.slane %v4055_v49, %v14805_v20  ;;  %v4070_v0 = vrot.slane %v4056_v50, %v14805_v20  ;;  %v7906_v3 = vmul.f32 %v4054_v48, %v43_v56  ;;  %v45_v50 = vld [vmem:[#allocation3 + $0x30] sm:$0xff] }
  0x43   :  { %v8405_v7 = vrot.slane %v8391_v53, %v14805_v20  ;;  %v8406_v8 = vcombine.high %v8398_v54, %v8398_v54  ;;  %v12948_v9 = vsel %vm12926_vm0, %v8390_v52, 0.0  ;;  %v12950_v11 = vsel %vm12926_vm0, %v8398_v54, 0.0 }
  0x44   :  { %v12939_v45 = vadd.f32 %v12938_v36, %v12937_v40  ;;  %v4071_v12 = vcombine.low %v4063_v63, %v4070_v0  ;;  %v4072_v13 = vcombine.low %v577_v58, %v581_v59  ;;  %v4073_v18 = vcombine.low %v585_v60, %v589_v62 }
  0x45   :  { %v8407_v21 = vcombine.high %v8405_v7, %v8405_v7  ;;  %v8408_v22 = vcombine.high %v7906_v3, %v7906_v3  ;;  %v8415_v23 = vrot.slane %v7906_v3, %v14805_v20  ;;  %v12952_v24 = vsel %vm12926_vm0, %v8406_v8, 0.0 }
  0x46   :  { %v12941_v51 = vadd.f32 %v12940_v44, %v12939_v45  ;;  %v593_v27 = vrot.slane %v261_v47, %v14797_v14  ;;  %v597_v28 = vrot.slane %v261_v47, %v14799_v15  ;;  %v601_v29 = vrot.slane %v261_v47, %v14801_v16 }
  0x47   :  { %v12954_v30 = vsel %vm12926_vm0, %v8405_v7, 0.0  ;;  %v605_v31 = vrot.slane %v261_v47, %v14803_v17  ;;  %v4080_v32 = vrot.slane %v4072_v13, %v14805_v20  ;;  %v4087_v33 = vrot.slane %v4073_v18, %v14805_v20  ;;  %v46_v18 = vld [vmem:[#allocation3 + $0x38] sm:$0xff] }
  0x48   :  { %v12943_v57 = vadd.f32 %v12942_v46, %v12941_v51  ;;  %v7907_v35 = vmul.f32 %v4071_v12, %v44_v25  ;;  %v8422_v36 = vrot.slane %v8408_v22, %v14805_v20  ;;  %v8423_v37 = vcombine.high %v8415_v23, %v8415_v23 }
  0x49   :  { %v12956_v38 = vsel %vm12926_vm0, %v8407_v21, 0.0  ;;  %v12958_v40 = vsel %vm12926_vm0, %v8415_v23, 0.0  ;;  %v4088_v42 = vcombine.low %v4080_v32, %v4087_v33  ;;  %v4089_v43 = vcombine.low %v593_v27, %v597_v28 }
  0x4a   :  { %v12945_v1 = vadd.f32 %v12944_v55, %v12943_v57  ;;  %v4090_v44 = vcombine.low %v601_v29, %v605_v31  ;;  %v8424_v46 = vcombine.high %v8422_v36, %v8422_v36  ;;  %v8425_v47 = vcombine.high %v7907_v35, %v7907_v35 }
  0x4b   :  { %v8432_v48 = vrot.slane %v7907_v35, %v14805_v20  ;;  %v12960_v49 = vsel %vm12926_vm0, %v8423_v37, 0.0  ;;  %v609_v52 = vrot.slane %v262_v41, %v14785_v2  ;;  %v613_v53 = vrot.slane %v262_v41, %v14787_v4  ;;  %v263_v35 = vld [vmem:[#allocation5 + $0x28] sm:$0xff] }
  0x4c   :  { %v12947_v10 = vadd.f32 %v12946_v61, %v12945_v1  ;;  %v617_v54 = vrot.slane %v262_v41, %v14789_v5  ;;  %v12962_v55 = vsel %vm12926_vm0, %v8422_v36, 0.0  ;;  %v621_v56 = vrot.slane %v262_v41, %v14791_v6 }
  0x4d   :  { %v4097_v57 = vrot.slane %v4089_v43, %v14805_v20  ;;  %v4104_v58 = vrot.slane %v4090_v44, %v14805_v20  ;;  %v7908_v60 = vmul.f32 %v4088_v42, %v45_v50  ;;  %v8439_v61 = vrot.slane %v8425_v47, %v14805_v20  ;;  %v47_v44 = vld [vmem:[#allocation3 + $0x40] sm:$0xff] }
  0x4e   :  { %v12949_v19 = vadd.f32 %v12948_v9, %v12947_v10  ;;  %v8440_v62 = vcombine.high %v8432_v48, %v8432_v48  ;;  %v12964_v63 = vsel %vm12926_vm0, %v8424_v46, 0.0  ;;  %v12966_v1 = vsel %vm12926_vm0, %v8432_v48, 0.0 }
  0x4f   :  { %v4105_v3 = vcombine.low %v4097_v57, %v4104_v58  ;;  %v4106_v7 = vcombine.low %v609_v52, %v613_v53  ;;  %v4107_v8 = vcombine.low %v617_v54, %v621_v56  ;;  %v8441_v10 = vcombine.high %v8439_v61, %v8439_v61 }
  0x50   :  { %v12951_v26 = vadd.f32 %v12950_v11, %v12949_v19  ;;  %v8442_v11 = vcombine.high %v7908_v60, %v7908_v60  ;;  %v8449_v12 = vrot.slane %v7908_v60, %v14805_v20  ;;  %v12968_v13 = vsel %vm12926_vm0, %v8440_v62, 0.0 }
  0x51   :  { %v625_v21 = vrot.slane %v262_v41, %v14797_v14  ;;  %v629_v22 = vrot.slane %v262_v41, %v14799_v15  ;;  %v633_v23 = vrot.slane %v262_v41, %v14801_v16  ;;  %v637_v25 = vrot.slane %v262_v41, %v14803_v17 }
  0x52   :  { %v12953_v34 = vadd.f32 %v12952_v24, %v12951_v26  ;;  %v12970_v24 = vsel %vm12926_vm0, %v8439_v61, 0.0  ;;  %v4114_v26 = vrot.slane %v4106_v7, %v14805_v20  ;;  %v4121_v27 = vrot.slane %v4107_v8, %v14805_v20  ;;  %v48_v8 = vld [vmem:[#allocation3 + $0x48] sm:$0xff] }
  0x53   :  { %v7909_v29 = vmul.f32 %v4105_v3, %v46_v18  ;;  %v8457_v31 = vcombine.high %v8449_v12, %v8449_v12  ;;  %v12972_v32 = vsel %vm12926_vm0, %v8441_v10, 0.0  ;;  %v4123_v37 = vcombine.low %v625_v21, %v629_v22 }
  0x54   :  { %v12955_v39 = vadd.f32 %v12954_v30, %v12953_v34  ;;  %v8456_v30 = vrot.slane %v8442_v11, %v14805_v20  ;;  %v12974_v34 = vsel %vm12926_vm0, %v8449_v12, 0.0  ;;  %v4122_v36 = vcombine.low %v4114_v26, %v4121_v27 }
  0x55   :  { %v8459_v41 = vcombine.high %v7909_v29, %v7909_v29  ;;  %v8466_v42 = vrot.slane %v7909_v29, %v14805_v20  ;;  %v12976_v43 = vsel %vm12926_vm0, %v8457_v31, 0.0  ;;  %v641_v46 = vrot.slane %v263_v35, %v14785_v2  ;;  %v264_v29 = vld [vmem:[#allocation5 + $0x30] sm:$0xff] }
  0x56   :  { %v12957_v45 = vadd.f32 %v12956_v38, %v12955_v39  ;;  %v4124_v38 = vcombine.low %v633_v23, %v637_v25  ;;  %v645_v47 = vrot.slane %v263_v35, %v14787_v4  ;;  %v649_v48 = vrot.slane %v263_v35, %v14789_v5 }
  0x57   :  { %v653_v50 = vrot.slane %v263_v35, %v14791_v6  ;;  %v7910_v54 = vmul.f32 %v4122_v36, %v47_v44  ;;  %v8474_v56 = vcombine.high %v8466_v42, %v8466_v42  ;;  %v657_v10 = vrot.slane %v263_v35, %v14797_v14 }
  0x58   :  { %v12959_v51 = vadd.f32 %v12958_v40, %v12957_v45  ;;  %v8458_v40 = vcombine.high %v8456_v30, %v8456_v30  ;;  %v4138_v52 = vrot.slane %v4124_v38, %v14805_v20  ;;  %v4140_v61 = vcombine.low %v641_v46, %v645_v47  ;;  %v49_v38 = vld [vmem:[#allocation3 + $0x50] sm:$0xff] }
  0x59   :  { %v4141_v62 = vcombine.low %v649_v48, %v653_v50  ;;  %v8483_v3 = vrot.slane %v7910_v54, %v14805_v20  ;;  %v12984_v7 = vsel %vm12926_vm0, %v8474_v56, 0.0  ;;  %v661_v11 = vrot.slane %v263_v35, %v14799_v15 }
  0x5a   :  { %v12961_v59 = vadd.f32 %v12960_v49, %v12959_v51  ;;  %v12978_v49 = vsel %vm12926_vm0, %v8456_v30, 0.0  ;;  %v4131_v51 = vrot.slane %v4123_v37, %v14805_v20  ;;  %v12980_v57 = vsel %vm12926_vm0, %v8458_v40, 0.0 }
  0x5b   :  { %v665_v12 = vrot.slane %v263_v35, %v14801_v16  ;;  %v669_v18 = vrot.slane %v263_v35, %v14803_v17  ;;  %v4155_v21 = vrot.slane %v4141_v62, %v14805_v20  ;;  %v8491_v25 = vcombine.high %v8483_v3, %v8483_v3  ;;  %v50_v62 = vld [vmem:[#allocation3 + $0x58] sm:$0xff] }
  0x5c   :  { %v12963_v0 = vadd.f32 %v12962_v55, %v12961_v59  ;;  %v8473_v55 = vrot.slane %v8459_v41, %v14805_v20  ;;  %v12982_v59 = vsel %vm12926_vm0, %v8466_v42, 0.0  ;;  %v4139_v60 = vcombine.low %v4131_v51, %v4138_v52 }
  0x5d   :  { %v4157_v31 = vcombine.low %v657_v10, %v661_v11  ;;  %v12992_v37 = vsel %vm12926_vm0, %v8491_v25, 0.0  ;;  %v673_v40 = vrot.slane %v264_v29, %v14785_v2  ;;  %v677_v41 = vrot.slane %v264_v29, %v14787_v4 }
  0x5e   :  { %v12965_v9 = vadd.f32 %v12964_v63, %v12963_v0  ;;  %v8475_v0 = vcombine.high %v8473_v55, %v8473_v55  ;;  %v7911_v23 = vmul.f32 %v4139_v60, %v48_v8  ;;  %v681_v42 = vrot.slane %v264_v29, %v14789_v5 }
  0x5f   :  { %v685_v44 = vrot.slane %v264_v29, %v14791_v6  ;;  %v701_v8 = vrot.slane %v264_v29, %v14803_v17 }
  0x60   :  { %v12967_v19 = vadd.f32 %v12966_v1, %v12965_v9  ;;  %v8476_v1 = vcombine.high %v7910_v54, %v7910_v54  ;;  %v12988_v26 = vsel %vm12926_vm0, %v8475_v0, 0.0  ;;  %v8493_v35 = vcombine.high %v7911_v23, %v7911_v23 }
  0x61   :  { %v8500_v36 = vrot.slane %v7911_v23, %v14805_v20  ;;  %v4175_v56 = vcombine.low %v681_v42, %v685_v44  ;;  %v689_v0 = vrot.slane %v264_v29, %v14797_v14  ;;  %v265_v23 = vld [vmem:[#allocation5 + $0x38] sm:$0xff] }
  0x62   :  { %v12969_v28 = vadd.f32 %v12968_v13, %v12967_v19  ;;  %v12986_v13 = vsel %vm12926_vm0, %v8473_v55, 0.0  ;;  %v4148_v19 = vrot.slane %v4140_v61, %v14805_v20  ;;  %v4174_v55 = vcombine.low %v673_v40, %v677_v41 }
  0x63   :  { %v8508_v50 = vcombine.high %v8500_v36, %v8500_v36  ;;  %v4189_v10 = vrot.slane %v4175_v56, %v14805_v20  ;;  %v52_v56 = vld [vmem:[#allocation3 + $0x68] sm:$0xff] }
  0x64   :  { %v12971_v33 = vadd.f32 %v12970_v24, %v12969_v28  ;;  %v8490_v24 = vrot.slane %v8476_v1, %v14805_v20  ;;  %v12990_v28 = vsel %vm12926_vm0, %v8483_v3, 0.0  ;;  %v4156_v30 = vcombine.low %v4148_v19, %v4155_v21 }
  0x65   :  { %v13000_v61 = vsel %vm12926_vm0, %v8508_v50, 0.0  ;;  %v693_v1 = vrot.slane %v264_v29, %v14799_v15  ;;  %v697_v3 = vrot.slane %v264_v29, %v14801_v16 }
  0x66   :  { %v12973_v39 = vadd.f32 %v12972_v32, %v12971_v33  ;;  %v4158_v32 = vcombine.low %v665_v12, %v669_v18  ;;  %v7912_v48 = vmul.f32 %v4156_v30, %v49_v38  ;;  %v717_v38 = vrot.slane %v265_v23, %v14791_v6 }
  0x67   :  { %v4191_v25 = vcombine.low %v689_v0, %v693_v1 }
  0x68   :  { %v12975_v45 = vadd.f32 %v12974_v34, %v12973_v39  ;;  %v8492_v34 = vcombine.high %v8490_v24, %v8490_v24  ;;  %v4172_v46 = vrot.slane %v4158_v32, %v14805_v20  ;;  %v8517_v60 = vrot.slane %v7912_v48, %v14805_v20  ;;  %v51_v32 = vld [vmem:[#allocation3 + $0x60] sm:$0xff] }
  0x6a   :  { %v12977_v53 = vadd.f32 %v12976_v43, %v12975_v45  ;;  %v12994_v43 = vsel %vm12926_vm0, %v8490_v24, 0.0  ;;  %v4165_v45 = vrot.slane %v4157_v31, %v14805_v20  ;;  %v12996_v51 = vsel %vm12926_vm0, %v8492_v34, 0.0 }
  0x6b   :  { %v8525_v18 = vcombine.high %v8517_v60, %v8517_v60  ;;  %v705_v34 = vrot.slane %v265_v23, %v14785_v2 }
  0x6c   :  { %v12979_v58 = vadd.f32 %v12978_v49, %v12977_v53  ;;  %v8507_v49 = vrot.slane %v8493_v35, %v14805_v20  ;;  %v12998_v53 = vsel %vm12926_vm0, %v8500_v36, 0.0  ;;  %v4173_v54 = vcombine.low %v4165_v45, %v4172_v46 }
  0x6d   :  { %v13008_v31 = vsel %vm12926_vm0, %v8525_v18, 0.0  ;;  %v709_v35 = vrot.slane %v265_v23, %v14787_v4  ;;  %v713_v36 = vrot.slane %v265_v23, %v14789_v5 }
  0x6e   :  { %v12981_v63 = vadd.f32 %v12980_v57, %v12979_v58  ;;  %v8509_v58 = vcombine.high %v8507_v49, %v8507_v49  ;;  %v7913_v12 = vmul.f32 %v4173_v54, %v50_v62  ;;  %v733_v62 = vrot.slane %v265_v23, %v14803_v17 }
  0x6f   :  { %v4209_v50 = vcombine.low %v713_v36, %v717_v38 }
  0x70   :  { %v12983_v9 = vadd.f32 %v12982_v59, %v12981_v63  ;;  %v8510_v59 = vcombine.high %v7912_v48, %v7912_v48  ;;  %v13004_v19 = vsel %vm12926_vm0, %v8509_v58, 0.0  ;;  %v8527_v29 = vcombine.high %v7913_v12, %v7913_v12 }
  0x71   :  { %v8534_v30 = vrot.slane %v7913_v12, %v14805_v20  ;;  %v721_v58 = vrot.slane %v265_v23, %v14797_v14  ;;  %v4223_v0 = vrot.slane %v4209_v50, %v14805_v20  ;;  %v266_v12 = vld [vmem:[#allocation5 + $0x40] sm:$0xff] }
  0x72   :  { %v12985_v22 = vadd.f32 %v12984_v7, %v12983_v9  ;;  %v13002_v7 = vsel %vm12926_vm0, %v8507_v49, 0.0  ;;  %v4182_v9 = vrot.slane %v4174_v55, %v14805_v20  ;;  %v4208_v49 = vcombine.low %v705_v34, %v709_v35  ;;  %v54_v50 = vld [vmem:[#allocation3 + $0x78] sm:$0xff] }
  0x73   :  { %v8542_v44 = vcombine.high %v8534_v30, %v8534_v30 }
  0x74   :  { %v12987_v27 = vadd.f32 %v12986_v13, %v12985_v22  ;;  %v8524_v13 = vrot.slane %v8510_v59, %v14805_v20  ;;  %v13006_v22 = vsel %vm12926_vm0, %v8517_v60, 0.0  ;;  %v4190_v24 = vcombine.low %v4182_v9, %v4189_v10 }
  0x75   :  { %v13016_v55 = vsel %vm12926_vm0, %v8542_v44, 0.0  ;;  %v725_v59 = vrot.slane %v265_v23, %v14799_v15  ;;  %v729_v60 = vrot.slane %v265_v23, %v14801_v16 }
  0x76   :  { %v12989_v33 = vadd.f32 %v12988_v26, %v12987_v27  ;;  %v4192_v26 = vcombine.low %v697_v3, %v701_v8  ;;  %v7914_v42 = vmul.f32 %v4190_v24, %v51_v32  ;;  %v749_v32 = vrot.slane %v266_v12, %v14791_v6 }
  0x77   :  { %v4225_v18 = vcombine.low %v721_v58, %v725_v59 }
  0x78   :  { %v12991_v39 = vadd.f32 %v12990_v28, %v12989_v33  ;;  %v8526_v28 = vcombine.high %v8524_v13, %v8524_v13  ;;  %v4206_v40 = vrot.slane %v4192_v26, %v14805_v20  ;;  %v8551_v54 = vrot.slane %v7914_v42, %v14805_v20  ;;  %v53_v26 = vld [vmem:[#allocation3 + $0x70] sm:$0xff] }
  0x7a   :  { %v12993_v47 = vadd.f32 %v12992_v37, %v12991_v39  ;;  %v13010_v37 = vsel %vm12926_vm0, %v8524_v13, 0.0  ;;  %v4199_v39 = vrot.slane %v4191_v25, %v14805_v20  ;;  %v13012_v45 = vsel %vm12926_vm0, %v8526_v28, 0.0 }
  0x7b   :  { %v8559_v8 = vcombine.high %v8551_v54, %v8551_v54  ;;  %v737_v28 = vrot.slane %v266_v12, %v14785_v2 }
  0x7c   :  { %v12995_v52 = vadd.f32 %v12994_v43, %v12993_v47  ;;  %v8541_v43 = vrot.slane %v8527_v29, %v14805_v20  ;;  %v13014_v47 = vsel %vm12926_vm0, %v8534_v30, 0.0  ;;  %v4207_v48 = vcombine.low %v4199_v39, %v4206_v40 }
  0x7d   :  { %v13024_v25 = vsel %vm12926_vm0, %v8559_v8, 0.0  ;;  %v741_v29 = vrot.slane %v266_v12, %v14787_v4  ;;  %v745_v30 = vrot.slane %v266_v12, %v14789_v5 }
  0x7e   :  { %v12997_v57 = vadd.f32 %v12996_v51, %v12995_v52  ;;  %v8543_v52 = vcombine.high %v8541_v43, %v8541_v43  ;;  %v7915_v3 = vmul.f32 %v4207_v48, %v52_v56  ;;  %v765_v56 = vrot.slane %v266_v12, %v14803_v17 }
  0x7f   :  { %v4243_v44 = vcombine.low %v745_v30, %v749_v32 }
  0x80   :  { %v12999_v63 = vadd.f32 %v12998_v53, %v12997_v57  ;;  %v8544_v53 = vcombine.high %v7914_v42, %v7914_v42  ;;  %v13020_v9 = vsel %vm12926_vm0, %v8543_v52, 0.0  ;;  %v8561_v23 = vcombine.high %v7915_v3, %v7915_v3 }
  0x81   :  { %v8568_v24 = vrot.slane %v7915_v3, %v14805_v20  ;;  %v753_v52 = vrot.slane %v266_v12, %v14797_v14  ;;  %v4257_v58 = vrot.slane %v4243_v44, %v14805_v20  ;;  %v267_v3 = vld [vmem:[#allocation5 + $0x48] sm:$0xff]  ;;  %v56_v44 = vld [vmem:[#allocation3 + $0x88] sm:$0xff] }
  0x82   :  { %v13001_v11 = vadd.f32 %v13000_v61, %v12999_v63  ;;  %v13018_v61 = vsel %vm12926_vm0, %v8541_v43, 0.0  ;;  %v4216_v63 = vrot.slane %v4208_v49, %v14805_v20  ;;  %v4242_v43 = vcombine.low %v737_v28, %v741_v29 }
  0x83   :  { %v8576_v38 = vcombine.high %v8568_v24, %v8568_v24 }
  0x84   :  { %v13003_v21 = vadd.f32 %v13002_v7, %v13001_v11  ;;  %v8558_v7 = vrot.slane %v8544_v53, %v14805_v20  ;;  %v13022_v11 = vsel %vm12926_vm0, %v8551_v54, 0.0  ;;  %v4224_v13 = vcombine.low %v4216_v63, %v4223_v0 }
  0x85   :  { %v13032_v49 = vsel %vm12926_vm0, %v8576_v38, 0.0  ;;  %v757_v53 = vrot.slane %v266_v12, %v14799_v15  ;;  %v761_v54 = vrot.slane %v266_v12, %v14801_v16 }
  0x86   :  { %v13005_v27 = vadd.f32 %v13004_v19, %v13003_v21  ;;  %v4226_v19 = vcombine.low %v729_v60, %v733_v62  ;;  %v7916_v36 = vmul.f32 %v4224_v13, %v53_v26  ;;  %v781_v26 = vrot.slane %v267_v3, %v14791_v6 }
  0x87   :  { %v4259_v8 = vcombine.low %v753_v52, %v757_v53 }
  0x88   :  { %v13007_v33 = vadd.f32 %v13006_v22, %v13005_v27  ;;  %v8560_v22 = vcombine.high %v8558_v7, %v8558_v7  ;;  %v4240_v34 = vrot.slane %v4226_v19, %v14805_v20  ;;  %v8585_v48 = vrot.slane %v7916_v36, %v14805_v20  ;;  %v55_v19 = vld [vmem:[#allocation3 + $0x80] sm:$0xff] }
  0x8a   :  { %v13009_v41 = vadd.f32 %v13008_v31, %v13007_v33  ;;  %v13026_v31 = vsel %vm12926_vm0, %v8558_v7, 0.0  ;;  %v4233_v33 = vrot.slane %v4225_v18, %v14805_v20  ;;  %v13028_v39 = vsel %vm12926_vm0, %v8560_v22, 0.0 }
  0x8b   :  { %v8593_v62 = vcombine.high %v8585_v48, %v8585_v48  ;;  %v769_v22 = vrot.slane %v267_v3, %v14785_v2 }
  0x8c   :  { %v13011_v46 = vadd.f32 %v13010_v37, %v13009_v41  ;;  %v8575_v37 = vrot.slane %v8561_v23, %v14805_v20  ;;  %v13030_v41 = vsel %vm12926_vm0, %v8568_v24, 0.0  ;;  %v4241_v42 = vcombine.low %v4233_v33, %v4240_v34 }
  0x8d   :  { %v13040_v18 = vsel %vm12926_vm0, %v8593_v62, 0.0  ;;  %v773_v23 = vrot.slane %v267_v3, %v14787_v4  ;;  %v777_v24 = vrot.slane %v267_v3, %v14789_v5 }
  0x8e   :  { %v13013_v51 = vadd.f32 %v13012_v45, %v13011_v46  ;;  %v8577_v46 = vcombine.high %v8575_v37, %v8575_v37  ;;  %v7917_v60 = vmul.f32 %v4241_v42, %v54_v50  ;;  %v797_v50 = vrot.slane %v267_v3, %v14803_v17 }
  0x8f   :  { %v4277_v38 = vcombine.low %v777_v24, %v781_v26 }
  0x90   :  { %v13015_v57 = vadd.f32 %v13014_v47, %v13013_v51  ;;  %v8578_v47 = vcombine.high %v7916_v36, %v7916_v36  ;;  %v13036_v63 = vsel %vm12926_vm0, %v8577_v46, 0.0  ;;  %v8595_v12 = vcombine.high %v7917_v60, %v7917_v60 }
  0x91   :  { %v8602_v13 = vrot.slane %v7917_v60, %v14805_v20  ;;  %v785_v46 = vrot.slane %v267_v3, %v14797_v14  ;;  %v4291_v52 = vrot.slane %v4277_v38, %v14805_v20  ;;  %v268_v60 = vld [vmem:[#allocation5 + $0x50] sm:$0xff]  ;;  %v58_v38 = vld [vmem:[#allocation3 + $0x98] sm:$0xff] }
  0x92   :  { %v13017_v1 = vadd.f32 %v13016_v55, %v13015_v57  ;;  %v13034_v55 = vsel %vm12926_vm0, %v8575_v37, 0.0  ;;  %v4250_v57 = vrot.slane %v4242_v43, %v14805_v20  ;;  %v4276_v37 = vcombine.low %v769_v22, %v773_v23 }
  0x93   :  { %v8610_v32 = vcombine.high %v8602_v13, %v8602_v13 }
  0x94   :  { %v13019_v10 = vadd.f32 %v13018_v61, %v13017_v1  ;;  %v8592_v61 = vrot.slane %v8578_v47, %v14805_v20  ;;  %v13038_v1 = vsel %vm12926_vm0, %v8585_v48, 0.0  ;;  %v4258_v7 = vcombine.low %v4250_v57, %v4257_v58 }
  0x95   :  { %v13048_v43 = vsel %vm12926_vm0, %v8610_v32, 0.0  ;;  %v789_v47 = vrot.slane %v267_v3, %v14799_v15  ;;  %v793_v48 = vrot.slane %v267_v3, %v14801_v16 }
  0x96   :  { %v13021_v21 = vadd.f32 %v13020_v9, %v13019_v10  ;;  %v4260_v9 = vcombine.low %v761_v54, %v765_v56  ;;  %v7918_v30 = vmul.f32 %v4258_v7, %v55_v19  ;;  %v813_v19 = vrot.slane %v268_v60, %v14791_v6 }
  0x97   :  { %v4293_v62 = vcombine.low %v785_v46, %v789_v47 }
  0x98   :  { %v13023_v27 = vadd.f32 %v13022_v11, %v13021_v21  ;;  %v8594_v11 = vcombine.high %v8592_v61, %v8592_v61  ;;  %v4274_v28 = vrot.slane %v4260_v9, %v14805_v20  ;;  %v8619_v42 = vrot.slane %v7918_v30, %v14805_v20  ;;  %v57_v9 = vld [vmem:[#allocation3 + $0x90] sm:$0xff] }
  0x9a   :  { %v13025_v35 = vadd.f32 %v13024_v25, %v13023_v27  ;;  %v13042_v25 = vsel %vm12926_vm0, %v8592_v61, 0.0  ;;  %v4267_v27 = vrot.slane %v4259_v8, %v14805_v20  ;;  %v13044_v33 = vsel %vm12926_vm0, %v8594_v11, 0.0 }
  0x9b   :  { %v8627_v56 = vcombine.high %v8619_v42, %v8619_v42  ;;  %v801_v11 = vrot.slane %v268_v60, %v14785_v2 }
  0x9c   :  { %v13027_v40 = vadd.f32 %v13026_v31, %v13025_v35  ;;  %v8609_v31 = vrot.slane %v8595_v12, %v14805_v20  ;;  %v13046_v35 = vsel %vm12926_vm0, %v8602_v13, 0.0  ;;  %v4275_v36 = vcombine.low %v4267_v27, %v4274_v28 }
  0x9d   :  { %v13056_v8 = vsel %vm12926_vm0, %v8627_v56, 0.0  ;;  %v805_v12 = vrot.slane %v268_v60, %v14787_v4  ;;  %v809_v13 = vrot.slane %v268_v60, %v14789_v5 }
  0x9e   :  { %v13029_v45 = vadd.f32 %v13028_v39, %v13027_v40  ;;  %v8611_v40 = vcombine.high %v8609_v31, %v8609_v31  ;;  %v7919_v54 = vmul.f32 %v4275_v36, %v56_v44  ;;  %v829_v44 = vrot.slane %v268_v60, %v14803_v17 }
  0x9f   :  { %v4311_v32 = vcombine.low %v809_v13, %v813_v19 }
  0xa0   :  { %v13031_v51 = vadd.f32 %v13030_v41, %v13029_v45  ;;  %v8612_v41 = vcombine.high %v7918_v30, %v7918_v30  ;;  %v13052_v57 = vsel %vm12926_vm0, %v8611_v40, 0.0  ;;  %v8629_v3 = vcombine.high %v7919_v54, %v7919_v54 }
  0xa1   :  { %v8636_v7 = vrot.slane %v7919_v54, %v14805_v20  ;;  %v817_v40 = vrot.slane %v268_v60, %v14797_v14  ;;  %v4325_v46 = vrot.slane %v4311_v32, %v14805_v20  ;;  %v269_v54 = vld [vmem:[#allocation5 + $0x58] sm:$0xff] }
  0xa2   :  { %v13033_v59 = vadd.f32 %v13032_v49, %v13031_v51  ;;  %v13050_v49 = vsel %vm12926_vm0, %v8609_v31, 0.0  ;;  %v4284_v51 = vrot.slane %v4276_v37, %v14805_v20  ;;  %v4310_v31 = vcombine.low %v801_v11, %v805_v12  ;;  %v60_v32 = vld [vmem:[#allocation3 + $0xa8] sm:$0xff] }
  0xa3   :  { %v8644_v26 = vcombine.high %v8636_v7, %v8636_v7 }
  0xa4   :  { %v13035_v0 = vadd.f32 %v13034_v55, %v13033_v59  ;;  %v8626_v55 = vrot.slane %v8612_v41, %v14805_v20  ;;  %v13054_v59 = vsel %vm12926_vm0, %v8619_v42, 0.0  ;;  %v4292_v61 = vcombine.low %v4284_v51, %v4291_v52 }
  0xa5   :  { %v13064_v37 = vsel %vm12926_vm0, %v8644_v26, 0.0  ;;  %v821_v41 = vrot.slane %v268_v60, %v14799_v15  ;;  %v825_v42 = vrot.slane %v268_v60, %v14801_v16 }
  0xa6   :  { %v13037_v10 = vadd.f32 %v13036_v63, %v13035_v0  ;;  %v4294_v63 = vcombine.low %v793_v48, %v797_v50  ;;  %v7920_v24 = vmul.f32 %v4292_v61, %v57_v9  ;;  %v845_v9 = vrot.slane %v269_v54, %v14791_v6 }
  0xa7   :  { %v4327_v56 = vcombine.low %v817_v40, %v821_v41 }
  0xa8   :  { %v13039_v21 = vadd.f32 %v13038_v1, %v13037_v10  ;;  %v8628_v1 = vcombine.high %v8626_v55, %v8626_v55  ;;  %v4308_v22 = vrot.slane %v4294_v63, %v14805_v20  ;;  %v8653_v36 = vrot.slane %v7920_v24, %v14805_v20  ;;  %v59_v63 = vld [vmem:[#allocation3 + $0xa0] sm:$0xff] }
  0xaa   :  { %v13041_v29 = vadd.f32 %v13040_v18, %v13039_v21  ;;  %v13058_v18 = vsel %vm12926_vm0, %v8626_v55, 0.0  ;;  %v4301_v21 = vrot.slane %v4293_v62, %v14805_v20  ;;  %v13060_v27 = vsel %vm12926_vm0, %v8628_v1, 0.0 }
  0xab   :  { %v8661_v50 = vcombine.high %v8653_v36, %v8653_v36  ;;  %v833_v1 = vrot.slane %v269_v54, %v14785_v2 }
  0xac   :  { %v13043_v34 = vadd.f32 %v13042_v25, %v13041_v29  ;;  %v8643_v25 = vrot.slane %v8629_v3, %v14805_v20  ;;  %v13062_v29 = vsel %vm12926_vm0, %v8636_v7, 0.0  ;;  %v4309_v30 = vcombine.low %v4301_v21, %v4308_v22 }
  0xad   :  { %v13072_v62 = vsel %vm12926_vm0, %v8661_v50, 0.0  ;;  %v837_v3 = vrot.slane %v269_v54, %v14787_v4  ;;  %v841_v7 = vrot.slane %v269_v54, %v14789_v5 }
  0xae   :  { %v13045_v39 = vadd.f32 %v13044_v33, %v13043_v34  ;;  %v8645_v34 = vcombine.high %v8643_v25, %v8643_v25  ;;  %v7921_v48 = vmul.f32 %v4309_v30, %v58_v38  ;;  %v861_v38 = vrot.slane %v269_v54, %v14803_v17 }
  0xaf   :  { %v4345_v26 = vcombine.low %v841_v7, %v845_v9 }
  0xb0   :  { %v13047_v45 = vadd.f32 %v13046_v35, %v13045_v39  ;;  %v8646_v35 = vcombine.high %v7920_v24, %v7920_v24  ;;  %v13068_v51 = vsel %vm12926_vm0, %v8645_v34, 0.0  ;;  %v8663_v60 = vcombine.high %v7921_v48, %v7921_v48 }
  0xb1   :  { %v8670_v61 = vrot.slane %v7921_v48, %v14805_v20  ;;  %v849_v34 = vrot.slane %v269_v54, %v14797_v14  ;;  %v4359_v40 = vrot.slane %v4345_v26, %v14805_v20  ;;  %v270_v48 = vld [vmem:[#allocation5 + $0x60] sm:$0xff] }
  0xb2   :  { %v13049_v53 = vadd.f32 %v13048_v43, %v13047_v45  ;;  %v13066_v43 = vsel %vm12926_vm0, %v8643_v25, 0.0  ;;  %v4318_v45 = vrot.slane %v4310_v31, %v14805_v20  ;;  %v4344_v25 = vcombine.low %v833_v1, %v837_v3  ;;  %v62_v26 = vld [vmem:[#allocation3 + $0xb8] sm:$0xff] }
  0xb3   :  { %v8678_v19 = vcombine.high %v8670_v61, %v8670_v61 }
  0xb4   :  { %v13051_v58 = vadd.f32 %v13050_v49, %v13049_v53  ;;  %v8660_v49 = vrot.slane %v8646_v35, %v14805_v20  ;;  %v13070_v53 = vsel %vm12926_vm0, %v8653_v36, 0.0  ;;  %v4326_v55 = vcombine.low %v4318_v45, %v4325_v46 }
  0xb5   :  { %v13080_v31 = vsel %vm12926_vm0, %v8678_v19, 0.0  ;;  %v853_v35 = vrot.slane %v269_v54, %v14799_v15  ;;  %v857_v36 = vrot.slane %v269_v54, %v14801_v16 }
  0xb6   :  { %v13053_v0 = vadd.f32 %v13052_v57, %v13051_v58  ;;  %v4328_v57 = vcombine.low %v825_v42, %v829_v44  ;;  %v7922_v13 = vmul.f32 %v4326_v55, %v59_v63  ;;  %v877_v63 = vrot.slane %v270_v48, %v14791_v6 }
  0xb7   :  { %v4361_v50 = vcombine.low %v849_v34, %v853_v35 }
  0xb8   :  { %v13055_v10 = vadd.f32 %v13054_v59, %v13053_v0  ;;  %v8662_v59 = vcombine.high %v8660_v49, %v8660_v49  ;;  %v4342_v11 = vrot.slane %v4328_v57, %v14805_v20  ;;  %v8687_v30 = vrot.slane %v7922_v13, %v14805_v20  ;;  %v61_v57 = vld [vmem:[#allocation3 + $0xb0] sm:$0xff] }
  0xba   :  { %v13057_v23 = vadd.f32 %v13056_v8, %v13055_v10  ;;  %v13074_v8 = vsel %vm12926_vm0, %v8660_v49, 0.0  ;;  %v4335_v10 = vrot.slane %v4327_v56, %v14805_v20  ;;  %v13076_v21 = vsel %vm12926_vm0, %v8662_v59, 0.0 }
  0xbb   :  { %v8695_v44 = vcombine.high %v8687_v30, %v8687_v30  ;;  %v865_v59 = vrot.slane %v270_v48, %v14785_v2 }
  0xbc   :  { %v13059_v28 = vadd.f32 %v13058_v18, %v13057_v23  ;;  %v8677_v18 = vrot.slane %v8663_v60, %v14805_v20  ;;  %v13078_v23 = vsel %vm12926_vm0, %v8670_v61, 0.0  ;;  %v4343_v24 = vcombine.low %v4335_v10, %v4342_v11 }
  0xbd   :  { %v13088_v56 = vsel %vm12926_vm0, %v8695_v44, 0.0  ;;  %v869_v60 = vrot.slane %v270_v48, %v14787_v4  ;;  %v873_v61 = vrot.slane %v270_v48, %v14789_v5 }
  0xbe   :  { %v13061_v33 = vadd.f32 %v13060_v27, %v13059_v28  ;;  %v8679_v28 = vcombine.high %v8677_v18, %v8677_v18  ;;  %v7923_v42 = vmul.f32 %v4343_v24, %v60_v32  ;;  %v893_v32 = vrot.slane %v270_v48, %v14803_v17 }
  0xbf   :  { %v4379_v19 = vcombine.low %v873_v61, %v877_v63 }
  0xc0   :  { %v13063_v39 = vadd.f32 %v13062_v29, %v13061_v33  ;;  %v8680_v29 = vcombine.high %v7922_v13, %v7922_v13  ;;  %v13084_v45 = vsel %vm12926_vm0, %v8679_v28, 0.0  ;;  %v8697_v54 = vcombine.high %v7923_v42, %v7923_v42 }
  0xc1   :  { %v8704_v55 = vrot.slane %v7923_v42, %v14805_v20  ;;  %v881_v28 = vrot.slane %v270_v48, %v14797_v14  ;;  %v4393_v34 = vrot.slane %v4379_v19, %v14805_v20  ;;  %v271_v42 = vld [vmem:[#allocation5 + $0x68] sm:$0xff]  ;;  %v64_v19 = vld [vmem:[#allocation3 + $0xc8] sm:$0xff] }
  0xc2   :  { %v13065_v47 = vadd.f32 %v13064_v37, %v13063_v39  ;;  %v13082_v37 = vsel %vm12926_vm0, %v8677_v18, 0.0  ;;  %v4352_v39 = vrot.slane %v4344_v25, %v14805_v20  ;;  %v4378_v18 = vcombine.low %v865_v59, %v869_v60 }
  0xc3   :  { %v8712_v9 = vcombine.high %v8704_v55, %v8704_v55 }
  0xc4   :  { %v13067_v52 = vadd.f32 %v13066_v43, %v13065_v47  ;;  %v8694_v43 = vrot.slane %v8680_v29, %v14805_v20  ;;  %v13086_v47 = vsel %vm12926_vm0, %v8687_v30, 0.0  ;;  %v4360_v49 = vcombine.low %v4352_v39, %v4359_v40 }
  0xc5   :  { %v13096_v25 = vsel %vm12926_vm0, %v8712_v9, 0.0  ;;  %v885_v29 = vrot.slane %v270_v48, %v14799_v15  ;;  %v889_v30 = vrot.slane %v270_v48, %v14801_v16 }
  0xc6   :  { %v13069_v58 = vadd.f32 %v13068_v51, %v13067_v52  ;;  %v4362_v51 = vcombine.low %v857_v36, %v861_v38  ;;  %v7924_v7 = vmul.f32 %v4360_v49, %v61_v57  ;;  %v909_v57 = vrot.slane %v271_v42, %v14791_v6 }
  0xc7   :  { %v4395_v44 = vcombine.low %v881_v28, %v885_v29 }
  0xc8   :  { %v13071_v0 = vadd.f32 %v13070_v53, %v13069_v58  ;;  %v8696_v53 = vcombine.high %v8694_v43, %v8694_v43  ;;  %v4376_v1 = vrot.slane %v4362_v51, %v14805_v20  ;;  %v8721_v24 = vrot.slane %v7924_v7, %v14805_v20  ;;  %v63_v51 = vld [vmem:[#allocation3 + $0xc0] sm:$0xff] }
  0xca   :  { %v13073_v12 = vadd.f32 %v13072_v62, %v13071_v0  ;;  %v13090_v62 = vsel %vm12926_vm0, %v8694_v43, 0.0  ;;  %v4369_v0 = vrot.slane %v4361_v50, %v14805_v20  ;;  %v13092_v10 = vsel %vm12926_vm0, %v8696_v53, 0.0 }
  0xcb   :  { %v8729_v38 = vcombine.high %v8721_v24, %v8721_v24  ;;  %v897_v53 = vrot.slane %v271_v42, %v14785_v2 }
  0xcc   :  { %v13075_v22 = vadd.f32 %v13074_v8, %v13073_v12  ;;  %v8711_v8 = vrot.slane %v8697_v54, %v14805_v20  ;;  %v13094_v12 = vsel %vm12926_vm0, %v8704_v55, 0.0  ;;  %v4377_v13 = vcombine.low %v4369_v0, %v4376_v1 }
  0xcd   :  { %v13104_v50 = vsel %vm12926_vm0, %v8729_v38, 0.0  ;;  %v901_v54 = vrot.slane %v271_v42, %v14787_v4  ;;  %v905_v55 = vrot.slane %v271_v42, %v14789_v5 }
  0xce   :  { %v13077_v27 = vadd.f32 %v13076_v21, %v13075_v22  ;;  %v8713_v22 = vcombine.high %v8711_v8, %v8711_v8  ;;  %v7925_v36 = vmul.f32 %v4377_v13, %v62_v26  ;;  %v925_v26 = vrot.slane %v271_v42, %v14803_v17 }
  0xcf   :  { %v4413_v9 = vcombine.low %v905_v55, %v909_v57 }
  0xd0   :  { %v13079_v33 = vadd.f32 %v13078_v23, %v13077_v27  ;;  %v8714_v23 = vcombine.high %v7924_v7, %v7924_v7  ;;  %v13100_v39 = vsel %vm12926_vm0, %v8713_v22, 0.0  ;;  %v8731_v48 = vcombine.high %v7925_v36, %v7925_v36 }
  0xd1   :  { %v8738_v49 = vrot.slane %v7925_v36, %v14805_v20  ;;  %v913_v22 = vrot.slane %v271_v42, %v14797_v14  ;;  %v4427_v28 = vrot.slane %v4413_v9, %v14805_v20  ;;  %v272_v36 = vld [vmem:[#allocation5 + $0x70] sm:$0xff]  ;;  %v66_v9 = vld [vmem:[#allocation3 + $0xd8] sm:$0xff] }
  0xd2   :  { %v13081_v41 = vadd.f32 %v13080_v31, %v13079_v33  ;;  %v13098_v31 = vsel %vm12926_vm0, %v8711_v8, 0.0  ;;  %v4386_v33 = vrot.slane %v4378_v18, %v14805_v20  ;;  %v4412_v8 = vcombine.low %v897_v53, %v901_v54 }
  0xd3   :  { %v8746_v63 = vcombine.high %v8738_v49, %v8738_v49 }
  0xd4   :  { %v13083_v46 = vadd.f32 %v13082_v37, %v13081_v41  ;;  %v8728_v37 = vrot.slane %v8714_v23, %v14805_v20  ;;  %v13102_v41 = vsel %vm12926_vm0, %v8721_v24, 0.0  ;;  %v4394_v43 = vcombine.low %v4386_v33, %v4393_v34 }
  0xd5   :  { %v13112_v18 = vsel %vm12926_vm0, %v8746_v63, 0.0  ;;  %v917_v23 = vrot.slane %v271_v42, %v14799_v15  ;;  %v921_v24 = vrot.slane %v271_v42, %v14801_v16 }
  0xd6   :  { %v13085_v52 = vadd.f32 %v13084_v45, %v13083_v46  ;;  %v4396_v45 = vcombine.low %v889_v30, %v893_v32  ;;  %v7926_v61 = vmul.f32 %v4394_v43, %v63_v51  ;;  %v941_v51 = vrot.slane %v272_v36, %v14791_v6 }
  0xd7   :  { %v4429_v38 = vcombine.low %v913_v22, %v917_v23 }
  0xd8   :  { %v13087_v58 = vadd.f32 %v13086_v47, %v13085_v52  ;;  %v8730_v47 = vcombine.high %v8728_v37, %v8728_v37  ;;  %v4410_v59 = vrot.slane %v4396_v45, %v14805_v20  ;;  %v8755_v13 = vrot.slane %v7926_v61, %v14805_v20  ;;  %v65_v45 = vld [vmem:[#allocation3 + $0xd0] sm:$0xff] }
  0xda   :  { %v13089_v3 = vadd.f32 %v13088_v56, %v13087_v58  ;;  %v13106_v56 = vsel %vm12926_vm0, %v8728_v37, 0.0  ;;  %v4403_v58 = vrot.slane %v4395_v44, %v14805_v20  ;;  %v13108_v0 = vsel %vm12926_vm0, %v8730_v47, 0.0 }
  0xdb   :  { %v8763_v32 = vcombine.high %v8755_v13, %v8755_v13  ;;  %v929_v47 = vrot.slane %v272_v36, %v14785_v2 }
  0xdc   :  { %v13091_v11 = vadd.f32 %v13090_v62, %v13089_v3  ;;  %v8745_v62 = vrot.slane %v8731_v48, %v14805_v20  ;;  %v13110_v3 = vsel %vm12926_vm0, %v8738_v49, 0.0  ;;  %v4411_v7 = vcombine.low %v4403_v58, %v4410_v59 }
  0xdd   :  { %v13120_v44 = vsel %vm12926_vm0, %v8763_v32, 0.0  ;;  %v933_v48 = vrot.slane %v272_v36, %v14787_v4  ;;  %v937_v49 = vrot.slane %v272_v36, %v14789_v5 }
  0xde   :  { %v13093_v21 = vadd.f32 %v13092_v10, %v13091_v11  ;;  %v8747_v11 = vcombine.high %v8745_v62, %v8745_v62  ;;  %v7927_v30 = vmul.f32 %v4411_v7, %v64_v19  ;;  %v957_v19 = vrot.slane %v272_v36, %v14803_v17 }
  0xdf   :  { %v4447_v63 = vcombine.low %v937_v49, %v941_v51 }
  0xe0   :  { %v13095_v27 = vadd.f32 %v13094_v12, %v13093_v21  ;;  %v8748_v12 = vcombine.high %v7926_v61, %v7926_v61  ;;  %v13116_v33 = vsel %vm12926_vm0, %v8747_v11, 0.0  ;;  %v8765_v42 = vcombine.high %v7927_v30, %v7927_v30 }
  0xe1   :  { %v8772_v43 = vrot.slane %v7927_v30, %v14805_v20  ;;  %v945_v11 = vrot.slane %v272_v36, %v14797_v14  ;;  %v4461_v22 = vrot.slane %v4447_v63, %v14805_v20  ;;  %v273_v30 = vld [vmem:[#allocation5 + $0x78] sm:$0xff] }
  0xe2   :  { %v13097_v35 = vadd.f32 %v13096_v25, %v13095_v27  ;;  %v13114_v25 = vsel %vm12926_vm0, %v8745_v62, 0.0  ;;  %v4420_v27 = vrot.slane %v4412_v8, %v14805_v20  ;;  %v4446_v62 = vcombine.low %v929_v47, %v933_v48  ;;  %v68_v63 = vld [vmem:[#allocation3 + $0xe8] sm:$0xff] }
  0xe3   :  { %v8780_v57 = vcombine.high %v8772_v43, %v8772_v43 }
  0xe4   :  { %v13099_v40 = vadd.f32 %v13098_v31, %v13097_v35  ;;  %v8762_v31 = vrot.slane %v8748_v12, %v14805_v20  ;;  %v13118_v35 = vsel %vm12926_vm0, %v8755_v13, 0.0  ;;  %v4428_v37 = vcombine.low %v4420_v27, %v4427_v28 }
  0xe5   :  { %v13128_v8 = vsel %vm12926_vm0, %v8780_v57, 0.0  ;;  %v949_v12 = vrot.slane %v272_v36, %v14799_v15  ;;  %v953_v13 = vrot.slane %v272_v36, %v14801_v16 }
  0xe6   :  { %v13101_v46 = vadd.f32 %v13100_v39, %v13099_v40  ;;  %v4430_v39 = vcombine.low %v921_v24, %v925_v26  ;;  %v7928_v55 = vmul.f32 %v4428_v37, %v65_v45  ;;  %v973_v45 = vrot.slane %v273_v30, %v14791_v6 }
  0xe7   :  { %v4463_v32 = vcombine.low %v945_v11, %v949_v12 }
  0xe8   :  { %v13103_v52 = vadd.f32 %v13102_v41, %v13101_v46  ;;  %v8764_v41 = vcombine.high %v8762_v31, %v8762_v31  ;;  %v4444_v53 = vrot.slane %v4430_v39, %v14805_v20  ;;  %v8789_v7 = vrot.slane %v7928_v55, %v14805_v20  ;;  %v67_v39 = vld [vmem:[#allocation3 + $0xe0] sm:$0xff] }
  0xea   :  { %v13105_v60 = vadd.f32 %v13104_v50, %v13103_v52  ;;  %v13122_v50 = vsel %vm12926_vm0, %v8762_v31, 0.0  ;;  %v4437_v52 = vrot.slane %v4429_v38, %v14805_v20  ;;  %v13124_v58 = vsel %vm12926_vm0, %v8764_v41, 0.0 }
  0xeb   :  { %v8797_v26 = vcombine.high %v8789_v7, %v8789_v7  ;;  %v961_v41 = vrot.slane %v273_v30, %v14785_v2 }
  0xec   :  { %v13107_v1 = vadd.f32 %v13106_v56, %v13105_v60  ;;  %v8779_v56 = vrot.slane %v8765_v42, %v14805_v20  ;;  %v13126_v60 = vsel %vm12926_vm0, %v8772_v43, 0.0  ;;  %v4445_v61 = vcombine.low %v4437_v52, %v4444_v53 }
  0xed   :  { %v13136_v38 = vsel %vm12926_vm0, %v8797_v26, 0.0  ;;  %v965_v42 = vrot.slane %v273_v30, %v14787_v4  ;;  %v969_v43 = vrot.slane %v273_v30, %v14789_v5 }
  0xee   :  { %v13109_v10 = vadd.f32 %v13108_v0, %v13107_v1  ;;  %v8781_v1 = vcombine.high %v8779_v56, %v8779_v56  ;;  %v7929_v24 = vmul.f32 %v4445_v61, %v66_v9  ;;  %v989_v9 = vrot.slane %v273_v30, %v14803_v17 }
  0xef   :  { %v4481_v57 = vcombine.low %v969_v43, %v973_v45 }
  0xf0   :  { %v13111_v21 = vadd.f32 %v13110_v3, %v13109_v10  ;;  %v8782_v3 = vcombine.high %v7928_v55, %v7928_v55  ;;  %v13132_v27 = vsel %vm12926_vm0, %v8781_v1, 0.0  ;;  %v8799_v36 = vcombine.high %v7929_v24, %v7929_v24 }
  0xf1   :  { %v8806_v37 = vrot.slane %v7929_v24, %v14805_v20  ;;  %v977_v1 = vrot.slane %v273_v30, %v14797_v14  ;;  %v4495_v11 = vrot.slane %v4481_v57, %v14805_v20  ;;  %v274_v24 = vld [vmem:[#allocation5 + $0x80] sm:$0xff] }
  0xf2   :  { %v13113_v29 = vadd.f32 %v13112_v18, %v13111_v21  ;;  %v13130_v18 = vsel %vm12926_vm0, %v8779_v56, 0.0  ;;  %v4454_v21 = vrot.slane %v4446_v62, %v14805_v20  ;;  %v4480_v56 = vcombine.low %v961_v41, %v965_v42  ;;  %v70_v57 = vld [vmem:[#allocation3 + $0xf8] sm:$0xff] }
  0xf3   :  { %v8814_v51 = vcombine.high %v8806_v37, %v8806_v37 }
  0xf4   :  { %v13115_v34 = vadd.f32 %v13114_v25, %v13113_v29  ;;  %v8796_v25 = vrot.slane %v8782_v3, %v14805_v20  ;;  %v13134_v29 = vsel %vm12926_vm0, %v8789_v7, 0.0  ;;  %v4462_v31 = vcombine.low %v4454_v21, %v4461_v22 }
  0xf5   :  { %v13144_v62 = vsel %vm12926_vm0, %v8814_v51, 0.0  ;;  %v981_v3 = vrot.slane %v273_v30, %v14799_v15  ;;  %v985_v7 = vrot.slane %v273_v30, %v14801_v16 }
  0xf6   :  { %v13117_v40 = vadd.f32 %v13116_v33, %v13115_v34  ;;  %v4464_v33 = vcombine.low %v953_v13, %v957_v19  ;;  %v7930_v49 = vmul.f32 %v4462_v31, %v67_v39  ;;  %v1005_v39 = vrot.slane %v274_v24, %v14791_v6 }
  0xf7   :  { %v4497_v26 = vcombine.low %v977_v1, %v981_v3 }
  0xf8   :  { %v13119_v46 = vadd.f32 %v13118_v35, %v13117_v40  ;;  %v8798_v35 = vcombine.high %v8796_v25, %v8796_v25  ;;  %v4478_v47 = vrot.slane %v4464_v33, %v14805_v20  ;;  %v8823_v61 = vrot.slane %v7930_v49, %v14805_v20  ;;  %v69_v33 = vld [vmem:[#allocation3 + $0xf0] sm:$0xff] }
  0xfa   :  { %v13121_v54 = vadd.f32 %v13120_v44, %v13119_v46  ;;  %v13138_v44 = vsel %vm12926_vm0, %v8796_v25, 0.0  ;;  %v4471_v46 = vrot.slane %v4463_v32, %v14805_v20  ;;  %v13140_v52 = vsel %vm12926_vm0, %v8798_v35, 0.0 }
  0xfb   :  { %v8831_v19 = vcombine.high %v8823_v61, %v8823_v61  ;;  %v993_v35 = vrot.slane %v274_v24, %v14785_v2 }
  0xfc   :  { %v13123_v59 = vadd.f32 %v13122_v50, %v13121_v54  ;;  %v8813_v50 = vrot.slane %v8799_v36, %v14805_v20  ;;  %v13142_v54 = vsel %vm12926_vm0, %v8806_v37, 0.0  ;;  %v4479_v55 = vcombine.low %v4471_v46, %v4478_v47 }
  0xfd   :  { %v13152_v32 = vsel %vm12926_vm0, %v8831_v19, 0.0  ;;  %v997_v36 = vrot.slane %v274_v24, %v14787_v4  ;;  %v1001_v37 = vrot.slane %v274_v24, %v14789_v5 }
  0xfe   :  { %v13125_v0 = vadd.f32 %v13124_v58, %v13123_v59  ;;  %v8815_v59 = vcombine.high %v8813_v50, %v8813_v50  ;;  %v7931_v13 = vmul.f32 %v4479_v55, %v68_v63  ;;  %v1021_v63 = vrot.slane %v274_v24, %v14803_v17 }
  0xff   :  { %v4515_v51 = vcombine.low %v1001_v37, %v1005_v39 }
 0x100   :  { %v13127_v10 = vadd.f32 %v13126_v60, %v13125_v0  ;;  %v8816_v60 = vcombine.high %v7930_v49, %v7930_v49  ;;  %v13148_v21 = vsel %vm12926_vm0, %v8815_v59, 0.0  ;;  %v8833_v30 = vcombine.high %v7931_v13, %v7931_v13 }
 0x101   :  { %v8840_v31 = vrot.slane %v7931_v13, %v14805_v20  ;;  %v1009_v59 = vrot.slane %v274_v24, %v14797_v14  ;;  %v4529_v1 = vrot.slane %v4515_v51, %v14805_v20  ;;  %v275_v13 = vld [vmem:[#allocation5 + $0x88] sm:$0xff]  ;;  %v72_v51 = vld [vmem:[#allocation3 + $0x108] sm:$0xff] }
 0x102   :  { %v13129_v23 = vadd.f32 %v13128_v8, %v13127_v10  ;;  %v13146_v8 = vsel %vm12926_vm0, %v8813_v50, 0.0  ;;  %v4488_v10 = vrot.slane %v4480_v56, %v14805_v20  ;;  %v4514_v50 = vcombine.low %v993_v35, %v997_v36 }
 0x103   :  { %v8848_v45 = vcombine.high %v8840_v31, %v8840_v31 }
 0x104   :  { %v13131_v28 = vadd.f32 %v13130_v18, %v13129_v23  ;;  %v8830_v18 = vrot.slane %v8816_v60, %v14805_v20  ;;  %v13150_v23 = vsel %vm12926_vm0, %v8823_v61, 0.0  ;;  %v4496_v25 = vcombine.low %v4488_v10, %v4495_v11 }
 0x105   :  { %v13160_v56 = vsel %vm12926_vm0, %v8848_v45, 0.0  ;;  %v1013_v60 = vrot.slane %v274_v24, %v14799_v15  ;;  %v1017_v61 = vrot.slane %v274_v24, %v14801_v16 }
 0x106   :  { %v13133_v34 = vadd.f32 %v13132_v27, %v13131_v28  ;;  %v4498_v27 = vcombine.low %v985_v7, %v989_v9  ;;  %v7932_v43 = vmul.f32 %v4496_v25, %v69_v33  ;;  %v1037_v33 = vrot.slane %v275_v13, %v14791_v6 }
 0x107   :  { %v4531_v19 = vcombine.low %v1009_v59, %v1013_v60 }
 0x108   :  { %v13135_v40 = vadd.f32 %v13134_v29, %v13133_v34  ;;  %v8832_v29 = vcombine.high %v8830_v18, %v8830_v18  ;;  %v4512_v41 = vrot.slane %v4498_v27, %v14805_v20  ;;  %v8857_v55 = vrot.slane %v7932_v43, %v14805_v20  ;;  %v71_v27 = vld [vmem:[#allocation3 + $0x100] sm:$0xff] }
 0x10a   :  { %v13137_v48 = vadd.f32 %v13136_v38, %v13135_v40  ;;  %v13154_v38 = vsel %vm12926_vm0, %v8830_v18, 0.0  ;;  %v4505_v40 = vrot.slane %v4497_v26, %v14805_v20  ;;  %v13156_v46 = vsel %vm12926_vm0, %v8832_v29, 0.0 }
 0x10b   :  { %v8865_v9 = vcombine.high %v8857_v55, %v8857_v55  ;;  %v1025_v29 = vrot.slane %v275_v13, %v14785_v2 }
 0x10c   :  { %v13139_v53 = vadd.f32 %v13138_v44, %v13137_v48  ;;  %v8847_v44 = vrot.slane %v8833_v30, %v14805_v20  ;;  %v13158_v48 = vsel %vm12926_vm0, %v8840_v31, 0.0  ;;  %v4513_v49 = vcombine.low %v4505_v40, %v4512_v41 }
 0x10d   :  { %v13168_v26 = vsel %vm12926_vm0, %v8865_v9, 0.0  ;;  %v1029_v30 = vrot.slane %v275_v13, %v14787_v4  ;;  %v1033_v31 = vrot.slane %v275_v13, %v14789_v5 }
 0x10e   :  { %v13141_v58 = vadd.f32 %v13140_v52, %v13139_v53  ;;  %v8849_v53 = vcombine.high %v8847_v44, %v8847_v44  ;;  %v7933_v7 = vmul.f32 %v4513_v49, %v70_v57  ;;  %v1053_v57 = vrot.slane %v275_v13, %v14803_v17 }
 0x10f   :  { %v4549_v45 = vcombine.low %v1033_v31, %v1037_v33 }
 0x110   :  { %v13143_v0 = vadd.f32 %v13142_v54, %v13141_v58  ;;  %v8850_v54 = vcombine.high %v7932_v43, %v7932_v43  ;;  %v13164_v10 = vsel %vm12926_vm0, %v8849_v53, 0.0  ;;  %v8867_v24 = vcombine.high %v7933_v7, %v7933_v7 }
 0x111   :  { %v8874_v25 = vrot.slane %v7933_v7, %v14805_v20  ;;  %v1041_v53 = vrot.slane %v275_v13, %v14797_v14  ;;  %v4563_v59 = vrot.slane %v4549_v45, %v14805_v20  ;;  %v276_v7 = vld [vmem:[#allocation5 + $0x90] sm:$0xff]  ;;  %v74_v45 = vld [vmem:[#allocation3 + $0x118] sm:$0xff] }
 0x112   :  { %v13145_v12 = vadd.f32 %v13144_v62, %v13143_v0  ;;  %v13162_v62 = vsel %vm12926_vm0, %v8847_v44, 0.0  ;;  %v4522_v0 = vrot.slane %v4514_v50, %v14805_v20  ;;  %v4548_v44 = vcombine.low %v1025_v29, %v1029_v30 }
 0x113   :  { %v8882_v39 = vcombine.high %v8874_v25, %v8874_v25 }
 0x114   :  { %v13147_v22 = vadd.f32 %v13146_v8, %v13145_v12  ;;  %v8864_v8 = vrot.slane %v8850_v54, %v14805_v20  ;;  %v13166_v12 = vsel %vm12926_vm0, %v8857_v55, 0.0  ;;  %v4530_v18 = vcombine.low %v4522_v0, %v4529_v1 }
 0x115   :  { %v13176_v50 = vsel %vm12926_vm0, %v8882_v39, 0.0  ;;  %v1045_v54 = vrot.slane %v275_v13, %v14799_v15  ;;  %v1049_v55 = vrot.slane %v275_v13, %v14801_v16 }
 0x116   :  { %v13149_v28 = vadd.f32 %v13148_v21, %v13147_v22  ;;  %v4532_v21 = vcombine.low %v1017_v61, %v1021_v63  ;;  %v7934_v37 = vmul.f32 %v4530_v18, %v71_v27  ;;  %v1069_v27 = vrot.slane %v276_v7, %v14791_v6 }
 0x117   :  { %v4565_v9 = vcombine.low %v1041_v53, %v1045_v54 }
 0x118   :  { %v13151_v34 = vadd.f32 %v13150_v23, %v13149_v28  ;;  %v8866_v23 = vcombine.high %v8864_v8, %v8864_v8  ;;  %v4546_v35 = vrot.slane %v4532_v21, %v14805_v20  ;;  %v8891_v49 = vrot.slane %v7934_v37, %v14805_v20  ;;  %v73_v21 = vld [vmem:[#allocation3 + $0x110] sm:$0xff] }
 0x11a   :  { %v13153_v42 = vadd.f32 %v13152_v32, %v13151_v34  ;;  %v13170_v32 = vsel %vm12926_vm0, %v8864_v8, 0.0  ;;  %v4539_v34 = vrot.slane %v4531_v19, %v14805_v20  ;;  %v13172_v40 = vsel %vm12926_vm0, %v8866_v23, 0.0 }
 0x11b   :  { %v8899_v63 = vcombine.high %v8891_v49, %v8891_v49  ;;  %v1057_v23 = vrot.slane %v276_v7, %v14785_v2 }
 0x11c   :  { %v13155_v47 = vadd.f32 %v13154_v38, %v13153_v42  ;;  %v8881_v38 = vrot.slane %v8867_v24, %v14805_v20  ;;  %v13174_v42 = vsel %vm12926_vm0, %v8874_v25, 0.0  ;;  %v4547_v43 = vcombine.low %v4539_v34, %v4546_v35 }
 0x11d   :  { %v13184_v19 = vsel %vm12926_vm0, %v8899_v63, 0.0  ;;  %v1061_v24 = vrot.slane %v276_v7, %v14787_v4  ;;  %v1065_v25 = vrot.slane %v276_v7, %v14789_v5 }
 0x11e   :  { %v13157_v52 = vadd.f32 %v13156_v46, %v13155_v47  ;;  %v8883_v47 = vcombine.high %v8881_v38, %v8881_v38  ;;  %v7935_v61 = vmul.f32 %v4547_v43, %v72_v51  ;;  %v1085_v51 = vrot.slane %v276_v7, %v14803_v17 }
 0x11f   :  { %v4583_v39 = vcombine.low %v1065_v25, %v1069_v27 }
 0x120   :  { %v13159_v58 = vadd.f32 %v13158_v48, %v13157_v52  ;;  %v8884_v48 = vcombine.high %v7934_v37, %v7934_v37  ;;  %v13180_v0 = vsel %vm12926_vm0, %v8883_v47, 0.0  ;;  %v8901_v13 = vcombine.high %v7935_v61, %v7935_v61 }
 0x121   :  { %v8908_v18 = vrot.slane %v7935_v61, %v14805_v20  ;;  %v1073_v47 = vrot.slane %v276_v7, %v14797_v14  ;;  %v4597_v53 = vrot.slane %v4583_v39, %v14805_v20  ;;  %v277_v61 = vld [vmem:[#allocation5 + $0x98] sm:$0xff] }
 0x122   :  { %v13161_v3 = vadd.f32 %v13160_v56, %v13159_v58  ;;  %v13178_v56 = vsel %vm12926_vm0, %v8881_v38, 0.0  ;;  %v4556_v58 = vrot.slane %v4548_v44, %v14805_v20  ;;  %v4582_v38 = vcombine.low %v1057_v23, %v1061_v24  ;;  %v76_v39 = vld [vmem:[#allocation3 + $0x128] sm:$0xff] }
 0x123   :  { %v8916_v33 = vcombine.high %v8908_v18, %v8908_v18 }
 0x124   :  { %v13163_v11 = vadd.f32 %v13162_v62, %v13161_v3  ;;  %v8898_v62 = vrot.slane %v8884_v48, %v14805_v20  ;;  %v13182_v3 = vsel %vm12926_vm0, %v8891_v49, 0.0  ;;  %v4564_v8 = vcombine.low %v4556_v58, %v4563_v59 }
 0x125   :  { %v13192_v44 = vsel %vm12926_vm0, %v8916_v33, 0.0  ;;  %v1077_v48 = vrot.slane %v276_v7, %v14799_v15  ;;  %v1081_v49 = vrot.slane %v276_v7, %v14801_v16 }
 0x126   :  { %v13165_v22 = vadd.f32 %v13164_v10, %v13163_v11  ;;  %v4566_v10 = vcombine.low %v1049_v55, %v1053_v57  ;;  %v7936_v31 = vmul.f32 %v4564_v8, %v73_v21  ;;  %v1101_v21 = vrot.slane %v277_v61, %v14791_v6 }
 0x127   :  { %v4599_v63 = vcombine.low %v1073_v47, %v1077_v48 }
 0x128   :  { %v13167_v28 = vadd.f32 %v13166_v12, %v13165_v22  ;;  %v8900_v12 = vcombine.high %v8898_v62, %v8898_v62  ;;  %v4580_v29 = vrot.slane %v4566_v10, %v14805_v20  ;;  %v8925_v43 = vrot.slane %v7936_v31, %v14805_v20  ;;  %v75_v10 = vld [vmem:[#allocation3 + $0x120] sm:$0xff] }
 0x12a   :  { %v13169_v36 = vadd.f32 %v13168_v26, %v13167_v28  ;;  %v13186_v26 = vsel %vm12926_vm0, %v8898_v62, 0.0  ;;  %v4573_v28 = vrot.slane %v4565_v9, %v14805_v20  ;;  %v13188_v34 = vsel %vm12926_vm0, %v8900_v12, 0.0 }
 0x12b   :  { %v8933_v57 = vcombine.high %v8925_v43, %v8925_v43  ;;  %v1089_v12 = vrot.slane %v277_v61, %v14785_v2 }
 0x12c   :  { %v13171_v41 = vadd.f32 %v13170_v32, %v13169_v36  ;;  %v8915_v32 = vrot.slane %v8901_v13, %v14805_v20  ;;  %v13190_v36 = vsel %vm12926_vm0, %v8908_v18, 0.0  ;;  %v4581_v37 = vcombine.low %v4573_v28, %v4580_v29 }
 0x12d   :  { %v13200_v9 = vsel %vm12926_vm0, %v8933_v57, 0.0  ;;  %v1093_v13 = vrot.slane %v277_v61, %v14787_v4  ;;  %v1097_v18 = vrot.slane %v277_v61, %v14789_v5 }
 0x12e   :  { %v13173_v46 = vadd.f32 %v13172_v40, %v13171_v41  ;;  %v8917_v41 = vcombine.high %v8915_v32, %v8915_v32  ;;  %v7937_v55 = vmul.f32 %v4581_v37, %v74_v45  ;;  %v1117_v45 = vrot.slane %v277_v61, %v14803_v17 }
 0x12f   :  { %v4617_v33 = vcombine.low %v1097_v18, %v1101_v21 }
 0x130   :  { %v13175_v52 = vadd.f32 %v13174_v42, %v13173_v46  ;;  %v8918_v42 = vcombine.high %v7936_v31, %v7936_v31  ;;  %v13196_v58 = vsel %vm12926_vm0, %v8917_v41, 0.0  ;;  %v8935_v7 = vcombine.high %v7937_v55, %v7937_v55 }
 0x131   :  { %v8942_v8 = vrot.slane %v7937_v55, %v14805_v20  ;;  %v1105_v41 = vrot.slane %v277_v61, %v14797_v14  ;;  %v4631_v47 = vrot.slane %v4617_v33, %v14805_v20  ;;  %v278_v55 = vld [vmem:[#allocation5 + $0xa0] sm:$0xff] }
 0x132   :  { %v13177_v60 = vadd.f32 %v13176_v50, %v13175_v52  ;;  %v13194_v50 = vsel %vm12926_vm0, %v8915_v32, 0.0  ;;  %v4590_v52 = vrot.slane %v4582_v38, %v14805_v20  ;;  %v4616_v32 = vcombine.low %v1089_v12, %v1093_v13  ;;  %v78_v33 = vld [vmem:[#allocation3 + $0x138] sm:$0xff] }
 0x133   :  { %v8950_v27 = vcombine.high %v8942_v8, %v8942_v8 }
 0x134   :  { %v13179_v1 = vadd.f32 %v13178_v56, %v13177_v60  ;;  %v8932_v56 = vrot.slane %v8918_v42, %v14805_v20  ;;  %v13198_v60 = vsel %vm12926_vm0, %v8925_v43, 0.0  ;;  %v4598_v62 = vcombine.low %v4590_v52, %v4597_v53 }
 0x135   :  { %v13208_v38 = vsel %vm12926_vm0, %v8950_v27, 0.0  ;;  %v1109_v42 = vrot.slane %v277_v61, %v14799_v15  ;;  %v1113_v43 = vrot.slane %v277_v61, %v14801_v16 }
 0x136   :  { %v13181_v11 = vadd.f32 %v13180_v0, %v13179_v1  ;;  %v4600_v0 = vcombine.low %v1081_v49, %v1085_v51  ;;  %v7938_v25 = vmul.f32 %v4598_v62, %v75_v10  ;;  %v1133_v10 = vrot.slane %v278_v55, %v14791_v6 }
 0x137   :  { %v4633_v57 = vcombine.low %v1105_v41, %v1109_v42 }
 0x138   :  { %v13183_v22 = vadd.f32 %v13182_v3, %v13181_v11  ;;  %v8934_v3 = vcombine.high %v8932_v56, %v8932_v56  ;;  %v4614_v23 = vrot.slane %v4600_v0, %v14805_v20  ;;  %v8959_v37 = vrot.slane %v7938_v25, %v14805_v20  ;;  %v77_v0 = vld [vmem:[#allocation3 + $0x130] sm:$0xff] }
 0x13a   :  { %v13185_v30 = vadd.f32 %v13184_v19, %v13183_v22  ;;  %v13202_v19 = vsel %vm12926_vm0, %v8932_v56, 0.0  ;;  %v4607_v22 = vrot.slane %v4599_v63, %v14805_v20  ;;  %v13204_v28 = vsel %vm12926_vm0, %v8934_v3, 0.0 }
 0x13b   :  { %v8967_v51 = vcombine.high %v8959_v37, %v8959_v37  ;;  %v1121_v3 = vrot.slane %v278_v55, %v14785_v2 }
 0x13c   :  { %v13187_v35 = vadd.f32 %v13186_v26, %v13185_v30  ;;  %v8949_v26 = vrot.slane %v8935_v7, %v14805_v20  ;;  %v13206_v30 = vsel %vm12926_vm0, %v8942_v8, 0.0  ;;  %v4615_v31 = vcombine.low %v4607_v22, %v4614_v23 }
 0x13d   :  { %v13216_v63 = vsel %vm12926_vm0, %v8967_v51, 0.0  ;;  %v1125_v7 = vrot.slane %v278_v55, %v14787_v4  ;;  %v1129_v8 = vrot.slane %v278_v55, %v14789_v5 }
 0x13e   :  { %v13189_v40 = vadd.f32 %v13188_v34, %v13187_v35  ;;  %v8951_v35 = vcombine.high %v8949_v26, %v8949_v26  ;;  %v7939_v49 = vmul.f32 %v4615_v31, %v76_v39  ;;  %v1149_v39 = vrot.slane %v278_v55, %v14803_v17 }
 0x13f   :  { %v4651_v27 = vcombine.low %v1129_v8, %v1133_v10 }
 0x140   :  { %v13191_v46 = vadd.f32 %v13190_v36, %v13189_v40  ;;  %v8952_v36 = vcombine.high %v7938_v25, %v7938_v25  ;;  %v13212_v52 = vsel %vm12926_vm0, %v8951_v35, 0.0  ;;  %v8969_v61 = vcombine.high %v7939_v49, %v7939_v49 }
 0x141   :  { %v8976_v62 = vrot.slane %v7939_v49, %v14805_v20  ;;  %v1137_v35 = vrot.slane %v278_v55, %v14797_v14  ;;  %v4665_v41 = vrot.slane %v4651_v27, %v14805_v20  ;;  %v279_v49 = vld [vmem:[#allocation5 + $0xa8] sm:$0xff]  ;;  %v80_v27 = vld [vmem:[#allocation3 + $0x148] sm:$0xff] }
 0x142   :  { %v13193_v54 = vadd.f32 %v13192_v44, %v13191_v46  ;;  %v13210_v44 = vsel %vm12926_vm0, %v8949_v26, 0.0  ;;  %v4624_v46 = vrot.slane %v4616_v32, %v14805_v20  ;;  %v4650_v26 = vcombine.low %v1121_v3, %v1125_v7 }
 0x143   :  { %v8984_v21 = vcombine.high %v8976_v62, %v8976_v62 }
 0x144   :  { %v13195_v59 = vadd.f32 %v13194_v50, %v13193_v54  ;;  %v8966_v50 = vrot.slane %v8952_v36, %v14805_v20  ;;  %v13214_v54 = vsel %vm12926_vm0, %v8959_v37, 0.0  ;;  %v4632_v56 = vcombine.low %v4624_v46, %v4631_v47 }
 0x145   :  { %v13224_v32 = vsel %vm12926_vm0, %v8984_v21, 0.0  ;;  %v1141_v36 = vrot.slane %v278_v55, %v14799_v15  ;;  %v1145_v37 = vrot.slane %v278_v55, %v14801_v16 }
 0x146   :  { %v13197_v1 = vadd.f32 %v13196_v58, %v13195_v59  ;;  %v4634_v58 = vcombine.low %v1113_v43, %v1117_v45  ;;  %v7940_v18 = vmul.f32 %v4632_v56, %v77_v0  ;;  %v1165_v0 = vrot.slane %v279_v49, %v14791_v6 }
 0x147   :  { %v4667_v51 = vcombine.low %v1137_v35, %v1141_v36 }
 0x148   :  { %v13199_v11 = vadd.f32 %v13198_v60, %v13197_v1  ;;  %v8968_v60 = vcombine.high %v8966_v50, %v8966_v50  ;;  %v4648_v12 = vrot.slane %v4634_v58, %v14805_v20  ;;  %v8993_v31 = vrot.slane %v7940_v18, %v14805_v20  ;;  %v79_v58 = vld [vmem:[#allocation3 + $0x140] sm:$0xff] }
 0x14a   :  { %v13201_v24 = vadd.f32 %v13200_v9, %v13199_v11  ;;  %v13218_v9 = vsel %vm12926_vm0, %v8966_v50, 0.0  ;;  %v4641_v11 = vrot.slane %v4633_v57, %v14805_v20  ;;  %v13220_v22 = vsel %vm12926_vm0, %v8968_v60, 0.0 }
 0x14b   :  { %v9001_v45 = vcombine.high %v8993_v31, %v8993_v31  ;;  %v1153_v60 = vrot.slane %v279_v49, %v14785_v2 }
 0x14c   :  { %v13203_v29 = vadd.f32 %v13202_v19, %v13201_v24  ;;  %v8983_v19 = vrot.slane %v8969_v61, %v14805_v20  ;;  %v13222_v24 = vsel %vm12926_vm0, %v8976_v62, 0.0  ;;  %v4649_v25 = vcombine.low %v4641_v11, %v4648_v12 }
 0x14d   :  { %v13232_v57 = vsel %vm12926_vm0, %v9001_v45, 0.0  ;;  %v1157_v61 = vrot.slane %v279_v49, %v14787_v4  ;;  %v1161_v62 = vrot.slane %v279_v49, %v14789_v5 }
 0x14e   :  { %v13205_v34 = vadd.f32 %v13204_v28, %v13203_v29  ;;  %v8985_v29 = vcombine.high %v8983_v19, %v8983_v19  ;;  %v7941_v43 = vmul.f32 %v4649_v25, %v78_v33  ;;  %v1181_v33 = vrot.slane %v279_v49, %v14803_v17 }
 0x14f   :  { %v4685_v21 = vcombine.low %v1161_v62, %v1165_v0 }
 0x150   :  { %v13207_v40 = vadd.f32 %v13206_v30, %v13205_v34  ;;  %v8986_v30 = vcombine.high %v7940_v18, %v7940_v18  ;;  %v13228_v46 = vsel %vm12926_vm0, %v8985_v29, 0.0  ;;  %v9003_v55 = vcombine.high %v7941_v43, %v7941_v43 }
 0x151   :  { %v9010_v56 = vrot.slane %v7941_v43, %v14805_v20  ;;  %v1169_v29 = vrot.slane %v279_v49, %v14797_v14  ;;  %v4699_v35 = vrot.slane %v4685_v21, %v14805_v20  ;;  %v280_v43 = vld [vmem:[#allocation5 + $0xb0] sm:$0xff]  ;;  %v82_v21 = vld [vmem:[#allocation3 + $0x158] sm:$0xff] }
 0x152   :  { %v13209_v48 = vadd.f32 %v13208_v38, %v13207_v40  ;;  %v13226_v38 = vsel %vm12926_vm0, %v8983_v19, 0.0  ;;  %v4658_v40 = vrot.slane %v4650_v26, %v14805_v20  ;;  %v4684_v19 = vcombine.low %v1153_v60, %v1157_v61 }
 0x153   :  { %v9018_v10 = vcombine.high %v9010_v56, %v9010_v56 }
 0x154   :  { %v13211_v53 = vadd.f32 %v13210_v44, %v13209_v48  ;;  %v9000_v44 = vrot.slane %v8986_v30, %v14805_v20  ;;  %v13230_v48 = vsel %vm12926_vm0, %v8993_v31, 0.0  ;;  %v4666_v50 = vcombine.low %v4658_v40, %v4665_v41 }
 0x155   :  { %v13240_v26 = vsel %vm12926_vm0, %v9018_v10, 0.0  ;;  %v1173_v30 = vrot.slane %v279_v49, %v14799_v15  ;;  %v1177_v31 = vrot.slane %v279_v49, %v14801_v16 }
 0x156   :  { %v13213_v59 = vadd.f32 %v13212_v52, %v13211_v53  ;;  %v4668_v52 = vcombine.low %v1145_v37, %v1149_v39  ;;  %v7942_v8 = vmul.f32 %v4666_v50, %v79_v58  ;;  %v1197_v58 = vrot.slane %v280_v43, %v14791_v6 }
 0x157   :  { %v4701_v45 = vcombine.low %v1169_v29, %v1173_v30 }
 0x158   :  { %v13215_v1 = vadd.f32 %v13214_v54, %v13213_v59  ;;  %v9002_v54 = vcombine.high %v9000_v44, %v9000_v44  ;;  %v4682_v3 = vrot.slane %v4668_v52, %v14805_v20  ;;  %v9027_v25 = vrot.slane %v7942_v8, %v14805_v20  ;;  %v81_v52 = vld [vmem:[#allocation3 + $0x150] sm:$0xff] }
 0x15a   :  { %v13217_v13 = vadd.f32 %v13216_v63, %v13215_v1  ;;  %v13234_v63 = vsel %vm12926_vm0, %v9000_v44, 0.0  ;;  %v4675_v1 = vrot.slane %v4667_v51, %v14805_v20  ;;  %v13236_v11 = vsel %vm12926_vm0, %v9002_v54, 0.0 }
 0x15b   :  { %v9035_v39 = vcombine.high %v9027_v25, %v9027_v25  ;;  %v1185_v54 = vrot.slane %v280_v43, %v14785_v2 }
 0x15c   :  { %v13219_v23 = vadd.f32 %v13218_v9, %v13217_v13  ;;  %v9017_v9 = vrot.slane %v9003_v55, %v14805_v20  ;;  %v13238_v13 = vsel %vm12926_vm0, %v9010_v56, 0.0  ;;  %v4683_v18 = vcombine.low %v4675_v1, %v4682_v3 }
 0x15d   :  { %v13248_v51 = vsel %vm12926_vm0, %v9035_v39, 0.0  ;;  %v1189_v55 = vrot.slane %v280_v43, %v14787_v4  ;;  %v1193_v56 = vrot.slane %v280_v43, %v14789_v5 }
 0x15e   :  { %v13221_v28 = vadd.f32 %v13220_v22, %v13219_v23  ;;  %v9019_v23 = vcombine.high %v9017_v9, %v9017_v9  ;;  %v7943_v37 = vmul.f32 %v4683_v18, %v80_v27  ;;  %v1213_v27 = vrot.slane %v280_v43, %v14803_v17 }
 0x15f   :  { %v4719_v10 = vcombine.low %v1193_v56, %v1197_v58 }
 0x160   :  { %v13223_v34 = vadd.f32 %v13222_v24, %v13221_v28  ;;  %v9020_v24 = vcombine.high %v7942_v8, %v7942_v8  ;;  %v13244_v40 = vsel %vm12926_vm0, %v9019_v23, 0.0  ;;  %v9037_v49 = vcombine.high %v7943_v37, %v7943_v37 }
 0x161   :  { %v9044_v50 = vrot.slane %v7943_v37, %v14805_v20  ;;  %v1201_v23 = vrot.slane %v280_v43, %v14797_v14  ;;  %v4733_v29 = vrot.slane %v4719_v10, %v14805_v20  ;;  %v281_v37 = vld [vmem:[#allocation5 + $0xb8] sm:$0xff] }
 0x162   :  { %v13225_v42 = vadd.f32 %v13224_v32, %v13223_v34  ;;  %v13242_v32 = vsel %vm12926_vm0, %v9017_v9, 0.0  ;;  %v4692_v34 = vrot.slane %v4684_v19, %v14805_v20  ;;  %v4718_v9 = vcombine.low %v1185_v54, %v1189_v55  ;;  %v84_v10 = vld [vmem:[#allocation3 + $0x168] sm:$0xff] }
 0x163   :  { %v9052_v0 = vcombine.high %v9044_v50, %v9044_v50 }
 0x164   :  { %v13227_v47 = vadd.f32 %v13226_v38, %v13225_v42  ;;  %v9034_v38 = vrot.slane %v9020_v24, %v14805_v20  ;;  %v13246_v42 = vsel %vm12926_vm0, %v9027_v25, 0.0  ;;  %v4700_v44 = vcombine.low %v4692_v34, %v4699_v35 }
 0x165   :  { %v13256_v19 = vsel %vm12926_vm0, %v9052_v0, 0.0  ;;  %v1205_v24 = vrot.slane %v280_v43, %v14799_v15  ;;  %v1209_v25 = vrot.slane %v280_v43, %v14801_v16 }
 0x166   :  { %v13229_v53 = vadd.f32 %v13228_v46, %v13227_v47  ;;  %v4702_v46 = vcombine.low %v1177_v31, %v1181_v33  ;;  %v7944_v62 = vmul.f32 %v4700_v44, %v81_v52  ;;  %v1229_v52 = vrot.slane %v281_v37, %v14791_v6 }
 0x167   :  { %v4735_v39 = vcombine.low %v1201_v23, %v1205_v24 }
 0x168   :  { %v13231_v59 = vadd.f32 %v13230_v48, %v13229_v53  ;;  %v9036_v48 = vcombine.high %v9034_v38, %v9034_v38  ;;  %v4716_v60 = vrot.slane %v4702_v46, %v14805_v20  ;;  %v9061_v18 = vrot.slane %v7944_v62, %v14805_v20  ;;  %v83_v46 = vld [vmem:[#allocation3 + $0x160] sm:$0xff] }
 0x16a   :  { %v13233_v7 = vadd.f32 %v13232_v57, %v13231_v59  ;;  %v13250_v57 = vsel %vm12926_vm0, %v9034_v38, 0.0  ;;  %v4709_v59 = vrot.slane %v4701_v45, %v14805_v20  ;;  %v13252_v1 = vsel %vm12926_vm0, %v9036_v48, 0.0 }
 0x16b   :  { %v9069_v33 = vcombine.high %v9061_v18, %v9061_v18  ;;  %v1217_v48 = vrot.slane %v281_v37, %v14785_v2 }
 0x16c   :  { %v13235_v12 = vadd.f32 %v13234_v63, %v13233_v7  ;;  %v9051_v63 = vrot.slane %v9037_v49, %v14805_v20  ;;  %v13254_v7 = vsel %vm12926_vm0, %v9044_v50, 0.0  ;;  %v4717_v8 = vcombine.low %v4709_v59, %v4716_v60 }
 0x16d   :  { %v13264_v45 = vsel %vm12926_vm0, %v9069_v33, 0.0  ;;  %v1221_v49 = vrot.slane %v281_v37, %v14787_v4  ;;  %v1225_v50 = vrot.slane %v281_v37, %v14789_v5 }
 0x16e   :  { %v13237_v22 = vadd.f32 %v13236_v11, %v13235_v12  ;;  %v9053_v12 = vcombine.high %v9051_v63, %v9051_v63  ;;  %v7945_v31 = vmul.f32 %v4717_v8, %v82_v21  ;;  %v1245_v21 = vrot.slane %v281_v37, %v14803_v17 }
 0x16f   :  { %v4753_v0 = vcombine.low %v1225_v50, %v1229_v52 }
 0x170   :  { %v13239_v28 = vadd.f32 %v13238_v13, %v13237_v22  ;;  %v9054_v13 = vcombine.high %v7944_v62, %v7944_v62  ;;  %v13260_v34 = vsel %vm12926_vm0, %v9053_v12, 0.0  ;;  %v9071_v43 = vcombine.high %v7945_v31, %v7945_v31 }
 0x171   :  { %v9078_v44 = vrot.slane %v7945_v31, %v14805_v20  ;;  %v1233_v12 = vrot.slane %v281_v37, %v14797_v14  ;;  %v4767_v23 = vrot.slane %v4753_v0, %v14805_v20  ;;  %v282_v31 = vld [vmem:[#allocation5 + $0xc0] sm:$0xff] }
 0x172   :  { %v13241_v36 = vadd.f32 %v13240_v26, %v13239_v28  ;;  %v13258_v26 = vsel %vm12926_vm0, %v9051_v63, 0.0  ;;  %v4726_v28 = vrot.slane %v4718_v9, %v14805_v20  ;;  %v4752_v63 = vcombine.low %v1217_v48, %v1221_v49  ;;  %v86_v0 = vld [vmem:[#allocation3 + $0x178] sm:$0xff] }
 0x173   :  { %v9086_v58 = vcombine.high %v9078_v44, %v9078_v44 }
 0x174   :  { %v13243_v41 = vadd.f32 %v13242_v32, %v13241_v36  ;;  %v9068_v32 = vrot.slane %v9054_v13, %v14805_v20  ;;  %v13262_v36 = vsel %vm12926_vm0, %v9061_v18, 0.0  ;;  %v4734_v38 = vcombine.low %v4726_v28, %v4733_v29 }
 0x175   :  { %v13272_v9 = vsel %vm12926_vm0, %v9086_v58, 0.0  ;;  %v1237_v13 = vrot.slane %v281_v37, %v14799_v15  ;;  %v1241_v18 = vrot.slane %v281_v37, %v14801_v16 }
 0x176   :  { %v13245_v47 = vadd.f32 %v13244_v40, %v13243_v41  ;;  %v4736_v40 = vcombine.low %v1209_v25, %v1213_v27  ;;  %v7946_v56 = vmul.f32 %v4734_v38, %v83_v46  ;;  %v1261_v46 = vrot.slane %v282_v31, %v14791_v6 }
 0x177   :  { %v4769_v33 = vcombine.low %v1233_v12, %v1237_v13 }
 0x178   :  { %v13247_v53 = vadd.f32 %v13246_v42, %v13245_v47  ;;  %v9070_v42 = vcombine.high %v9068_v32, %v9068_v32  ;;  %v4750_v54 = vrot.slane %v4736_v40, %v14805_v20  ;;  %v9095_v8 = vrot.slane %v7946_v56, %v14805_v20  ;;  %v85_v40 = vld [vmem:[#allocation3 + $0x170] sm:$0xff] }
 0x17a   :  { %v13249_v61 = vadd.f32 %v13248_v51, %v13247_v53  ;;  %v13266_v51 = vsel %vm12926_vm0, %v9068_v32, 0.0  ;;  %v4743_v53 = vrot.slane %v4735_v39, %v14805_v20  ;;  %v13268_v59 = vsel %vm12926_vm0, %v9070_v42, 0.0 }
 0x17b   :  { %v9103_v27 = vcombine.high %v9095_v8, %v9095_v8  ;;  %v1249_v42 = vrot.slane %v282_v31, %v14785_v2 }
 0x17c   :  { %v13251_v3 = vadd.f32 %v13250_v57, %v13249_v61  ;;  %v9085_v57 = vrot.slane %v9071_v43, %v14805_v20  ;;  %v13270_v61 = vsel %vm12926_vm0, %v9078_v44, 0.0  ;;  %v4751_v62 = vcombine.low %v4743_v53, %v4750_v54 }
 0x17d   :  { %v13280_v39 = vsel %vm12926_vm0, %v9103_v27, 0.0  ;;  %v1253_v43 = vrot.slane %v282_v31, %v14787_v4  ;;  %v1257_v44 = vrot.slane %v282_v31, %v14789_v5 }
 0x17e   :  { %v13253_v11 = vadd.f32 %v13252_v1, %v13251_v3  ;;  %v9087_v3 = vcombine.high %v9085_v57, %v9085_v57  ;;  %v7947_v25 = vmul.f32 %v4751_v62, %v84_v10  ;;  %v1277_v10 = vrot.slane %v282_v31, %v14803_v17 }
 0x17f   :  { %v4787_v58 = vcombine.low %v1257_v44, %v1261_v46 }
 0x180   :  { %v13255_v22 = vadd.f32 %v13254_v7, %v13253_v11  ;;  %v9088_v7 = vcombine.high %v7946_v56, %v7946_v56  ;;  %v13276_v28 = vsel %vm12926_vm0, %v9087_v3, 0.0  ;;  %v9105_v37 = vcombine.high %v7947_v25, %v7947_v25 }
 0x181   :  { %v9112_v38 = vrot.slane %v7947_v25, %v14805_v20  ;;  %v1265_v3 = vrot.slane %v282_v31, %v14797_v14  ;;  %v4801_v12 = vrot.slane %v4787_v58, %v14805_v20  ;;  %v283_v25 = vld [vmem:[#allocation5 + $0xc8] sm:$0xff]  ;;  %v88_v58 = vld [vmem:[#allocation3 + $0x188] sm:$0xff] }
 0x182   :  { %v13257_v30 = vadd.f32 %v13256_v19, %v13255_v22  ;;  %v13274_v19 = vsel %vm12926_vm0, %v9085_v57, 0.0  ;;  %v4760_v22 = vrot.slane %v4752_v63, %v14805_v20  ;;  %v4786_v57 = vcombine.low %v1249_v42, %v1253_v43 }
 0x183   :  { %v9120_v52 = vcombine.high %v9112_v38, %v9112_v38 }
 0x184   :  { %v13259_v35 = vadd.f32 %v13258_v26, %v13257_v30  ;;  %v9102_v26 = vrot.slane %v9088_v7, %v14805_v20  ;;  %v13278_v30 = vsel %vm12926_vm0, %v9095_v8, 0.0  ;;  %v4768_v32 = vcombine.low %v4760_v22, %v4767_v23 }
 0x185   :  { %v13288_v63 = vsel %vm12926_vm0, %v9120_v52, 0.0  ;;  %v1269_v7 = vrot.slane %v282_v31, %v14799_v15  ;;  %v1273_v8 = vrot.slane %v282_v31, %v14801_v16 }
 0x186   :  { %v13261_v41 = vadd.f32 %v13260_v34, %v13259_v35  ;;  %v4770_v34 = vcombine.low %v1241_v18, %v1245_v21  ;;  %v7948_v50 = vmul.f32 %v4768_v32, %v85_v40  ;;  %v1293_v40 = vrot.slane %v283_v25, %v14791_v6 }
 0x187   :  { %v4803_v27 = vcombine.low %v1265_v3, %v1269_v7 }
 0x188   :  { %v13263_v47 = vadd.f32 %v13262_v36, %v13261_v41  ;;  %v9104_v36 = vcombine.high %v9102_v26, %v9102_v26  ;;  %v4784_v48 = vrot.slane %v4770_v34, %v14805_v20  ;;  %v9129_v62 = vrot.slane %v7948_v50, %v14805_v20  ;;  %v87_v34 = vld [vmem:[#allocation3 + $0x180] sm:$0xff] }
 0x18a   :  { %v13265_v55 = vadd.f32 %v13264_v45, %v13263_v47  ;;  %v13282_v45 = vsel %vm12926_vm0, %v9102_v26, 0.0  ;;  %v4777_v47 = vrot.slane %v4769_v33, %v14805_v20  ;;  %v13284_v53 = vsel %vm12926_vm0, %v9104_v36, 0.0 }
 0x18b   :  { %v9137_v21 = vcombine.high %v9129_v62, %v9129_v62  ;;  %v1281_v36 = vrot.slane %v283_v25, %v14785_v2 }
 0x18c   :  { %v13267_v60 = vadd.f32 %v13266_v51, %v13265_v55  ;;  %v9119_v51 = vrot.slane %v9105_v37, %v14805_v20  ;;  %v13286_v55 = vsel %vm12926_vm0, %v9112_v38, 0.0  ;;  %v4785_v56 = vcombine.low %v4777_v47, %v4784_v48 }
 0x18d   :  { %v13296_v33 = vsel %vm12926_vm0, %v9137_v21, 0.0  ;;  %v1285_v37 = vrot.slane %v283_v25, %v14787_v4  ;;  %v1289_v38 = vrot.slane %v283_v25, %v14789_v5 }
 0x18e   :  { %v13269_v1 = vadd.f32 %v13268_v59, %v13267_v60  ;;  %v9121_v60 = vcombine.high %v9119_v51, %v9119_v51  ;;  %v7949_v18 = vmul.f32 %v4785_v56, %v86_v0  ;;  %v1309_v0 = vrot.slane %v283_v25, %v14803_v17 }
 0x18f   :  { %v4821_v52 = vcombine.low %v1289_v38, %v1293_v40 }
 0x190   :  { %v13271_v11 = vadd.f32 %v13270_v61, %v13269_v1  ;;  %v9122_v61 = vcombine.high %v7948_v50, %v7948_v50  ;;  %v13292_v22 = vsel %vm12926_vm0, %v9121_v60, 0.0  ;;  %v9139_v31 = vcombine.high %v7949_v18, %v7949_v18 }
 0x191   :  { %v9146_v32 = vrot.slane %v7949_v18, %v14805_v20  ;;  %v1297_v60 = vrot.slane %v283_v25, %v14797_v14  ;;  %v4835_v3 = vrot.slane %v4821_v52, %v14805_v20  ;;  %v284_v18 = vld [vmem:[#allocation5 + $0xd0] sm:$0xff]  ;;  %v90_v52 = vld [vmem:[#allocation3 + $0x198] sm:$0xff] }
 0x192   :  { %v13273_v24 = vadd.f32 %v13272_v9, %v13271_v11  ;;  %v13290_v9 = vsel %vm12926_vm0, %v9119_v51, 0.0  ;;  %v4794_v11 = vrot.slane %v4786_v57, %v14805_v20  ;;  %v4820_v51 = vcombine.low %v1281_v36, %v1285_v37 }
 0x193   :  { %v9154_v46 = vcombine.high %v9146_v32, %v9146_v32 }
 0x194   :  { %v13275_v29 = vadd.f32 %v13274_v19, %v13273_v24  ;;  %v9136_v19 = vrot.slane %v9122_v61, %v14805_v20  ;;  %v13294_v24 = vsel %vm12926_vm0, %v9129_v62, 0.0  ;;  %v4802_v26 = vcombine.low %v4794_v11, %v4801_v12 }
 0x195   :  { %v13304_v57 = vsel %vm12926_vm0, %v9154_v46, 0.0  ;;  %v1301_v61 = vrot.slane %v283_v25, %v14799_v15  ;;  %v1305_v62 = vrot.slane %v283_v25, %v14801_v16 }
 0x196   :  { %v13277_v35 = vadd.f32 %v13276_v28, %v13275_v29  ;;  %v4804_v28 = vcombine.low %v1273_v8, %v1277_v10  ;;  %v7950_v44 = vmul.f32 %v4802_v26, %v87_v34  ;;  %v1325_v34 = vrot.slane %v284_v18, %v14791_v6 }
 0x197   :  { %v4837_v21 = vcombine.low %v1297_v60, %v1301_v61 }
 0x198   :  { %v13279_v41 = vadd.f32 %v13278_v30, %v13277_v35  ;;  %v9138_v30 = vcombine.high %v9136_v19, %v9136_v19  ;;  %v4818_v42 = vrot.slane %v4804_v28, %v14805_v20  ;;  %v9163_v56 = vrot.slane %v7950_v44, %v14805_v20  ;;  %v89_v28 = vld [vmem:[#allocation3 + $0x190] sm:$0xff] }
 0x19a   :  { %v13281_v49 = vadd.f32 %v13280_v39, %v13279_v41  ;;  %v13298_v39 = vsel %vm12926_vm0, %v9136_v19, 0.0  ;;  %v4811_v41 = vrot.slane %v4803_v27, %v14805_v20  ;;  %v13300_v47 = vsel %vm12926_vm0, %v9138_v30, 0.0 }
 0x19b   :  { %v9171_v10 = vcombine.high %v9163_v56, %v9163_v56  ;;  %v1313_v30 = vrot.slane %v284_v18, %v14785_v2 }
 0x19c   :  { %v13283_v54 = vadd.f32 %v13282_v45, %v13281_v49  ;;  %v9153_v45 = vrot.slane %v9139_v31, %v14805_v20  ;;  %v13302_v49 = vsel %vm12926_vm0, %v9146_v32, 0.0  ;;  %v4819_v50 = vcombine.low %v4811_v41, %v4818_v42 }
 0x19d   :  { %v13312_v27 = vsel %vm12926_vm0, %v9171_v10, 0.0  ;;  %v1317_v31 = vrot.slane %v284_v18, %v14787_v4  ;;  %v1321_v32 = vrot.slane %v284_v18, %v14789_v5 }
 0x19e   :  { %v13285_v59 = vadd.f32 %v13284_v53, %v13283_v54  ;;  %v9155_v54 = vcombine.high %v9153_v45, %v9153_v45  ;;  %v7951_v8 = vmul.f32 %v4819_v50, %v88_v58  ;;  %v1341_v58 = vrot.slane %v284_v18, %v14803_v17 }
 0x19f   :  { %v4855_v46 = vcombine.low %v1321_v32, %v1325_v34 }
 0x1a0   :  { %v13287_v1 = vadd.f32 %v13286_v55, %v13285_v59  ;;  %v9156_v55 = vcombine.high %v7950_v44, %v7950_v44  ;;  %v13308_v11 = vsel %vm12926_vm0, %v9155_v54, 0.0  ;;  %v9173_v25 = vcombine.high %v7951_v8, %v7951_v8 }
 0x1a1   :  { %v9180_v26 = vrot.slane %v7951_v8, %v14805_v20  ;;  %v1329_v54 = vrot.slane %v284_v18, %v14797_v14  ;;  %v4869_v60 = vrot.slane %v4855_v46, %v14805_v20  ;;  %v285_v8 = vld [vmem:[#allocation5 + $0xd8] sm:$0xff] }
 0x1a2   :  { %v13289_v13 = vadd.f32 %v13288_v63, %v13287_v1  ;;  %v13306_v63 = vsel %vm12926_vm0, %v9153_v45, 0.0  ;;  %v4828_v1 = vrot.slane %v4820_v51, %v14805_v20  ;;  %v4854_v45 = vcombine.low %v1313_v30, %v1317_v31  ;;  %v92_v46 = vld [vmem:[#allocation3 + $0x1a8] sm:$0xff] }
 0x1a3   :  { %v9188_v40 = vcombine.high %v9180_v26, %v9180_v26 }
 0x1a4   :  { %v13291_v23 = vadd.f32 %v13290_v9, %v13289_v13  ;;  %v9170_v9 = vrot.slane %v9156_v55, %v14805_v20  ;;  %v13310_v13 = vsel %vm12926_vm0, %v9163_v56, 0.0  ;;  %v4836_v19 = vcombine.low %v4828_v1, %v4835_v3 }
 0x1a5   :  { %v13320_v51 = vsel %vm12926_vm0, %v9188_v40, 0.0  ;;  %v1333_v55 = vrot.slane %v284_v18, %v14799_v15  ;;  %v1337_v56 = vrot.slane %v284_v18, %v14801_v16 }
 0x1a6   :  { %v13293_v29 = vadd.f32 %v13292_v22, %v13291_v23  ;;  %v4838_v22 = vcombine.low %v1305_v62, %v1309_v0  ;;  %v7952_v38 = vmul.f32 %v4836_v19, %v89_v28  ;;  %v1357_v28 = vrot.slane %v285_v8, %v14791_v6 }
 0x1a7   :  { %v4871_v10 = vcombine.low %v1329_v54, %v1333_v55 }
 0x1a8   :  { %v13295_v35 = vadd.f32 %v13294_v24, %v13293_v29  ;;  %v9172_v24 = vcombine.high %v9170_v9, %v9170_v9  ;;  %v4852_v36 = vrot.slane %v4838_v22, %v14805_v20  ;;  %v9197_v50 = vrot.slane %v7952_v38, %v14805_v20  ;;  %v91_v22 = vld [vmem:[#allocation3 + $0x1a0] sm:$0xff] }
 0x1aa   :  { %v13297_v43 = vadd.f32 %v13296_v33, %v13295_v35  ;;  %v13314_v33 = vsel %vm12926_vm0, %v9170_v9, 0.0  ;;  %v4845_v35 = vrot.slane %v4837_v21, %v14805_v20  ;;  %v13316_v41 = vsel %vm12926_vm0, %v9172_v24, 0.0 }
 0x1ab   :  { %v9205_v0 = vcombine.high %v9197_v50, %v9197_v50  ;;  %v1345_v24 = vrot.slane %v285_v8, %v14785_v2 }
 0x1ac   :  { %v13299_v48 = vadd.f32 %v13298_v39, %v13297_v43  ;;  %v9187_v39 = vrot.slane %v9173_v25, %v14805_v20  ;;  %v13318_v43 = vsel %vm12926_vm0, %v9180_v26, 0.0  ;;  %v4853_v44 = vcombine.low %v4845_v35, %v4852_v36 }
 0x1ad   :  { %v13328_v21 = vsel %vm12926_vm0, %v9205_v0, 0.0  ;;  %v1349_v25 = vrot.slane %v285_v8, %v14787_v4  ;;  %v1353_v26 = vrot.slane %v285_v8, %v14789_v5 }
 0x1ae   :  { %v13301_v53 = vadd.f32 %v13300_v47, %v13299_v48  ;;  %v9189_v48 = vcombine.high %v9187_v39, %v9187_v39  ;;  %v7953_v62 = vmul.f32 %v4853_v44, %v90_v52  ;;  %v1373_v52 = vrot.slane %v285_v8, %v14803_v17 }
 0x1af   :  { %v4889_v40 = vcombine.low %v1353_v26, %v1357_v28 }
 0x1b0   :  { %v13303_v59 = vadd.f32 %v13302_v49, %v13301_v53  ;;  %v9190_v49 = vcombine.high %v7952_v38, %v7952_v38  ;;  %v13324_v1 = vsel %vm12926_vm0, %v9189_v48, 0.0  ;;  %v9207_v18 = vcombine.high %v7953_v62, %v7953_v62 }
 0x1b1   :  { %v9214_v19 = vrot.slane %v7953_v62, %v14805_v20  ;;  %v1361_v48 = vrot.slane %v285_v8, %v14797_v14  ;;  %v4903_v54 = vrot.slane %v4889_v40, %v14805_v20  ;;  %v286_v62 = vld [vmem:[#allocation5 + $0xe0] sm:$0xff] }
 0x1b2   :  { %v13305_v7 = vadd.f32 %v13304_v57, %v13303_v59  ;;  %v13322_v57 = vsel %vm12926_vm0, %v9187_v39, 0.0  ;;  %v4862_v59 = vrot.slane %v4854_v45, %v14805_v20  ;;  %v4888_v39 = vcombine.low %v1345_v24, %v1349_v25  ;;  %v94_v40 = vld [vmem:[#allocation3 + $0x1b8] sm:$0xff] }
 0x1b3   :  { %v9222_v34 = vcombine.high %v9214_v19, %v9214_v19 }
 0x1b4   :  { %v13307_v12 = vadd.f32 %v13306_v63, %v13305_v7  ;;  %v9204_v63 = vrot.slane %v9190_v49, %v14805_v20  ;;  %v13326_v7 = vsel %vm12926_vm0, %v9197_v50, 0.0  ;;  %v4870_v9 = vcombine.low %v4862_v59, %v4869_v60 }
 0x1b5   :  { %v13336_v45 = vsel %vm12926_vm0, %v9222_v34, 0.0  ;;  %v1365_v49 = vrot.slane %v285_v8, %v14799_v15  ;;  %v1369_v50 = vrot.slane %v285_v8, %v14801_v16 }
 0x1b6   :  { %v13309_v23 = vadd.f32 %v13308_v11, %v13307_v12  ;;  %v4872_v11 = vcombine.low %v1337_v56, %v1341_v58  ;;  %v7954_v32 = vmul.f32 %v4870_v9, %v91_v22  ;;  %v1389_v22 = vrot.slane %v286_v62, %v14791_v6 }
 0x1b7   :  { %v4905_v0 = vcombine.low %v1361_v48, %v1365_v49 }
 0x1b8   :  { %v13311_v29 = vadd.f32 %v13310_v13, %v13309_v23  ;;  %v9206_v13 = vcombine.high %v9204_v63, %v9204_v63  ;;  %v4886_v30 = vrot.slane %v4872_v11, %v14805_v20  ;;  %v9231_v44 = vrot.slane %v7954_v32, %v14805_v20  ;;  %v93_v11 = vld [vmem:[#allocation3 + $0x1b0] sm:$0xff] }
 0x1ba   :  { %v13313_v37 = vadd.f32 %v13312_v27, %v13311_v29  ;;  %v13330_v27 = vsel %vm12926_vm0, %v9204_v63, 0.0  ;;  %v4879_v29 = vrot.slane %v4871_v10, %v14805_v20  ;;  %v13332_v35 = vsel %vm12926_vm0, %v9206_v13, 0.0 }
 0x1bb   :  { %v9239_v58 = vcombine.high %v9231_v44, %v9231_v44  ;;  %v1377_v13 = vrot.slane %v286_v62, %v14785_v2 }
 0x1bc   :  { %v13315_v42 = vadd.f32 %v13314_v33, %v13313_v37  ;;  %v9221_v33 = vrot.slane %v9207_v18, %v14805_v20  ;;  %v13334_v37 = vsel %vm12926_vm0, %v9214_v19, 0.0  ;;  %v4887_v38 = vcombine.low %v4879_v29, %v4886_v30 }
 0x1bd   :  { %v13344_v10 = vsel %vm12926_vm0, %v9239_v58, 0.0  ;;  %v1381_v18 = vrot.slane %v286_v62, %v14787_v4  ;;  %v1385_v19 = vrot.slane %v286_v62, %v14789_v5 }
 0x1be   :  { %v13317_v47 = vadd.f32 %v13316_v41, %v13315_v42  ;;  %v9223_v42 = vcombine.high %v9221_v33, %v9221_v33  ;;  %v7955_v56 = vmul.f32 %v4887_v38, %v92_v46  ;;  %v1405_v46 = vrot.slane %v286_v62, %v14803_v17 }
 0x1bf   :  { %v4923_v34 = vcombine.low %v1385_v19, %v1389_v22 }
 0x1c0   :  { %v13319_v53 = vadd.f32 %v13318_v43, %v13317_v47  ;;  %v9224_v43 = vcombine.high %v7954_v32, %v7954_v32  ;;  %v13340_v59 = vsel %vm12926_vm0, %v9223_v42, 0.0  ;;  %v9241_v8 = vcombine.high %v7955_v56, %v7955_v56 }
 0x1c1   :  { %v9248_v9 = vrot.slane %v7955_v56, %v14805_v20  ;;  %v1393_v42 = vrot.slane %v286_v62, %v14797_v14  ;;  %v4937_v48 = vrot.slane %v4923_v34, %v14805_v20  ;;  %v287_v56 = vld [vmem:[#allocation5 + $0xe8] sm:$0xff]  ;;  %v96_v34 = vld [vmem:[#allocation3 + $0x1c8] sm:$0xff] }
 0x1c2   :  { %v13321_v61 = vadd.f32 %v13320_v51, %v13319_v53  ;;  %v13338_v51 = vsel %vm12926_vm0, %v9221_v33, 0.0  ;;  %v4896_v53 = vrot.slane %v4888_v39, %v14805_v20  ;;  %v4922_v33 = vcombine.low %v1377_v13, %v1381_v18 }
 0x1c3   :  { %v9256_v28 = vcombine.high %v9248_v9, %v9248_v9 }
 0x1c4   :  { %v13323_v3 = vadd.f32 %v13322_v57, %v13321_v61  ;;  %v9238_v57 = vrot.slane %v9224_v43, %v14805_v20  ;;  %v13342_v61 = vsel %vm12926_vm0, %v9231_v44, 0.0  ;;  %v4904_v63 = vcombine.low %v4896_v53, %v4903_v54 }
 0x1c5   :  { %v13352_v39 = vsel %vm12926_vm0, %v9256_v28, 0.0  ;;  %v1397_v43 = vrot.slane %v286_v62, %v14799_v15  ;;  %v1401_v44 = vrot.slane %v286_v62, %v14801_v16 }
 0x1c6   :  { %v13325_v12 = vadd.f32 %v13324_v1, %v13323_v3  ;;  %v4906_v1 = vcombine.low %v1369_v50, %v1373_v52  ;;  %v7956_v26 = vmul.f32 %v4904_v63, %v93_v11  ;;  %v1421_v11 = vrot.slane %v287_v56, %v14791_v6 }
 0x1c7   :  { %v4939_v58 = vcombine.low %v1393_v42, %v1397_v43 }
 0x1c8   :  { %v13327_v23 = vadd.f32 %v13326_v7, %v13325_v12  ;;  %v9240_v7 = vcombine.high %v9238_v57, %v9238_v57  ;;  %v4920_v24 = vrot.slane %v4906_v1, %v14805_v20  ;;  %v9265_v38 = vrot.slane %v7956_v26, %v14805_v20  ;;  %v95_v1 = vld [vmem:[#allocation3 + $0x1c0] sm:$0xff] }
 0x1ca   :  { %v13329_v31 = vadd.f32 %v13328_v21, %v13327_v23  ;;  %v13346_v21 = vsel %vm12926_vm0, %v9238_v57, 0.0  ;;  %v4913_v23 = vrot.slane %v4905_v0, %v14805_v20  ;;  %v13348_v29 = vsel %vm12926_vm0, %v9240_v7, 0.0 }
 0x1cb   :  { %v9273_v52 = vcombine.high %v9265_v38, %v9265_v38  ;;  %v1409_v7 = vrot.slane %v287_v56, %v14785_v2 }
 0x1cc   :  { %v13331_v36 = vadd.f32 %v13330_v27, %v13329_v31  ;;  %v9255_v27 = vrot.slane %v9241_v8, %v14805_v20  ;;  %v13350_v31 = vsel %vm12926_vm0, %v9248_v9, 0.0  ;;  %v4921_v32 = vcombine.low %v4913_v23, %v4920_v24 }
 0x1cd   :  { %v13360_v0 = vsel %vm12926_vm0, %v9273_v52, 0.0  ;;  %v1413_v8 = vrot.slane %v287_v56, %v14787_v4  ;;  %v1417_v9 = vrot.slane %v287_v56, %v14789_v5 }
 0x1ce   :  { %v13333_v41 = vadd.f32 %v13332_v35, %v13331_v36  ;;  %v9257_v36 = vcombine.high %v9255_v27, %v9255_v27  ;;  %v7957_v50 = vmul.f32 %v4921_v32, %v94_v40  ;;  %v1437_v40 = vrot.slane %v287_v56, %v14803_v17 }
 0x1cf   :  { %v4957_v28 = vcombine.low %v1417_v9, %v1421_v11 }
 0x1d0   :  { %v13335_v47 = vadd.f32 %v13334_v37, %v13333_v41  ;;  %v9258_v37 = vcombine.high %v7956_v26, %v7956_v26  ;;  %v13356_v53 = vsel %vm12926_vm0, %v9257_v36, 0.0  ;;  %v9275_v62 = vcombine.high %v7957_v50, %v7957_v50 }
 0x1d1   :  { %v9282_v63 = vrot.slane %v7957_v50, %v14805_v20  ;;  %v1425_v36 = vrot.slane %v287_v56, %v14797_v14  ;;  %v4971_v42 = vrot.slane %v4957_v28, %v14805_v20  ;;  %v288_v50 = vld [vmem:[#allocation5 + $0xf0] sm:$0xff]  ;;  %v98_v28 = vld [vmem:[#allocation3 + $0x1d8] sm:$0xff] }
 0x1d2   :  { %v13337_v55 = vadd.f32 %v13336_v45, %v13335_v47  ;;  %v13354_v45 = vsel %vm12926_vm0, %v9255_v27, 0.0  ;;  %v4930_v47 = vrot.slane %v4922_v33, %v14805_v20  ;;  %v4956_v27 = vcombine.low %v1409_v7, %v1413_v8 }
 0x1d3   :  { %v9290_v22 = vcombine.high %v9282_v63, %v9282_v63 }
 0x1d4   :  { %v13339_v60 = vadd.f32 %v13338_v51, %v13337_v55  ;;  %v9272_v51 = vrot.slane %v9258_v37, %v14805_v20  ;;  %v13358_v55 = vsel %vm12926_vm0, %v9265_v38, 0.0  ;;  %v4938_v57 = vcombine.low %v4930_v47, %v4937_v48 }
 0x1d5   :  { %v13368_v33 = vsel %vm12926_vm0, %v9290_v22, 0.0  ;;  %v1429_v37 = vrot.slane %v287_v56, %v14799_v15  ;;  %v1433_v38 = vrot.slane %v287_v56, %v14801_v16 }
 0x1d6   :  { %v13341_v3 = vadd.f32 %v13340_v59, %v13339_v60  ;;  %v4940_v59 = vcombine.low %v1401_v44, %v1405_v46  ;;  %v7958_v19 = vmul.f32 %v4938_v57, %v95_v1  ;;  %v1453_v1 = vrot.slane %v288_v50, %v14791_v6 }
 0x1d7   :  { %v4973_v52 = vcombine.low %v1425_v36, %v1429_v37 }
 0x1d8   :  { %v13343_v12 = vadd.f32 %v13342_v61, %v13341_v3  ;;  %v9274_v61 = vcombine.high %v9272_v51, %v9272_v51  ;;  %v4954_v13 = vrot.slane %v4940_v59, %v14805_v20  ;;  %v9299_v32 = vrot.slane %v7958_v19, %v14805_v20  ;;  %v97_v59 = vld [vmem:[#allocation3 + $0x1d0] sm:$0xff] }
 0x1da   :  { %v13345_v25 = vadd.f32 %v13344_v10, %v13343_v12  ;;  %v13362_v10 = vsel %vm12926_vm0, %v9272_v51, 0.0  ;;  %v4947_v12 = vrot.slane %v4939_v58, %v14805_v20  ;;  %v13364_v23 = vsel %vm12926_vm0, %v9274_v61, 0.0 }
 0x1db   :  { %v9307_v46 = vcombine.high %v9299_v32, %v9299_v32  ;;  %v1441_v61 = vrot.slane %v288_v50, %v14785_v2 }
 0x1dc   :  { %v13347_v30 = vadd.f32 %v13346_v21, %v13345_v25  ;;  %v9289_v21 = vrot.slane %v9275_v62, %v14805_v20  ;;  %v13366_v25 = vsel %vm12926_vm0, %v9282_v63, 0.0  ;;  %v4955_v26 = vcombine.low %v4947_v12, %v4954_v13 }
 0x1dd   :  { %v13376_v58 = vsel %vm12926_vm0, %v9307_v46, 0.0  ;;  %v1445_v62 = vrot.slane %v288_v50, %v14787_v4  ;;  %v1449_v63 = vrot.slane %v288_v50, %v14789_v5 }
 0x1de   :  { %v13349_v35 = vadd.f32 %v13348_v29, %v13347_v30  ;;  %v9291_v30 = vcombine.high %v9289_v21, %v9289_v21  ;;  %v7959_v44 = vmul.f32 %v4955_v26, %v96_v34  ;;  %v1469_v34 = vrot.slane %v288_v50, %v14803_v17 }
 0x1df   :  { %v4991_v22 = vcombine.low %v1449_v63, %v1453_v1 }
 0x1e0   :  { %v13351_v41 = vadd.f32 %v13350_v31, %v13349_v35  ;;  %v9292_v31 = vcombine.high %v7958_v19, %v7958_v19  ;;  %v13372_v47 = vsel %vm12926_vm0, %v9291_v30, 0.0  ;;  %v9309_v56 = vcombine.high %v7959_v44, %v7959_v44 }
 0x1e1   :  { %v9316_v57 = vrot.slane %v7959_v44, %v14805_v20  ;;  %v1457_v30 = vrot.slane %v288_v50, %v14797_v14  ;;  %v5005_v36 = vrot.slane %v4991_v22, %v14805_v20  ;;  %v289_v44 = vld [vmem:[#allocation5 + $0xf8] sm:$0xff] }
 0x1e2   :  { %v13353_v49 = vadd.f32 %v13352_v39, %v13351_v41  ;;  %v13370_v39 = vsel %vm12926_vm0, %v9289_v21, 0.0  ;;  %v4964_v41 = vrot.slane %v4956_v27, %v14805_v20  ;;  %v4990_v21 = vcombine.low %v1441_v61, %v1445_v62  ;;  %v100_v22 = vld [vmem:[#allocation3 + $0x1e8] sm:$0xff] }
 0x1e3   :  { %v9324_v11 = vcombine.high %v9316_v57, %v9316_v57 }
 0x1e4   :  { %v13355_v54 = vadd.f32 %v13354_v45, %v13353_v49  ;;  %v9306_v45 = vrot.slane %v9292_v31, %v14805_v20  ;;  %v13374_v49 = vsel %vm12926_vm0, %v9299_v32, 0.0  ;;  %v4972_v51 = vcombine.low %v4964_v41, %v4971_v42 }
 0x1e5   :  { %v13384_v27 = vsel %vm12926_vm0, %v9324_v11, 0.0  ;;  %v1461_v31 = vrot.slane %v288_v50, %v14799_v15  ;;  %v1465_v32 = vrot.slane %v288_v50, %v14801_v16 }
 0x1e6   :  { %v13357_v60 = vadd.f32 %v13356_v53, %v13355_v54  ;;  %v4974_v53 = vcombine.low %v1433_v38, %v1437_v40  ;;  %v7960_v9 = vmul.f32 %v4972_v51, %v97_v59  ;;  %v1485_v59 = vrot.slane %v289_v44, %v14791_v6 }
 0x1e7   :  { %v5007_v46 = vcombine.low %v1457_v30, %v1461_v31 }
 0x1e8   :  { %v13359_v3 = vadd.f32 %v13358_v55, %v13357_v60  ;;  %v9308_v55 = vcombine.high %v9306_v45, %v9306_v45  ;;  %v4988_v7 = vrot.slane %v4974_v53, %v14805_v20  ;;  %v9333_v26 = vrot.slane %v7960_v9, %v14805_v20  ;;  %v99_v53 = vld [vmem:[#allocation3 + $0x1e0] sm:$0xff] }
 0x1ea   :  { %v13361_v18 = vadd.f32 %v13360_v0, %v13359_v3  ;;  %v13378_v0 = vsel %vm12926_vm0, %v9306_v45, 0.0  ;;  %v4981_v3 = vrot.slane %v4973_v52, %v14805_v20  ;;  %v13380_v12 = vsel %vm12926_vm0, %v9308_v55, 0.0 }
 0x1eb   :  { %v9341_v40 = vcombine.high %v9333_v26, %v9333_v26  ;;  %v1473_v55 = vrot.slane %v289_v44, %v14785_v2 }
 0x1ec   :  { %v13363_v24 = vadd.f32 %v13362_v10, %v13361_v18  ;;  %v9323_v10 = vrot.slane %v9309_v56, %v14805_v20  ;;  %v13382_v18 = vsel %vm12926_vm0, %v9316_v57, 0.0  ;;  %v4989_v19 = vcombine.low %v4981_v3, %v4988_v7 }
 0x1ed   :  { %v13392_v52 = vsel %vm12926_vm0, %v9341_v40, 0.0  ;;  %v1477_v56 = vrot.slane %v289_v44, %v14787_v4  ;;  %v1481_v57 = vrot.slane %v289_v44, %v14789_v5 }
 0x1ee   :  { %v13365_v29 = vadd.f32 %v13364_v23, %v13363_v24  ;;  %v9325_v24 = vcombine.high %v9323_v10, %v9323_v10  ;;  %v7961_v38 = vmul.f32 %v4989_v19, %v98_v28  ;;  %v1501_v28 = vrot.slane %v289_v44, %v14803_v17 }
 0x1ef   :  { %v5025_v11 = vcombine.low %v1481_v57, %v1485_v59 }
 0x1f0   :  { %v13367_v35 = vadd.f32 %v13366_v25, %v13365_v29  ;;  %v9326_v25 = vcombine.high %v7960_v9, %v7960_v9  ;;  %v13388_v41 = vsel %vm12926_vm0, %v9325_v24, 0.0  ;;  %v9343_v50 = vcombine.high %v7961_v38, %v7961_v38 }
 0x1f1   :  { %v9350_v51 = vrot.slane %v7961_v38, %v14805_v20  ;;  %v1489_v24 = vrot.slane %v289_v44, %v14797_v14  ;;  %v5039_v30 = vrot.slane %v5025_v11, %v14805_v20  ;;  %v290_v38 = vld [vmem:[#allocation5 + $0x100] sm:$0xff] }
 0x1f2   :  { %v13369_v43 = vadd.f32 %v13368_v33, %v13367_v35  ;;  %v13386_v33 = vsel %vm12926_vm0, %v9323_v10, 0.0  ;;  %v4998_v35 = vrot.slane %v4990_v21, %v14805_v20  ;;  %v5024_v10 = vcombine.low %v1473_v55, %v1477_v56  ;;  %v102_v11 = vld [vmem:[#allocation3 + $0x1f8] sm:$0xff] }
 0x1f3   :  { %v9358_v1 = vcombine.high %v9350_v51, %v9350_v51 }
 0x1f4   :  { %v13371_v48 = vadd.f32 %v13370_v39, %v13369_v43  ;;  %v9340_v39 = vrot.slane %v9326_v25, %v14805_v20  ;;  %v13390_v43 = vsel %vm12926_vm0, %v9333_v26, 0.0  ;;  %v5006_v45 = vcombine.low %v4998_v35, %v5005_v36 }
 0x1f5   :  { %v13400_v21 = vsel %vm12926_vm0, %v9358_v1, 0.0  ;;  %v1493_v25 = vrot.slane %v289_v44, %v14799_v15  ;;  %v1497_v26 = vrot.slane %v289_v44, %v14801_v16 }
 0x1f6   :  { %v13373_v54 = vadd.f32 %v13372_v47, %v13371_v48  ;;  %v5008_v47 = vcombine.low %v1465_v32, %v1469_v34  ;;  %v7962_v63 = vmul.f32 %v5006_v45, %v99_v53  ;;  %v1517_v53 = vrot.slane %v290_v38, %v14791_v6 }
 0x1f7   :  { %v5041_v40 = vcombine.low %v1489_v24, %v1493_v25 }
 0x1f8   :  { %v13375_v60 = vadd.f32 %v13374_v49, %v13373_v54  ;;  %v9342_v49 = vcombine.high %v9340_v39, %v9340_v39  ;;  %v5022_v61 = vrot.slane %v5008_v47, %v14805_v20  ;;  %v9367_v19 = vrot.slane %v7962_v63, %v14805_v20  ;;  %v101_v47 = vld [vmem:[#allocation3 + $0x1f0] sm:$0xff] }
 0x1fa   :  { %v13377_v8 = vadd.f32 %v13376_v58, %v13375_v60  ;;  %v13394_v58 = vsel %vm12926_vm0, %v9340_v39, 0.0  ;;  %v5015_v60 = vrot.slane %v5007_v46, %v14805_v20  ;;  %v13396_v3 = vsel %vm12926_vm0, %v9342_v49, 0.0 }
 0x1fb   :  { %v9375_v34 = vcombine.high %v9367_v19, %v9367_v19  ;;  %v1505_v49 = vrot.slane %v290_v38, %v14785_v2 }
 0x1fc   :  { %v13379_v13 = vadd.f32 %v13378_v0, %v13377_v8  ;;  %v9357_v0 = vrot.slane %v9343_v50, %v14805_v20  ;;  %v13398_v8 = vsel %vm12926_vm0, %v9350_v51, 0.0  ;;  %v5023_v9 = vcombine.low %v5015_v60, %v5022_v61 }
 0x1fd   :  { %v13408_v46 = vsel %vm12926_vm0, %v9375_v34, 0.0  ;;  %v1509_v50 = vrot.slane %v290_v38, %v14787_v4  ;;  %v1513_v51 = vrot.slane %v290_v38, %v14789_v5 }
 0x1fe   :  { %v13381_v23 = vadd.f32 %v13380_v12, %v13379_v13  ;;  %v9359_v13 = vcombine.high %v9357_v0, %v9357_v0  ;;  %v7963_v32 = vmul.f32 %v5023_v9, %v100_v22  ;;  %v1533_v22 = vrot.slane %v290_v38, %v14803_v17 }
 0x1ff   :  { %v5059_v1 = vcombine.low %v1513_v51, %v1517_v53 }
 0x200   :  { %v13383_v29 = vadd.f32 %v13382_v18, %v13381_v23  ;;  %v9360_v18 = vcombine.high %v7962_v63, %v7962_v63  ;;  %v13404_v35 = vsel %vm12926_vm0, %v9359_v13, 0.0  ;;  %v9377_v44 = vcombine.high %v7963_v32, %v7963_v32 }
 0x201   :  { %v9384_v45 = vrot.slane %v7963_v32, %v14805_v20  ;;  %v1521_v13 = vrot.slane %v290_v38, %v14797_v14  ;;  %v5073_v24 = vrot.slane %v5059_v1, %v14805_v20  ;;  %v291_v32 = vld [vmem:[#allocation5 + $0x108] sm:$0xff]  ;;  %v104_v1 = vld [vmem:[#allocation3 + $0x208] sm:$0xff] }
 0x202   :  { %v13385_v37 = vadd.f32 %v13384_v27, %v13383_v29  ;;  %v13402_v27 = vsel %vm12926_vm0, %v9357_v0, 0.0  ;;  %v5032_v29 = vrot.slane %v5024_v10, %v14805_v20  ;;  %v5058_v0 = vcombine.low %v1505_v49, %v1509_v50 }
 0x203   :  { %v9392_v59 = vcombine.high %v9384_v45, %v9384_v45 }
 0x204   :  { %v13387_v42 = vadd.f32 %v13386_v33, %v13385_v37  ;;  %v9374_v33 = vrot.slane %v9360_v18, %v14805_v20  ;;  %v13406_v37 = vsel %vm12926_vm0, %v9367_v19, 0.0  ;;  %v5040_v39 = vcombine.low %v5032_v29, %v5039_v30 }
 0x205   :  { %v13416_v10 = vsel %vm12926_vm0, %v9392_v59, 0.0  ;;  %v1525_v18 = vrot.slane %v290_v38, %v14799_v15  ;;  %v1529_v19 = vrot.slane %v290_v38, %v14801_v16 }
 0x206   :  { %v13389_v48 = vadd.f32 %v13388_v41, %v13387_v42  ;;  %v5042_v41 = vcombine.low %v1497_v26, %v1501_v28  ;;  %v7964_v57 = vmul.f32 %v5040_v39, %v101_v47  ;;  %v1549_v47 = vrot.slane %v291_v32, %v14791_v6 }
 0x207   :  { %v5075_v34 = vcombine.low %v1521_v13, %v1525_v18 }
 0x208   :  { %v13391_v54 = vadd.f32 %v13390_v43, %v13389_v48  ;;  %v9376_v43 = vcombine.high %v9374_v33, %v9374_v33  ;;  %v5056_v55 = vrot.slane %v5042_v41, %v14805_v20  ;;  %v9401_v9 = vrot.slane %v7964_v57, %v14805_v20  ;;  %v103_v41 = vld [vmem:[#allocation3 + $0x200] sm:$0xff] }
 0x20a   :  { %v13393_v62 = vadd.f32 %v13392_v52, %v13391_v54  ;;  %v13410_v52 = vsel %vm12926_vm0, %v9374_v33, 0.0  ;;  %v5049_v54 = vrot.slane %v5041_v40, %v14805_v20  ;;  %v13412_v60 = vsel %vm12926_vm0, %v9376_v43, 0.0 }
 0x20b   :  { %v9409_v28 = vcombine.high %v9401_v9, %v9401_v9  ;;  %v1537_v43 = vrot.slane %v291_v32, %v14785_v2 }
 0x20c   :  { %v13395_v7 = vadd.f32 %v13394_v58, %v13393_v62  ;;  %v9391_v58 = vrot.slane %v9377_v44, %v14805_v20  ;;  %v13414_v62 = vsel %vm12926_vm0, %v9384_v45, 0.0  ;;  %v5057_v63 = vcombine.low %v5049_v54, %v5056_v55 }
 0x20d   :  { %v13424_v40 = vsel %vm12926_vm0, %v9409_v28, 0.0  ;;  %v1541_v44 = vrot.slane %v291_v32, %v14787_v4  ;;  %v1545_v45 = vrot.slane %v291_v32, %v14789_v5 }
 0x20e   :  { %v13397_v12 = vadd.f32 %v13396_v3, %v13395_v7  ;;  %v9393_v7 = vcombine.high %v9391_v58, %v9391_v58  ;;  %v7965_v26 = vmul.f32 %v5057_v63, %v102_v11  ;;  %v1565_v11 = vrot.slane %v291_v32, %v14803_v17 }
 0x20f   :  { %v5093_v59 = vcombine.low %v1545_v45, %v1549_v47 }
 0x210   :  { %v13399_v23 = vadd.f32 %v13398_v8, %v13397_v12  ;;  %v9394_v8 = vcombine.high %v7964_v57, %v7964_v57  ;;  %v13420_v29 = vsel %vm12926_vm0, %v9393_v7, 0.0  ;;  %v9411_v38 = vcombine.high %v7965_v26, %v7965_v26 }
 0x211   :  { %v9418_v39 = vrot.slane %v7965_v26, %v14805_v20  ;;  %v1553_v7 = vrot.slane %v291_v32, %v14797_v14  ;;  %v5107_v13 = vrot.slane %v5093_v59, %v14805_v20  ;;  %v292_v26 = vld [vmem:[#allocation5 + $0x110] sm:$0xff]  ;;  %v106_v59 = vld [vmem:[#allocation3 + $0x218] sm:$0xff] }
 0x212   :  { %v13401_v31 = vadd.f32 %v13400_v21, %v13399_v23  ;;  %v13418_v21 = vsel %vm12926_vm0, %v9391_v58, 0.0  ;;  %v5066_v23 = vrot.slane %v5058_v0, %v14805_v20  ;;  %v5092_v58 = vcombine.low %v1537_v43, %v1541_v44 }
 0x213   :  { %v9426_v53 = vcombine.high %v9418_v39, %v9418_v39 }
 0x214   :  { %v13403_v36 = vadd.f32 %v13402_v27, %v13401_v31  ;;  %v9408_v27 = vrot.slane %v9394_v8, %v14805_v20  ;;  %v13422_v31 = vsel %vm12926_vm0, %v9401_v9, 0.0  ;;  %v5074_v33 = vcombine.low %v5066_v23, %v5073_v24 }
 0x215   :  { %v13432_v0 = vsel %vm12926_vm0, %v9426_v53, 0.0  ;;  %v1557_v8 = vrot.slane %v291_v32, %v14799_v15  ;;  %v1561_v9 = vrot.slane %v291_v32, %v14801_v16 }
 0x216   :  { %v13405_v42 = vadd.f32 %v13404_v35, %v13403_v36  ;;  %v5076_v35 = vcombine.low %v1529_v19, %v1533_v22  ;;  %v7966_v51 = vmul.f32 %v5074_v33, %v103_v41  ;;  %v1581_v41 = vrot.slane %v292_v26, %v14791_v6 }
 0x217   :  { %v5109_v28 = vcombine.low %v1553_v7, %v1557_v8 }
 0x218   :  { %v13407_v48 = vadd.f32 %v13406_v37, %v13405_v42  ;;  %v9410_v37 = vcombine.high %v9408_v27, %v9408_v27  ;;  %v5090_v49 = vrot.slane %v5076_v35, %v14805_v20  ;;  %v9435_v63 = vrot.slane %v7966_v51, %v14805_v20  ;;  %v105_v35 = vld [vmem:[#allocation3 + $0x210] sm:$0xff] }
 0x21a   :  { %v13409_v56 = vadd.f32 %v13408_v46, %v13407_v48  ;;  %v13426_v46 = vsel %vm12926_vm0, %v9408_v27, 0.0  ;;  %v5083_v48 = vrot.slane %v5075_v34, %v14805_v20  ;;  %v13428_v54 = vsel %vm12926_vm0, %v9410_v37, 0.0 }
 0x21b   :  { %v9443_v22 = vcombine.high %v9435_v63, %v9435_v63  ;;  %v1569_v37 = vrot.slane %v292_v26, %v14785_v2 }
 0x21c   :  { %v13411_v61 = vadd.f32 %v13410_v52, %v13409_v56  ;;  %v9425_v52 = vrot.slane %v9411_v38, %v14805_v20  ;;  %v13430_v56 = vsel %vm12926_vm0, %v9418_v39, 0.0  ;;  %v5091_v57 = vcombine.low %v5083_v48, %v5090_v49 }
 0x21d   :  { %v13440_v34 = vsel %vm12926_vm0, %v9443_v22, 0.0  ;;  %v1573_v38 = vrot.slane %v292_v26, %v14787_v4  ;;  %v1577_v39 = vrot.slane %v292_v26, %v14789_v5 }
 0x21e   :  { %v13413_v3 = vadd.f32 %v13412_v60, %v13411_v61  ;;  %v9427_v61 = vcombine.high %v9425_v52, %v9425_v52  ;;  %v7967_v19 = vmul.f32 %v5091_v57, %v104_v1  ;;  %v1597_v1 = vrot.slane %v292_v26, %v14803_v17 }
 0x21f   :  { %v5127_v53 = vcombine.low %v1577_v39, %v1581_v41 }
 0x220   :  { %v13415_v12 = vadd.f32 %v13414_v62, %v13413_v3  ;;  %v9428_v62 = vcombine.high %v7966_v51, %v7966_v51  ;;  %v13436_v23 = vsel %vm12926_vm0, %v9427_v61, 0.0  ;;  %v9445_v32 = vcombine.high %v7967_v19, %v7967_v19 }
 0x221   :  { %v9452_v33 = vrot.slane %v7967_v19, %v14805_v20  ;;  %v1585_v61 = vrot.slane %v292_v26, %v14797_v14  ;;  %v5141_v7 = vrot.slane %v5127_v53, %v14805_v20  ;;  %v293_v19 = vld [vmem:[#allocation5 + $0x118] sm:$0xff] }
 0x222   :  { %v13417_v25 = vadd.f32 %v13416_v10, %v13415_v12  ;;  %v13434_v10 = vsel %vm12926_vm0, %v9425_v52, 0.0  ;;  %v5100_v12 = vrot.slane %v5092_v58, %v14805_v20  ;;  %v5126_v52 = vcombine.low %v1569_v37, %v1573_v38  ;;  %v108_v53 = vld [vmem:[#allocation3 + $0x228] sm:$0xff] }
 0x223   :  { %v9460_v47 = vcombine.high %v9452_v33, %v9452_v33 }
 0x224   :  { %v13419_v30 = vadd.f32 %v13418_v21, %v13417_v25  ;;  %v9442_v21 = vrot.slane %v9428_v62, %v14805_v20  ;;  %v13438_v25 = vsel %vm12926_vm0, %v9435_v63, 0.0  ;;  %v5108_v27 = vcombine.low %v5100_v12, %v5107_v13 }
 0x225   :  { %v13448_v58 = vsel %vm12926_vm0, %v9460_v47, 0.0  ;;  %v1589_v62 = vrot.slane %v292_v26, %v14799_v15  ;;  %v1593_v63 = vrot.slane %v292_v26, %v14801_v16 }
 0x226   :  { %v13421_v36 = vadd.f32 %v13420_v29, %v13419_v30  ;;  %v5110_v29 = vcombine.low %v1561_v9, %v1565_v11  ;;  %v7968_v45 = vmul.f32 %v5108_v27, %v105_v35  ;;  %v1613_v35 = vrot.slane %v293_v19, %v14791_v6 }
 0x227   :  { %v5143_v22 = vcombine.low %v1585_v61, %v1589_v62 }
 0x228   :  { %v13423_v42 = vadd.f32 %v13422_v31, %v13421_v36  ;;  %v9444_v31 = vcombine.high %v9442_v21, %v9442_v21  ;;  %v5124_v43 = vrot.slane %v5110_v29, %v14805_v20  ;;  %v9469_v57 = vrot.slane %v7968_v45, %v14805_v20  ;;  %v107_v29 = vld [vmem:[#allocation3 + $0x220] sm:$0xff] }
 0x22a   :  { %v13425_v50 = vadd.f32 %v13424_v40, %v13423_v42  ;;  %v13442_v40 = vsel %vm12926_vm0, %v9442_v21, 0.0  ;;  %v5117_v42 = vrot.slane %v5109_v28, %v14805_v20  ;;  %v13444_v48 = vsel %vm12926_vm0, %v9444_v31, 0.0 }
 0x22b   :  { %v9477_v11 = vcombine.high %v9469_v57, %v9469_v57  ;;  %v1601_v31 = vrot.slane %v293_v19, %v14785_v2 }
 0x22c   :  { %v13427_v55 = vadd.f32 %v13426_v46, %v13425_v50  ;;  %v9459_v46 = vrot.slane %v9445_v32, %v14805_v20  ;;  %v13446_v50 = vsel %vm12926_vm0, %v9452_v33, 0.0  ;;  %v5125_v51 = vcombine.low %v5117_v42, %v5124_v43 }
 0x22d   :  { %v13456_v28 = vsel %vm12926_vm0, %v9477_v11, 0.0  ;;  %v1605_v32 = vrot.slane %v293_v19, %v14787_v4  ;;  %v1609_v33 = vrot.slane %v293_v19, %v14789_v5 }
 0x22e   :  { %v13429_v60 = vadd.f32 %v13428_v54, %v13427_v55  ;;  %v9461_v55 = vcombine.high %v9459_v46, %v9459_v46  ;;  %v7969_v9 = vmul.f32 %v5125_v51, %v106_v59  ;;  %v1629_v59 = vrot.slane %v293_v19, %v14803_v17 }
 0x22f   :  { %v5161_v47 = vcombine.low %v1609_v33, %v1613_v35 }
 0x230   :  { %v13431_v3 = vadd.f32 %v13430_v56, %v13429_v60  ;;  %v9462_v56 = vcombine.high %v7968_v45, %v7968_v45  ;;  %v13452_v12 = vsel %vm12926_vm0, %v9461_v55, 0.0  ;;  %v9479_v26 = vcombine.high %v7969_v9, %v7969_v9 }
 0x231   :  { %v9486_v27 = vrot.slane %v7969_v9, %v14805_v20  ;;  %v1617_v55 = vrot.slane %v293_v19, %v14797_v14  ;;  %v5175_v61 = vrot.slane %v5161_v47, %v14805_v20  ;;  %v294_v9 = vld [vmem:[#allocation5 + $0x120] sm:$0xff] }
 0x232   :  { %v13433_v18 = vadd.f32 %v13432_v0, %v13431_v3  ;;  %v13450_v0 = vsel %vm12926_vm0, %v9459_v46, 0.0  ;;  %v5134_v3 = vrot.slane %v5126_v52, %v14805_v20  ;;  %v5160_v46 = vcombine.low %v1601_v31, %v1605_v32  ;;  %v110_v47 = vld [vmem:[#allocation3 + $0x238] sm:$0xff] }
 0x233   :  { %v9494_v41 = vcombine.high %v9486_v27, %v9486_v27 }
 0x234   :  { %v13435_v24 = vadd.f32 %v13434_v10, %v13433_v18  ;;  %v9476_v10 = vrot.slane %v9462_v56, %v14805_v20  ;;  %v13454_v18 = vsel %vm12926_vm0, %v9469_v57, 0.0  ;;  %v5142_v21 = vcombine.low %v5134_v3, %v5141_v7 }
 0x235   :  { %v13464_v52 = vsel %vm12926_vm0, %v9494_v41, 0.0  ;;  %v1621_v56 = vrot.slane %v293_v19, %v14799_v15  ;;  %v1625_v57 = vrot.slane %v293_v19, %v14801_v16 }
 0x236   :  { %v13437_v30 = vadd.f32 %v13436_v23, %v13435_v24  ;;  %v5144_v23 = vcombine.low %v1593_v63, %v1597_v1  ;;  %v7970_v39 = vmul.f32 %v5142_v21, %v107_v29  ;;  %v1645_v29 = vrot.slane %v294_v9, %v14791_v6 }
 0x237   :  { %v5177_v11 = vcombine.low %v1617_v55, %v1621_v56 }
 0x238   :  { %v13439_v36 = vadd.f32 %v13438_v25, %v13437_v30  ;;  %v9478_v25 = vcombine.high %v9476_v10, %v9476_v10  ;;  %v5158_v37 = vrot.slane %v5144_v23, %v14805_v20  ;;  %v9503_v51 = vrot.slane %v7970_v39, %v14805_v20  ;;  %v109_v23 = vld [vmem:[#allocation3 + $0x230] sm:$0xff] }
 0x23a   :  { %v13441_v44 = vadd.f32 %v13440_v34, %v13439_v36  ;;  %v13458_v34 = vsel %vm12926_vm0, %v9476_v10, 0.0  ;;  %v5151_v36 = vrot.slane %v5143_v22, %v14805_v20  ;;  %v13460_v42 = vsel %vm12926_vm0, %v9478_v25, 0.0 }
 0x23b   :  { %v9511_v1 = vcombine.high %v9503_v51, %v9503_v51  ;;  %v1633_v25 = vrot.slane %v294_v9, %v14785_v2 }
 0x23c   :  { %v13443_v49 = vadd.f32 %v13442_v40, %v13441_v44  ;;  %v9493_v40 = vrot.slane %v9479_v26, %v14805_v20  ;;  %v13462_v44 = vsel %vm12926_vm0, %v9486_v27, 0.0  ;;  %v5159_v45 = vcombine.low %v5151_v36, %v5158_v37 }
 0x23d   :  { %v13472_v22 = vsel %vm12926_vm0, %v9511_v1, 0.0  ;;  %v1637_v26 = vrot.slane %v294_v9, %v14787_v4  ;;  %v1641_v27 = vrot.slane %v294_v9, %v14789_v5 }
 0x23e   :  { %v13445_v54 = vadd.f32 %v13444_v48, %v13443_v49  ;;  %v9495_v49 = vcombine.high %v9493_v40, %v9493_v40  ;;  %v7971_v63 = vmul.f32 %v5159_v45, %v108_v53  ;;  %v1661_v53 = vrot.slane %v294_v9, %v14803_v17 }
 0x23f   :  { %v5195_v41 = vcombine.low %v1641_v27, %v1645_v29 }
 0x240   :  { %v13447_v60 = vadd.f32 %v13446_v50, %v13445_v54  ;;  %v9496_v50 = vcombine.high %v7970_v39, %v7970_v39  ;;  %v13468_v3 = vsel %vm12926_vm0, %v9495_v49, 0.0  ;;  %v9513_v19 = vcombine.high %v7971_v63, %v7971_v63 }
 0x241   :  { %v9520_v21 = vrot.slane %v7971_v63, %v14805_v20  ;;  %v1649_v49 = vrot.slane %v294_v9, %v14797_v14  ;;  %v5209_v55 = vrot.slane %v5195_v41, %v14805_v20  ;;  %v295_v63 = vld [vmem:[#allocation5 + $0x128] sm:$0xff]  ;;  %v112_v41 = vld [vmem:[#allocation3 + $0x248] sm:$0xff] }
 0x242   :  { %v13449_v8 = vadd.f32 %v13448_v58, %v13447_v60  ;;  %v13466_v58 = vsel %vm12926_vm0, %v9493_v40, 0.0  ;;  %v5168_v60 = vrot.slane %v5160_v46, %v14805_v20  ;;  %v5194_v40 = vcombine.low %v1633_v25, %v1637_v26 }
 0x243   :  { %v9528_v35 = vcombine.high %v9520_v21, %v9520_v21 }
 0x244   :  { %v13451_v13 = vadd.f32 %v13450_v0, %v13449_v8  ;;  %v9510_v0 = vrot.slane %v9496_v50, %v14805_v20  ;;  %v13470_v8 = vsel %vm12926_vm0, %v9503_v51, 0.0  ;;  %v5176_v10 = vcombine.low %v5168_v60, %v5175_v61 }
 0x245   :  { %v13480_v46 = vsel %vm12926_vm0, %v9528_v35, 0.0  ;;  %v1653_v50 = vrot.slane %v294_v9, %v14799_v15  ;;  %v1657_v51 = vrot.slane %v294_v9, %v14801_v16 }
 0x246   :  { %v13453_v24 = vadd.f32 %v13452_v12, %v13451_v13  ;;  %v5178_v12 = vcombine.low %v1625_v57, %v1629_v59  ;;  %v7972_v33 = vmul.f32 %v5176_v10, %v109_v23  ;;  %v1677_v23 = vrot.slane %v295_v63, %v14791_v6 }
 0x247   :  { %v5211_v1 = vcombine.low %v1649_v49, %v1653_v50 }
 0x248   :  { %v13455_v30 = vadd.f32 %v13454_v18, %v13453_v24  ;;  %v9512_v18 = vcombine.high %v9510_v0, %v9510_v0  ;;  %v5192_v31 = vrot.slane %v5178_v12, %v14805_v20  ;;  %v9537_v45 = vrot.slane %v7972_v33, %v14805_v20  ;;  %v111_v12 = vld [vmem:[#allocation3 + $0x240] sm:$0xff] }
 0x24a   :  { %v13457_v38 = vadd.f32 %v13456_v28, %v13455_v30  ;;  %v13474_v28 = vsel %vm12926_vm0, %v9510_v0, 0.0  ;;  %v5185_v30 = vrot.slane %v5177_v11, %v14805_v20  ;;  %v13476_v36 = vsel %vm12926_vm0, %v9512_v18, 0.0 }
 0x24b   :  { %v9545_v59 = vcombine.high %v9537_v45, %v9537_v45  ;;  %v1665_v18 = vrot.slane %v295_v63, %v14785_v2 }
 0x24c   :  { %v13459_v43 = vadd.f32 %v13458_v34, %v13457_v38  ;;  %v9527_v34 = vrot.slane %v9513_v19, %v14805_v20  ;;  %v13478_v38 = vsel %vm12926_vm0, %v9520_v21, 0.0  ;;  %v5193_v39 = vcombine.low %v5185_v30, %v5192_v31 }
 0x24d   :  { %v13488_v11 = vsel %vm12926_vm0, %v9545_v59, 0.0  ;;  %v1669_v19 = vrot.slane %v295_v63, %v14787_v4  ;;  %v1673_v21 = vrot.slane %v295_v63, %v14789_v5 }
 0x24e   :  { %v13461_v48 = vadd.f32 %v13460_v42, %v13459_v43  ;;  %v9529_v43 = vcombine.high %v9527_v34, %v9527_v34  ;;  %v7973_v57 = vmul.f32 %v5193_v39, %v110_v47  ;;  %v1693_v47 = vrot.slane %v295_v63, %v14803_v17 }
 0x24f   :  { %v5229_v35 = vcombine.low %v1673_v21, %v1677_v23 }
 0x250   :  { %v13463_v54 = vadd.f32 %v13462_v44, %v13461_v48  ;;  %v9530_v44 = vcombine.high %v7972_v33, %v7972_v33  ;;  %v13484_v60 = vsel %vm12926_vm0, %v9529_v43, 0.0  ;;  %v9547_v9 = vcombine.high %v7973_v57, %v7973_v57 }
 0x251   :  { %v9554_v10 = vrot.slane %v7973_v57, %v14805_v20  ;;  %v1681_v43 = vrot.slane %v295_v63, %v14797_v14  ;;  %v5243_v49 = vrot.slane %v5229_v35, %v14805_v20  ;;  %v296_v57 = vld [vmem:[#allocation5 + $0x130] sm:$0xff]  ;;  %v114_v35 = vld [vmem:[#allocation3 + $0x258] sm:$0xff] }
 0x252   :  { %v13465_v62 = vadd.f32 %v13464_v52, %v13463_v54  ;;  %v13482_v52 = vsel %vm12926_vm0, %v9527_v34, 0.0  ;;  %v5202_v54 = vrot.slane %v5194_v40, %v14805_v20  ;;  %v5228_v34 = vcombine.low %v1665_v18, %v1669_v19 }
 0x253   :  { %v9562_v29 = vcombine.high %v9554_v10, %v9554_v10 }
 0x254   :  { %v13467_v7 = vadd.f32 %v13466_v58, %v13465_v62  ;;  %v9544_v58 = vrot.slane %v9530_v44, %v14805_v20  ;;  %v13486_v62 = vsel %vm12926_vm0, %v9537_v45, 0.0  ;;  %v5210_v0 = vcombine.low %v5202_v54, %v5209_v55 }
 0x255   :  { %v13496_v40 = vsel %vm12926_vm0, %v9562_v29, 0.0  ;;  %v1685_v44 = vrot.slane %v295_v63, %v14799_v15  ;;  %v1689_v45 = vrot.slane %v295_v63, %v14801_v16 }
 0x256   :  { %v13469_v13 = vadd.f32 %v13468_v3, %v13467_v7  ;;  %v5212_v3 = vcombine.low %v1657_v51, %v1661_v53  ;;  %v7974_v27 = vmul.f32 %v5210_v0, %v111_v12  ;;  %v1709_v12 = vrot.slane %v296_v57, %v14791_v6 }
 0x257   :  { %v5245_v59 = vcombine.low %v1681_v43, %v1685_v44 }
 0x258   :  { %v13471_v24 = vadd.f32 %v13470_v8, %v13469_v13  ;;  %v9546_v8 = vcombine.high %v9544_v58, %v9544_v58  ;;  %v5226_v25 = vrot.slane %v5212_v3, %v14805_v20  ;;  %v9571_v39 = vrot.slane %v7974_v27, %v14805_v20  ;;  %v113_v3 = vld [vmem:[#allocation3 + $0x250] sm:$0xff] }
 0x25a   :  { %v13473_v32 = vadd.f32 %v13472_v22, %v13471_v24  ;;  %v13490_v22 = vsel %vm12926_vm0, %v9544_v58, 0.0  ;;  %v5219_v24 = vrot.slane %v5211_v1, %v14805_v20  ;;  %v13492_v30 = vsel %vm12926_vm0, %v9546_v8, 0.0 }
 0x25b   :  { %v9579_v53 = vcombine.high %v9571_v39, %v9571_v39  ;;  %v1697_v8 = vrot.slane %v296_v57, %v14785_v2 }
 0x25c   :  { %v13475_v37 = vadd.f32 %v13474_v28, %v13473_v32  ;;  %v9561_v28 = vrot.slane %v9547_v9, %v14805_v20  ;;  %v13494_v32 = vsel %vm12926_vm0, %v9554_v10, 0.0  ;;  %v5227_v33 = vcombine.low %v5219_v24, %v5226_v25 }
 0x25d   :  { %v13504_v1 = vsel %vm12926_vm0, %v9579_v53, 0.0  ;;  %v1701_v9 = vrot.slane %v296_v57, %v14787_v4  ;;  %v1705_v10 = vrot.slane %v296_v57, %v14789_v5 }
 0x25e   :  { %v13477_v42 = vadd.f32 %v13476_v36, %v13475_v37  ;;  %v9563_v37 = vcombine.high %v9561_v28, %v9561_v28  ;;  %v7975_v51 = vmul.f32 %v5227_v33, %v112_v41  ;;  %v1725_v41 = vrot.slane %v296_v57, %v14803_v17 }
 0x25f   :  { %v5263_v29 = vcombine.low %v1705_v10, %v1709_v12 }
 0x260   :  { %v13479_v48 = vadd.f32 %v13478_v38, %v13477_v42  ;;  %v9564_v38 = vcombine.high %v7974_v27, %v7974_v27  ;;  %v13500_v54 = vsel %vm12926_vm0, %v9563_v37, 0.0  ;;  %v9581_v63 = vcombine.high %v7975_v51, %v7975_v51 }
 0x261   :  { %v9588_v0 = vrot.slane %v7975_v51, %v14805_v20  ;;  %v1713_v37 = vrot.slane %v296_v57, %v14797_v14  ;;  %v5277_v43 = vrot.slane %v5263_v29, %v14805_v20  ;;  %v297_v51 = vld [vmem:[#allocation5 + $0x138] sm:$0xff] }
 0x262   :  { %v13481_v56 = vadd.f32 %v13480_v46, %v13479_v48  ;;  %v13498_v46 = vsel %vm12926_vm0, %v9561_v28, 0.0  ;;  %v5236_v48 = vrot.slane %v5228_v34, %v14805_v20  ;;  %v5262_v28 = vcombine.low %v1697_v8, %v1701_v9  ;;  %v116_v29 = vld [vmem:[#allocation3 + $0x268] sm:$0xff] }
 0x263   :  { %v9596_v23 = vcombine.high %v9588_v0, %v9588_v0 }
 0x264   :  { %v13483_v61 = vadd.f32 %v13482_v52, %v13481_v56  ;;  %v9578_v52 = vrot.slane %v9564_v38, %v14805_v20  ;;  %v13502_v56 = vsel %vm12926_vm0, %v9571_v39, 0.0  ;;  %v5244_v58 = vcombine.low %v5236_v48, %v5243_v49 }
 0x265   :  { %v13512_v34 = vsel %vm12926_vm0, %v9596_v23, 0.0  ;;  %v1717_v38 = vrot.slane %v296_v57, %v14799_v15  ;;  %v1721_v39 = vrot.slane %v296_v57, %v14801_v16 }
 0x266   :  { %v13485_v7 = vadd.f32 %v13484_v60, %v13483_v61  ;;  %v5246_v60 = vcombine.low %v1689_v45, %v1693_v47  ;;  %v7976_v21 = vmul.f32 %v5244_v58, %v113_v3  ;;  %v1741_v3 = vrot.slane %v297_v51, %v14791_v6 }
 0x267   :  { %v5279_v53 = vcombine.low %v1713_v37, %v1717_v38 }
 0x268   :  { %v13487_v13 = vadd.f32 %v13486_v62, %v13485_v7  ;;  %v9580_v62 = vcombine.high %v9578_v52, %v9578_v52  ;;  %v5260_v18 = vrot.slane %v5246_v60, %v14805_v20  ;;  %v9605_v33 = vrot.slane %v7976_v21, %v14805_v20  ;;  %v115_v60 = vld [vmem:[#allocation3 + $0x260] sm:$0xff] }
 0x26a   :  { %v13489_v26 = vadd.f32 %v13488_v11, %v13487_v13  ;;  %v13506_v11 = vsel %vm12926_vm0, %v9578_v52, 0.0  ;;  %v5253_v13 = vrot.slane %v5245_v59, %v14805_v20  ;;  %v13508_v24 = vsel %vm12926_vm0, %v9580_v62, 0.0 }
 0x26b   :  { %v9613_v47 = vcombine.high %v9605_v33, %v9605_v33  ;;  %v1729_v62 = vrot.slane %v297_v51, %v14785_v2 }
 0x26c   :  { %v13491_v31 = vadd.f32 %v13490_v22, %v13489_v26  ;;  %v9595_v22 = vrot.slane %v9581_v63, %v14805_v20  ;;  %v13510_v26 = vsel %vm12926_vm0, %v9588_v0, 0.0  ;;  %v5261_v27 = vcombine.low %v5253_v13, %v5260_v18 }
 0x26d   :  { %v13520_v59 = vsel %vm12926_vm0, %v9613_v47, 0.0  ;;  %v1733_v63 = vrot.slane %v297_v51, %v14787_v4  ;;  %v1737_v0 = vrot.slane %v297_v51, %v14789_v5 }
 0x26e   :  { %v13493_v36 = vadd.f32 %v13492_v30, %v13491_v31  ;;  %v9597_v31 = vcombine.high %v9595_v22, %v9595_v22  ;;  %v7977_v45 = vmul.f32 %v5261_v27, %v114_v35  ;;  %v1757_v35 = vrot.slane %v297_v51, %v14803_v17 }
 0x26f   :  { %v5297_v23 = vcombine.low %v1737_v0, %v1741_v3 }
 0x270   :  { %v13495_v42 = vadd.f32 %v13494_v32, %v13493_v36  ;;  %v9598_v32 = vcombine.high %v7976_v21, %v7976_v21  ;;  %v13516_v48 = vsel %vm12926_vm0, %v9597_v31, 0.0  ;;  %v9615_v57 = vcombine.high %v7977_v45, %v7977_v45 }
 0x271   :  { %v9622_v58 = vrot.slane %v7977_v45, %v14805_v20  ;;  %v1745_v31 = vrot.slane %v297_v51, %v14797_v14  ;;  %v5311_v37 = vrot.slane %v5297_v23, %v14805_v20  ;;  %v298_v45 = vld [vmem:[#allocation5 + $0x140] sm:$0xff] }
 0x272   :  { %v13497_v50 = vadd.f32 %v13496_v40, %v13495_v42  ;;  %v13514_v40 = vsel %vm12926_vm0, %v9595_v22, 0.0  ;;  %v5270_v42 = vrot.slane %v5262_v28, %v14805_v20  ;;  %v5296_v22 = vcombine.low %v1729_v62, %v1733_v63  ;;  %v118_v23 = vld [vmem:[#allocation3 + $0x278] sm:$0xff] }
 0x273   :  { %v9630_v12 = vcombine.high %v9622_v58, %v9622_v58 }
 0x274   :  { %v13499_v55 = vadd.f32 %v13498_v46, %v13497_v50  ;;  %v9612_v46 = vrot.slane %v9598_v32, %v14805_v20  ;;  %v13518_v50 = vsel %vm12926_vm0, %v9605_v33, 0.0  ;;  %v5278_v52 = vcombine.low %v5270_v42, %v5277_v43 }
 0x275   :  { %v13528_v28 = vsel %vm12926_vm0, %v9630_v12, 0.0  ;;  %v1749_v32 = vrot.slane %v297_v51, %v14799_v15  ;;  %v1753_v33 = vrot.slane %v297_v51, %v14801_v16 }
 0x276   :  { %v13501_v61 = vadd.f32 %v13500_v54, %v13499_v55  ;;  %v5280_v54 = vcombine.low %v1721_v39, %v1725_v41  ;;  %v7978_v10 = vmul.f32 %v5278_v52, %v115_v60  ;;  %v1773_v60 = vrot.slane %v298_v45, %v14791_v6 }
 0x277   :  { %v5313_v47 = vcombine.low %v1745_v31, %v1749_v32 }
 0x278   :  { %v13503_v7 = vadd.f32 %v13502_v56, %v13501_v61  ;;  %v9614_v56 = vcombine.high %v9612_v46, %v9612_v46  ;;  %v5294_v8 = vrot.slane %v5280_v54, %v14805_v20  ;;  %v9639_v27 = vrot.slane %v7978_v10, %v14805_v20  ;;  %v117_v54 = vld [vmem:[#allocation3 + $0x270] sm:$0xff] }
 0x27a   :  { %v13505_v19 = vadd.f32 %v13504_v1, %v13503_v7  ;;  %v13522_v1 = vsel %vm12926_vm0, %v9612_v46, 0.0  ;;  %v5287_v7 = vrot.slane %v5279_v53, %v14805_v20  ;;  %v13524_v13 = vsel %vm12926_vm0, %v9614_v56, 0.0 }
 0x27b   :  { %v9647_v41 = vcombine.high %v9639_v27, %v9639_v27  ;;  %v1761_v56 = vrot.slane %v298_v45, %v14785_v2 }
 0x27c   :  { %v13507_v25 = vadd.f32 %v13506_v11, %v13505_v19  ;;  %v9629_v11 = vrot.slane %v9615_v57, %v14805_v20  ;;  %v13526_v19 = vsel %vm12926_vm0, %v9622_v58, 0.0  ;;  %v5295_v21 = vcombine.low %v5287_v7, %v5294_v8 }
 0x27d   :  { %v13536_v53 = vsel %vm12926_vm0, %v9647_v41, 0.0  ;;  %v1765_v57 = vrot.slane %v298_v45, %v14787_v4  ;;  %v1769_v58 = vrot.slane %v298_v45, %v14789_v5 }
 0x27e   :  { %v13509_v30 = vadd.f32 %v13508_v24, %v13507_v25  ;;  %v9631_v25 = vcombine.high %v9629_v11, %v9629_v11  ;;  %v7979_v39 = vmul.f32 %v5295_v21, %v116_v29  ;;  %v1789_v29 = vrot.slane %v298_v45, %v14803_v17 }
 0x27f   :  { %v5331_v12 = vcombine.low %v1769_v58, %v1773_v60 }
 0x280   :  { %v13511_v36 = vadd.f32 %v13510_v26, %v13509_v30  ;;  %v9632_v26 = vcombine.high %v7978_v10, %v7978_v10  ;;  %v13532_v42 = vsel %vm12926_vm0, %v9631_v25, 0.0  ;;  %v9649_v51 = vcombine.high %v7979_v39, %v7979_v39 }
 0x281   :  { %v9656_v52 = vrot.slane %v7979_v39, %v14805_v20  ;;  %v1777_v25 = vrot.slane %v298_v45, %v14797_v14  ;;  %v5345_v31 = vrot.slane %v5331_v12, %v14805_v20  ;;  %v299_v39 = vld [vmem:[#allocation5 + $0x148] sm:$0xff]  ;;  %v120_v12 = vld [vmem:[#allocation3 + $0x288] sm:$0xff] }
 0x282   :  { %v13513_v44 = vadd.f32 %v13512_v34, %v13511_v36  ;;  %v13530_v34 = vsel %vm12926_vm0, %v9629_v11, 0.0  ;;  %v5304_v36 = vrot.slane %v5296_v22, %v14805_v20  ;;  %v5330_v11 = vcombine.low %v1761_v56, %v1765_v57 }
 0x283   :  { %v9664_v3 = vcombine.high %v9656_v52, %v9656_v52 }
 0x284   :  { %v13515_v49 = vadd.f32 %v13514_v40, %v13513_v44  ;;  %v9646_v40 = vrot.slane %v9632_v26, %v14805_v20  ;;  %v13534_v44 = vsel %vm12926_vm0, %v9639_v27, 0.0  ;;  %v5312_v46 = vcombine.low %v5304_v36, %v5311_v37 }
 0x285   :  { %v13544_v22 = vsel %vm12926_vm0, %v9664_v3, 0.0  ;;  %v1781_v26 = vrot.slane %v298_v45, %v14799_v15  ;;  %v1785_v27 = vrot.slane %v298_v45, %v14801_v16 }
 0x286   :  { %v13517_v55 = vadd.f32 %v13516_v48, %v13515_v49  ;;  %v5314_v48 = vcombine.low %v1753_v33, %v1757_v35  ;;  %v7980_v0 = vmul.f32 %v5312_v46, %v117_v54  ;;  %v1805_v54 = vrot.slane %v299_v39, %v14791_v6 }
 0x287   :  { %v5347_v41 = vcombine.low %v1777_v25, %v1781_v26 }
 0x288   :  { %v13519_v61 = vadd.f32 %v13518_v50, %v13517_v55  ;;  %v9648_v50 = vcombine.high %v9646_v40, %v9646_v40  ;;  %v5328_v62 = vrot.slane %v5314_v48, %v14805_v20  ;;  %v9673_v21 = vrot.slane %v7980_v0, %v14805_v20  ;;  %v119_v48 = vld [vmem:[#allocation3 + $0x280] sm:$0xff] }
 0x28a   :  { %v13521_v9 = vadd.f32 %v13520_v59, %v13519_v61  ;;  %v13538_v59 = vsel %vm12926_vm0, %v9646_v40, 0.0  ;;  %v5321_v61 = vrot.slane %v5313_v47, %v14805_v20  ;;  %v13540_v7 = vsel %vm12926_vm0, %v9648_v50, 0.0 }
 0x28b   :  { %v9681_v35 = vcombine.high %v9673_v21, %v9673_v21  ;;  %v1793_v50 = vrot.slane %v299_v39, %v14785_v2 }
 0x28c   :  { %v13523_v18 = vadd.f32 %v13522_v1, %v13521_v9  ;;  %v9663_v1 = vrot.slane %v9649_v51, %v14805_v20  ;;  %v13542_v9 = vsel %vm12926_vm0, %v9656_v52, 0.0  ;;  %v5329_v10 = vcombine.low %v5321_v61, %v5328_v62 }
 0x28d   :  { %v13552_v47 = vsel %vm12926_vm0, %v9681_v35, 0.0  ;;  %v1797_v51 = vrot.slane %v299_v39, %v14787_v4  ;;  %v1801_v52 = vrot.slane %v299_v39, %v14789_v5 }
 0x28e   :  { %v13525_v24 = vadd.f32 %v13524_v13, %v13523_v18  ;;  %v9665_v18 = vcombine.high %v9663_v1, %v9663_v1  ;;  %v7981_v33 = vmul.f32 %v5329_v10, %v118_v23  ;;  %v1821_v23 = vrot.slane %v299_v39, %v14803_v17 }
 0x28f   :  { %v5365_v3 = vcombine.low %v1801_v52, %v1805_v54 }
 0x290   :  { %v13527_v30 = vadd.f32 %v13526_v19, %v13525_v24  ;;  %v9666_v19 = vcombine.high %v7980_v0, %v7980_v0  ;;  %v13548_v36 = vsel %vm12926_vm0, %v9665_v18, 0.0  ;;  %v9683_v45 = vcombine.high %v7981_v33, %v7981_v33 }
 0x291   :  { %v9690_v46 = vrot.slane %v7981_v33, %v14805_v20  ;;  %v1809_v18 = vrot.slane %v299_v39, %v14797_v14  ;;  %v5379_v25 = vrot.slane %v5365_v3, %v14805_v20  ;;  %v300_v33 = vld [vmem:[#allocation5 + $0x150] sm:$0xff]  ;;  %v122_v3 = vld [vmem:[#allocation3 + $0x298] sm:$0xff] }
 0x292   :  { %v13529_v38 = vadd.f32 %v13528_v28, %v13527_v30  ;;  %v13546_v28 = vsel %vm12926_vm0, %v9663_v1, 0.0  ;;  %v5338_v30 = vrot.slane %v5330_v11, %v14805_v20  ;;  %v5364_v1 = vcombine.low %v1793_v50, %v1797_v51 }
 0x293   :  { %v9698_v60 = vcombine.high %v9690_v46, %v9690_v46 }
 0x294   :  { %v13531_v43 = vadd.f32 %v13530_v34, %v13529_v38  ;;  %v9680_v34 = vrot.slane %v9666_v19, %v14805_v20  ;;  %v13550_v38 = vsel %vm12926_vm0, %v9673_v21, 0.0  ;;  %v5346_v40 = vcombine.low %v5338_v30, %v5345_v31 }
 0x295   :  { %v13560_v11 = vsel %vm12926_vm0, %v9698_v60, 0.0  ;;  %v1813_v19 = vrot.slane %v299_v39, %v14799_v15  ;;  %v1817_v21 = vrot.slane %v299_v39, %v14801_v16 }
 0x296   :  { %v13533_v49 = vadd.f32 %v13532_v42, %v13531_v43  ;;  %v5348_v42 = vcombine.low %v1785_v27, %v1789_v29  ;;  %v7982_v58 = vmul.f32 %v5346_v40, %v119_v48  ;;  %v1837_v48 = vrot.slane %v300_v33, %v14791_v6 }
 0x297   :  { %v5381_v35 = vcombine.low %v1809_v18, %v1813_v19 }
 0x298   :  { %v13535_v55 = vadd.f32 %v13534_v44, %v13533_v49  ;;  %v9682_v44 = vcombine.high %v9680_v34, %v9680_v34  ;;  %v5362_v56 = vrot.slane %v5348_v42, %v14805_v20  ;;  %v9707_v10 = vrot.slane %v7982_v58, %v14805_v20  ;;  %v121_v42 = vld [vmem:[#allocation3 + $0x290] sm:$0xff] }
 0x29a   :  { %v13537_v63 = vadd.f32 %v13536_v53, %v13535_v55  ;;  %v13554_v53 = vsel %vm12926_vm0, %v9680_v34, 0.0  ;;  %v5355_v55 = vrot.slane %v5347_v41, %v14805_v20  ;;  %v13556_v61 = vsel %vm12926_vm0, %v9682_v44, 0.0 }
 0x29b   :  { %v9715_v29 = vcombine.high %v9707_v10, %v9707_v10  ;;  %v1825_v44 = vrot.slane %v300_v33, %v14785_v2 }
 0x29c   :  { %v13539_v8 = vadd.f32 %v13538_v59, %v13537_v63  ;;  %v9697_v59 = vrot.slane %v9683_v45, %v14805_v20  ;;  %v13558_v63 = vsel %vm12926_vm0, %v9690_v46, 0.0  ;;  %v5363_v0 = vcombine.low %v5355_v55, %v5362_v56 }
 0x29d   :  { %v13568_v41 = vsel %vm12926_vm0, %v9715_v29, 0.0  ;;  %v1829_v45 = vrot.slane %v300_v33, %v14787_v4  ;;  %v1833_v46 = vrot.slane %v300_v33, %v14789_v5 }
 0x29e   :  { %v13541_v13 = vadd.f32 %v13540_v7, %v13539_v8  ;;  %v9699_v8 = vcombine.high %v9697_v59, %v9697_v59  ;;  %v7983_v27 = vmul.f32 %v5363_v0, %v120_v12  ;;  %v1853_v12 = vrot.slane %v300_v33, %v14803_v17 }
 0x29f   :  { %v5399_v60 = vcombine.low %v1833_v46, %v1837_v48 }
 0x2a0   :  { %v13543_v24 = vadd.f32 %v13542_v9, %v13541_v13  ;;  %v9700_v9 = vcombine.high %v7982_v58, %v7982_v58  ;;  %v13564_v30 = vsel %vm12926_vm0, %v9699_v8, 0.0  ;;  %v9717_v39 = vcombine.high %v7983_v27, %v7983_v27 }
 0x2a1   :  { %v9724_v40 = vrot.slane %v7983_v27, %v14805_v20  ;;  %v1841_v8 = vrot.slane %v300_v33, %v14797_v14  ;;  %v5413_v18 = vrot.slane %v5399_v60, %v14805_v20  ;;  %v301_v27 = vld [vmem:[#allocation5 + $0x158] sm:$0xff] }
 0x2a2   :  { %v13545_v32 = vadd.f32 %v13544_v22, %v13543_v24  ;;  %v13562_v22 = vsel %vm12926_vm0, %v9697_v59, 0.0  ;;  %v5372_v24 = vrot.slane %v5364_v1, %v14805_v20  ;;  %v5398_v59 = vcombine.low %v1825_v44, %v1829_v45  ;;  %v124_v60 = vld [vmem:[#allocation3 + $0x2a8] sm:$0xff] }
 0x2a3   :  { %v9732_v54 = vcombine.high %v9724_v40, %v9724_v40 }
 0x2a4   :  { %v13547_v37 = vadd.f32 %v13546_v28, %v13545_v32  ;;  %v9714_v28 = vrot.slane %v9700_v9, %v14805_v20  ;;  %v13566_v32 = vsel %vm12926_vm0, %v9707_v10, 0.0  ;;  %v5380_v34 = vcombine.low %v5372_v24, %v5379_v25 }
 0x2a5   :  { %v13576_v1 = vsel %vm12926_vm0, %v9732_v54, 0.0  ;;  %v1845_v9 = vrot.slane %v300_v33, %v14799_v15  ;;  %v1849_v10 = vrot.slane %v300_v33, %v14801_v16 }
 0x2a6   :  { %v13549_v43 = vadd.f32 %v13548_v36, %v13547_v37  ;;  %v5382_v36 = vcombine.low %v1817_v21, %v1821_v23  ;;  %v7984_v52 = vmul.f32 %v5380_v34, %v121_v42  ;;  %v1869_v42 = vrot.slane %v301_v27, %v14791_v6 }
 0x2a7   :  { %v5415_v29 = vcombine.low %v1841_v8, %v1845_v9 }
 0x2a8   :  { %v13551_v49 = vadd.f32 %v13550_v38, %v13549_v43  ;;  %v9716_v38 = vcombine.high %v9714_v28, %v9714_v28  ;;  %v5396_v50 = vrot.slane %v5382_v36, %v14805_v20  ;;  %v9741_v0 = vrot.slane %v7984_v52, %v14805_v20  ;;  %v123_v36 = vld [vmem:[#allocation3 + $0x2a0] sm:$0xff] }
 0x2aa   :  { %v13553_v57 = vadd.f32 %v13552_v47, %v13551_v49  ;;  %v13570_v47 = vsel %vm12926_vm0, %v9714_v28, 0.0  ;;  %v5389_v49 = vrot.slane %v5381_v35, %v14805_v20  ;;  %v13572_v55 = vsel %vm12926_vm0, %v9716_v38, 0.0 }
 0x2ab   :  { %v9749_v23 = vcombine.high %v9741_v0, %v9741_v0  ;;  %v1857_v38 = vrot.slane %v301_v27, %v14785_v2 }
 0x2ac   :  { %v13555_v62 = vadd.f32 %v13554_v53, %v13553_v57  ;;  %v9731_v53 = vrot.slane %v9717_v39, %v14805_v20  ;;  %v13574_v57 = vsel %vm12926_vm0, %v9724_v40, 0.0  ;;  %v5397_v58 = vcombine.low %v5389_v49, %v5396_v50 }
 0x2ad   :  { %v13584_v35 = vsel %vm12926_vm0, %v9749_v23, 0.0  ;;  %v1861_v39 = vrot.slane %v301_v27, %v14787_v4  ;;  %v1865_v40 = vrot.slane %v301_v27, %v14789_v5 }
 0x2ae   :  { %v13557_v7 = vadd.f32 %v13556_v61, %v13555_v62  ;;  %v9733_v62 = vcombine.high %v9731_v53, %v9731_v53  ;;  %v7985_v21 = vmul.f32 %v5397_v58, %v122_v3  ;;  %v1885_v3 = vrot.slane %v301_v27, %v14803_v17 }
 0x2af   :  { %v5433_v54 = vcombine.low %v1865_v40, %v1869_v42 }
 0x2b0   :  { %v13559_v13 = vadd.f32 %v13558_v63, %v13557_v7  ;;  %v9734_v63 = vcombine.high %v7984_v52, %v7984_v52  ;;  %v13580_v24 = vsel %vm12926_vm0, %v9733_v62, 0.0  ;;  %v9751_v33 = vcombine.high %v7985_v21, %v7985_v21 }
 0x2b1   :  { %v9758_v34 = vrot.slane %v7985_v21, %v14805_v20  ;;  %v1873_v62 = vrot.slane %v301_v27, %v14797_v14  ;;  %v5447_v8 = vrot.slane %v5433_v54, %v14805_v20  ;;  %v302_v21 = vld [vmem:[#allocation5 + $0x160] sm:$0xff] }
 0x2b2   :  { %v13561_v26 = vadd.f32 %v13560_v11, %v13559_v13  ;;  %v13578_v11 = vsel %vm12926_vm0, %v9731_v53, 0.0  ;;  %v5406_v13 = vrot.slane %v5398_v59, %v14805_v20  ;;  %v5432_v53 = vcombine.low %v1857_v38, %v1861_v39  ;;  %v126_v54 = vld [vmem:[#allocation3 + $0x2b8] sm:$0xff] }
 0x2b3   :  { %v9766_v48 = vcombine.high %v9758_v34, %v9758_v34 }
 0x2b4   :  { %v13563_v31 = vadd.f32 %v13562_v22, %v13561_v26  ;;  %v9748_v22 = vrot.slane %v9734_v63, %v14805_v20  ;;  %v13582_v26 = vsel %vm12926_vm0, %v9741_v0, 0.0  ;;  %v5414_v28 = vcombine.low %v5406_v13, %v5413_v18 }
 0x2b5   :  { %v13592_v59 = vsel %vm12926_vm0, %v9766_v48, 0.0  ;;  %v1877_v63 = vrot.slane %v301_v27, %v14799_v15  ;;  %v1881_v0 = vrot.slane %v301_v27, %v14801_v16 }
 0x2b6   :  { %v13565_v37 = vadd.f32 %v13564_v30, %v13563_v31  ;;  %v5416_v30 = vcombine.low %v1849_v10, %v1853_v12  ;;  %v7986_v46 = vmul.f32 %v5414_v28, %v123_v36  ;;  %v1901_v36 = vrot.slane %v302_v21, %v14791_v6 }
 0x2b7   :  { %v5449_v23 = vcombine.low %v1873_v62, %v1877_v63 }
 0x2b8   :  { %v13567_v43 = vadd.f32 %v13566_v32, %v13565_v37  ;;  %v9750_v32 = vcombine.high %v9748_v22, %v9748_v22  ;;  %v5430_v44 = vrot.slane %v5416_v30, %v14805_v20  ;;  %v9775_v58 = vrot.slane %v7986_v46, %v14805_v20  ;;  %v125_v30 = vld [vmem:[#allocation3 + $0x2b0] sm:$0xff] }
 0x2ba   :  { %v13569_v51 = vadd.f32 %v13568_v41, %v13567_v43  ;;  %v13586_v41 = vsel %vm12926_vm0, %v9748_v22, 0.0  ;;  %v5423_v43 = vrot.slane %v5415_v29, %v14805_v20  ;;  %v13588_v49 = vsel %vm12926_vm0, %v9750_v32, 0.0 }
 0x2bb   :  { %v9783_v12 = vcombine.high %v9775_v58, %v9775_v58  ;;  %v1889_v32 = vrot.slane %v302_v21, %v14785_v2 }
 0x2bc   :  { %v13571_v56 = vadd.f32 %v13570_v47, %v13569_v51  ;;  %v9765_v47 = vrot.slane %v9751_v33, %v14805_v20  ;;  %v13590_v51 = vsel %vm12926_vm0, %v9758_v34, 0.0  ;;  %v5431_v52 = vcombine.low %v5423_v43, %v5430_v44 }
 0x2bd   :  { %v13600_v29 = vsel %vm12926_vm0, %v9783_v12, 0.0  ;;  %v1893_v33 = vrot.slane %v302_v21, %v14787_v4  ;;  %v1897_v34 = vrot.slane %v302_v21, %v14789_v5 }
 0x2be   :  { %v13573_v61 = vadd.f32 %v13572_v55, %v13571_v56  ;;  %v9767_v56 = vcombine.high %v9765_v47, %v9765_v47  ;;  %v7987_v10 = vmul.f32 %v5431_v52, %v124_v60  ;;  %v1917_v60 = vrot.slane %v302_v21, %v14803_v17 }
 0x2bf   :  { %v5467_v48 = vcombine.low %v1897_v34, %v1901_v36 }
 0x2c0   :  { %v13575_v7 = vadd.f32 %v13574_v57, %v13573_v61  ;;  %v9768_v57 = vcombine.high %v7986_v46, %v7986_v46  ;;  %v13596_v13 = vsel %vm12926_vm0, %v9767_v56, 0.0  ;;  %v9785_v27 = vcombine.high %v7987_v10, %v7987_v10 }
 0x2c1   :  { %v9792_v28 = vrot.slane %v7987_v10, %v14805_v20  ;;  %v1905_v56 = vrot.slane %v302_v21, %v14797_v14  ;;  %v5481_v62 = vrot.slane %v5467_v48, %v14805_v20  ;;  %v303_v10 = vld [vmem:[#allocation5 + $0x168] sm:$0xff]  ;;  %v128_v48 = vld [vmem:[#allocation3 + $0x2c8] sm:$0xff] }
 0x2c2   :  { %v13577_v19 = vadd.f32 %v13576_v1, %v13575_v7  ;;  %v13594_v1 = vsel %vm12926_vm0, %v9765_v47, 0.0  ;;  %v5440_v7 = vrot.slane %v5432_v53, %v14805_v20  ;;  %v5466_v47 = vcombine.low %v1889_v32, %v1893_v33 }
 0x2c3   :  { %v9800_v42 = vcombine.high %v9792_v28, %v9792_v28 }
 0x2c4   :  { %v13579_v25 = vadd.f32 %v13578_v11, %v13577_v19  ;;  %v9782_v11 = vrot.slane %v9768_v57, %v14805_v20  ;;  %v13598_v19 = vsel %vm12926_vm0, %v9775_v58, 0.0  ;;  %v5448_v22 = vcombine.low %v5440_v7, %v5447_v8 }
 0x2c5   :  { %v13608_v53 = vsel %vm12926_vm0, %v9800_v42, 0.0  ;;  %v1909_v57 = vrot.slane %v302_v21, %v14799_v15  ;;  %v1913_v58 = vrot.slane %v302_v21, %v14801_v16 }
 0x2c6   :  { %v13581_v31 = vadd.f32 %v13580_v24, %v13579_v25  ;;  %v5450_v24 = vcombine.low %v1881_v0, %v1885_v3  ;;  %v7988_v40 = vmul.f32 %v5448_v22, %v125_v30  ;;  %v1933_v30 = vrot.slane %v303_v10, %v14791_v6 }
 0x2c7   :  { %v5483_v12 = vcombine.low %v1905_v56, %v1909_v57 }
 0x2c8   :  { %v13583_v37 = vadd.f32 %v13582_v26, %v13581_v31  ;;  %v9784_v26 = vcombine.high %v9782_v11, %v9782_v11  ;;  %v5464_v38 = vrot.slane %v5450_v24, %v14805_v20  ;;  %v9809_v52 = vrot.slane %v7988_v40, %v14805_v20  ;;  %v127_v24 = vld [vmem:[#allocation3 + $0x2c0] sm:$0xff] }
 0x2ca   :  { %v13585_v45 = vadd.f32 %v13584_v35, %v13583_v37  ;;  %v13602_v35 = vsel %vm12926_vm0, %v9782_v11, 0.0  ;;  %v5457_v37 = vrot.slane %v5449_v23, %v14805_v20  ;;  %v13604_v43 = vsel %vm12926_vm0, %v9784_v26, 0.0 }
 0x2cb   :  { %v9817_v3 = vcombine.high %v9809_v52, %v9809_v52  ;;  %v1921_v26 = vrot.slane %v303_v10, %v14785_v2 }
 0x2cc   :  { %v13587_v50 = vadd.f32 %v13586_v41, %v13585_v45  ;;  %v9799_v41 = vrot.slane %v9785_v27, %v14805_v20  ;;  %v13606_v45 = vsel %vm12926_vm0, %v9792_v28, 0.0  ;;  %v5465_v46 = vcombine.low %v5457_v37, %v5464_v38 }
 0x2cd   :  { %v13616_v23 = vsel %vm12926_vm0, %v9817_v3, 0.0  ;;  %v1925_v27 = vrot.slane %v303_v10, %v14787_v4  ;;  %v1929_v28 = vrot.slane %v303_v10, %v14789_v5 }
 0x2ce   :  { %v13589_v55 = vadd.f32 %v13588_v49, %v13587_v50  ;;  %v9801_v50 = vcombine.high %v9799_v41, %v9799_v41  ;;  %v7989_v0 = vmul.f32 %v5465_v46, %v126_v54  ;;  %v1949_v54 = vrot.slane %v303_v10, %v14803_v17 }
 0x2cf   :  { %v5501_v42 = vcombine.low %v1929_v28, %v1933_v30 }
 0x2d0   :  { %v13591_v61 = vadd.f32 %v13590_v51, %v13589_v55  ;;  %v9802_v51 = vcombine.high %v7988_v40, %v7988_v40  ;;  %v13612_v7 = vsel %vm12926_vm0, %v9801_v50, 0.0  ;;  %v9819_v21 = vcombine.high %v7989_v0, %v7989_v0 }
 0x2d1   :  { %v9826_v22 = vrot.slane %v7989_v0, %v14805_v20  ;;  %v1937_v50 = vrot.slane %v303_v10, %v14797_v14  ;;  %v5515_v56 = vrot.slane %v5501_v42, %v14805_v20  ;;  %v304_v0 = vld [vmem:[#allocation5 + $0x170] sm:$0xff]  ;;  %v130_v42 = vld [vmem:[#allocation3 + $0x2d8] sm:$0xff] }
 0x2d2   :  { %v13593_v9 = vadd.f32 %v13592_v59, %v13591_v61  ;;  %v13610_v59 = vsel %vm12926_vm0, %v9799_v41, 0.0  ;;  %v5474_v61 = vrot.slane %v5466_v47, %v14805_v20  ;;  %v5500_v41 = vcombine.low %v1921_v26, %v1925_v27 }
 0x2d3   :  { %v9834_v36 = vcombine.high %v9826_v22, %v9826_v22 }
 0x2d4   :  { %v13595_v18 = vadd.f32 %v13594_v1, %v13593_v9  ;;  %v9816_v1 = vrot.slane %v9802_v51, %v14805_v20  ;;  %v13614_v9 = vsel %vm12926_vm0, %v9809_v52, 0.0  ;;  %v5482_v11 = vcombine.low %v5474_v61, %v5481_v62 }
 0x2d5   :  { %v13624_v47 = vsel %vm12926_vm0, %v9834_v36, 0.0  ;;  %v1941_v51 = vrot.slane %v303_v10, %v14799_v15  ;;  %v1945_v52 = vrot.slane %v303_v10, %v14801_v16 }
 0x2d6   :  { %v13597_v25 = vadd.f32 %v13596_v13, %v13595_v18  ;;  %v5484_v13 = vcombine.low %v1913_v58, %v1917_v60  ;;  %v7990_v34 = vmul.f32 %v5482_v11, %v127_v24  ;;  %v1965_v24 = vrot.slane %v304_v0, %v14791_v6 }
 0x2d7   :  { %v5517_v3 = vcombine.low %v1937_v50, %v1941_v51 }
 0x2d8   :  { %v13599_v31 = vadd.f32 %v13598_v19, %v13597_v25  ;;  %v9818_v19 = vcombine.high %v9816_v1, %v9816_v1  ;;  %v5498_v32 = vrot.slane %v5484_v13, %v14805_v20  ;;  %v9843_v46 = vrot.slane %v7990_v34, %v14805_v20  ;;  %v129_v13 = vld [vmem:[#allocation3 + $0x2d0] sm:$0xff] }
 0x2da   :  { %v13601_v39 = vadd.f32 %v13600_v29, %v13599_v31  ;;  %v13618_v29 = vsel %vm12926_vm0, %v9816_v1, 0.0  ;;  %v5491_v31 = vrot.slane %v5483_v12, %v14805_v20  ;;  %v13620_v37 = vsel %vm12926_vm0, %v9818_v19, 0.0 }
 0x2db   :  { %v9851_v60 = vcombine.high %v9843_v46, %v9843_v46  ;;  %v1953_v19 = vrot.slane %v304_v0, %v14785_v2 }
 0x2dc   :  { %v13603_v44 = vadd.f32 %v13602_v35, %v13601_v39  ;;  %v9833_v35 = vrot.slane %v9819_v21, %v14805_v20  ;;  %v13622_v39 = vsel %vm12926_vm0, %v9826_v22, 0.0  ;;  %v5499_v40 = vcombine.low %v5491_v31, %v5498_v32 }
 0x2dd   :  { %v13632_v12 = vsel %vm12926_vm0, %v9851_v60, 0.0  ;;  %v1957_v21 = vrot.slane %v304_v0, %v14787_v4  ;;  %v1961_v22 = vrot.slane %v304_v0, %v14789_v5 }
 0x2de   :  { %v13605_v49 = vadd.f32 %v13604_v43, %v13603_v44  ;;  %v9835_v44 = vcombine.high %v9833_v35, %v9833_v35  ;;  %v7991_v58 = vmul.f32 %v5499_v40, %v128_v48  ;;  %v1981_v48 = vrot.slane %v304_v0, %v14803_v17 }
 0x2df   :  { %v5535_v36 = vcombine.low %v1961_v22, %v1965_v24 }
 0x2e0   :  { %v13607_v55 = vadd.f32 %v13606_v45, %v13605_v49  ;;  %v9836_v45 = vcombine.high %v7990_v34, %v7990_v34  ;;  %v13628_v61 = vsel %vm12926_vm0, %v9835_v44, 0.0  ;;  %v9853_v10 = vcombine.high %v7991_v58, %v7991_v58 }
 0x2e1   :  { %v9860_v11 = vrot.slane %v7991_v58, %v14805_v20  ;;  %v1969_v44 = vrot.slane %v304_v0, %v14797_v14  ;;  %v5549_v50 = vrot.slane %v5535_v36, %v14805_v20  ;;  %v305_v58 = vld [vmem:[#allocation5 + $0x178] sm:$0xff] }
 0x2e2   :  { %v13609_v63 = vadd.f32 %v13608_v53, %v13607_v55  ;;  %v13626_v53 = vsel %vm12926_vm0, %v9833_v35, 0.0  ;;  %v5508_v55 = vrot.slane %v5500_v41, %v14805_v20  ;;  %v5534_v35 = vcombine.low %v1953_v19, %v1957_v21  ;;  %v132_v36 = vld [vmem:[#allocation3 + $0x2e8] sm:$0xff] }
 0x2e3   :  { %v9868_v30 = vcombine.high %v9860_v11, %v9860_v11 }
 0x2e4   :  { %v13611_v8 = vadd.f32 %v13610_v59, %v13609_v63  ;;  %v9850_v59 = vrot.slane %v9836_v45, %v14805_v20  ;;  %v13630_v63 = vsel %vm12926_vm0, %v9843_v46, 0.0  ;;  %v5516_v1 = vcombine.low %v5508_v55, %v5515_v56 }
 0x2e5   :  { %v13640_v41 = vsel %vm12926_vm0, %v9868_v30, 0.0  ;;  %v1973_v45 = vrot.slane %v304_v0, %v14799_v15  ;;  %v1977_v46 = vrot.slane %v304_v0, %v14801_v16 }
 0x2e6   :  { %v13613_v18 = vadd.f32 %v13612_v7, %v13611_v8  ;;  %v5518_v7 = vcombine.low %v1945_v52, %v1949_v54  ;;  %v7992_v28 = vmul.f32 %v5516_v1, %v129_v13  ;;  %v1997_v13 = vrot.slane %v305_v58, %v14791_v6 }
 0x2e7   :  { %v5551_v60 = vcombine.low %v1969_v44, %v1973_v45 }
 0x2e8   :  { %v13615_v25 = vadd.f32 %v13614_v9, %v13613_v18  ;;  %v9852_v9 = vcombine.high %v9850_v59, %v9850_v59  ;;  %v5532_v26 = vrot.slane %v5518_v7, %v14805_v20  ;;  %v9877_v40 = vrot.slane %v7992_v28, %v14805_v20  ;;  %v131_v7 = vld [vmem:[#allocation3 + $0x2e0] sm:$0xff] }
 0x2ea   :  { %v13617_v33 = vadd.f32 %v13616_v23, %v13615_v25  ;;  %v13634_v23 = vsel %vm12926_vm0, %v9850_v59, 0.0  ;;  %v5525_v25 = vrot.slane %v5517_v3, %v14805_v20  ;;  %v13636_v31 = vsel %vm12926_vm0, %v9852_v9, 0.0 }
 0x2eb   :  { %v9885_v54 = vcombine.high %v9877_v40, %v9877_v40  ;;  %v1985_v9 = vrot.slane %v305_v58, %v14785_v2 }
 0x2ec   :  { %v13619_v38 = vadd.f32 %v13618_v29, %v13617_v33  ;;  %v9867_v29 = vrot.slane %v9853_v10, %v14805_v20  ;;  %v13638_v33 = vsel %vm12926_vm0, %v9860_v11, 0.0  ;;  %v5533_v34 = vcombine.low %v5525_v25, %v5532_v26 }
 0x2ed   :  { %v13648_v3 = vsel %vm12926_vm0, %v9885_v54, 0.0  ;;  %v1989_v10 = vrot.slane %v305_v58, %v14787_v4  ;;  %v1993_v11 = vrot.slane %v305_v58, %v14789_v5 }
 0x2ee   :  { %v13621_v43 = vadd.f32 %v13620_v37, %v13619_v38  ;;  %v9869_v38 = vcombine.high %v9867_v29, %v9867_v29  ;;  %v7993_v52 = vmul.f32 %v5533_v34, %v130_v42  ;;  %v2013_v42 = vrot.slane %v305_v58, %v14803_v17 }
 0x2ef   :  { %v5569_v30 = vcombine.low %v1993_v11, %v1997_v13 }
 0x2f0   :  { %v13623_v49 = vadd.f32 %v13622_v39, %v13621_v43  ;;  %v9870_v39 = vcombine.high %v7992_v28, %v7992_v28  ;;  %v13644_v55 = vsel %vm12926_vm0, %v9869_v38, 0.0  ;;  %v9887_v0 = vcombine.high %v7993_v52, %v7993_v52 }
 0x2f1   :  { %v9894_v1 = vrot.slane %v7993_v52, %v14805_v20  ;;  %v2001_v38 = vrot.slane %v305_v58, %v14797_v14  ;;  %v5583_v44 = vrot.slane %v5569_v30, %v14805_v20  ;;  %v306_v52 = vld [vmem:[#allocation5 + $0x180] sm:$0xff] }
 0x2f2   :  { %v13625_v57 = vadd.f32 %v13624_v47, %v13623_v49  ;;  %v13642_v47 = vsel %vm12926_vm0, %v9867_v29, 0.0  ;;  %v5542_v49 = vrot.slane %v5534_v35, %v14805_v20  ;;  %v5568_v29 = vcombine.low %v1985_v9, %v1989_v10  ;;  %v134_v30 = vld [vmem:[#allocation3 + $0x2f8] sm:$0xff] }
 0x2f3   :  { %v9902_v24 = vcombine.high %v9894_v1, %v9894_v1 }
 0x2f4   :  { %v13627_v62 = vadd.f32 %v13626_v53, %v13625_v57  ;;  %v9884_v53 = vrot.slane %v9870_v39, %v14805_v20  ;;  %v13646_v57 = vsel %vm12926_vm0, %v9877_v40, 0.0  ;;  %v5550_v59 = vcombine.low %v5542_v49, %v5549_v50 }
 0x2f5   :  { %v13656_v35 = vsel %vm12926_vm0, %v9902_v24, 0.0  ;;  %v2005_v39 = vrot.slane %v305_v58, %v14799_v15  ;;  %v2009_v40 = vrot.slane %v305_v58, %v14801_v16 }
 0x2f6   :  { %v13629_v8 = vadd.f32 %v13628_v61, %v13627_v62  ;;  %v5552_v61 = vcombine.low %v1977_v46, %v1981_v48  ;;  %v7994_v22 = vmul.f32 %v5550_v59, %v131_v7  ;;  %v2029_v7 = vrot.slane %v306_v52, %v14791_v6 }
 0x2f7   :  { %v5585_v54 = vcombine.low %v2001_v38, %v2005_v39 }
 0x2f8   :  { %v13631_v18 = vadd.f32 %v13630_v63, %v13629_v8  ;;  %v9886_v63 = vcombine.high %v9884_v53, %v9884_v53  ;;  %v5566_v19 = vrot.slane %v5552_v61, %v14805_v20  ;;  %v9911_v34 = vrot.slane %v7994_v22, %v14805_v20  ;;  %v133_v61 = vld [vmem:[#allocation3 + $0x2f0] sm:$0xff] }
 0x2fa   :  { %v13633_v27 = vadd.f32 %v13632_v12, %v13631_v18  ;;  %v13650_v12 = vsel %vm12926_vm0, %v9884_v53, 0.0  ;;  %v5559_v18 = vrot.slane %v5551_v60, %v14805_v20  ;;  %v13652_v25 = vsel %vm12926_vm0, %v9886_v63, 0.0 }
 0x2fb   :  { %v9919_v48 = vcombine.high %v9911_v34, %v9911_v34  ;;  %v2017_v63 = vrot.slane %v306_v52, %v14785_v2 }
 0x2fc   :  { %v13635_v32 = vadd.f32 %v13634_v23, %v13633_v27  ;;  %v9901_v23 = vrot.slane %v9887_v0, %v14805_v20  ;;  %v13654_v27 = vsel %vm12926_vm0, %v9894_v1, 0.0  ;;  %v5567_v28 = vcombine.low %v5559_v18, %v5566_v19 }
 0x2fd   :  { %v13664_v60 = vsel %vm12926_vm0, %v9919_v48, 0.0  ;;  %v2021_v0 = vrot.slane %v306_v52, %v14787_v4  ;;  %v2025_v1 = vrot.slane %v306_v52, %v14789_v5 }
 0x2fe   :  { %v13637_v37 = vadd.f32 %v13636_v31, %v13635_v32  ;;  %v9903_v32 = vcombine.high %v9901_v23, %v9901_v23  ;;  %v7995_v46 = vmul.f32 %v5567_v28, %v132_v36  ;;  %v2045_v36 = vrot.slane %v306_v52, %v14803_v17 }
 0x2ff   :  { %v5603_v24 = vcombine.low %v2025_v1, %v2029_v7 }
 0x300   :  { %v13639_v43 = vadd.f32 %v13638_v33, %v13637_v37  ;;  %v9904_v33 = vcombine.high %v7994_v22, %v7994_v22  ;;  %v13660_v49 = vsel %vm12926_vm0, %v9903_v32, 0.0  ;;  %v9921_v58 = vcombine.high %v7995_v46, %v7995_v46 }
 0x301   :  { %v9928_v59 = vrot.slane %v7995_v46, %v14805_v20  ;;  %v2033_v32 = vrot.slane %v306_v52, %v14797_v14  ;;  %v5617_v38 = vrot.slane %v5603_v24, %v14805_v20  ;;  %v307_v46 = vld [vmem:[#allocation5 + $0x188] sm:$0xff]  ;;  %v136_v24 = vld [vmem:[#allocation3 + $0x308] sm:$0xff] }
 0x302   :  { %v13641_v51 = vadd.f32 %v13640_v41, %v13639_v43  ;;  %v13658_v41 = vsel %vm12926_vm0, %v9901_v23, 0.0  ;;  %v5576_v43 = vrot.slane %v5568_v29, %v14805_v20  ;;  %v5602_v23 = vcombine.low %v2017_v63, %v2021_v0 }
 0x303   :  { %v9936_v13 = vcombine.high %v9928_v59, %v9928_v59 }
 0x304   :  { %v13643_v56 = vadd.f32 %v13642_v47, %v13641_v51  ;;  %v9918_v47 = vrot.slane %v9904_v33, %v14805_v20  ;;  %v13662_v51 = vsel %vm12926_vm0, %v9911_v34, 0.0  ;;  %v5584_v53 = vcombine.low %v5576_v43, %v5583_v44 }
 0x305   :  { %v13672_v29 = vsel %vm12926_vm0, %v9936_v13, 0.0  ;;  %v2037_v33 = vrot.slane %v306_v52, %v14799_v15  ;;  %v2041_v34 = vrot.slane %v306_v52, %v14801_v16 }
 0x306   :  { %v13645_v62 = vadd.f32 %v13644_v55, %v13643_v56  ;;  %v5586_v55 = vcombine.low %v2009_v40, %v2013_v42  ;;  %v7996_v11 = vmul.f32 %v5584_v53, %v133_v61  ;;  %v2061_v61 = vrot.slane %v307_v46, %v14791_v6 }
 0x307   :  { %v5619_v48 = vcombine.low %v2033_v32, %v2037_v33 }
 0x308   :  { %v13647_v8 = vadd.f32 %v13646_v57, %v13645_v62  ;;  %v9920_v57 = vcombine.high %v9918_v47, %v9918_v47  ;;  %v5600_v9 = vrot.slane %v5586_v55, %v14805_v20  ;;  %v9945_v28 = vrot.slane %v7996_v11, %v14805_v20  ;;  %v135_v55 = vld [vmem:[#allocation3 + $0x300] sm:$0xff] }
 0x30a   :  { %v13649_v21 = vadd.f32 %v13648_v3, %v13647_v8  ;;  %v13666_v3 = vsel %vm12926_vm0, %v9918_v47, 0.0  ;;  %v5593_v8 = vrot.slane %v5585_v54, %v14805_v20  ;;  %v13668_v18 = vsel %vm12926_vm0, %v9920_v57, 0.0 }
 0x30b   :  { %v9953_v42 = vcombine.high %v9945_v28, %v9945_v28  ;;  %v2049_v57 = vrot.slane %v307_v46, %v14785_v2 }
 0x30c   :  { %v13651_v26 = vadd.f32 %v13650_v12, %v13649_v21  ;;  %v9935_v12 = vrot.slane %v9921_v58, %v14805_v20  ;;  %v13670_v21 = vsel %vm12926_vm0, %v9928_v59, 0.0  ;;  %v5601_v22 = vcombine.low %v5593_v8, %v5600_v9 }
 0x30d   :  { %v13680_v54 = vsel %vm12926_vm0, %v9953_v42, 0.0  ;;  %v2053_v58 = vrot.slane %v307_v46, %v14787_v4  ;;  %v2057_v59 = vrot.slane %v307_v46, %v14789_v5 }
 0x30e   :  { %v13653_v31 = vadd.f32 %v13652_v25, %v13651_v26  ;;  %v9937_v26 = vcombine.high %v9935_v12, %v9935_v12  ;;  %v7997_v40 = vmul.f32 %v5601_v22, %v134_v30  ;;  %v2077_v30 = vrot.slane %v307_v46, %v14803_v17 }
 0x30f   :  { %v5637_v13 = vcombine.low %v2057_v59, %v2061_v61 }
 0x310   :  { %v13655_v37 = vadd.f32 %v13654_v27, %v13653_v31  ;;  %v9938_v27 = vcombine.high %v7996_v11, %v7996_v11  ;;  %v13676_v43 = vsel %vm12926_vm0, %v9937_v26, 0.0  ;;  %v9955_v52 = vcombine.high %v7997_v40, %v7997_v40 }
 0x311   :  { %v9962_v53 = vrot.slane %v7997_v40, %v14805_v20  ;;  %v2065_v26 = vrot.slane %v307_v46, %v14797_v14  ;;  %v5651_v32 = vrot.slane %v5637_v13, %v14805_v20  ;;  %v308_v40 = vld [vmem:[#allocation5 + $0x190] sm:$0xff]  ;;  %v138_v13 = vld [vmem:[#allocation3 + $0x318] sm:$0xff] }
 0x312   :  { %v13657_v45 = vadd.f32 %v13656_v35, %v13655_v37  ;;  %v13674_v35 = vsel %vm12926_vm0, %v9935_v12, 0.0  ;;  %v5610_v37 = vrot.slane %v5602_v23, %v14805_v20  ;;  %v5636_v12 = vcombine.low %v2049_v57, %v2053_v58 }
 0x313   :  { %v9970_v7 = vcombine.high %v9962_v53, %v9962_v53 }
 0x314   :  { %v13659_v50 = vadd.f32 %v13658_v41, %v13657_v45  ;;  %v9952_v41 = vrot.slane %v9938_v27, %v14805_v20  ;;  %v13678_v45 = vsel %vm12926_vm0, %v9945_v28, 0.0  ;;  %v5618_v47 = vcombine.low %v5610_v37, %v5617_v38 }
 0x315   :  { %v13688_v23 = vsel %vm12926_vm0, %v9970_v7, 0.0  ;;  %v2069_v27 = vrot.slane %v307_v46, %v14799_v15  ;;  %v2073_v28 = vrot.slane %v307_v46, %v14801_v16 }
 0x316   :  { %v13661_v56 = vadd.f32 %v13660_v49, %v13659_v50  ;;  %v5620_v49 = vcombine.low %v2041_v34, %v2045_v36  ;;  %v7998_v1 = vmul.f32 %v5618_v47, %v135_v55  ;;  %v2093_v55 = vrot.slane %v308_v40, %v14791_v6 }
 0x317   :  { %v5653_v42 = vcombine.low %v2065_v26, %v2069_v27 }
 0x318   :  { %v13663_v62 = vadd.f32 %v13662_v51, %v13661_v56  ;;  %v9954_v51 = vcombine.high %v9952_v41, %v9952_v41  ;;  %v5634_v63 = vrot.slane %v5620_v49, %v14805_v20  ;;  %v9979_v22 = vrot.slane %v7998_v1, %v14805_v20  ;;  %v137_v49 = vld [vmem:[#allocation3 + $0x310] sm:$0xff] }
 0x31a   :  { %v13665_v10 = vadd.f32 %v13664_v60, %v13663_v62  ;;  %v13682_v60 = vsel %vm12926_vm0, %v9952_v41, 0.0  ;;  %v5627_v62 = vrot.slane %v5619_v48, %v14805_v20  ;;  %v13684_v8 = vsel %vm12926_vm0, %v9954_v51, 0.0 }
 0x31b   :  { %v9987_v36 = vcombine.high %v9979_v22, %v9979_v22  ;;  %v2081_v51 = vrot.slane %v308_v40, %v14785_v2 }
 0x31c   :  { %v13667_v19 = vadd.f32 %v13666_v3, %v13665_v10  ;;  %v9969_v3 = vrot.slane %v9955_v52, %v14805_v20  ;;  %v13686_v10 = vsel %vm12926_vm0, %v9962_v53, 0.0  ;;  %v5635_v11 = vcombine.low %v5627_v62, %v5634_v63 }
 0x31d   :  { %v13696_v48 = vsel %vm12926_vm0, %v9987_v36, 0.0  ;;  %v2085_v52 = vrot.slane %v308_v40, %v14787_v4  ;;  %v2089_v53 = vrot.slane %v308_v40, %v14789_v5 }
 0x31e   :  { %v13669_v25 = vadd.f32 %v13668_v18, %v13667_v19  ;;  %v9971_v19 = vcombine.high %v9969_v3, %v9969_v3  ;;  %v7999_v34 = vmul.f32 %v5635_v11, %v136_v24  ;;  %v2109_v24 = vrot.slane %v308_v40, %v14803_v17 }
 0x31f   :  { %v5671_v7 = vcombine.low %v2089_v53, %v2093_v55 }
 0x320   :  { %v13671_v31 = vadd.f32 %v13670_v21, %v13669_v25  ;;  %v9972_v21 = vcombine.high %v7998_v1, %v7998_v1  ;;  %v13692_v37 = vsel %vm12926_vm0, %v9971_v19, 0.0  ;;  %v9989_v46 = vcombine.high %v7999_v34, %v7999_v34 }
 0x321   :  { %v9996_v47 = vrot.slane %v7999_v34, %v14805_v20  ;;  %v2097_v19 = vrot.slane %v308_v40, %v14797_v14  ;;  %v5685_v26 = vrot.slane %v5671_v7, %v14805_v20  ;;  %v309_v34 = vld [vmem:[#allocation5 + $0x198] sm:$0xff] }
 0x322   :  { %v13673_v39 = vadd.f32 %v13672_v29, %v13671_v31  ;;  %v13690_v29 = vsel %vm12926_vm0, %v9969_v3, 0.0  ;;  %v5644_v31 = vrot.slane %v5636_v12, %v14805_v20  ;;  %v5670_v3 = vcombine.low %v2081_v51, %v2085_v52  ;;  %v140_v7 = vld [vmem:[#allocation3 + $0x328] sm:$0xff] }
 0x323   :  { %v10004_v61 = vcombine.high %v9996_v47, %v9996_v47 }
 0x324   :  { %v13675_v44 = vadd.f32 %v13674_v35, %v13673_v39  ;;  %v9986_v35 = vrot.slane %v9972_v21, %v14805_v20  ;;  %v13694_v39 = vsel %vm12926_vm0, %v9979_v22, 0.0  ;;  %v5652_v41 = vcombine.low %v5644_v31, %v5651_v32 }
 0x325   :  { %v13704_v12 = vsel %vm12926_vm0, %v10004_v61, 0.0  ;;  %v2101_v21 = vrot.slane %v308_v40, %v14799_v15  ;;  %v2105_v22 = vrot.slane %v308_v40, %v14801_v16 }
 0x326   :  { %v13677_v50 = vadd.f32 %v13676_v43, %v13675_v44  ;;  %v5654_v43 = vcombine.low %v2073_v28, %v2077_v30  ;;  %v8000_v59 = vmul.f32 %v5652_v41, %v137_v49  ;;  %v2125_v49 = vrot.slane %v309_v34, %v14791_v6 }
 0x327   :  { %v5687_v36 = vcombine.low %v2097_v19, %v2101_v21 }
 0x328   :  { %v13679_v56 = vadd.f32 %v13678_v45, %v13677_v50  ;;  %v9988_v45 = vcombine.high %v9986_v35, %v9986_v35  ;;  %v5668_v57 = vrot.slane %v5654_v43, %v14805_v20  ;;  %v10013_v11 = vrot.slane %v8000_v59, %v14805_v20  ;;  %v139_v43 = vld [vmem:[#allocation3 + $0x320] sm:$0xff] }
 0x32a   :  { %v13681_v0 = vadd.f32 %v13680_v54, %v13679_v56  ;;  %v13698_v54 = vsel %vm12926_vm0, %v9986_v35, 0.0  ;;  %v5661_v56 = vrot.slane %v5653_v42, %v14805_v20  ;;  %v13700_v62 = vsel %vm12926_vm0, %v9988_v45, 0.0 }
 0x32b   :  { %v10021_v30 = vcombine.high %v10013_v11, %v10013_v11  ;;  %v2113_v45 = vrot.slane %v309_v34, %v14785_v2 }
 0x32c   :  { %v13683_v9 = vadd.f32 %v13682_v60, %v13681_v0  ;;  %v10003_v60 = vrot.slane %v9989_v46, %v14805_v20  ;;  %v13702_v0 = vsel %vm12926_vm0, %v9996_v47, 0.0  ;;  %v5669_v1 = vcombine.low %v5661_v56, %v5668_v57 }
 0x32d   :  { %v13712_v42 = vsel %vm12926_vm0, %v10021_v30, 0.0  ;;  %v2117_v46 = vrot.slane %v309_v34, %v14787_v4  ;;  %v2121_v47 = vrot.slane %v309_v34, %v14789_v5 }
 0x32e   :  { %v13685_v18 = vadd.f32 %v13684_v8, %v13683_v9  ;;  %v10005_v9 = vcombine.high %v10003_v60, %v10003_v60  ;;  %v8001_v28 = vmul.f32 %v5669_v1, %v138_v13  ;;  %v2141_v13 = vrot.slane %v309_v34, %v14803_v17 }
 0x32f   :  { %v5705_v61 = vcombine.low %v2121_v47, %v2125_v49 }
 0x330   :  { %v13687_v25 = vadd.f32 %v13686_v10, %v13685_v18  ;;  %v10006_v10 = vcombine.high %v8000_v59, %v8000_v59  ;;  %v13708_v31 = vsel %vm12926_vm0, %v10005_v9, 0.0  ;;  %v10023_v40 = vcombine.high %v8001_v28, %v8001_v28 }
 0x331   :  { %v10030_v41 = vrot.slane %v8001_v28, %v14805_v20  ;;  %v2129_v9 = vrot.slane %v309_v34, %v14797_v14  ;;  %v5719_v19 = vrot.slane %v5705_v61, %v14805_v20  ;;  %v310_v28 = vld [vmem:[#allocation5 + $0x1a0] sm:$0xff] }
 0x332   :  { %v13689_v33 = vadd.f32 %v13688_v23, %v13687_v25  ;;  %v13706_v23 = vsel %vm12926_vm0, %v10003_v60, 0.0  ;;  %v5678_v25 = vrot.slane %v5670_v3, %v14805_v20  ;;  %v5704_v60 = vcombine.low %v2113_v45, %v2117_v46  ;;  %v142_v61 = vld [vmem:[#allocation3 + $0x338] sm:$0xff] }
 0x333   :  { %v10038_v55 = vcombine.high %v10030_v41, %v10030_v41 }
 0x334   :  { %v13691_v38 = vadd.f32 %v13690_v29, %v13689_v33  ;;  %v10020_v29 = vrot.slane %v10006_v10, %v14805_v20  ;;  %v13710_v33 = vsel %vm12926_vm0, %v10013_v11, 0.0  ;;  %v5686_v35 = vcombine.low %v5678_v25, %v5685_v26 }
 0x335   :  { %v13720_v3 = vsel %vm12926_vm0, %v10038_v55, 0.0  ;;  %v2133_v10 = vrot.slane %v309_v34, %v14799_v15  ;;  %v2137_v11 = vrot.slane %v309_v34, %v14801_v16 }
 0x336   :  { %v13693_v44 = vadd.f32 %v13692_v37, %v13691_v38  ;;  %v5688_v37 = vcombine.low %v2105_v22, %v2109_v24  ;;  %v8002_v53 = vmul.f32 %v5686_v35, %v139_v43  ;;  %v2157_v43 = vrot.slane %v310_v28, %v14791_v6 }
 0x337   :  { %v5721_v30 = vcombine.low %v2129_v9, %v2133_v10 }
 0x338   :  { %v13695_v50 = vadd.f32 %v13694_v39, %v13693_v44  ;;  %v10022_v39 = vcombine.high %v10020_v29, %v10020_v29  ;;  %v5702_v51 = vrot.slane %v5688_v37, %v14805_v20  ;;  %v10047_v1 = vrot.slane %v8002_v53, %v14805_v20  ;;  %v141_v37 = vld [vmem:[#allocation3 + $0x330] sm:$0xff] }
 0x33a   :  { %v13697_v58 = vadd.f32 %v13696_v48, %v13695_v50  ;;  %v13714_v48 = vsel %vm12926_vm0, %v10020_v29, 0.0  ;;  %v5695_v50 = vrot.slane %v5687_v36, %v14805_v20  ;;  %v13716_v56 = vsel %vm12926_vm0, %v10022_v39, 0.0 }
 0x33b   :  { %v10055_v24 = vcombine.high %v10047_v1, %v10047_v1  ;;  %v2145_v39 = vrot.slane %v310_v28, %v14785_v2 }
 0x33c   :  { %v13699_v63 = vadd.f32 %v13698_v54, %v13697_v58  ;;  %v10037_v54 = vrot.slane %v10023_v40, %v14805_v20  ;;  %v13718_v58 = vsel %vm12926_vm0, %v10030_v41, 0.0  ;;  %v5703_v59 = vcombine.low %v5695_v50, %v5702_v51 }
 0x33d   :  { %v13728_v36 = vsel %vm12926_vm0, %v10055_v24, 0.0  ;;  %v2149_v40 = vrot.slane %v310_v28, %v14787_v4  ;;  %v2153_v41 = vrot.slane %v310_v28, %v14789_v5 }
 0x33e   :  { %v13701_v8 = vadd.f32 %v13700_v62, %v13699_v63  ;;  %v10039_v63 = vcombine.high %v10037_v54, %v10037_v54  ;;  %v8003_v22 = vmul.f32 %v5703_v59, %v140_v7  ;;  %v2173_v7 = vrot.slane %v310_v28, %v14803_v17 }
 0x33f   :  { %v5739_v55 = vcombine.low %v2153_v41, %v2157_v43 }
 0x340   :  { %v13703_v18 = vadd.f32 %v13702_v0, %v13701_v8  ;;  %v10040_v0 = vcombine.high %v8002_v53, %v8002_v53  ;;  %v13724_v25 = vsel %vm12926_vm0, %v10039_v63, 0.0  ;;  %v10057_v34 = vcombine.high %v8003_v22, %v8003_v22 }
 0x341   :  { %v10064_v35 = vrot.slane %v8003_v22, %v14805_v20  ;;  %v2161_v63 = vrot.slane %v310_v28, %v14797_v14  ;;  %v5753_v9 = vrot.slane %v5739_v55, %v14805_v20  ;;  %v311_v22 = vld [vmem:[#allocation5 + $0x1a8] sm:$0xff]  ;;  %v144_v55 = vld [vmem:[#allocation3 + $0x348] sm:$0xff] }
 0x342   :  { %v13705_v27 = vadd.f32 %v13704_v12, %v13703_v18  ;;  %v13722_v12 = vsel %vm12926_vm0, %v10037_v54, 0.0  ;;  %v5712_v18 = vrot.slane %v5704_v60, %v14805_v20  ;;  %v5738_v54 = vcombine.low %v2145_v39, %v2149_v40 }
 0x343   :  { %v10072_v49 = vcombine.high %v10064_v35, %v10064_v35 }
 0x344   :  { %v13707_v32 = vadd.f32 %v13706_v23, %v13705_v27  ;;  %v10054_v23 = vrot.slane %v10040_v0, %v14805_v20  ;;  %v13726_v27 = vsel %vm12926_vm0, %v10047_v1, 0.0  ;;  %v5720_v29 = vcombine.low %v5712_v18, %v5719_v19 }
 0x345   :  { %v13736_v60 = vsel %vm12926_vm0, %v10072_v49, 0.0  ;;  %v2165_v0 = vrot.slane %v310_v28, %v14799_v15  ;;  %v2169_v1 = vrot.slane %v310_v28, %v14801_v16 }
 0x346   :  { %v13709_v38 = vadd.f32 %v13708_v31, %v13707_v32  ;;  %v5722_v31 = vcombine.low %v2137_v11, %v2141_v13  ;;  %v8004_v47 = vmul.f32 %v5720_v29, %v141_v37  ;;  %v2189_v37 = vrot.slane %v311_v22, %v14791_v6 }
 0x347   :  { %v5755_v24 = vcombine.low %v2161_v63, %v2165_v0 }
 0x348   :  { %v13711_v44 = vadd.f32 %v13710_v33, %v13709_v38  ;;  %v10056_v33 = vcombine.high %v10054_v23, %v10054_v23  ;;  %v5736_v45 = vrot.slane %v5722_v31, %v14805_v20  ;;  %v10081_v59 = vrot.slane %v8004_v47, %v14805_v20  ;;  %v143_v31 = vld [vmem:[#allocation3 + $0x340] sm:$0xff] }
 0x34a   :  { %v13713_v52 = vadd.f32 %v13712_v42, %v13711_v44  ;;  %v13730_v42 = vsel %vm12926_vm0, %v10054_v23, 0.0  ;;  %v5729_v44 = vrot.slane %v5721_v30, %v14805_v20  ;;  %v13732_v50 = vsel %vm12926_vm0, %v10056_v33, 0.0 }
 0x34b   :  { %v10089_v13 = vcombine.high %v10081_v59, %v10081_v59  ;;  %v2177_v33 = vrot.slane %v311_v22, %v14785_v2 }
 0x34c   :  { %v13715_v57 = vadd.f32 %v13714_v48, %v13713_v52  ;;  %v10071_v48 = vrot.slane %v10057_v34, %v14805_v20  ;;  %v13734_v52 = vsel %vm12926_vm0, %v10064_v35, 0.0  ;;  %v5737_v53 = vcombine.low %v5729_v44, %v5736_v45 }
 0x34d   :  { %v13744_v30 = vsel %vm12926_vm0, %v10089_v13, 0.0  ;;  %v2181_v34 = vrot.slane %v311_v22, %v14787_v4  ;;  %v2185_v35 = vrot.slane %v311_v22, %v14789_v5 }
 0x34e   :  { %v13717_v62 = vadd.f32 %v13716_v56, %v13715_v57  ;;  %v10073_v57 = vcombine.high %v10071_v48, %v10071_v48  ;;  %v8005_v11 = vmul.f32 %v5737_v53, %v142_v61  ;;  %v2205_v61 = vrot.slane %v311_v22, %v14803_v17 }
 0x34f   :  { %v5773_v49 = vcombine.low %v2185_v35, %v2189_v37 }
 0x350   :  { %v13719_v8 = vadd.f32 %v13718_v58, %v13717_v62  ;;  %v10074_v58 = vcombine.high %v8004_v47, %v8004_v47  ;;  %v13740_v18 = vsel %vm12926_vm0, %v10073_v57, 0.0  ;;  %v10091_v28 = vcombine.high %v8005_v11, %v8005_v11 }
 0x351   :  { %v10098_v29 = vrot.slane %v8005_v11, %v14805_v20  ;;  %v2193_v57 = vrot.slane %v311_v22, %v14797_v14  ;;  %v5787_v63 = vrot.slane %v5773_v49, %v14805_v20  ;;  %v312_v11 = vld [vmem:[#allocation5 + $0x1b0] sm:$0xff]  ;;  %v146_v49 = vld [vmem:[#allocation3 + $0x358] sm:$0xff] }
 0x352   :  { %v13721_v21 = vadd.f32 %v13720_v3, %v13719_v8  ;;  %v13738_v3 = vsel %vm12926_vm0, %v10071_v48, 0.0  ;;  %v5746_v8 = vrot.slane %v5738_v54, %v14805_v20  ;;  %v5772_v48 = vcombine.low %v2177_v33, %v2181_v34 }
 0x353   :  { %v10106_v43 = vcombine.high %v10098_v29, %v10098_v29 }
 0x354   :  { %v13723_v26 = vadd.f32 %v13722_v12, %v13721_v21  ;;  %v10088_v12 = vrot.slane %v10074_v58, %v14805_v20  ;;  %v13742_v21 = vsel %vm12926_vm0, %v10081_v59, 0.0  ;;  %v5754_v23 = vcombine.low %v5746_v8, %v5753_v9 }
 0x355   :  { %v13752_v54 = vsel %vm12926_vm0, %v10106_v43, 0.0  ;;  %v2197_v58 = vrot.slane %v311_v22, %v14799_v15  ;;  %v2201_v59 = vrot.slane %v311_v22, %v14801_v16 }
 0x356   :  { %v13725_v32 = vadd.f32 %v13724_v25, %v13723_v26  ;;  %v5756_v25 = vcombine.low %v2169_v1, %v2173_v7  ;;  %v8006_v41 = vmul.f32 %v5754_v23, %v143_v31  ;;  %v2221_v31 = vrot.slane %v312_v11, %v14791_v6 }
 0x357   :  { %v5789_v13 = vcombine.low %v2193_v57, %v2197_v58 }
 0x358   :  { %v13727_v38 = vadd.f32 %v13726_v27, %v13725_v32  ;;  %v10090_v27 = vcombine.high %v10088_v12, %v10088_v12  ;;  %v5770_v39 = vrot.slane %v5756_v25, %v14805_v20  ;;  %v10115_v53 = vrot.slane %v8006_v41, %v14805_v20  ;;  %v145_v25 = vld [vmem:[#allocation3 + $0x350] sm:$0xff] }
 0x35a   :  { %v13729_v46 = vadd.f32 %v13728_v36, %v13727_v38  ;;  %v13746_v36 = vsel %vm12926_vm0, %v10088_v12, 0.0  ;;  %v5763_v38 = vrot.slane %v5755_v24, %v14805_v20  ;;  %v13748_v44 = vsel %vm12926_vm0, %v10090_v27, 0.0 }
 0x35b   :  { %v10123_v7 = vcombine.high %v10115_v53, %v10115_v53  ;;  %v2209_v27 = vrot.slane %v312_v11, %v14785_v2 }
 0x35c   :  { %v13731_v51 = vadd.f32 %v13730_v42, %v13729_v46  ;;  %v10105_v42 = vrot.slane %v10091_v28, %v14805_v20  ;;  %v13750_v46 = vsel %vm12926_vm0, %v10098_v29, 0.0  ;;  %v5771_v47 = vcombine.low %v5763_v38, %v5770_v39 }
 0x35d   :  { %v13760_v24 = vsel %vm12926_vm0, %v10123_v7, 0.0  ;;  %v2213_v28 = vrot.slane %v312_v11, %v14787_v4  ;;  %v2217_v29 = vrot.slane %v312_v11, %v14789_v5 }
 0x35e   :  { %v13733_v56 = vadd.f32 %v13732_v50, %v13731_v51  ;;  %v10107_v51 = vcombine.high %v10105_v42, %v10105_v42  ;;  %v8007_v1 = vmul.f32 %v5771_v47, %v144_v55  ;;  %v2237_v55 = vrot.slane %v312_v11, %v14803_v17 }
 0x35f   :  { %v5807_v43 = vcombine.low %v2217_v29, %v2221_v31 }
 0x360   :  { %v13735_v62 = vadd.f32 %v13734_v52, %v13733_v56  ;;  %v10108_v52 = vcombine.high %v8006_v41, %v8006_v41  ;;  %v13756_v8 = vsel %vm12926_vm0, %v10107_v51, 0.0  ;;  %v10125_v22 = vcombine.high %v8007_v1, %v8007_v1 }
 0x361   :  { %v10132_v23 = vrot.slane %v8007_v1, %v14805_v20  ;;  %v2225_v51 = vrot.slane %v312_v11, %v14797_v14  ;;  %v5821_v57 = vrot.slane %v5807_v43, %v14805_v20  ;;  %v313_v1 = vld [vmem:[#allocation5 + $0x1b8] sm:$0xff] }
 0x362   :  { %v13737_v10 = vadd.f32 %v13736_v60, %v13735_v62  ;;  %v13754_v60 = vsel %vm12926_vm0, %v10105_v42, 0.0  ;;  %v5780_v62 = vrot.slane %v5772_v48, %v14805_v20  ;;  %v5806_v42 = vcombine.low %v2209_v27, %v2213_v28  ;;  %v148_v43 = vld [vmem:[#allocation3 + $0x368] sm:$0xff] }
 0x363   :  { %v10140_v37 = vcombine.high %v10132_v23, %v10132_v23 }
 0x364   :  { %v13739_v19 = vadd.f32 %v13738_v3, %v13737_v10  ;;  %v10122_v3 = vrot.slane %v10108_v52, %v14805_v20  ;;  %v13758_v10 = vsel %vm12926_vm0, %v10115_v53, 0.0  ;;  %v5788_v12 = vcombine.low %v5780_v62, %v5787_v63 }
 0x365   :  { %v13768_v48 = vsel %vm12926_vm0, %v10140_v37, 0.0  ;;  %v2229_v52 = vrot.slane %v312_v11, %v14799_v15  ;;  %v2233_v53 = vrot.slane %v312_v11, %v14801_v16 }
 0x366   :  { %v13741_v26 = vadd.f32 %v13740_v18, %v13739_v19  ;;  %v5790_v18 = vcombine.low %v2201_v59, %v2205_v61  ;;  %v8008_v35 = vmul.f32 %v5788_v12, %v145_v25  ;;  %v2253_v25 = vrot.slane %v313_v1, %v14791_v6 }
 0x367   :  { %v5823_v7 = vcombine.low %v2225_v51, %v2229_v52 }
 0x368   :  { %v13743_v32 = vadd.f32 %v13742_v21, %v13741_v26  ;;  %v10124_v21 = vcombine.high %v10122_v3, %v10122_v3  ;;  %v5804_v33 = vrot.slane %v5790_v18, %v14805_v20  ;;  %v10149_v47 = vrot.slane %v8008_v35, %v14805_v20  ;;  %v147_v18 = vld [vmem:[#allocation3 + $0x360] sm:$0xff] }
 0x36a   :  { %v13745_v40 = vadd.f32 %v13744_v30, %v13743_v32  ;;  %v13762_v30 = vsel %vm12926_vm0, %v10122_v3, 0.0  ;;  %v5797_v32 = vrot.slane %v5789_v13, %v14805_v20  ;;  %v13764_v38 = vsel %vm12926_vm0, %v10124_v21, 0.0 }
 0x36b   :  { %v10157_v61 = vcombine.high %v10149_v47, %v10149_v47  ;;  %v2241_v21 = vrot.slane %v313_v1, %v14785_v2 }
 0x36c   :  { %v13747_v45 = vadd.f32 %v13746_v36, %v13745_v40  ;;  %v10139_v36 = vrot.slane %v10125_v22, %v14805_v20  ;;  %v13766_v40 = vsel %vm12926_vm0, %v10132_v23, 0.0  ;;  %v5805_v41 = vcombine.low %v5797_v32, %v5804_v33 }
 0x36d   :  { %v13776_v13 = vsel %vm12926_vm0, %v10157_v61, 0.0  ;;  %v2245_v22 = vrot.slane %v313_v1, %v14787_v4  ;;  %v2249_v23 = vrot.slane %v313_v1, %v14789_v5 }
 0x36e   :  { %v13749_v50 = vadd.f32 %v13748_v44, %v13747_v45  ;;  %v10141_v45 = vcombine.high %v10139_v36, %v10139_v36  ;;  %v8009_v59 = vmul.f32 %v5805_v41, %v146_v49  ;;  %v2269_v49 = vrot.slane %v313_v1, %v14803_v17 }
 0x36f   :  { %v5841_v37 = vcombine.low %v2249_v23, %v2253_v25 }
 0x370   :  { %v13751_v56 = vadd.f32 %v13750_v46, %v13749_v50  ;;  %v10142_v46 = vcombine.high %v8008_v35, %v8008_v35  ;;  %v13772_v62 = vsel %vm12926_vm0, %v10141_v45, 0.0  ;;  %v10159_v11 = vcombine.high %v8009_v59, %v8009_v59 }
 0x371   :  { %v10166_v12 = vrot.slane %v8009_v59, %v14805_v20  ;;  %v2257_v45 = vrot.slane %v313_v1, %v14797_v14  ;;  %v5855_v51 = vrot.slane %v5841_v37, %v14805_v20  ;;  %v314_v59 = vld [vmem:[#allocation5 + $0x1c0] sm:$0xff] }
 0x372   :  { %v13753_v0 = vadd.f32 %v13752_v54, %v13751_v56  ;;  %v13770_v54 = vsel %vm12926_vm0, %v10139_v36, 0.0  ;;  %v5814_v56 = vrot.slane %v5806_v42, %v14805_v20  ;;  %v5840_v36 = vcombine.low %v2241_v21, %v2245_v22  ;;  %v150_v37 = vld [vmem:[#allocation3 + $0x378] sm:$0xff] }
 0x373   :  { %v10174_v31 = vcombine.high %v10166_v12, %v10166_v12 }
 0x374   :  { %v13755_v9 = vadd.f32 %v13754_v60, %v13753_v0  ;;  %v10156_v60 = vrot.slane %v10142_v46, %v14805_v20  ;;  %v13774_v0 = vsel %vm12926_vm0, %v10149_v47, 0.0  ;;  %v5822_v3 = vcombine.low %v5814_v56, %v5821_v57 }
 0x375   :  { %v13784_v42 = vsel %vm12926_vm0, %v10174_v31, 0.0  ;;  %v2261_v46 = vrot.slane %v313_v1, %v14799_v15  ;;  %v2265_v47 = vrot.slane %v313_v1, %v14801_v16 }
 0x376   :  { %v13757_v19 = vadd.f32 %v13756_v8, %v13755_v9  ;;  %v5824_v8 = vcombine.low %v2233_v53, %v2237_v55  ;;  %v8010_v29 = vmul.f32 %v5822_v3, %v147_v18  ;;  %v2285_v18 = vrot.slane %v314_v59, %v14791_v6 }
 0x377   :  { %v5857_v61 = vcombine.low %v2257_v45, %v2261_v46 }
 0x378   :  { %v13759_v26 = vadd.f32 %v13758_v10, %v13757_v19  ;;  %v10158_v10 = vcombine.high %v10156_v60, %v10156_v60  ;;  %v5838_v27 = vrot.slane %v5824_v8, %v14805_v20  ;;  %v10183_v41 = vrot.slane %v8010_v29, %v14805_v20  ;;  %v149_v8 = vld [vmem:[#allocation3 + $0x370] sm:$0xff] }
 0x37a   :  { %v13761_v34 = vadd.f32 %v13760_v24, %v13759_v26  ;;  %v13778_v24 = vsel %vm12926_vm0, %v10156_v60, 0.0  ;;  %v5831_v26 = vrot.slane %v5823_v7, %v14805_v20  ;;  %v13780_v32 = vsel %vm12926_vm0, %v10158_v10, 0.0 }
 0x37b   :  { %v10191_v55 = vcombine.high %v10183_v41, %v10183_v41  ;;  %v2273_v10 = vrot.slane %v314_v59, %v14785_v2 }
 0x37c   :  { %v13763_v39 = vadd.f32 %v13762_v30, %v13761_v34  ;;  %v10173_v30 = vrot.slane %v10159_v11, %v14805_v20  ;;  %v13782_v34 = vsel %vm12926_vm0, %v10166_v12, 0.0  ;;  %v5839_v35 = vcombine.low %v5831_v26, %v5838_v27 }
 0x37d   :  { %v13792_v7 = vsel %vm12926_vm0, %v10191_v55, 0.0  ;;  %v2277_v11 = vrot.slane %v314_v59, %v14787_v4  ;;  %v2281_v12 = vrot.slane %v314_v59, %v14789_v5 }
 0x37e   :  { %v13765_v44 = vadd.f32 %v13764_v38, %v13763_v39  ;;  %v10175_v39 = vcombine.high %v10173_v30, %v10173_v30  ;;  %v8011_v53 = vmul.f32 %v5839_v35, %v148_v43  ;;  %v2301_v43 = vrot.slane %v314_v59, %v14803_v17 }
 0x37f   :  { %v5875_v31 = vcombine.low %v2281_v12, %v2285_v18 }
 0x380   :  { %v13767_v50 = vadd.f32 %v13766_v40, %v13765_v44  ;;  %v10176_v40 = vcombine.high %v8010_v29, %v8010_v29  ;;  %v13788_v56 = vsel %vm12926_vm0, %v10175_v39, 0.0  ;;  %v10193_v1 = vcombine.high %v8011_v53, %v8011_v53 }
 0x381   :  { %v10200_v3 = vrot.slane %v8011_v53, %v14805_v20  ;;  %v2289_v39 = vrot.slane %v314_v59, %v14797_v14  ;;  %v5889_v45 = vrot.slane %v5875_v31, %v14805_v20  ;;  %v315_v53 = vld [vmem:[#allocation5 + $0x1c8] sm:$0xff]  ;;  %v152_v31 = vld [vmem:[#allocation3 + $0x388] sm:$0xff] }
 0x382   :  { %v13769_v58 = vadd.f32 %v13768_v48, %v13767_v50  ;;  %v13786_v48 = vsel %vm12926_vm0, %v10173_v30, 0.0  ;;  %v5848_v50 = vrot.slane %v5840_v36, %v14805_v20  ;;  %v5874_v30 = vcombine.low %v2273_v10, %v2277_v11 }
 0x383   :  { %v10208_v25 = vcombine.high %v10200_v3, %v10200_v3 }
 0x384   :  { %v13771_v63 = vadd.f32 %v13770_v54, %v13769_v58  ;;  %v10190_v54 = vrot.slane %v10176_v40, %v14805_v20  ;;  %v13790_v58 = vsel %vm12926_vm0, %v10183_v41, 0.0  ;;  %v5856_v60 = vcombine.low %v5848_v50, %v5855_v51 }
 0x385   :  { %v13800_v36 = vsel %vm12926_vm0, %v10208_v25, 0.0  ;;  %v2293_v40 = vrot.slane %v314_v59, %v14799_v15  ;;  %v2297_v41 = vrot.slane %v314_v59, %v14801_v16 }
 0x386   :  { %v13773_v9 = vadd.f32 %v13772_v62, %v13771_v63  ;;  %v5858_v62 = vcombine.low %v2265_v47, %v2269_v49  ;;  %v8012_v23 = vmul.f32 %v5856_v60, %v149_v8  ;;  %v2317_v8 = vrot.slane %v315_v53, %v14791_v6 }
 0x387   :  { %v5891_v55 = vcombine.low %v2289_v39, %v2293_v40 }
 0x388   :  { %v13775_v19 = vadd.f32 %v13774_v0, %v13773_v9  ;;  %v10192_v0 = vcombine.high %v10190_v54, %v10190_v54  ;;  %v5872_v21 = vrot.slane %v5858_v62, %v14805_v20  ;;  %v10217_v35 = vrot.slane %v8012_v23, %v14805_v20  ;;  %v151_v62 = vld [vmem:[#allocation3 + $0x380] sm:$0xff] }
 0x38a   :  { %v13777_v28 = vadd.f32 %v13776_v13, %v13775_v19  ;;  %v13794_v13 = vsel %vm12926_vm0, %v10190_v54, 0.0  ;;  %v5865_v19 = vrot.slane %v5857_v61, %v14805_v20  ;;  %v13796_v26 = vsel %vm12926_vm0, %v10192_v0, 0.0 }
 0x38b   :  { %v10225_v49 = vcombine.high %v10217_v35, %v10217_v35  ;;  %v2305_v0 = vrot.slane %v315_v53, %v14785_v2 }
 0x38c   :  { %v13779_v33 = vadd.f32 %v13778_v24, %v13777_v28  ;;  %v10207_v24 = vrot.slane %v10193_v1, %v14805_v20  ;;  %v13798_v28 = vsel %vm12926_vm0, %v10200_v3, 0.0  ;;  %v5873_v29 = vcombine.low %v5865_v19, %v5872_v21 }
 0x38d   :  { %v13808_v61 = vsel %vm12926_vm0, %v10225_v49, 0.0  ;;  %v2309_v1 = vrot.slane %v315_v53, %v14787_v4  ;;  %v2313_v3 = vrot.slane %v315_v53, %v14789_v5 }
 0x38e   :  { %v13781_v38 = vadd.f32 %v13780_v32, %v13779_v33  ;;  %v10209_v33 = vcombine.high %v10207_v24, %v10207_v24  ;;  %v8013_v47 = vmul.f32 %v5873_v29, %v150_v37  ;;  %v2333_v37 = vrot.slane %v315_v53, %v14803_v17 }
 0x38f   :  { %v5909_v25 = vcombine.low %v2313_v3, %v2317_v8 }
 0x390   :  { %v13783_v44 = vadd.f32 %v13782_v34, %v13781_v38  ;;  %v10210_v34 = vcombine.high %v8012_v23, %v8012_v23  ;;  %v13804_v50 = vsel %vm12926_vm0, %v10209_v33, 0.0  ;;  %v10227_v59 = vcombine.high %v8013_v47, %v8013_v47 }
 0x391   :  { %v10234_v60 = vrot.slane %v8013_v47, %v14805_v20  ;;  %v2321_v33 = vrot.slane %v315_v53, %v14797_v14  ;;  %v5923_v39 = vrot.slane %v5909_v25, %v14805_v20  ;;  %v316_v47 = vld [vmem:[#allocation5 + $0x1d0] sm:$0xff]  ;;  %v154_v25 = vld [vmem:[#allocation3 + $0x398] sm:$0xff] }
 0x392   :  { %v13785_v52 = vadd.f32 %v13784_v42, %v13783_v44  ;;  %v13802_v42 = vsel %vm12926_vm0, %v10207_v24, 0.0  ;;  %v5882_v44 = vrot.slane %v5874_v30, %v14805_v20  ;;  %v5908_v24 = vcombine.low %v2305_v0, %v2309_v1 }
 0x393   :  { %v10242_v18 = vcombine.high %v10234_v60, %v10234_v60 }
 0x394   :  { %v13787_v57 = vadd.f32 %v13786_v48, %v13785_v52  ;;  %v10224_v48 = vrot.slane %v10210_v34, %v14805_v20  ;;  %v13806_v52 = vsel %vm12926_vm0, %v10217_v35, 0.0  ;;  %v5890_v54 = vcombine.low %v5882_v44, %v5889_v45 }
 0x395   :  { %v13816_v30 = vsel %vm12926_vm0, %v10242_v18, 0.0  ;;  %v2325_v34 = vrot.slane %v315_v53, %v14799_v15  ;;  %v2329_v35 = vrot.slane %v315_v53, %v14801_v16 }
 0x396   :  { %v13789_v63 = vadd.f32 %v13788_v56, %v13787_v57  ;;  %v5892_v56 = vcombine.low %v2297_v41, %v2301_v43  ;;  %v8014_v12 = vmul.f32 %v5890_v54, %v151_v62  ;;  %v2349_v62 = vrot.slane %v316_v47, %v14791_v6 }
 0x397   :  { %v5925_v49 = vcombine.low %v2321_v33, %v2325_v34 }
 0x398   :  { %v13791_v9 = vadd.f32 %v13790_v58, %v13789_v63  ;;  %v10226_v58 = vcombine.high %v10224_v48, %v10224_v48  ;;  %v5906_v10 = vrot.slane %v5892_v56, %v14805_v20  ;;  %v10251_v29 = vrot.slane %v8014_v12, %v14805_v20  ;;  %v153_v56 = vld [vmem:[#allocation3 + $0x390] sm:$0xff] }
 0x39a   :  { %v13793_v22 = vadd.f32 %v13792_v7, %v13791_v9  ;;  %v13810_v7 = vsel %vm12926_vm0, %v10224_v48, 0.0  ;;  %v5899_v9 = vrot.slane %v5891_v55, %v14805_v20  ;;  %v13812_v19 = vsel %vm12926_vm0, %v10226_v58, 0.0 }
 0x39b   :  { %v10259_v43 = vcombine.high %v10251_v29, %v10251_v29  ;;  %v2337_v58 = vrot.slane %v316_v47, %v14785_v2 }
 0x39c   :  { %v13795_v27 = vadd.f32 %v13794_v13, %v13793_v22  ;;  %v10241_v13 = vrot.slane %v10227_v59, %v14805_v20  ;;  %v13814_v22 = vsel %vm12926_vm0, %v10234_v60, 0.0  ;;  %v5907_v23 = vcombine.low %v5899_v9, %v5906_v10 }
 0x39d   :  { %v13824_v55 = vsel %vm12926_vm0, %v10259_v43, 0.0  ;;  %v2341_v59 = vrot.slane %v316_v47, %v14787_v4  ;;  %v2345_v60 = vrot.slane %v316_v47, %v14789_v5 }
 0x39e   :  { %v13797_v32 = vadd.f32 %v13796_v26, %v13795_v27  ;;  %v10243_v27 = vcombine.high %v10241_v13, %v10241_v13  ;;  %v8015_v41 = vmul.f32 %v5907_v23, %v152_v31  ;;  %v2365_v31 = vrot.slane %v316_v47, %v14803_v17 }
 0x39f   :  { %v5943_v18 = vcombine.low %v2345_v60, %v2349_v62 }
 0x3a0   :  { %v13799_v38 = vadd.f32 %v13798_v28, %v13797_v32  ;;  %v10244_v28 = vcombine.high %v8014_v12, %v8014_v12  ;;  %v13820_v44 = vsel %vm12926_vm0, %v10243_v27, 0.0  ;;  %v10261_v53 = vcombine.high %v8015_v41, %v8015_v41 }
 0x3a1   :  { %v10268_v54 = vrot.slane %v8015_v41, %v14805_v20  ;;  %v2353_v27 = vrot.slane %v316_v47, %v14797_v14  ;;  %v5957_v33 = vrot.slane %v5943_v18, %v14805_v20  ;;  %v317_v41 = vld [vmem:[#allocation5 + $0x1d8] sm:$0xff] }
 0x3a2   :  { %v13801_v46 = vadd.f32 %v13800_v36, %v13799_v38  ;;  %v13818_v36 = vsel %vm12926_vm0, %v10241_v13, 0.0  ;;  %v5916_v38 = vrot.slane %v5908_v24, %v14805_v20  ;;  %v5942_v13 = vcombine.low %v2337_v58, %v2341_v59  ;;  %v156_v18 = vld [vmem:[#allocation3 + $0x3a8] sm:$0xff] }
 0x3a3   :  { %v10276_v8 = vcombine.high %v10268_v54, %v10268_v54 }
 0x3a4   :  { %v13803_v51 = vadd.f32 %v13802_v42, %v13801_v46  ;;  %v10258_v42 = vrot.slane %v10244_v28, %v14805_v20  ;;  %v13822_v46 = vsel %vm12926_vm0, %v10251_v29, 0.0  ;;  %v5924_v48 = vcombine.low %v5916_v38, %v5923_v39 }
 0x3a5   :  { %v13832_v24 = vsel %vm12926_vm0, %v10276_v8, 0.0  ;;  %v2357_v28 = vrot.slane %v316_v47, %v14799_v15  ;;  %v2361_v29 = vrot.slane %v316_v47, %v14801_v16 }
 0x3a6   :  { %v13805_v57 = vadd.f32 %v13804_v50, %v13803_v51  ;;  %v5926_v50 = vcombine.low %v2329_v35, %v2333_v37  ;;  %v8016_v3 = vmul.f32 %v5924_v48, %v153_v56  ;;  %v2381_v56 = vrot.slane %v317_v41, %v14791_v6 }
 0x3a7   :  { %v5959_v43 = vcombine.low %v2353_v27, %v2357_v28 }
 0x3a8   :  { %v13807_v63 = vadd.f32 %v13806_v52, %v13805_v57  ;;  %v10260_v52 = vcombine.high %v10258_v42, %v10258_v42  ;;  %v5940_v0 = vrot.slane %v5926_v50, %v14805_v20  ;;  %v10285_v23 = vrot.slane %v8016_v3, %v14805_v20  ;;  %v155_v50 = vld [vmem:[#allocation3 + $0x3a0] sm:$0xff] }
 0x3aa   :  { %v13809_v11 = vadd.f32 %v13808_v61, %v13807_v63  ;;  %v13826_v61 = vsel %vm12926_vm0, %v10258_v42, 0.0  ;;  %v5933_v63 = vrot.slane %v5925_v49, %v14805_v20  ;;  %v13828_v9 = vsel %vm12926_vm0, %v10260_v52, 0.0 }
 0x3ab   :  { %v10293_v37 = vcombine.high %v10285_v23, %v10285_v23  ;;  %v2369_v52 = vrot.slane %v317_v41, %v14785_v2 }
 0x3ac   :  { %v13811_v21 = vadd.f32 %v13810_v7, %v13809_v11  ;;  %v10275_v7 = vrot.slane %v10261_v53, %v14805_v20  ;;  %v13830_v11 = vsel %vm12926_vm0, %v10268_v54, 0.0  ;;  %v5941_v12 = vcombine.low %v5933_v63, %v5940_v0 }
 0x3ad   :  { %v13840_v49 = vsel %vm12926_vm0, %v10293_v37, 0.0  ;;  %v2373_v53 = vrot.slane %v317_v41, %v14787_v4  ;;  %v2377_v54 = vrot.slane %v317_v41, %v14789_v5 }
 0x3ae   :  { %v13813_v26 = vadd.f32 %v13812_v19, %v13811_v21  ;;  %v10277_v21 = vcombine.high %v10275_v7, %v10275_v7  ;;  %v8017_v35 = vmul.f32 %v5941_v12, %v154_v25  ;;  %v2397_v25 = vrot.slane %v317_v41, %v14803_v17 }
 0x3af   :  { %v5977_v8 = vcombine.low %v2377_v54, %v2381_v56 }
 0x3b0   :  { %v13815_v32 = vadd.f32 %v13814_v22, %v13813_v26  ;;  %v10278_v22 = vcombine.high %v8016_v3, %v8016_v3  ;;  %v13836_v38 = vsel %vm12926_vm0, %v10277_v21, 0.0  ;;  %v10295_v47 = vcombine.high %v8017_v35, %v8017_v35 }
 0x3b1   :  { %v10302_v48 = vrot.slane %v8017_v35, %v14805_v20  ;;  %v2385_v21 = vrot.slane %v317_v41, %v14797_v14  ;;  %v5991_v27 = vrot.slane %v5977_v8, %v14805_v20  ;;  %v318_v35 = vld [vmem:[#allocation5 + $0x1e0] sm:$0xff] }
 0x3b2   :  { %v13817_v40 = vadd.f32 %v13816_v30, %v13815_v32  ;;  %v13834_v30 = vsel %vm12926_vm0, %v10275_v7, 0.0  ;;  %v5950_v32 = vrot.slane %v5942_v13, %v14805_v20  ;;  %v5976_v7 = vcombine.low %v2369_v52, %v2373_v53  ;;  %v158_v8 = vld [vmem:[#allocation3 + $0x3b8] sm:$0xff] }
 0x3b3   :  { %v10310_v62 = vcombine.high %v10302_v48, %v10302_v48 }
 0x3b4   :  { %v13819_v45 = vadd.f32 %v13818_v36, %v13817_v40  ;;  %v10292_v36 = vrot.slane %v10278_v22, %v14805_v20  ;;  %v13838_v40 = vsel %vm12926_vm0, %v10285_v23, 0.0  ;;  %v5958_v42 = vcombine.low %v5950_v32, %v5957_v33 }
 0x3b5   :  { %v13848_v13 = vsel %vm12926_vm0, %v10310_v62, 0.0  ;;  %v2389_v22 = vrot.slane %v317_v41, %v14799_v15  ;;  %v2393_v23 = vrot.slane %v317_v41, %v14801_v16 }
 0x3b6   :  { %v13821_v51 = vadd.f32 %v13820_v44, %v13819_v45  ;;  %v5960_v44 = vcombine.low %v2361_v29, %v2365_v31  ;;  %v8018_v60 = vmul.f32 %v5958_v42, %v155_v50  ;;  %v2413_v50 = vrot.slane %v318_v35, %v14791_v6 }
 0x3b7   :  { %v5993_v37 = vcombine.low %v2385_v21, %v2389_v22 }
 0x3b8   :  { %v13823_v57 = vadd.f32 %v13822_v46, %v13821_v51  ;;  %v10294_v46 = vcombine.high %v10292_v36, %v10292_v36  ;;  %v5974_v58 = vrot.slane %v5960_v44, %v14805_v20  ;;  %v10319_v12 = vrot.slane %v8018_v60, %v14805_v20  ;;  %v157_v44 = vld [vmem:[#allocation3 + $0x3b0] sm:$0xff] }
 0x3ba   :  { %v13825_v1 = vadd.f32 %v13824_v55, %v13823_v57  ;;  %v13842_v55 = vsel %vm12926_vm0, %v10292_v36, 0.0  ;;  %v5967_v57 = vrot.slane %v5959_v43, %v14805_v20  ;;  %v13844_v63 = vsel %vm12926_vm0, %v10294_v46, 0.0 }
 0x3bb   :  { %v10327_v31 = vcombine.high %v10319_v12, %v10319_v12  ;;  %v2401_v46 = vrot.slane %v318_v35, %v14785_v2 }
 0x3bc   :  { %v13827_v10 = vadd.f32 %v13826_v61, %v13825_v1  ;;  %v10309_v61 = vrot.slane %v10295_v47, %v14805_v20  ;;  %v13846_v1 = vsel %vm12926_vm0, %v10302_v48, 0.0  ;;  %v5975_v3 = vcombine.low %v5967_v57, %v5974_v58 }
 0x3bd   :  { %v13856_v43 = vsel %vm12926_vm0, %v10327_v31, 0.0  ;;  %v2405_v47 = vrot.slane %v318_v35, %v14787_v4  ;;  %v2409_v48 = vrot.slane %v318_v35, %v14789_v5 }
 0x3be   :  { %v13829_v19 = vadd.f32 %v13828_v9, %v13827_v10  ;;  %v10311_v10 = vcombine.high %v10309_v61, %v10309_v61  ;;  %v8019_v29 = vmul.f32 %v5975_v3, %v156_v18  ;;  %v2429_v18 = vrot.slane %v318_v35, %v14803_v17 }
 0x3bf   :  { %v6011_v62 = vcombine.low %v2409_v48, %v2413_v50 }
 0x3c0   :  { %v13831_v26 = vadd.f32 %v13830_v11, %v13829_v19  ;;  %v10312_v11 = vcombine.high %v8018_v60, %v8018_v60  ;;  %v13852_v32 = vsel %vm12926_vm0, %v10311_v10, 0.0  ;;  %v10329_v41 = vcombine.high %v8019_v29, %v8019_v29 }
 0x3c1   :  { %v10336_v42 = vrot.slane %v8019_v29, %v14805_v20  ;;  %v2417_v10 = vrot.slane %v318_v35, %v14797_v14  ;;  %v6025_v21 = vrot.slane %v6011_v62, %v14805_v20  ;;  %v319_v29 = vld [vmem:[#allocation5 + $0x1e8] sm:$0xff]  ;;  %v160_v62 = vld [vmem:[#allocation3 + $0x3c8] sm:$0xff] }
 0x3c2   :  { %v13833_v34 = vadd.f32 %v13832_v24, %v13831_v26  ;;  %v13850_v24 = vsel %vm12926_vm0, %v10309_v61, 0.0  ;;  %v5984_v26 = vrot.slane %v5976_v7, %v14805_v20  ;;  %v6010_v61 = vcombine.low %v2401_v46, %v2405_v47 }
 0x3c3   :  { %v10344_v56 = vcombine.high %v10336_v42, %v10336_v42 }
 0x3c4   :  { %v13835_v39 = vadd.f32 %v13834_v30, %v13833_v34  ;;  %v10326_v30 = vrot.slane %v10312_v11, %v14805_v20  ;;  %v13854_v34 = vsel %vm12926_vm0, %v10319_v12, 0.0  ;;  %v5992_v36 = vcombine.low %v5984_v26, %v5991_v27 }
 0x3c5   :  { %v13864_v7 = vsel %vm12926_vm0, %v10344_v56, 0.0  ;;  %v2421_v11 = vrot.slane %v318_v35, %v14799_v15  ;;  %v2425_v12 = vrot.slane %v318_v35, %v14801_v16 }
 0x3c6   :  { %v13837_v45 = vadd.f32 %v13836_v38, %v13835_v39  ;;  %v5994_v38 = vcombine.low %v2393_v23, %v2397_v25  ;;  %v8020_v54 = vmul.f32 %v5992_v36, %v157_v44  ;;  %v2445_v44 = vrot.slane %v319_v29, %v14791_v6 }
 0x3c7   :  { %v6027_v31 = vcombine.low %v2417_v10, %v2421_v11 }
 0x3c8   :  { %v13839_v51 = vadd.f32 %v13838_v40, %v13837_v45  ;;  %v10328_v40 = vcombine.high %v10326_v30, %v10326_v30  ;;  %v6008_v52 = vrot.slane %v5994_v38, %v14805_v20  ;;  %v10353_v3 = vrot.slane %v8020_v54, %v14805_v20  ;;  %v159_v38 = vld [vmem:[#allocation3 + $0x3c0] sm:$0xff] }
 0x3ca   :  { %v13841_v59 = vadd.f32 %v13840_v49, %v13839_v51  ;;  %v13858_v49 = vsel %vm12926_vm0, %v10326_v30, 0.0  ;;  %v6001_v51 = vrot.slane %v5993_v37, %v14805_v20  ;;  %v13860_v57 = vsel %vm12926_vm0, %v10328_v40, 0.0 }
 0x3cb   :  { %v10361_v25 = vcombine.high %v10353_v3, %v10353_v3  ;;  %v2433_v40 = vrot.slane %v319_v29, %v14785_v2 }
 0x3cc   :  { %v13843_v0 = vadd.f32 %v13842_v55, %v13841_v59  ;;  %v10343_v55 = vrot.slane %v10329_v41, %v14805_v20  ;;  %v13862_v59 = vsel %vm12926_vm0, %v10336_v42, 0.0  ;;  %v6009_v60 = vcombine.low %v6001_v51, %v6008_v52 }
 0x3cd   :  { %v13872_v37 = vsel %vm12926_vm0, %v10361_v25, 0.0  ;;  %v2437_v41 = vrot.slane %v319_v29, %v14787_v4  ;;  %v2441_v42 = vrot.slane %v319_v29, %v14789_v5 }
 0x3ce   :  { %v13845_v9 = vadd.f32 %v13844_v63, %v13843_v0  ;;  %v10345_v0 = vcombine.high %v10343_v55, %v10343_v55  ;;  %v8021_v23 = vmul.f32 %v6009_v60, %v158_v8  ;;  %v2461_v8 = vrot.slane %v319_v29, %v14803_v17 }
 0x3cf   :  { %v6045_v56 = vcombine.low %v2441_v42, %v2445_v44 }
 0x3d0   :  { %v13847_v19 = vadd.f32 %v13846_v1, %v13845_v9  ;;  %v10346_v1 = vcombine.high %v8020_v54, %v8020_v54  ;;  %v13868_v26 = vsel %vm12926_vm0, %v10345_v0, 0.0  ;;  %v10363_v35 = vcombine.high %v8021_v23, %v8021_v23 }
 0x3d1   :  { %v10370_v36 = vrot.slane %v8021_v23, %v14805_v20  ;;  %v2449_v0 = vrot.slane %v319_v29, %v14797_v14  ;;  %v6059_v10 = vrot.slane %v6045_v56, %v14805_v20  ;;  %v320_v23 = vld [vmem:[#allocation5 + $0x1f0] sm:$0xff]  ;;  %v162_v56 = vld [vmem:[#allocation3 + $0x3d8] sm:$0xff] }
 0x3d2   :  { %v13849_v28 = vadd.f32 %v13848_v13, %v13847_v19  ;;  %v13866_v13 = vsel %vm12926_vm0, %v10343_v55, 0.0  ;;  %v6018_v19 = vrot.slane %v6010_v61, %v14805_v20  ;;  %v6044_v55 = vcombine.low %v2433_v40, %v2437_v41 }
 0x3d3   :  { %v10378_v50 = vcombine.high %v10370_v36, %v10370_v36 }
 0x3d4   :  { %v13851_v33 = vadd.f32 %v13850_v24, %v13849_v28  ;;  %v10360_v24 = vrot.slane %v10346_v1, %v14805_v20  ;;  %v13870_v28 = vsel %vm12926_vm0, %v10353_v3, 0.0  ;;  %v6026_v30 = vcombine.low %v6018_v19, %v6025_v21 }
 0x3d5   :  { %v13880_v61 = vsel %vm12926_vm0, %v10378_v50, 0.0  ;;  %v2453_v1 = vrot.slane %v319_v29, %v14799_v15  ;;  %v2457_v3 = vrot.slane %v319_v29, %v14801_v16 }
 0x3d6   :  { %v13853_v39 = vadd.f32 %v13852_v32, %v13851_v33  ;;  %v6028_v32 = vcombine.low %v2425_v12, %v2429_v18  ;;  %v8022_v48 = vmul.f32 %v6026_v30, %v159_v38  ;;  %v2477_v38 = vrot.slane %v320_v23, %v14791_v6 }
 0x3d7   :  { %v6061_v25 = vcombine.low %v2449_v0, %v2453_v1 }
 0x3d8   :  { %v13855_v45 = vadd.f32 %v13854_v34, %v13853_v39  ;;  %v10362_v34 = vcombine.high %v10360_v24, %v10360_v24  ;;  %v6042_v46 = vrot.slane %v6028_v32, %v14805_v20  ;;  %v10387_v60 = vrot.slane %v8022_v48, %v14805_v20  ;;  %v161_v32 = vld [vmem:[#allocation3 + $0x3d0] sm:$0xff] }
 0x3da   :  { %v13857_v53 = vadd.f32 %v13856_v43, %v13855_v45  ;;  %v13874_v43 = vsel %vm12926_vm0, %v10360_v24, 0.0  ;;  %v6035_v45 = vrot.slane %v6027_v31, %v14805_v20  ;;  %v13876_v51 = vsel %vm12926_vm0, %v10362_v34, 0.0 }
 0x3db   :  { %v10395_v18 = vcombine.high %v10387_v60, %v10387_v60  ;;  %v2465_v34 = vrot.slane %v320_v23, %v14785_v2 }
 0x3dc   :  { %v13859_v58 = vadd.f32 %v13858_v49, %v13857_v53  ;;  %v10377_v49 = vrot.slane %v10363_v35, %v14805_v20  ;;  %v13878_v53 = vsel %vm12926_vm0, %v10370_v36, 0.0  ;;  %v6043_v54 = vcombine.low %v6035_v45, %v6042_v46 }
 0x3dd   :  { %v13888_v31 = vsel %vm12926_vm0, %v10395_v18, 0.0  ;;  %v2469_v35 = vrot.slane %v320_v23, %v14787_v4  ;;  %v2473_v36 = vrot.slane %v320_v23, %v14789_v5 }
 0x3de   :  { %v13861_v63 = vadd.f32 %v13860_v57, %v13859_v58  ;;  %v10379_v58 = vcombine.high %v10377_v49, %v10377_v49  ;;  %v8023_v12 = vmul.f32 %v6043_v54, %v160_v62  ;;  %v2493_v62 = vrot.slane %v320_v23, %v14803_v17 }
 0x3df   :  { %v6079_v50 = vcombine.low %v2473_v36, %v2477_v38 }
 0x3e0   :  { %v13863_v9 = vadd.f32 %v13862_v59, %v13861_v63  ;;  %v10380_v59 = vcombine.high %v8022_v48, %v8022_v48  ;;  %v13884_v19 = vsel %vm12926_vm0, %v10379_v58, 0.0  ;;  %v10397_v29 = vcombine.high %v8023_v12, %v8023_v12 }
 0x3e1   :  { %v10404_v30 = vrot.slane %v8023_v12, %v14805_v20  ;;  %v2481_v58 = vrot.slane %v320_v23, %v14797_v14  ;;  %v6093_v0 = vrot.slane %v6079_v50, %v14805_v20  ;;  %v321_v12 = vld [vmem:[#allocation5 + $0x1f8] sm:$0xff] }
 0x3e2   :  { %v13865_v22 = vadd.f32 %v13864_v7, %v13863_v9  ;;  %v13882_v7 = vsel %vm12926_vm0, %v10377_v49, 0.0  ;;  %v6052_v9 = vrot.slane %v6044_v55, %v14805_v20  ;;  %v6078_v49 = vcombine.low %v2465_v34, %v2469_v35  ;;  %v164_v50 = vld [vmem:[#allocation3 + $0x3e8] sm:$0xff] }
 0x3e3   :  { %v10412_v44 = vcombine.high %v10404_v30, %v10404_v30 }
 0x3e4   :  { %v13867_v27 = vadd.f32 %v13866_v13, %v13865_v22  ;;  %v10394_v13 = vrot.slane %v10380_v59, %v14805_v20  ;;  %v13886_v22 = vsel %vm12926_vm0, %v10387_v60, 0.0  ;;  %v6060_v24 = vcombine.low %v6052_v9, %v6059_v10 }
 0x3e5   :  { %v13896_v55 = vsel %vm12926_vm0, %v10412_v44, 0.0  ;;  %v2485_v59 = vrot.slane %v320_v23, %v14799_v15  ;;  %v2489_v60 = vrot.slane %v320_v23, %v14801_v16 }
 0x3e6   :  { %v13869_v33 = vadd.f32 %v13868_v26, %v13867_v27  ;;  %v6062_v26 = vcombine.low %v2457_v3, %v2461_v8  ;;  %v8024_v42 = vmul.f32 %v6060_v24, %v161_v32  ;;  %v2509_v32 = vrot.slane %v321_v12, %v14791_v6 }
 0x3e7   :  { %v6095_v18 = vcombine.low %v2481_v58, %v2485_v59 }
 0x3e8   :  { %v13871_v39 = vadd.f32 %v13870_v28, %v13869_v33  ;;  %v10396_v28 = vcombine.high %v10394_v13, %v10394_v13  ;;  %v6076_v40 = vrot.slane %v6062_v26, %v14805_v20  ;;  %v10421_v54 = vrot.slane %v8024_v42, %v14805_v20  ;;  %v163_v26 = vld [vmem:[#allocation3 + $0x3e0] sm:$0xff] }
 0x3ea   :  { %v13873_v47 = vadd.f32 %v13872_v37, %v13871_v39  ;;  %v13890_v37 = vsel %vm12926_vm0, %v10394_v13, 0.0  ;;  %v6069_v39 = vrot.slane %v6061_v25, %v14805_v20  ;;  %v13892_v45 = vsel %vm12926_vm0, %v10396_v28, 0.0 }
 0x3eb   :  { %v10429_v8 = vcombine.high %v10421_v54, %v10421_v54  ;;  %v2497_v28 = vrot.slane %v321_v12, %v14785_v2 }
 0x3ec   :  { %v13875_v52 = vadd.f32 %v13874_v43, %v13873_v47  ;;  %v10411_v43 = vrot.slane %v10397_v29, %v14805_v20  ;;  %v13894_v47 = vsel %vm12926_vm0, %v10404_v30, 0.0  ;;  %v6077_v48 = vcombine.low %v6069_v39, %v6076_v40 }
 0x3ed   :  { %v13904_v25 = vsel %vm12926_vm0, %v10429_v8, 0.0  ;;  %v2501_v29 = vrot.slane %v321_v12, %v14787_v4  ;;  %v2505_v30 = vrot.slane %v321_v12, %v14789_v5 }
 0x3ee   :  { %v13877_v57 = vadd.f32 %v13876_v51, %v13875_v52  ;;  %v10413_v52 = vcombine.high %v10411_v43, %v10411_v43  ;;  %v8025_v3 = vmul.f32 %v6077_v48, %v162_v56  ;;  %v2525_v56 = vrot.slane %v321_v12, %v14803_v17 }
 0x3ef   :  { %v6113_v44 = vcombine.low %v2505_v30, %v2509_v32 }
 0x3f0   :  { %v13879_v63 = vadd.f32 %v13878_v53, %v13877_v57  ;;  %v10414_v53 = vcombine.high %v8024_v42, %v8024_v42  ;;  %v13900_v9 = vsel %vm12926_vm0, %v10413_v52, 0.0  ;;  %v10431_v23 = vcombine.high %v8025_v3, %v8025_v3 }
 0x3f1   :  { %v10438_v24 = vrot.slane %v8025_v3, %v14805_v20  ;;  %v2513_v52 = vrot.slane %v321_v12, %v14797_v14  ;;  %v6127_v58 = vrot.slane %v6113_v44, %v14805_v20  ;;  %v322_v3 = vld [vmem:[#allocation5 + $0x200] sm:$0xff] }
 0x3f2   :  { %v13881_v11 = vadd.f32 %v13880_v61, %v13879_v63  ;;  %v13898_v61 = vsel %vm12926_vm0, %v10411_v43, 0.0  ;;  %v6086_v63 = vrot.slane %v6078_v49, %v14805_v20  ;;  %v6112_v43 = vcombine.low %v2497_v28, %v2501_v29  ;;  %v166_v44 = vld [vmem:[#allocation3 + $0x3f8] sm:$0xff] }
 0x3f3   :  { %v10446_v38 = vcombine.high %v10438_v24, %v10438_v24 }
 0x3f4   :  { %v13883_v21 = vadd.f32 %v13882_v7, %v13881_v11  ;;  %v10428_v7 = vrot.slane %v10414_v53, %v14805_v20  ;;  %v13902_v11 = vsel %vm12926_vm0, %v10421_v54, 0.0  ;;  %v6094_v13 = vcombine.low %v6086_v63, %v6093_v0 }
 0x3f5   :  { %v13912_v49 = vsel %vm12926_vm0, %v10446_v38, 0.0  ;;  %v2517_v53 = vrot.slane %v321_v12, %v14799_v15  ;;  %v2521_v54 = vrot.slane %v321_v12, %v14801_v16 }
 0x3f6   :  { %v13885_v27 = vadd.f32 %v13884_v19, %v13883_v21  ;;  %v6096_v19 = vcombine.low %v2489_v60, %v2493_v62  ;;  %v8026_v36 = vmul.f32 %v6094_v13, %v163_v26  ;;  %v2541_v26 = vrot.slane %v322_v3, %v14791_v6 }
 0x3f7   :  { %v6129_v8 = vcombine.low %v2513_v52, %v2517_v53 }
 0x3f8   :  { %v13887_v33 = vadd.f32 %v13886_v22, %v13885_v27  ;;  %v10430_v22 = vcombine.high %v10428_v7, %v10428_v7  ;;  %v6110_v34 = vrot.slane %v6096_v19, %v14805_v20  ;;  %v10455_v48 = vrot.slane %v8026_v36, %v14805_v20  ;;  %v165_v19 = vld [vmem:[#allocation3 + $0x3f0] sm:$0xff] }
 0x3fa   :  { %v13889_v41 = vadd.f32 %v13888_v31, %v13887_v33  ;;  %v13906_v31 = vsel %vm12926_vm0, %v10428_v7, 0.0  ;;  %v6103_v33 = vrot.slane %v6095_v18, %v14805_v20  ;;  %v13908_v39 = vsel %vm12926_vm0, %v10430_v22, 0.0 }
 0x3fb   :  { %v10463_v62 = vcombine.high %v10455_v48, %v10455_v48  ;;  %v2529_v22 = vrot.slane %v322_v3, %v14785_v2 }
 0x3fc   :  { %v13891_v46 = vadd.f32 %v13890_v37, %v13889_v41  ;;  %v10445_v37 = vrot.slane %v10431_v23, %v14805_v20  ;;  %v13910_v41 = vsel %vm12926_vm0, %v10438_v24, 0.0  ;;  %v6111_v42 = vcombine.low %v6103_v33, %v6110_v34 }
 0x3fd   :  { %v13920_v18 = vsel %vm12926_vm0, %v10463_v62, 0.0  ;;  %v2533_v23 = vrot.slane %v322_v3, %v14787_v4  ;;  %v2537_v24 = vrot.slane %v322_v3, %v14789_v5 }
 0x3fe   :  { %v13893_v51 = vadd.f32 %v13892_v45, %v13891_v46  ;;  %v10447_v46 = vcombine.high %v10445_v37, %v10445_v37  ;;  %v8027_v60 = vmul.f32 %v6111_v42, %v164_v50  ;;  %v2557_v50 = vrot.slane %v322_v3, %v14803_v17 }
 0x3ff   :  { %v6147_v38 = vcombine.low %v2537_v24, %v2541_v26 }
 0x400   :  { %v13895_v57 = vadd.f32 %v13894_v47, %v13893_v51  ;;  %v10448_v47 = vcombine.high %v8026_v36, %v8026_v36  ;;  %v13916_v63 = vsel %vm12926_vm0, %v10447_v46, 0.0  ;;  %v10465_v12 = vcombine.high %v8027_v60, %v8027_v60 }
 0x401   :  { %v10472_v13 = vrot.slane %v8027_v60, %v14805_v20  ;;  %v2545_v46 = vrot.slane %v322_v3, %v14797_v14  ;;  %v6161_v52 = vrot.slane %v6147_v38, %v14805_v20  ;;  %v323_v60 = vld [vmem:[#allocation5 + $0x208] sm:$0xff]  ;;  %v168_v38 = vld [vmem:[#allocation3 + $0x408] sm:$0xff] }
 0x402   :  { %v13897_v1 = vadd.f32 %v13896_v55, %v13895_v57  ;;  %v13914_v55 = vsel %vm12926_vm0, %v10445_v37, 0.0  ;;  %v6120_v57 = vrot.slane %v6112_v43, %v14805_v20  ;;  %v6146_v37 = vcombine.low %v2529_v22, %v2533_v23 }
 0x403   :  { %v10480_v32 = vcombine.high %v10472_v13, %v10472_v13 }
 0x404   :  { %v13899_v10 = vadd.f32 %v13898_v61, %v13897_v1  ;;  %v10462_v61 = vrot.slane %v10448_v47, %v14805_v20  ;;  %v13918_v1 = vsel %vm12926_vm0, %v10455_v48, 0.0  ;;  %v6128_v7 = vcombine.low %v6120_v57, %v6127_v58 }
 0x405   :  { %v13928_v43 = vsel %vm12926_vm0, %v10480_v32, 0.0  ;;  %v2549_v47 = vrot.slane %v322_v3, %v14799_v15  ;;  %v2553_v48 = vrot.slane %v322_v3, %v14801_v16 }
 0x406   :  { %v13901_v21 = vadd.f32 %v13900_v9, %v13899_v10  ;;  %v6130_v9 = vcombine.low %v2521_v54, %v2525_v56  ;;  %v8028_v30 = vmul.f32 %v6128_v7, %v165_v19  ;;  %v2573_v19 = vrot.slane %v323_v60, %v14791_v6 }
 0x407   :  { %v6163_v62 = vcombine.low %v2545_v46, %v2549_v47 }
 0x408   :  { %v13903_v27 = vadd.f32 %v13902_v11, %v13901_v21  ;;  %v10464_v11 = vcombine.high %v10462_v61, %v10462_v61  ;;  %v6144_v28 = vrot.slane %v6130_v9, %v14805_v20  ;;  %v10489_v42 = vrot.slane %v8028_v30, %v14805_v20  ;;  %v167_v9 = vld [vmem:[#allocation3 + $0x400] sm:$0xff] }
 0x40a   :  { %v13905_v35 = vadd.f32 %v13904_v25, %v13903_v27  ;;  %v13922_v25 = vsel %vm12926_vm0, %v10462_v61, 0.0  ;;  %v6137_v27 = vrot.slane %v6129_v8, %v14805_v20  ;;  %v13924_v33 = vsel %vm12926_vm0, %v10464_v11, 0.0 }
 0x40b   :  { %v10497_v56 = vcombine.high %v10489_v42, %v10489_v42  ;;  %v2561_v11 = vrot.slane %v323_v60, %v14785_v2 }
 0x40c   :  { %v13907_v40 = vadd.f32 %v13906_v31, %v13905_v35  ;;  %v10479_v31 = vrot.slane %v10465_v12, %v14805_v20  ;;  %v13926_v35 = vsel %vm12926_vm0, %v10472_v13, 0.0  ;;  %v6145_v36 = vcombine.low %v6137_v27, %v6144_v28 }
 0x40d   :  { %v13936_v8 = vsel %vm12926_vm0, %v10497_v56, 0.0  ;;  %v2565_v12 = vrot.slane %v323_v60, %v14787_v4  ;;  %v2569_v13 = vrot.slane %v323_v60, %v14789_v5 }
 0x40e   :  { %v13909_v45 = vadd.f32 %v13908_v39, %v13907_v40  ;;  %v10481_v40 = vcombine.high %v10479_v31, %v10479_v31  ;;  %v8029_v54 = vmul.f32 %v6145_v36, %v166_v44  ;;  %v2589_v44 = vrot.slane %v323_v60, %v14803_v17 }
 0x40f   :  { %v6181_v32 = vcombine.low %v2569_v13, %v2573_v19 }
 0x410   :  { %v13911_v51 = vadd.f32 %v13910_v41, %v13909_v45  ;;  %v10482_v41 = vcombine.high %v8028_v30, %v8028_v30  ;;  %v13932_v57 = vsel %vm12926_vm0, %v10481_v40, 0.0  ;;  %v10499_v3 = vcombine.high %v8029_v54, %v8029_v54 }
 0x411   :  { %v10506_v7 = vrot.slane %v8029_v54, %v14805_v20  ;;  %v2577_v40 = vrot.slane %v323_v60, %v14797_v14  ;;  %v6195_v46 = vrot.slane %v6181_v32, %v14805_v20  ;;  %v324_v54 = vld [vmem:[#allocation5 + $0x210] sm:$0xff]  ;;  %v170_v32 = vld [vmem:[#allocation3 + $0x418] sm:$0xff] }
 0x412   :  { %v13913_v59 = vadd.f32 %v13912_v49, %v13911_v51  ;;  %v13930_v49 = vsel %vm12926_vm0, %v10479_v31, 0.0  ;;  %v6154_v51 = vrot.slane %v6146_v37, %v14805_v20  ;;  %v6180_v31 = vcombine.low %v2561_v11, %v2565_v12 }
 0x413   :  { %v10514_v26 = vcombine.high %v10506_v7, %v10506_v7 }
 0x414   :  { %v13915_v0 = vadd.f32 %v13914_v55, %v13913_v59  ;;  %v10496_v55 = vrot.slane %v10482_v41, %v14805_v20  ;;  %v13934_v59 = vsel %vm12926_vm0, %v10489_v42, 0.0  ;;  %v6162_v61 = vcombine.low %v6154_v51, %v6161_v52 }
 0x415   :  { %v13944_v37 = vsel %vm12926_vm0, %v10514_v26, 0.0  ;;  %v2581_v41 = vrot.slane %v323_v60, %v14799_v15  ;;  %v2585_v42 = vrot.slane %v323_v60, %v14801_v16 }
 0x416   :  { %v13917_v10 = vadd.f32 %v13916_v63, %v13915_v0  ;;  %v6164_v63 = vcombine.low %v2553_v48, %v2557_v50  ;;  %v8030_v24 = vmul.f32 %v6162_v61, %v167_v9  ;;  %v2605_v9 = vrot.slane %v324_v54, %v14791_v6 }
 0x417   :  { %v6197_v56 = vcombine.low %v2577_v40, %v2581_v41 }
 0x418   :  { %v13919_v21 = vadd.f32 %v13918_v1, %v13917_v10  ;;  %v10498_v1 = vcombine.high %v10496_v55, %v10496_v55  ;;  %v6178_v22 = vrot.slane %v6164_v63, %v14805_v20  ;;  %v10523_v36 = vrot.slane %v8030_v24, %v14805_v20  ;;  %v169_v63 = vld [vmem:[#allocation3 + $0x410] sm:$0xff] }
 0x41a   :  { %v13921_v29 = vadd.f32 %v13920_v18, %v13919_v21  ;;  %v13938_v18 = vsel %vm12926_vm0, %v10496_v55, 0.0  ;;  %v6171_v21 = vrot.slane %v6163_v62, %v14805_v20  ;;  %v13940_v27 = vsel %vm12926_vm0, %v10498_v1, 0.0 }
 0x41b   :  { %v10531_v50 = vcombine.high %v10523_v36, %v10523_v36  ;;  %v2593_v1 = vrot.slane %v324_v54, %v14785_v2 }
 0x41c   :  { %v13923_v34 = vadd.f32 %v13922_v25, %v13921_v29  ;;  %v10513_v25 = vrot.slane %v10499_v3, %v14805_v20  ;;  %v13942_v29 = vsel %vm12926_vm0, %v10506_v7, 0.0  ;;  %v6179_v30 = vcombine.low %v6171_v21, %v6178_v22 }
 0x41d   :  { %v13952_v62 = vsel %vm12926_vm0, %v10531_v50, 0.0  ;;  %v2597_v3 = vrot.slane %v324_v54, %v14787_v4  ;;  %v2601_v7 = vrot.slane %v324_v54, %v14789_v5 }
 0x41e   :  { %v13925_v39 = vadd.f32 %v13924_v33, %v13923_v34  ;;  %v10515_v34 = vcombine.high %v10513_v25, %v10513_v25  ;;  %v8031_v48 = vmul.f32 %v6179_v30, %v168_v38  ;;  %v2621_v38 = vrot.slane %v324_v54, %v14803_v17 }
 0x41f   :  { %v6215_v26 = vcombine.low %v2601_v7, %v2605_v9 }
 0x420   :  { %v13927_v45 = vadd.f32 %v13926_v35, %v13925_v39  ;;  %v10516_v35 = vcombine.high %v8030_v24, %v8030_v24  ;;  %v13948_v51 = vsel %vm12926_vm0, %v10515_v34, 0.0  ;;  %v10533_v60 = vcombine.high %v8031_v48, %v8031_v48 }
 0x421   :  { %v10540_v61 = vrot.slane %v8031_v48, %v14805_v20  ;;  %v2609_v34 = vrot.slane %v324_v54, %v14797_v14  ;;  %v6229_v40 = vrot.slane %v6215_v26, %v14805_v20  ;;  %v325_v48 = vld [vmem:[#allocation5 + $0x218] sm:$0xff] }
 0x422   :  { %v13929_v53 = vadd.f32 %v13928_v43, %v13927_v45  ;;  %v13946_v43 = vsel %vm12926_vm0, %v10513_v25, 0.0  ;;  %v6188_v45 = vrot.slane %v6180_v31, %v14805_v20  ;;  %v6214_v25 = vcombine.low %v2593_v1, %v2597_v3  ;;  %v172_v26 = vld [vmem:[#allocation3 + $0x428] sm:$0xff] }
 0x423   :  { %v10548_v19 = vcombine.high %v10540_v61, %v10540_v61 }
 0x424   :  { %v13931_v58 = vadd.f32 %v13930_v49, %v13929_v53  ;;  %v10530_v49 = vrot.slane %v10516_v35, %v14805_v20  ;;  %v13950_v53 = vsel %vm12926_vm0, %v10523_v36, 0.0  ;;  %v6196_v55 = vcombine.low %v6188_v45, %v6195_v46 }
 0x425   :  { %v13960_v31 = vsel %vm12926_vm0, %v10548_v19, 0.0  ;;  %v2613_v35 = vrot.slane %v324_v54, %v14799_v15  ;;  %v2617_v36 = vrot.slane %v324_v54, %v14801_v16 }
 0x426   :  { %v13933_v0 = vadd.f32 %v13932_v57, %v13931_v58  ;;  %v6198_v57 = vcombine.low %v2585_v42, %v2589_v44  ;;  %v8032_v13 = vmul.f32 %v6196_v55, %v169_v63  ;;  %v2637_v63 = vrot.slane %v325_v48, %v14791_v6 }
 0x427   :  { %v6231_v50 = vcombine.low %v2609_v34, %v2613_v35 }
 0x428   :  { %v13935_v10 = vadd.f32 %v13934_v59, %v13933_v0  ;;  %v10532_v59 = vcombine.high %v10530_v49, %v10530_v49  ;;  %v6212_v11 = vrot.slane %v6198_v57, %v14805_v20  ;;  %v10557_v30 = vrot.slane %v8032_v13, %v14805_v20  ;;  %v171_v57 = vld [vmem:[#allocation3 + $0x420] sm:$0xff] }
 0x42a   :  { %v13937_v23 = vadd.f32 %v13936_v8, %v13935_v10  ;;  %v13954_v8 = vsel %vm12926_vm0, %v10530_v49, 0.0  ;;  %v6205_v10 = vrot.slane %v6197_v56, %v14805_v20  ;;  %v13956_v21 = vsel %vm12926_vm0, %v10532_v59, 0.0 }
 0x42b   :  { %v10565_v44 = vcombine.high %v10557_v30, %v10557_v30  ;;  %v2625_v59 = vrot.slane %v325_v48, %v14785_v2 }
 0x42c   :  { %v13939_v28 = vadd.f32 %v13938_v18, %v13937_v23  ;;  %v10547_v18 = vrot.slane %v10533_v60, %v14805_v20  ;;  %v13958_v23 = vsel %vm12926_vm0, %v10540_v61, 0.0  ;;  %v6213_v24 = vcombine.low %v6205_v10, %v6212_v11 }
 0x42d   :  { %v13968_v56 = vsel %vm12926_vm0, %v10565_v44, 0.0  ;;  %v2629_v60 = vrot.slane %v325_v48, %v14787_v4  ;;  %v2633_v61 = vrot.slane %v325_v48, %v14789_v5 }
 0x42e   :  { %v13941_v33 = vadd.f32 %v13940_v27, %v13939_v28  ;;  %v10549_v28 = vcombine.high %v10547_v18, %v10547_v18  ;;  %v8033_v42 = vmul.f32 %v6213_v24, %v170_v32  ;;  %v2653_v32 = vrot.slane %v325_v48, %v14803_v17 }
 0x42f   :  { %v6249_v19 = vcombine.low %v2633_v61, %v2637_v63 }
 0x430   :  { %v13943_v39 = vadd.f32 %v13942_v29, %v13941_v33  ;;  %v10550_v29 = vcombine.high %v8032_v13, %v8032_v13  ;;  %v13964_v45 = vsel %vm12926_vm0, %v10549_v28, 0.0  ;;  %v10567_v54 = vcombine.high %v8033_v42, %v8033_v42 }
 0x431   :  { %v10574_v55 = vrot.slane %v8033_v42, %v14805_v20  ;;  %v2641_v28 = vrot.slane %v325_v48, %v14797_v14  ;;  %v6263_v34 = vrot.slane %v6249_v19, %v14805_v20  ;;  %v326_v42 = vld [vmem:[#allocation5 + $0x220] sm:$0xff] }
 0x432   :  { %v13945_v47 = vadd.f32 %v13944_v37, %v13943_v39  ;;  %v13962_v37 = vsel %vm12926_vm0, %v10547_v18, 0.0  ;;  %v6222_v39 = vrot.slane %v6214_v25, %v14805_v20  ;;  %v6248_v18 = vcombine.low %v2625_v59, %v2629_v60  ;;  %v174_v19 = vld [vmem:[#allocation3 + $0x438] sm:$0xff] }
 0x433   :  { %v10582_v9 = vcombine.high %v10574_v55, %v10574_v55 }
 0x434   :  { %v13947_v52 = vadd.f32 %v13946_v43, %v13945_v47  ;;  %v10564_v43 = vrot.slane %v10550_v29, %v14805_v20  ;;  %v13966_v47 = vsel %vm12926_vm0, %v10557_v30, 0.0  ;;  %v6230_v49 = vcombine.low %v6222_v39, %v6229_v40 }
 0x435   :  { %v13976_v25 = vsel %vm12926_vm0, %v10582_v9, 0.0  ;;  %v2645_v29 = vrot.slane %v325_v48, %v14799_v15  ;;  %v2649_v30 = vrot.slane %v325_v48, %v14801_v16 }
 0x436   :  { %v13949_v58 = vadd.f32 %v13948_v51, %v13947_v52  ;;  %v6232_v51 = vcombine.low %v2617_v36, %v2621_v38  ;;  %v8034_v7 = vmul.f32 %v6230_v49, %v171_v57  ;;  %v2669_v57 = vrot.slane %v326_v42, %v14791_v6 }
 0x437   :  { %v6265_v44 = vcombine.low %v2641_v28, %v2645_v29 }
 0x438   :  { %v13951_v0 = vadd.f32 %v13950_v53, %v13949_v58  ;;  %v10566_v53 = vcombine.high %v10564_v43, %v10564_v43  ;;  %v6246_v1 = vrot.slane %v6232_v51, %v14805_v20  ;;  %v10591_v24 = vrot.slane %v8034_v7, %v14805_v20  ;;  %v173_v51 = vld [vmem:[#allocation3 + $0x430] sm:$0xff] }
 0x43a   :  { %v13953_v12 = vadd.f32 %v13952_v62, %v13951_v0  ;;  %v13970_v62 = vsel %vm12926_vm0, %v10564_v43, 0.0  ;;  %v6239_v0 = vrot.slane %v6231_v50, %v14805_v20  ;;  %v13972_v10 = vsel %vm12926_vm0, %v10566_v53, 0.0 }
 0x43b   :  { %v10599_v38 = vcombine.high %v10591_v24, %v10591_v24  ;;  %v2657_v53 = vrot.slane %v326_v42, %v14785_v2 }
 0x43c   :  { %v13955_v22 = vadd.f32 %v13954_v8, %v13953_v12  ;;  %v10581_v8 = vrot.slane %v10567_v54, %v14805_v20  ;;  %v13974_v12 = vsel %vm12926_vm0, %v10574_v55, 0.0  ;;  %v6247_v13 = vcombine.low %v6239_v0, %v6246_v1 }
 0x43d   :  { %v13984_v50 = vsel %vm12926_vm0, %v10599_v38, 0.0  ;;  %v2661_v54 = vrot.slane %v326_v42, %v14787_v4  ;;  %v2665_v55 = vrot.slane %v326_v42, %v14789_v5 }
 0x43e   :  { %v13957_v27 = vadd.f32 %v13956_v21, %v13955_v22  ;;  %v10583_v22 = vcombine.high %v10581_v8, %v10581_v8  ;;  %v8035_v36 = vmul.f32 %v6247_v13, %v172_v26  ;;  %v2685_v26 = vrot.slane %v326_v42, %v14803_v17 }
 0x43f   :  { %v6283_v9 = vcombine.low %v2665_v55, %v2669_v57 }
 0x440   :  { %v13959_v33 = vadd.f32 %v13958_v23, %v13957_v27  ;;  %v10584_v23 = vcombine.high %v8034_v7, %v8034_v7  ;;  %v13980_v39 = vsel %vm12926_vm0, %v10583_v22, 0.0  ;;  %v10601_v48 = vcombine.high %v8035_v36, %v8035_v36 }
 0x441   :  { %v10608_v49 = vrot.slane %v8035_v36, %v14805_v20  ;;  %v2673_v22 = vrot.slane %v326_v42, %v14797_v14  ;;  %v6297_v28 = vrot.slane %v6283_v9, %v14805_v20  ;;  %v327_v36 = vld [vmem:[#allocation5 + $0x228] sm:$0xff]  ;;  %v176_v9 = vld [vmem:[#allocation3 + $0x448] sm:$0xff] }
 0x442   :  { %v13961_v41 = vadd.f32 %v13960_v31, %v13959_v33  ;;  %v13978_v31 = vsel %vm12926_vm0, %v10581_v8, 0.0  ;;  %v6256_v33 = vrot.slane %v6248_v18, %v14805_v20  ;;  %v6282_v8 = vcombine.low %v2657_v53, %v2661_v54 }
 0x443   :  { %v10616_v63 = vcombine.high %v10608_v49, %v10608_v49 }
 0x444   :  { %v13963_v46 = vadd.f32 %v13962_v37, %v13961_v41  ;;  %v10598_v37 = vrot.slane %v10584_v23, %v14805_v20  ;;  %v13982_v41 = vsel %vm12926_vm0, %v10591_v24, 0.0  ;;  %v6264_v43 = vcombine.low %v6256_v33, %v6263_v34 }
 0x445   :  { %v13992_v18 = vsel %vm12926_vm0, %v10616_v63, 0.0  ;;  %v2677_v23 = vrot.slane %v326_v42, %v14799_v15  ;;  %v2681_v24 = vrot.slane %v326_v42, %v14801_v16 }
 0x446   :  { %v13965_v52 = vadd.f32 %v13964_v45, %v13963_v46  ;;  %v6266_v45 = vcombine.low %v2649_v30, %v2653_v32  ;;  %v8036_v61 = vmul.f32 %v6264_v43, %v173_v51  ;;  %v2701_v51 = vrot.slane %v327_v36, %v14791_v6 }
 0x447   :  { %v6299_v38 = vcombine.low %v2673_v22, %v2677_v23 }
 0x448   :  { %v13967_v58 = vadd.f32 %v13966_v47, %v13965_v52  ;;  %v10600_v47 = vcombine.high %v10598_v37, %v10598_v37  ;;  %v6280_v59 = vrot.slane %v6266_v45, %v14805_v20  ;;  %v10625_v13 = vrot.slane %v8036_v61, %v14805_v20  ;;  %v175_v45 = vld [vmem:[#allocation3 + $0x440] sm:$0xff] }
 0x44a   :  { %v13969_v3 = vadd.f32 %v13968_v56, %v13967_v58  ;;  %v13986_v56 = vsel %vm12926_vm0, %v10598_v37, 0.0  ;;  %v6273_v58 = vrot.slane %v6265_v44, %v14805_v20  ;;  %v13988_v0 = vsel %vm12926_vm0, %v10600_v47, 0.0 }
 0x44b   :  { %v10633_v32 = vcombine.high %v10625_v13, %v10625_v13  ;;  %v2689_v47 = vrot.slane %v327_v36, %v14785_v2 }
 0x44c   :  { %v13971_v11 = vadd.f32 %v13970_v62, %v13969_v3  ;;  %v10615_v62 = vrot.slane %v10601_v48, %v14805_v20  ;;  %v13990_v3 = vsel %vm12926_vm0, %v10608_v49, 0.0  ;;  %v6281_v7 = vcombine.low %v6273_v58, %v6280_v59 }
 0x44d   :  { %v14000_v44 = vsel %vm12926_vm0, %v10633_v32, 0.0  ;;  %v2693_v48 = vrot.slane %v327_v36, %v14787_v4  ;;  %v2697_v49 = vrot.slane %v327_v36, %v14789_v5 }
 0x44e   :  { %v13973_v21 = vadd.f32 %v13972_v10, %v13971_v11  ;;  %v10617_v11 = vcombine.high %v10615_v62, %v10615_v62  ;;  %v8037_v30 = vmul.f32 %v6281_v7, %v174_v19  ;;  %v2717_v19 = vrot.slane %v327_v36, %v14803_v17 }
 0x44f   :  { %v6317_v63 = vcombine.low %v2697_v49, %v2701_v51 }
 0x450   :  { %v13975_v27 = vadd.f32 %v13974_v12, %v13973_v21  ;;  %v10618_v12 = vcombine.high %v8036_v61, %v8036_v61  ;;  %v13996_v33 = vsel %vm12926_vm0, %v10617_v11, 0.0  ;;  %v10635_v42 = vcombine.high %v8037_v30, %v8037_v30 }
 0x451   :  { %v10642_v43 = vrot.slane %v8037_v30, %v14805_v20  ;;  %v2705_v11 = vrot.slane %v327_v36, %v14797_v14  ;;  %v6331_v22 = vrot.slane %v6317_v63, %v14805_v20  ;;  %v328_v30 = vld [vmem:[#allocation5 + $0x230] sm:$0xff]  ;;  %v178_v63 = vld [vmem:[#allocation3 + $0x458] sm:$0xff] }
 0x452   :  { %v13977_v35 = vadd.f32 %v13976_v25, %v13975_v27  ;;  %v13994_v25 = vsel %vm12926_vm0, %v10615_v62, 0.0  ;;  %v6290_v27 = vrot.slane %v6282_v8, %v14805_v20  ;;  %v6316_v62 = vcombine.low %v2689_v47, %v2693_v48 }
 0x453   :  { %v10650_v57 = vcombine.high %v10642_v43, %v10642_v43 }
 0x454   :  { %v13979_v40 = vadd.f32 %v13978_v31, %v13977_v35  ;;  %v10632_v31 = vrot.slane %v10618_v12, %v14805_v20  ;;  %v13998_v35 = vsel %vm12926_vm0, %v10625_v13, 0.0  ;;  %v6298_v37 = vcombine.low %v6290_v27, %v6297_v28 }
 0x455   :  { %v14008_v8 = vsel %vm12926_vm0, %v10650_v57, 0.0  ;;  %v2709_v12 = vrot.slane %v327_v36, %v14799_v15  ;;  %v2713_v13 = vrot.slane %v327_v36, %v14801_v16 }
 0x456   :  { %v13981_v46 = vadd.f32 %v13980_v39, %v13979_v40  ;;  %v6300_v39 = vcombine.low %v2681_v24, %v2685_v26  ;;  %v8038_v55 = vmul.f32 %v6298_v37, %v175_v45  ;;  %v2733_v45 = vrot.slane %v328_v30, %v14791_v6 }
 0x457   :  { %v6333_v32 = vcombine.low %v2705_v11, %v2709_v12 }
 0x458   :  { %v13983_v52 = vadd.f32 %v13982_v41, %v13981_v46  ;;  %v10634_v41 = vcombine.high %v10632_v31, %v10632_v31  ;;  %v6314_v53 = vrot.slane %v6300_v39, %v14805_v20  ;;  %v10659_v7 = vrot.slane %v8038_v55, %v14805_v20  ;;  %v177_v39 = vld [vmem:[#allocation3 + $0x450] sm:$0xff] }
 0x45a   :  { %v13985_v60 = vadd.f32 %v13984_v50, %v13983_v52  ;;  %v14002_v50 = vsel %vm12926_vm0, %v10632_v31, 0.0  ;;  %v6307_v52 = vrot.slane %v6299_v38, %v14805_v20  ;;  %v14004_v58 = vsel %vm12926_vm0, %v10634_v41, 0.0 }
 0x45b   :  { %v10667_v26 = vcombine.high %v10659_v7, %v10659_v7  ;;  %v2721_v41 = vrot.slane %v328_v30, %v14785_v2 }
 0x45c   :  { %v13987_v1 = vadd.f32 %v13986_v56, %v13985_v60  ;;  %v10649_v56 = vrot.slane %v10635_v42, %v14805_v20  ;;  %v14006_v60 = vsel %vm12926_vm0, %v10642_v43, 0.0  ;;  %v6315_v61 = vcombine.low %v6307_v52, %v6314_v53 }
 0x45d   :  { %v14016_v38 = vsel %vm12926_vm0, %v10667_v26, 0.0  ;;  %v2725_v42 = vrot.slane %v328_v30, %v14787_v4  ;;  %v2729_v43 = vrot.slane %v328_v30, %v14789_v5 }
 0x45e   :  { %v13989_v10 = vadd.f32 %v13988_v0, %v13987_v1  ;;  %v10651_v1 = vcombine.high %v10649_v56, %v10649_v56  ;;  %v8039_v24 = vmul.f32 %v6315_v61, %v176_v9  ;;  %v2749_v9 = vrot.slane %v328_v30, %v14803_v17 }
 0x45f   :  { %v6351_v57 = vcombine.low %v2729_v43, %v2733_v45 }
 0x460   :  { %v13991_v21 = vadd.f32 %v13990_v3, %v13989_v10  ;;  %v10652_v3 = vcombine.high %v8038_v55, %v8038_v55  ;;  %v14012_v27 = vsel %vm12926_vm0, %v10651_v1, 0.0  ;;  %v10669_v36 = vcombine.high %v8039_v24, %v8039_v24 }
 0x461   :  { %v10676_v37 = vrot.slane %v8039_v24, %v14805_v20  ;;  %v2737_v1 = vrot.slane %v328_v30, %v14797_v14  ;;  %v6365_v11 = vrot.slane %v6351_v57, %v14805_v20  ;;  %v329_v24 = vld [vmem:[#allocation5 + $0x238] sm:$0xff] }
 0x462   :  { %v13993_v29 = vadd.f32 %v13992_v18, %v13991_v21  ;;  %v14010_v18 = vsel %vm12926_vm0, %v10649_v56, 0.0  ;;  %v6324_v21 = vrot.slane %v6316_v62, %v14805_v20  ;;  %v6350_v56 = vcombine.low %v2721_v41, %v2725_v42  ;;  %v180_v57 = vld [vmem:[#allocation3 + $0x468] sm:$0xff] }
 0x463   :  { %v10684_v51 = vcombine.high %v10676_v37, %v10676_v37 }
 0x464   :  { %v13995_v34 = vadd.f32 %v13994_v25, %v13993_v29  ;;  %v10666_v25 = vrot.slane %v10652_v3, %v14805_v20  ;;  %v14014_v29 = vsel %vm12926_vm0, %v10659_v7, 0.0  ;;  %v6332_v31 = vcombine.low %v6324_v21, %v6331_v22 }
 0x465   :  { %v14024_v62 = vsel %vm12926_vm0, %v10684_v51, 0.0  ;;  %v2741_v3 = vrot.slane %v328_v30, %v14799_v15  ;;  %v2745_v7 = vrot.slane %v328_v30, %v14801_v16 }
 0x466   :  { %v13997_v40 = vadd.f32 %v13996_v33, %v13995_v34  ;;  %v6334_v33 = vcombine.low %v2713_v13, %v2717_v19  ;;  %v8040_v49 = vmul.f32 %v6332_v31, %v177_v39  ;;  %v2765_v39 = vrot.slane %v329_v24, %v14791_v6 }
 0x467   :  { %v6367_v26 = vcombine.low %v2737_v1, %v2741_v3 }
 0x468   :  { %v13999_v46 = vadd.f32 %v13998_v35, %v13997_v40  ;;  %v10668_v35 = vcombine.high %v10666_v25, %v10666_v25  ;;  %v6348_v47 = vrot.slane %v6334_v33, %v14805_v20  ;;  %v10693_v61 = vrot.slane %v8040_v49, %v14805_v20  ;;  %v179_v33 = vld [vmem:[#allocation3 + $0x460] sm:$0xff] }
 0x46a   :  { %v14001_v54 = vadd.f32 %v14000_v44, %v13999_v46  ;;  %v14018_v44 = vsel %vm12926_vm0, %v10666_v25, 0.0  ;;  %v6341_v46 = vrot.slane %v6333_v32, %v14805_v20  ;;  %v14020_v52 = vsel %vm12926_vm0, %v10668_v35, 0.0 }
 0x46b   :  { %v10701_v19 = vcombine.high %v10693_v61, %v10693_v61  ;;  %v2753_v35 = vrot.slane %v329_v24, %v14785_v2 }
 0x46c   :  { %v14003_v59 = vadd.f32 %v14002_v50, %v14001_v54  ;;  %v10683_v50 = vrot.slane %v10669_v36, %v14805_v20  ;;  %v14022_v54 = vsel %vm12926_vm0, %v10676_v37, 0.0  ;;  %v6349_v55 = vcombine.low %v6341_v46, %v6348_v47 }
 0x46d   :  { %v14032_v32 = vsel %vm12926_vm0, %v10701_v19, 0.0  ;;  %v2757_v36 = vrot.slane %v329_v24, %v14787_v4  ;;  %v2761_v37 = vrot.slane %v329_v24, %v14789_v5 }
 0x46e   :  { %v14005_v0 = vadd.f32 %v14004_v58, %v14003_v59  ;;  %v10685_v59 = vcombine.high %v10683_v50, %v10683_v50  ;;  %v8041_v13 = vmul.f32 %v6349_v55, %v178_v63  ;;  %v2781_v63 = vrot.slane %v329_v24, %v14803_v17 }
 0x46f   :  { %v6385_v51 = vcombine.low %v2761_v37, %v2765_v39 }
 0x470   :  { %v14007_v10 = vadd.f32 %v14006_v60, %v14005_v0  ;;  %v10686_v60 = vcombine.high %v8040_v49, %v8040_v49  ;;  %v14028_v21 = vsel %vm12926_vm0, %v10685_v59, 0.0  ;;  %v10703_v30 = vcombine.high %v8041_v13, %v8041_v13 }
 0x471   :  { %v10710_v31 = vrot.slane %v8041_v13, %v14805_v20  ;;  %v2769_v59 = vrot.slane %v329_v24, %v14797_v14  ;;  %v6399_v1 = vrot.slane %v6385_v51, %v14805_v20  ;;  %v330_v13 = vld [vmem:[#allocation5 + $0x240] sm:$0xff] }
 0x472   :  { %v14009_v23 = vadd.f32 %v14008_v8, %v14007_v10  ;;  %v14026_v8 = vsel %vm12926_vm0, %v10683_v50, 0.0  ;;  %v6358_v10 = vrot.slane %v6350_v56, %v14805_v20  ;;  %v6384_v50 = vcombine.low %v2753_v35, %v2757_v36  ;;  %v182_v51 = vld [vmem:[#allocation3 + $0x478] sm:$0xff] }
 0x473   :  { %v10718_v45 = vcombine.high %v10710_v31, %v10710_v31 }
 0x474   :  { %v14011_v28 = vadd.f32 %v14010_v18, %v14009_v23  ;;  %v10700_v18 = vrot.slane %v10686_v60, %v14805_v20  ;;  %v14030_v23 = vsel %vm12926_vm0, %v10693_v61, 0.0  ;;  %v6366_v25 = vcombine.low %v6358_v10, %v6365_v11 }
 0x475   :  { %v14040_v56 = vsel %vm12926_vm0, %v10718_v45, 0.0  ;;  %v2773_v60 = vrot.slane %v329_v24, %v14799_v15  ;;  %v2777_v61 = vrot.slane %v329_v24, %v14801_v16 }
 0x476   :  { %v14013_v34 = vadd.f32 %v14012_v27, %v14011_v28  ;;  %v6368_v27 = vcombine.low %v2745_v7, %v2749_v9  ;;  %v8042_v43 = vmul.f32 %v6366_v25, %v179_v33  ;;  %v2797_v33 = vrot.slane %v330_v13, %v14791_v6 }
 0x477   :  { %v6401_v19 = vcombine.low %v2769_v59, %v2773_v60 }
 0x478   :  { %v14015_v40 = vadd.f32 %v14014_v29, %v14013_v34  ;;  %v10702_v29 = vcombine.high %v10700_v18, %v10700_v18  ;;  %v6382_v41 = vrot.slane %v6368_v27, %v14805_v20  ;;  %v10727_v55 = vrot.slane %v8042_v43, %v14805_v20  ;;  %v181_v27 = vld [vmem:[#allocation3 + $0x470] sm:$0xff] }
 0x47a   :  { %v14017_v48 = vadd.f32 %v14016_v38, %v14015_v40  ;;  %v14034_v38 = vsel %vm12926_vm0, %v10700_v18, 0.0  ;;  %v6375_v40 = vrot.slane %v6367_v26, %v14805_v20  ;;  %v14036_v46 = vsel %vm12926_vm0, %v10702_v29, 0.0 }
 0x47b   :  { %v10735_v9 = vcombine.high %v10727_v55, %v10727_v55  ;;  %v2785_v29 = vrot.slane %v330_v13, %v14785_v2 }
 0x47c   :  { %v14019_v53 = vadd.f32 %v14018_v44, %v14017_v48  ;;  %v10717_v44 = vrot.slane %v10703_v30, %v14805_v20  ;;  %v14038_v48 = vsel %vm12926_vm0, %v10710_v31, 0.0  ;;  %v6383_v49 = vcombine.low %v6375_v40, %v6382_v41 }
 0x47d   :  { %v14048_v26 = vsel %vm12926_vm0, %v10735_v9, 0.0  ;;  %v2789_v30 = vrot.slane %v330_v13, %v14787_v4  ;;  %v2793_v31 = vrot.slane %v330_v13, %v14789_v5 }
 0x47e   :  { %v14021_v58 = vadd.f32 %v14020_v52, %v14019_v53  ;;  %v10719_v53 = vcombine.high %v10717_v44, %v10717_v44  ;;  %v8043_v7 = vmul.f32 %v6383_v49, %v180_v57  ;;  %v2813_v57 = vrot.slane %v330_v13, %v14803_v17 }
 0x47f   :  { %v6419_v45 = vcombine.low %v2793_v31, %v2797_v33 }
 0x480   :  { %v14023_v0 = vadd.f32 %v14022_v54, %v14021_v58  ;;  %v10720_v54 = vcombine.high %v8042_v43, %v8042_v43  ;;  %v14044_v10 = vsel %vm12926_vm0, %v10719_v53, 0.0  ;;  %v10737_v24 = vcombine.high %v8043_v7, %v8043_v7 }
 0x481   :  { %v10744_v25 = vrot.slane %v8043_v7, %v14805_v20  ;;  %v2801_v53 = vrot.slane %v330_v13, %v14797_v14  ;;  %v6433_v59 = vrot.slane %v6419_v45, %v14805_v20  ;;  %v331_v7 = vld [vmem:[#allocation5 + $0x248] sm:$0xff]  ;;  %v184_v45 = vld [vmem:[#allocation3 + $0x488] sm:$0xff] }
 0x482   :  { %v14025_v12 = vadd.f32 %v14024_v62, %v14023_v0  ;;  %v14042_v62 = vsel %vm12926_vm0, %v10717_v44, 0.0  ;;  %v6392_v0 = vrot.slane %v6384_v50, %v14805_v20  ;;  %v6418_v44 = vcombine.low %v2785_v29, %v2789_v30 }
 0x483   :  { %v10752_v39 = vcombine.high %v10744_v25, %v10744_v25 }
 0x484   :  { %v14027_v22 = vadd.f32 %v14026_v8, %v14025_v12  ;;  %v10734_v8 = vrot.slane %v10720_v54, %v14805_v20  ;;  %v14046_v12 = vsel %vm12926_vm0, %v10727_v55, 0.0  ;;  %v6400_v18 = vcombine.low %v6392_v0, %v6399_v1 }
 0x485   :  { %v14056_v50 = vsel %vm12926_vm0, %v10752_v39, 0.0  ;;  %v2805_v54 = vrot.slane %v330_v13, %v14799_v15  ;;  %v2809_v55 = vrot.slane %v330_v13, %v14801_v16 }
 0x486   :  { %v14029_v28 = vadd.f32 %v14028_v21, %v14027_v22  ;;  %v6402_v21 = vcombine.low %v2777_v61, %v2781_v63  ;;  %v8044_v37 = vmul.f32 %v6400_v18, %v181_v27  ;;  %v2829_v27 = vrot.slane %v331_v7, %v14791_v6 }
 0x487   :  { %v6435_v9 = vcombine.low %v2801_v53, %v2805_v54 }
 0x488   :  { %v14031_v34 = vadd.f32 %v14030_v23, %v14029_v28  ;;  %v10736_v23 = vcombine.high %v10734_v8, %v10734_v8  ;;  %v6416_v35 = vrot.slane %v6402_v21, %v14805_v20  ;;  %v10761_v49 = vrot.slane %v8044_v37, %v14805_v20  ;;  %v183_v21 = vld [vmem:[#allocation3 + $0x480] sm:$0xff] }
 0x48a   :  { %v14033_v42 = vadd.f32 %v14032_v32, %v14031_v34  ;;  %v14050_v32 = vsel %vm12926_vm0, %v10734_v8, 0.0  ;;  %v6409_v34 = vrot.slane %v6401_v19, %v14805_v20  ;;  %v14052_v40 = vsel %vm12926_vm0, %v10736_v23, 0.0 }
 0x48b   :  { %v10769_v63 = vcombine.high %v10761_v49, %v10761_v49  ;;  %v2817_v23 = vrot.slane %v331_v7, %v14785_v2 }
 0x48c   :  { %v14035_v47 = vadd.f32 %v14034_v38, %v14033_v42  ;;  %v10751_v38 = vrot.slane %v10737_v24, %v14805_v20  ;;  %v14054_v42 = vsel %vm12926_vm0, %v10744_v25, 0.0  ;;  %v6417_v43 = vcombine.low %v6409_v34, %v6416_v35 }
 0x48d   :  { %v14064_v19 = vsel %vm12926_vm0, %v10769_v63, 0.0  ;;  %v2821_v24 = vrot.slane %v331_v7, %v14787_v4  ;;  %v2825_v25 = vrot.slane %v331_v7, %v14789_v5 }
 0x48e   :  { %v14037_v52 = vadd.f32 %v14036_v46, %v14035_v47  ;;  %v10753_v47 = vcombine.high %v10751_v38, %v10751_v38  ;;  %v8045_v61 = vmul.f32 %v6417_v43, %v182_v51  ;;  %v2845_v51 = vrot.slane %v331_v7, %v14803_v17 }
 0x48f   :  { %v6453_v39 = vcombine.low %v2825_v25, %v2829_v27 }
 0x490   :  { %v14039_v58 = vadd.f32 %v14038_v48, %v14037_v52  ;;  %v10754_v48 = vcombine.high %v8044_v37, %v8044_v37  ;;  %v14060_v0 = vsel %vm12926_vm0, %v10753_v47, 0.0  ;;  %v10771_v13 = vcombine.high %v8045_v61, %v8045_v61 }
 0x491   :  { %v10778_v18 = vrot.slane %v8045_v61, %v14805_v20  ;;  %v2833_v47 = vrot.slane %v331_v7, %v14797_v14  ;;  %v6467_v53 = vrot.slane %v6453_v39, %v14805_v20  ;;  %v332_v61 = vld [vmem:[#allocation5 + $0x250] sm:$0xff]  ;;  %v186_v39 = vld [vmem:[#allocation3 + $0x498] sm:$0xff] }
 0x492   :  { %v14041_v3 = vadd.f32 %v14040_v56, %v14039_v58  ;;  %v14058_v56 = vsel %vm12926_vm0, %v10751_v38, 0.0  ;;  %v6426_v58 = vrot.slane %v6418_v44, %v14805_v20  ;;  %v6452_v38 = vcombine.low %v2817_v23, %v2821_v24 }
 0x493   :  { %v10786_v33 = vcombine.high %v10778_v18, %v10778_v18 }
 0x494   :  { %v14043_v11 = vadd.f32 %v14042_v62, %v14041_v3  ;;  %v10768_v62 = vrot.slane %v10754_v48, %v14805_v20  ;;  %v14062_v3 = vsel %vm12926_vm0, %v10761_v49, 0.0  ;;  %v6434_v8 = vcombine.low %v6426_v58, %v6433_v59 }
 0x495   :  { %v14072_v44 = vsel %vm12926_vm0, %v10786_v33, 0.0  ;;  %v2837_v48 = vrot.slane %v331_v7, %v14799_v15  ;;  %v2841_v49 = vrot.slane %v331_v7, %v14801_v16 }
 0x496   :  { %v14045_v22 = vadd.f32 %v14044_v10, %v14043_v11  ;;  %v6436_v10 = vcombine.low %v2809_v55, %v2813_v57  ;;  %v8046_v31 = vmul.f32 %v6434_v8, %v183_v21  ;;  %v2861_v21 = vrot.slane %v332_v61, %v14791_v6 }
 0x497   :  { %v6469_v63 = vcombine.low %v2833_v47, %v2837_v48 }
 0x498   :  { %v14047_v28 = vadd.f32 %v14046_v12, %v14045_v22  ;;  %v10770_v12 = vcombine.high %v10768_v62, %v10768_v62  ;;  %v6450_v29 = vrot.slane %v6436_v10, %v14805_v20  ;;  %v10795_v43 = vrot.slane %v8046_v31, %v14805_v20  ;;  %v185_v10 = vld [vmem:[#allocation3 + $0x490] sm:$0xff] }
 0x49a   :  { %v14049_v36 = vadd.f32 %v14048_v26, %v14047_v28  ;;  %v14066_v26 = vsel %vm12926_vm0, %v10768_v62, 0.0  ;;  %v6443_v28 = vrot.slane %v6435_v9, %v14805_v20  ;;  %v14068_v34 = vsel %vm12926_vm0, %v10770_v12, 0.0 }
 0x49b   :  { %v10803_v57 = vcombine.high %v10795_v43, %v10795_v43  ;;  %v2849_v12 = vrot.slane %v332_v61, %v14785_v2 }
 0x49c   :  { %v14051_v41 = vadd.f32 %v14050_v32, %v14049_v36  ;;  %v10785_v32 = vrot.slane %v10771_v13, %v14805_v20  ;;  %v14070_v36 = vsel %vm12926_vm0, %v10778_v18, 0.0  ;;  %v6451_v37 = vcombine.low %v6443_v28, %v6450_v29 }
 0x49d   :  { %v14080_v9 = vsel %vm12926_vm0, %v10803_v57, 0.0  ;;  %v2853_v13 = vrot.slane %v332_v61, %v14787_v4  ;;  %v2857_v18 = vrot.slane %v332_v61, %v14789_v5 }
 0x49e   :  { %v14053_v46 = vadd.f32 %v14052_v40, %v14051_v41  ;;  %v10787_v41 = vcombine.high %v10785_v32, %v10785_v32  ;;  %v8047_v55 = vmul.f32 %v6451_v37, %v184_v45  ;;  %v2877_v45 = vrot.slane %v332_v61, %v14803_v17 }
 0x49f   :  { %v6487_v33 = vcombine.low %v2857_v18, %v2861_v21 }
 0x4a0   :  { %v14055_v52 = vadd.f32 %v14054_v42, %v14053_v46  ;;  %v10788_v42 = vcombine.high %v8046_v31, %v8046_v31  ;;  %v14076_v58 = vsel %vm12926_vm0, %v10787_v41, 0.0  ;;  %v10805_v7 = vcombine.high %v8047_v55, %v8047_v55 }
 0x4a1   :  { %v10812_v8 = vrot.slane %v8047_v55, %v14805_v20  ;;  %v2865_v41 = vrot.slane %v332_v61, %v14797_v14  ;;  %v6501_v47 = vrot.slane %v6487_v33, %v14805_v20  ;;  %v333_v55 = vld [vmem:[#allocation5 + $0x258] sm:$0xff] }
 0x4a2   :  { %v14057_v60 = vadd.f32 %v14056_v50, %v14055_v52  ;;  %v14074_v50 = vsel %vm12926_vm0, %v10785_v32, 0.0  ;;  %v6460_v52 = vrot.slane %v6452_v38, %v14805_v20  ;;  %v6486_v32 = vcombine.low %v2849_v12, %v2853_v13  ;;  %v188_v33 = vld [vmem:[#allocation3 + $0x4a8] sm:$0xff] }
 0x4a3   :  { %v10820_v27 = vcombine.high %v10812_v8, %v10812_v8 }
 0x4a4   :  { %v14059_v1 = vadd.f32 %v14058_v56, %v14057_v60  ;;  %v10802_v56 = vrot.slane %v10788_v42, %v14805_v20  ;;  %v14078_v60 = vsel %vm12926_vm0, %v10795_v43, 0.0  ;;  %v6468_v62 = vcombine.low %v6460_v52, %v6467_v53 }
 0x4a5   :  { %v14088_v38 = vsel %vm12926_vm0, %v10820_v27, 0.0  ;;  %v2869_v42 = vrot.slane %v332_v61, %v14799_v15  ;;  %v2873_v43 = vrot.slane %v332_v61, %v14801_v16 }
 0x4a6   :  { %v14061_v11 = vadd.f32 %v14060_v0, %v14059_v1  ;;  %v6470_v0 = vcombine.low %v2841_v49, %v2845_v51  ;;  %v8048_v25 = vmul.f32 %v6468_v62, %v185_v10  ;;  %v2893_v10 = vrot.slane %v333_v55, %v14791_v6 }
 0x4a7   :  { %v6503_v57 = vcombine.low %v2865_v41, %v2869_v42 }
 0x4a8   :  { %v14063_v22 = vadd.f32 %v14062_v3, %v14061_v11  ;;  %v10804_v3 = vcombine.high %v10802_v56, %v10802_v56  ;;  %v6484_v23 = vrot.slane %v6470_v0, %v14805_v20  ;;  %v10829_v37 = vrot.slane %v8048_v25, %v14805_v20  ;;  %v187_v0 = vld [vmem:[#allocation3 + $0x4a0] sm:$0xff] }
 0x4aa   :  { %v14065_v30 = vadd.f32 %v14064_v19, %v14063_v22  ;;  %v14082_v19 = vsel %vm12926_vm0, %v10802_v56, 0.0  ;;  %v6477_v22 = vrot.slane %v6469_v63, %v14805_v20  ;;  %v14084_v28 = vsel %vm12926_vm0, %v10804_v3, 0.0 }
 0x4ab   :  { %v10837_v51 = vcombine.high %v10829_v37, %v10829_v37  ;;  %v2881_v3 = vrot.slane %v333_v55, %v14785_v2 }
 0x4ac   :  { %v14067_v35 = vadd.f32 %v14066_v26, %v14065_v30  ;;  %v10819_v26 = vrot.slane %v10805_v7, %v14805_v20  ;;  %v14086_v30 = vsel %vm12926_vm0, %v10812_v8, 0.0  ;;  %v6485_v31 = vcombine.low %v6477_v22, %v6484_v23 }
 0x4ad   :  { %v14096_v63 = vsel %vm12926_vm0, %v10837_v51, 0.0  ;;  %v2885_v7 = vrot.slane %v333_v55, %v14787_v4  ;;  %v2889_v8 = vrot.slane %v333_v55, %v14789_v5 }
 0x4ae   :  { %v14069_v40 = vadd.f32 %v14068_v34, %v14067_v35  ;;  %v10821_v35 = vcombine.high %v10819_v26, %v10819_v26  ;;  %v8049_v49 = vmul.f32 %v6485_v31, %v186_v39  ;;  %v2909_v39 = vrot.slane %v333_v55, %v14803_v17 }
 0x4af   :  { %v6521_v27 = vcombine.low %v2889_v8, %v2893_v10 }
 0x4b0   :  { %v14071_v46 = vadd.f32 %v14070_v36, %v14069_v40  ;;  %v10822_v36 = vcombine.high %v8048_v25, %v8048_v25  ;;  %v14092_v52 = vsel %vm12926_vm0, %v10821_v35, 0.0  ;;  %v10839_v61 = vcombine.high %v8049_v49, %v8049_v49 }
 0x4b1   :  { %v10846_v62 = vrot.slane %v8049_v49, %v14805_v20  ;;  %v2897_v35 = vrot.slane %v333_v55, %v14797_v14  ;;  %v6535_v41 = vrot.slane %v6521_v27, %v14805_v20  ;;  %v334_v49 = vld [vmem:[#allocation5 + $0x260] sm:$0xff] }
 0x4b2   :  { %v14073_v54 = vadd.f32 %v14072_v44, %v14071_v46  ;;  %v14090_v44 = vsel %vm12926_vm0, %v10819_v26, 0.0  ;;  %v6494_v46 = vrot.slane %v6486_v32, %v14805_v20  ;;  %v6520_v26 = vcombine.low %v2881_v3, %v2885_v7  ;;  %v190_v27 = vld [vmem:[#allocation3 + $0x4b8] sm:$0xff] }
 0x4b3   :  { %v10854_v21 = vcombine.high %v10846_v62, %v10846_v62 }
 0x4b4   :  { %v14075_v59 = vadd.f32 %v14074_v50, %v14073_v54  ;;  %v10836_v50 = vrot.slane %v10822_v36, %v14805_v20  ;;  %v14094_v54 = vsel %vm12926_vm0, %v10829_v37, 0.0  ;;  %v6502_v56 = vcombine.low %v6494_v46, %v6501_v47 }
 0x4b5   :  { %v14104_v32 = vsel %vm12926_vm0, %v10854_v21, 0.0  ;;  %v2901_v36 = vrot.slane %v333_v55, %v14799_v15  ;;  %v2905_v37 = vrot.slane %v333_v55, %v14801_v16 }
 0x4b6   :  { %v14077_v1 = vadd.f32 %v14076_v58, %v14075_v59  ;;  %v6504_v58 = vcombine.low %v2873_v43, %v2877_v45  ;;  %v8050_v18 = vmul.f32 %v6502_v56, %v187_v0  ;;  %v2925_v0 = vrot.slane %v334_v49, %v14791_v6 }
 0x4b7   :  { %v6537_v51 = vcombine.low %v2897_v35, %v2901_v36 }
 0x4b8   :  { %v14079_v11 = vadd.f32 %v14078_v60, %v14077_v1  ;;  %v10838_v60 = vcombine.high %v10836_v50, %v10836_v50  ;;  %v6518_v12 = vrot.slane %v6504_v58, %v14805_v20  ;;  %v10863_v31 = vrot.slane %v8050_v18, %v14805_v20  ;;  %v189_v58 = vld [vmem:[#allocation3 + $0x4b0] sm:$0xff] }
 0x4ba   :  { %v14081_v24 = vadd.f32 %v14080_v9, %v14079_v11  ;;  %v14098_v9 = vsel %vm12926_vm0, %v10836_v50, 0.0  ;;  %v6511_v11 = vrot.slane %v6503_v57, %v14805_v20  ;;  %v14100_v22 = vsel %vm12926_vm0, %v10838_v60, 0.0 }
 0x4bb   :  { %v10871_v45 = vcombine.high %v10863_v31, %v10863_v31  ;;  %v2913_v60 = vrot.slane %v334_v49, %v14785_v2 }
 0x4bc   :  { %v14083_v29 = vadd.f32 %v14082_v19, %v14081_v24  ;;  %v10853_v19 = vrot.slane %v10839_v61, %v14805_v20  ;;  %v14102_v24 = vsel %vm12926_vm0, %v10846_v62, 0.0  ;;  %v6519_v25 = vcombine.low %v6511_v11, %v6518_v12 }
 0x4bd   :  { %v14112_v57 = vsel %vm12926_vm0, %v10871_v45, 0.0  ;;  %v2917_v61 = vrot.slane %v334_v49, %v14787_v4  ;;  %v2921_v62 = vrot.slane %v334_v49, %v14789_v5 }
 0x4be   :  { %v14085_v34 = vadd.f32 %v14084_v28, %v14083_v29  ;;  %v10855_v29 = vcombine.high %v10853_v19, %v10853_v19  ;;  %v8051_v43 = vmul.f32 %v6519_v25, %v188_v33  ;;  %v2941_v33 = vrot.slane %v334_v49, %v14803_v17 }
 0x4bf   :  { %v6555_v21 = vcombine.low %v2921_v62, %v2925_v0 }
 0x4c0   :  { %v14087_v40 = vadd.f32 %v14086_v30, %v14085_v34  ;;  %v10856_v30 = vcombine.high %v8050_v18, %v8050_v18  ;;  %v14108_v46 = vsel %vm12926_vm0, %v10855_v29, 0.0  ;;  %v10873_v55 = vcombine.high %v8051_v43, %v8051_v43 }
 0x4c1   :  { %v10880_v56 = vrot.slane %v8051_v43, %v14805_v20  ;;  %v2929_v29 = vrot.slane %v334_v49, %v14797_v14  ;;  %v6569_v35 = vrot.slane %v6555_v21, %v14805_v20  ;;  %v335_v43 = vld [vmem:[#allocation5 + $0x268] sm:$0xff]  ;;  %v192_v21 = vld [vmem:[#allocation3 + $0x4c8] sm:$0xff] }
 0x4c2   :  { %v14089_v48 = vadd.f32 %v14088_v38, %v14087_v40  ;;  %v14106_v38 = vsel %vm12926_vm0, %v10853_v19, 0.0  ;;  %v6528_v40 = vrot.slane %v6520_v26, %v14805_v20  ;;  %v6554_v19 = vcombine.low %v2913_v60, %v2917_v61 }
 0x4c3   :  { %v10888_v10 = vcombine.high %v10880_v56, %v10880_v56 }
 0x4c4   :  { %v14091_v53 = vadd.f32 %v14090_v44, %v14089_v48  ;;  %v10870_v44 = vrot.slane %v10856_v30, %v14805_v20  ;;  %v14110_v48 = vsel %vm12926_vm0, %v10863_v31, 0.0  ;;  %v6536_v50 = vcombine.low %v6528_v40, %v6535_v41 }
 0x4c5   :  { %v14120_v26 = vsel %vm12926_vm0, %v10888_v10, 0.0  ;;  %v2933_v30 = vrot.slane %v334_v49, %v14799_v15  ;;  %v2937_v31 = vrot.slane %v334_v49, %v14801_v16 }
 0x4c6   :  { %v14093_v59 = vadd.f32 %v14092_v52, %v14091_v53  ;;  %v6538_v52 = vcombine.low %v2905_v37, %v2909_v39  ;;  %v8052_v8 = vmul.f32 %v6536_v50, %v189_v58  ;;  %v2957_v58 = vrot.slane %v335_v43, %v14791_v6 }
 0x4c7   :  { %v6571_v45 = vcombine.low %v2929_v29, %v2933_v30 }
 0x4c8   :  { %v14095_v1 = vadd.f32 %v14094_v54, %v14093_v59  ;;  %v10872_v54 = vcombine.high %v10870_v44, %v10870_v44  ;;  %v6552_v3 = vrot.slane %v6538_v52, %v14805_v20  ;;  %v10897_v25 = vrot.slane %v8052_v8, %v14805_v20  ;;  %v191_v52 = vld [vmem:[#allocation3 + $0x4c0] sm:$0xff] }
 0x4ca   :  { %v14097_v13 = vadd.f32 %v14096_v63, %v14095_v1  ;;  %v14114_v63 = vsel %vm12926_vm0, %v10870_v44, 0.0  ;;  %v6545_v1 = vrot.slane %v6537_v51, %v14805_v20  ;;  %v14116_v11 = vsel %vm12926_vm0, %v10872_v54, 0.0 }
 0x4cb   :  { %v10905_v39 = vcombine.high %v10897_v25, %v10897_v25  ;;  %v2945_v54 = vrot.slane %v335_v43, %v14785_v2 }
 0x4cc   :  { %v14099_v23 = vadd.f32 %v14098_v9, %v14097_v13  ;;  %v10887_v9 = vrot.slane %v10873_v55, %v14805_v20  ;;  %v14118_v13 = vsel %vm12926_vm0, %v10880_v56, 0.0  ;;  %v6553_v18 = vcombine.low %v6545_v1, %v6552_v3 }
 0x4cd   :  { %v14128_v51 = vsel %vm12926_vm0, %v10905_v39, 0.0  ;;  %v2949_v55 = vrot.slane %v335_v43, %v14787_v4  ;;  %v2953_v56 = vrot.slane %v335_v43, %v14789_v5 }
 0x4ce   :  { %v14101_v28 = vadd.f32 %v14100_v22, %v14099_v23  ;;  %v10889_v23 = vcombine.high %v10887_v9, %v10887_v9  ;;  %v8053_v37 = vmul.f32 %v6553_v18, %v190_v27  ;;  %v2973_v27 = vrot.slane %v335_v43, %v14803_v17 }
 0x4cf   :  { %v6589_v10 = vcombine.low %v2953_v56, %v2957_v58 }
 0x4d0   :  { %v14103_v34 = vadd.f32 %v14102_v24, %v14101_v28  ;;  %v10890_v24 = vcombine.high %v8052_v8, %v8052_v8  ;;  %v14124_v40 = vsel %vm12926_vm0, %v10889_v23, 0.0  ;;  %v10907_v49 = vcombine.high %v8053_v37, %v8053_v37 }
 0x4d1   :  { %v10914_v50 = vrot.slane %v8053_v37, %v14805_v20  ;;  %v2961_v23 = vrot.slane %v335_v43, %v14797_v14  ;;  %v6603_v29 = vrot.slane %v6589_v10, %v14805_v20  ;;  %v336_v37 = vld [vmem:[#allocation5 + $0x270] sm:$0xff]  ;;  %v194_v10 = vld [vmem:[#allocation3 + $0x4d8] sm:$0xff] }
 0x4d2   :  { %v14105_v42 = vadd.f32 %v14104_v32, %v14103_v34  ;;  %v14122_v32 = vsel %vm12926_vm0, %v10887_v9, 0.0  ;;  %v6562_v34 = vrot.slane %v6554_v19, %v14805_v20  ;;  %v6588_v9 = vcombine.low %v2945_v54, %v2949_v55 }
 0x4d3   :  { %v10922_v0 = vcombine.high %v10914_v50, %v10914_v50 }
 0x4d4   :  { %v14107_v47 = vadd.f32 %v14106_v38, %v14105_v42  ;;  %v10904_v38 = vrot.slane %v10890_v24, %v14805_v20  ;;  %v14126_v42 = vsel %vm12926_vm0, %v10897_v25, 0.0  ;;  %v6570_v44 = vcombine.low %v6562_v34, %v6569_v35 }
 0x4d5   :  { %v14136_v19 = vsel %vm12926_vm0, %v10922_v0, 0.0  ;;  %v2965_v24 = vrot.slane %v335_v43, %v14799_v15  ;;  %v2969_v25 = vrot.slane %v335_v43, %v14801_v16 }
 0x4d6   :  { %v14109_v53 = vadd.f32 %v14108_v46, %v14107_v47  ;;  %v6572_v46 = vcombine.low %v2937_v31, %v2941_v33  ;;  %v8054_v62 = vmul.f32 %v6570_v44, %v191_v52  ;;  %v2989_v52 = vrot.slane %v336_v37, %v14791_v6 }
 0x4d7   :  { %v6605_v39 = vcombine.low %v2961_v23, %v2965_v24 }
 0x4d8   :  { %v14111_v59 = vadd.f32 %v14110_v48, %v14109_v53  ;;  %v10906_v48 = vcombine.high %v10904_v38, %v10904_v38  ;;  %v6586_v60 = vrot.slane %v6572_v46, %v14805_v20  ;;  %v10931_v18 = vrot.slane %v8054_v62, %v14805_v20  ;;  %v193_v46 = vld [vmem:[#allocation3 + $0x4d0] sm:$0xff] }
 0x4da   :  { %v14113_v7 = vadd.f32 %v14112_v57, %v14111_v59  ;;  %v14130_v57 = vsel %vm12926_vm0, %v10904_v38, 0.0  ;;  %v6579_v59 = vrot.slane %v6571_v45, %v14805_v20  ;;  %v14132_v1 = vsel %vm12926_vm0, %v10906_v48, 0.0 }
 0x4db   :  { %v10939_v33 = vcombine.high %v10931_v18, %v10931_v18  ;;  %v2977_v48 = vrot.slane %v336_v37, %v14785_v2 }
 0x4dc   :  { %v14115_v12 = vadd.f32 %v14114_v63, %v14113_v7  ;;  %v10921_v63 = vrot.slane %v10907_v49, %v14805_v20  ;;  %v14134_v7 = vsel %vm12926_vm0, %v10914_v50, 0.0  ;;  %v6587_v8 = vcombine.low %v6579_v59, %v6586_v60 }
 0x4dd   :  { %v14144_v45 = vsel %vm12926_vm0, %v10939_v33, 0.0  ;;  %v2981_v49 = vrot.slane %v336_v37, %v14787_v4  ;;  %v2985_v50 = vrot.slane %v336_v37, %v14789_v5 }
 0x4de   :  { %v14117_v22 = vadd.f32 %v14116_v11, %v14115_v12  ;;  %v10923_v12 = vcombine.high %v10921_v63, %v10921_v63  ;;  %v8055_v31 = vmul.f32 %v6587_v8, %v192_v21  ;;  %v3005_v21 = vrot.slane %v336_v37, %v14803_v17 }
 0x4df   :  { %v6623_v0 = vcombine.low %v2985_v50, %v2989_v52 }
 0x4e0   :  { %v14119_v28 = vadd.f32 %v14118_v13, %v14117_v22  ;;  %v10924_v13 = vcombine.high %v8054_v62, %v8054_v62  ;;  %v14140_v34 = vsel %vm12926_vm0, %v10923_v12, 0.0  ;;  %v10941_v43 = vcombine.high %v8055_v31, %v8055_v31 }
 0x4e1   :  { %v10948_v44 = vrot.slane %v8055_v31, %v14805_v20  ;;  %v2993_v12 = vrot.slane %v336_v37, %v14797_v14  ;;  %v6637_v23 = vrot.slane %v6623_v0, %v14805_v20  ;;  %v337_v31 = vld [vmem:[#allocation5 + $0x278] sm:$0xff] }
 0x4e2   :  { %v14121_v36 = vadd.f32 %v14120_v26, %v14119_v28  ;;  %v14138_v26 = vsel %vm12926_vm0, %v10921_v63, 0.0  ;;  %v6596_v28 = vrot.slane %v6588_v9, %v14805_v20  ;;  %v6622_v63 = vcombine.low %v2977_v48, %v2981_v49  ;;  %v196_v0 = vld [vmem:[#allocation3 + $0x4e8] sm:$0xff] }
 0x4e3   :  { %v10956_v58 = vcombine.high %v10948_v44, %v10948_v44 }
 0x4e4   :  { %v14123_v41 = vadd.f32 %v14122_v32, %v14121_v36  ;;  %v10938_v32 = vrot.slane %v10924_v13, %v14805_v20  ;;  %v14142_v36 = vsel %vm12926_vm0, %v10931_v18, 0.0  ;;  %v6604_v38 = vcombine.low %v6596_v28, %v6603_v29 }
 0x4e5   :  { %v14152_v9 = vsel %vm12926_vm0, %v10956_v58, 0.0  ;;  %v2997_v13 = vrot.slane %v336_v37, %v14799_v15  ;;  %v3001_v18 = vrot.slane %v336_v37, %v14801_v16 }
 0x4e6   :  { %v14125_v47 = vadd.f32 %v14124_v40, %v14123_v41  ;;  %v6606_v40 = vcombine.low %v2969_v25, %v2973_v27  ;;  %v8056_v56 = vmul.f32 %v6604_v38, %v193_v46  ;;  %v3021_v46 = vrot.slane %v337_v31, %v14791_v6 }
 0x4e7   :  { %v6639_v33 = vcombine.low %v2993_v12, %v2997_v13 }
 0x4e8   :  { %v14127_v53 = vadd.f32 %v14126_v42, %v14125_v47  ;;  %v10940_v42 = vcombine.high %v10938_v32, %v10938_v32  ;;  %v6620_v54 = vrot.slane %v6606_v40, %v14805_v20  ;;  %v10965_v8 = vrot.slane %v8056_v56, %v14805_v20  ;;  %v195_v40 = vld [vmem:[#allocation3 + $0x4e0] sm:$0xff] }
 0x4ea   :  { %v14129_v61 = vadd.f32 %v14128_v51, %v14127_v53  ;;  %v14146_v51 = vsel %vm12926_vm0, %v10938_v32, 0.0  ;;  %v6613_v53 = vrot.slane %v6605_v39, %v14805_v20  ;;  %v14148_v59 = vsel %vm12926_vm0, %v10940_v42, 0.0 }
 0x4eb   :  { %v10973_v27 = vcombine.high %v10965_v8, %v10965_v8  ;;  %v3009_v42 = vrot.slane %v337_v31, %v14785_v2 }
 0x4ec   :  { %v14131_v3 = vadd.f32 %v14130_v57, %v14129_v61  ;;  %v10955_v57 = vrot.slane %v10941_v43, %v14805_v20  ;;  %v14150_v61 = vsel %vm12926_vm0, %v10948_v44, 0.0  ;;  %v6621_v62 = vcombine.low %v6613_v53, %v6620_v54 }
 0x4ed   :  { %v14160_v39 = vsel %vm12926_vm0, %v10973_v27, 0.0  ;;  %v3013_v43 = vrot.slane %v337_v31, %v14787_v4  ;;  %v3017_v44 = vrot.slane %v337_v31, %v14789_v5 }
 0x4ee   :  { %v14133_v11 = vadd.f32 %v14132_v1, %v14131_v3  ;;  %v10957_v3 = vcombine.high %v10955_v57, %v10955_v57  ;;  %v8057_v25 = vmul.f32 %v6621_v62, %v194_v10  ;;  %v3037_v10 = vrot.slane %v337_v31, %v14803_v17 }
 0x4ef   :  { %v6657_v58 = vcombine.low %v3017_v44, %v3021_v46 }
 0x4f0   :  { %v14135_v22 = vadd.f32 %v14134_v7, %v14133_v11  ;;  %v10958_v7 = vcombine.high %v8056_v56, %v8056_v56  ;;  %v14156_v28 = vsel %vm12926_vm0, %v10957_v3, 0.0  ;;  %v10975_v37 = vcombine.high %v8057_v25, %v8057_v25 }
 0x4f1   :  { %v10982_v38 = vrot.slane %v8057_v25, %v14805_v20  ;;  %v3025_v3 = vrot.slane %v337_v31, %v14797_v14  ;;  %v6671_v12 = vrot.slane %v6657_v58, %v14805_v20  ;;  %v338_v25 = vld [vmem:[#allocation5 + $0x280] sm:$0xff] }
 0x4f2   :  { %v14137_v30 = vadd.f32 %v14136_v19, %v14135_v22  ;;  %v14154_v19 = vsel %vm12926_vm0, %v10955_v57, 0.0  ;;  %v6630_v22 = vrot.slane %v6622_v63, %v14805_v20  ;;  %v6656_v57 = vcombine.low %v3009_v42, %v3013_v43  ;;  %v198_v58 = vld [vmem:[#allocation3 + $0x4f8] sm:$0xff] }
 0x4f3   :  { %v10990_v52 = vcombine.high %v10982_v38, %v10982_v38 }
 0x4f4   :  { %v14139_v35 = vadd.f32 %v14138_v26, %v14137_v30  ;;  %v10972_v26 = vrot.slane %v10958_v7, %v14805_v20  ;;  %v14158_v30 = vsel %vm12926_vm0, %v10965_v8, 0.0  ;;  %v6638_v32 = vcombine.low %v6630_v22, %v6637_v23 }
 0x4f5   :  { %v14168_v63 = vsel %vm12926_vm0, %v10990_v52, 0.0  ;;  %v3029_v7 = vrot.slane %v337_v31, %v14799_v15  ;;  %v3033_v8 = vrot.slane %v337_v31, %v14801_v16 }
 0x4f6   :  { %v14141_v41 = vadd.f32 %v14140_v34, %v14139_v35  ;;  %v6640_v34 = vcombine.low %v3001_v18, %v3005_v21  ;;  %v8058_v50 = vmul.f32 %v6638_v32, %v195_v40  ;;  %v3053_v40 = vrot.slane %v338_v25, %v14791_v6 }
 0x4f7   :  { %v6673_v27 = vcombine.low %v3025_v3, %v3029_v7 }
 0x4f8   :  { %v14143_v47 = vadd.f32 %v14142_v36, %v14141_v41  ;;  %v10974_v36 = vcombine.high %v10972_v26, %v10972_v26  ;;  %v6654_v48 = vrot.slane %v6640_v34, %v14805_v20  ;;  %v10999_v62 = vrot.slane %v8058_v50, %v14805_v20  ;;  %v197_v34 = vld [vmem:[#allocation3 + $0x4f0] sm:$0xff] }
 0x4fa   :  { %v14145_v55 = vadd.f32 %v14144_v45, %v14143_v47  ;;  %v14162_v45 = vsel %vm12926_vm0, %v10972_v26, 0.0  ;;  %v6647_v47 = vrot.slane %v6639_v33, %v14805_v20  ;;  %v14164_v53 = vsel %vm12926_vm0, %v10974_v36, 0.0 }
 0x4fb   :  { %v11007_v21 = vcombine.high %v10999_v62, %v10999_v62  ;;  %v3041_v36 = vrot.slane %v338_v25, %v14785_v2 }
 0x4fc   :  { %v14147_v60 = vadd.f32 %v14146_v51, %v14145_v55  ;;  %v10989_v51 = vrot.slane %v10975_v37, %v14805_v20  ;;  %v14166_v55 = vsel %vm12926_vm0, %v10982_v38, 0.0  ;;  %v6655_v56 = vcombine.low %v6647_v47, %v6654_v48 }
 0x4fd   :  { %v14176_v33 = vsel %vm12926_vm0, %v11007_v21, 0.0  ;;  %v3045_v37 = vrot.slane %v338_v25, %v14787_v4  ;;  %v3049_v38 = vrot.slane %v338_v25, %v14789_v5 }
 0x4fe   :  { %v14149_v1 = vadd.f32 %v14148_v59, %v14147_v60  ;;  %v10991_v60 = vcombine.high %v10989_v51, %v10989_v51  ;;  %v8059_v18 = vmul.f32 %v6655_v56, %v196_v0  ;;  %v3069_v0 = vrot.slane %v338_v25, %v14803_v17 }
 0x4ff   :  { %v6691_v52 = vcombine.low %v3049_v38, %v3053_v40 }
 0x500   :  { %v14151_v11 = vadd.f32 %v14150_v61, %v14149_v1  ;;  %v10992_v61 = vcombine.high %v8058_v50, %v8058_v50  ;;  %v14172_v22 = vsel %vm12926_vm0, %v10991_v60, 0.0  ;;  %v11009_v31 = vcombine.high %v8059_v18, %v8059_v18 }
 0x501   :  { %v11016_v32 = vrot.slane %v8059_v18, %v14805_v20  ;;  %v3057_v60 = vrot.slane %v338_v25, %v14797_v14  ;;  %v6705_v3 = vrot.slane %v6691_v52, %v14805_v20  ;;  %v339_v18 = vld [vmem:[#allocation5 + $0x288] sm:$0xff]  ;;  %v200_v52 = vld [vmem:[#allocation3 + $0x508] sm:$0xff] }
 0x502   :  { %v14153_v24 = vadd.f32 %v14152_v9, %v14151_v11  ;;  %v14170_v9 = vsel %vm12926_vm0, %v10989_v51, 0.0  ;;  %v6664_v11 = vrot.slane %v6656_v57, %v14805_v20  ;;  %v6690_v51 = vcombine.low %v3041_v36, %v3045_v37 }
 0x503   :  { %v11024_v46 = vcombine.high %v11016_v32, %v11016_v32 }
 0x504   :  { %v14155_v29 = vadd.f32 %v14154_v19, %v14153_v24  ;;  %v11006_v19 = vrot.slane %v10992_v61, %v14805_v20  ;;  %v14174_v24 = vsel %vm12926_vm0, %v10999_v62, 0.0  ;;  %v6672_v26 = vcombine.low %v6664_v11, %v6671_v12 }
 0x505   :  { %v14184_v57 = vsel %vm12926_vm0, %v11024_v46, 0.0  ;;  %v3061_v61 = vrot.slane %v338_v25, %v14799_v15  ;;  %v3065_v62 = vrot.slane %v338_v25, %v14801_v16 }
 0x506   :  { %v14157_v35 = vadd.f32 %v14156_v28, %v14155_v29  ;;  %v6674_v28 = vcombine.low %v3033_v8, %v3037_v10  ;;  %v8060_v44 = vmul.f32 %v6672_v26, %v197_v34  ;;  %v3085_v34 = vrot.slane %v339_v18, %v14791_v6 }
 0x507   :  { %v6707_v21 = vcombine.low %v3057_v60, %v3061_v61 }
 0x508   :  { %v14159_v41 = vadd.f32 %v14158_v30, %v14157_v35  ;;  %v11008_v30 = vcombine.high %v11006_v19, %v11006_v19  ;;  %v6688_v42 = vrot.slane %v6674_v28, %v14805_v20  ;;  %v11033_v56 = vrot.slane %v8060_v44, %v14805_v20  ;;  %v199_v28 = vld [vmem:[#allocation3 + $0x500] sm:$0xff] }
 0x50a   :  { %v14161_v49 = vadd.f32 %v14160_v39, %v14159_v41  ;;  %v14178_v39 = vsel %vm12926_vm0, %v11006_v19, 0.0  ;;  %v6681_v41 = vrot.slane %v6673_v27, %v14805_v20  ;;  %v14180_v47 = vsel %vm12926_vm0, %v11008_v30, 0.0 }
 0x50b   :  { %v11041_v10 = vcombine.high %v11033_v56, %v11033_v56  ;;  %v3073_v30 = vrot.slane %v339_v18, %v14785_v2 }
 0x50c   :  { %v14163_v54 = vadd.f32 %v14162_v45, %v14161_v49  ;;  %v11023_v45 = vrot.slane %v11009_v31, %v14805_v20  ;;  %v14182_v49 = vsel %vm12926_vm0, %v11016_v32, 0.0  ;;  %v6689_v50 = vcombine.low %v6681_v41, %v6688_v42 }
 0x50d   :  { %v14192_v27 = vsel %vm12926_vm0, %v11041_v10, 0.0  ;;  %v3077_v31 = vrot.slane %v339_v18, %v14787_v4  ;;  %v3081_v32 = vrot.slane %v339_v18, %v14789_v5 }
 0x50e   :  { %v14165_v59 = vadd.f32 %v14164_v53, %v14163_v54  ;;  %v11025_v54 = vcombine.high %v11023_v45, %v11023_v45  ;;  %v8061_v8 = vmul.f32 %v6689_v50, %v198_v58  ;;  %v3101_v58 = vrot.slane %v339_v18, %v14803_v17 }
 0x50f   :  { %v6725_v46 = vcombine.low %v3081_v32, %v3085_v34 }
 0x510   :  { %v14167_v1 = vadd.f32 %v14166_v55, %v14165_v59  ;;  %v11026_v55 = vcombine.high %v8060_v44, %v8060_v44  ;;  %v14188_v11 = vsel %vm12926_vm0, %v11025_v54, 0.0  ;;  %v11043_v25 = vcombine.high %v8061_v8, %v8061_v8 }
 0x511   :  { %v11050_v26 = vrot.slane %v8061_v8, %v14805_v20  ;;  %v3089_v54 = vrot.slane %v339_v18, %v14797_v14  ;;  %v6739_v60 = vrot.slane %v6725_v46, %v14805_v20  ;;  %v340_v8 = vld [vmem:[#allocation5 + $0x290] sm:$0xff]  ;;  %v202_v46 = vld [vmem:[#allocation3 + $0x518] sm:$0xff] }
 0x512   :  { %v14169_v13 = vadd.f32 %v14168_v63, %v14167_v1  ;;  %v14186_v63 = vsel %vm12926_vm0, %v11023_v45, 0.0  ;;  %v6698_v1 = vrot.slane %v6690_v51, %v14805_v20  ;;  %v6724_v45 = vcombine.low %v3073_v30, %v3077_v31 }
 0x513   :  { %v11058_v40 = vcombine.high %v11050_v26, %v11050_v26 }
 0x514   :  { %v14171_v23 = vadd.f32 %v14170_v9, %v14169_v13  ;;  %v11040_v9 = vrot.slane %v11026_v55, %v14805_v20  ;;  %v14190_v13 = vsel %vm12926_vm0, %v11033_v56, 0.0  ;;  %v6706_v19 = vcombine.low %v6698_v1, %v6705_v3 }
 0x515   :  { %v14200_v51 = vsel %vm12926_vm0, %v11058_v40, 0.0  ;;  %v3093_v55 = vrot.slane %v339_v18, %v14799_v15  ;;  %v3097_v56 = vrot.slane %v339_v18, %v14801_v16 }
 0x516   :  { %v14173_v29 = vadd.f32 %v14172_v22, %v14171_v23  ;;  %v6708_v22 = vcombine.low %v3065_v62, %v3069_v0  ;;  %v8062_v38 = vmul.f32 %v6706_v19, %v199_v28  ;;  %v3117_v28 = vrot.slane %v340_v8, %v14791_v6 }
 0x517   :  { %v6741_v10 = vcombine.low %v3089_v54, %v3093_v55 }
 0x518   :  { %v14175_v35 = vadd.f32 %v14174_v24, %v14173_v29  ;;  %v11042_v24 = vcombine.high %v11040_v9, %v11040_v9  ;;  %v6722_v36 = vrot.slane %v6708_v22, %v14805_v20  ;;  %v11067_v50 = vrot.slane %v8062_v38, %v14805_v20  ;;  %v201_v22 = vld [vmem:[#allocation3 + $0x510] sm:$0xff] }
 0x51a   :  { %v14177_v43 = vadd.f32 %v14176_v33, %v14175_v35  ;;  %v14194_v33 = vsel %vm12926_vm0, %v11040_v9, 0.0  ;;  %v6715_v35 = vrot.slane %v6707_v21, %v14805_v20  ;;  %v14196_v41 = vsel %vm12926_vm0, %v11042_v24, 0.0 }
 0x51b   :  { %v11075_v0 = vcombine.high %v11067_v50, %v11067_v50  ;;  %v3105_v24 = vrot.slane %v340_v8, %v14785_v2 }
 0x51c   :  { %v14179_v48 = vadd.f32 %v14178_v39, %v14177_v43  ;;  %v11057_v39 = vrot.slane %v11043_v25, %v14805_v20  ;;  %v14198_v43 = vsel %vm12926_vm0, %v11050_v26, 0.0  ;;  %v6723_v44 = vcombine.low %v6715_v35, %v6722_v36 }
 0x51d   :  { %v14208_v21 = vsel %vm12926_vm0, %v11075_v0, 0.0  ;;  %v3109_v25 = vrot.slane %v340_v8, %v14787_v4  ;;  %v3113_v26 = vrot.slane %v340_v8, %v14789_v5 }
 0x51e   :  { %v14181_v53 = vadd.f32 %v14180_v47, %v14179_v48  ;;  %v11059_v48 = vcombine.high %v11057_v39, %v11057_v39  ;;  %v8063_v62 = vmul.f32 %v6723_v44, %v200_v52  ;;  %v3133_v52 = vrot.slane %v340_v8, %v14803_v17 }
 0x51f   :  { %v6759_v40 = vcombine.low %v3113_v26, %v3117_v28 }
 0x520   :  { %v14183_v59 = vadd.f32 %v14182_v49, %v14181_v53  ;;  %v11060_v49 = vcombine.high %v8062_v38, %v8062_v38  ;;  %v14204_v1 = vsel %vm12926_vm0, %v11059_v48, 0.0  ;;  %v11077_v18 = vcombine.high %v8063_v62, %v8063_v62 }
 0x521   :  { %v11084_v19 = vrot.slane %v8063_v62, %v14805_v20  ;;  %v3121_v48 = vrot.slane %v340_v8, %v14797_v14  ;;  %v6773_v54 = vrot.slane %v6759_v40, %v14805_v20  ;;  %v341_v62 = vld [vmem:[#allocation5 + $0x298] sm:$0xff] }
 0x522   :  { %v14185_v7 = vadd.f32 %v14184_v57, %v14183_v59  ;;  %v14202_v57 = vsel %vm12926_vm0, %v11057_v39, 0.0  ;;  %v6732_v59 = vrot.slane %v6724_v45, %v14805_v20  ;;  %v6758_v39 = vcombine.low %v3105_v24, %v3109_v25  ;;  %v204_v40 = vld [vmem:[#allocation3 + $0x528] sm:$0xff] }
 0x523   :  { %v11092_v34 = vcombine.high %v11084_v19, %v11084_v19 }
 0x524   :  { %v14187_v12 = vadd.f32 %v14186_v63, %v14185_v7  ;;  %v11074_v63 = vrot.slane %v11060_v49, %v14805_v20  ;;  %v14206_v7 = vsel %vm12926_vm0, %v11067_v50, 0.0  ;;  %v6740_v9 = vcombine.low %v6732_v59, %v6739_v60 }
 0x525   :  { %v14216_v45 = vsel %vm12926_vm0, %v11092_v34, 0.0  ;;  %v3125_v49 = vrot.slane %v340_v8, %v14799_v15  ;;  %v3129_v50 = vrot.slane %v340_v8, %v14801_v16 }
 0x526   :  { %v14189_v23 = vadd.f32 %v14188_v11, %v14187_v12  ;;  %v6742_v11 = vcombine.low %v3097_v56, %v3101_v58  ;;  %v8064_v32 = vmul.f32 %v6740_v9, %v201_v22  ;;  %v3149_v22 = vrot.slane %v341_v62, %v14791_v6 }
 0x527   :  { %v6775_v0 = vcombine.low %v3121_v48, %v3125_v49 }
 0x528   :  { %v14191_v29 = vadd.f32 %v14190_v13, %v14189_v23  ;;  %v11076_v13 = vcombine.high %v11074_v63, %v11074_v63  ;;  %v6756_v30 = vrot.slane %v6742_v11, %v14805_v20  ;;  %v11101_v44 = vrot.slane %v8064_v32, %v14805_v20  ;;  %v203_v11 = vld [vmem:[#allocation3 + $0x520] sm:$0xff] }
 0x52a   :  { %v14193_v37 = vadd.f32 %v14192_v27, %v14191_v29  ;;  %v14210_v27 = vsel %vm12926_vm0, %v11074_v63, 0.0  ;;  %v6749_v29 = vrot.slane %v6741_v10, %v14805_v20  ;;  %v14212_v35 = vsel %vm12926_vm0, %v11076_v13, 0.0 }
 0x52b   :  { %v11109_v58 = vcombine.high %v11101_v44, %v11101_v44  ;;  %v3137_v13 = vrot.slane %v341_v62, %v14785_v2 }
 0x52c   :  { %v14195_v42 = vadd.f32 %v14194_v33, %v14193_v37  ;;  %v11091_v33 = vrot.slane %v11077_v18, %v14805_v20  ;;  %v14214_v37 = vsel %vm12926_vm0, %v11084_v19, 0.0  ;;  %v6757_v38 = vcombine.low %v6749_v29, %v6756_v30 }
 0x52d   :  { %v14224_v10 = vsel %vm12926_vm0, %v11109_v58, 0.0  ;;  %v3141_v18 = vrot.slane %v341_v62, %v14787_v4  ;;  %v3145_v19 = vrot.slane %v341_v62, %v14789_v5 }
 0x52e   :  { %v14197_v47 = vadd.f32 %v14196_v41, %v14195_v42  ;;  %v11093_v42 = vcombine.high %v11091_v33, %v11091_v33  ;;  %v8065_v56 = vmul.f32 %v6757_v38, %v202_v46  ;;  %v3165_v46 = vrot.slane %v341_v62, %v14803_v17 }
 0x52f   :  { %v6793_v34 = vcombine.low %v3145_v19, %v3149_v22 }
 0x530   :  { %v14199_v53 = vadd.f32 %v14198_v43, %v14197_v47  ;;  %v11094_v43 = vcombine.high %v8064_v32, %v8064_v32  ;;  %v14220_v59 = vsel %vm12926_vm0, %v11093_v42, 0.0  ;;  %v11111_v8 = vcombine.high %v8065_v56, %v8065_v56 }
 0x531   :  { %v11118_v9 = vrot.slane %v8065_v56, %v14805_v20  ;;  %v3153_v42 = vrot.slane %v341_v62, %v14797_v14  ;;  %v6807_v48 = vrot.slane %v6793_v34, %v14805_v20  ;;  %v342_v56 = vld [vmem:[#allocation5 + $0x2a0] sm:$0xff] }
 0x532   :  { %v14201_v61 = vadd.f32 %v14200_v51, %v14199_v53  ;;  %v14218_v51 = vsel %vm12926_vm0, %v11091_v33, 0.0  ;;  %v6766_v53 = vrot.slane %v6758_v39, %v14805_v20  ;;  %v6792_v33 = vcombine.low %v3137_v13, %v3141_v18  ;;  %v206_v34 = vld [vmem:[#allocation3 + $0x538] sm:$0xff] }
 0x533   :  { %v11126_v28 = vcombine.high %v11118_v9, %v11118_v9 }
 0x534   :  { %v14203_v3 = vadd.f32 %v14202_v57, %v14201_v61  ;;  %v11108_v57 = vrot.slane %v11094_v43, %v14805_v20  ;;  %v14222_v61 = vsel %vm12926_vm0, %v11101_v44, 0.0  ;;  %v6774_v63 = vcombine.low %v6766_v53, %v6773_v54 }
 0x535   :  { %v14232_v39 = vsel %vm12926_vm0, %v11126_v28, 0.0  ;;  %v3157_v43 = vrot.slane %v341_v62, %v14799_v15  ;;  %v3161_v44 = vrot.slane %v341_v62, %v14801_v16 }
 0x536   :  { %v14205_v12 = vadd.f32 %v14204_v1, %v14203_v3  ;;  %v6776_v1 = vcombine.low %v3129_v50, %v3133_v52  ;;  %v8066_v26 = vmul.f32 %v6774_v63, %v203_v11  ;;  %v3181_v11 = vrot.slane %v342_v56, %v14791_v6 }
 0x537   :  { %v6809_v58 = vcombine.low %v3153_v42, %v3157_v43 }
 0x538   :  { %v14207_v23 = vadd.f32 %v14206_v7, %v14205_v12  ;;  %v11110_v7 = vcombine.high %v11108_v57, %v11108_v57  ;;  %v6790_v24 = vrot.slane %v6776_v1, %v14805_v20  ;;  %v11135_v38 = vrot.slane %v8066_v26, %v14805_v20  ;;  %v205_v1 = vld [vmem:[#allocation3 + $0x530] sm:$0xff] }
 0x53a   :  { %v14209_v31 = vadd.f32 %v14208_v21, %v14207_v23  ;;  %v14226_v21 = vsel %vm12926_vm0, %v11108_v57, 0.0  ;;  %v6783_v23 = vrot.slane %v6775_v0, %v14805_v20  ;;  %v14228_v29 = vsel %vm12926_vm0, %v11110_v7, 0.0 }
 0x53b   :  { %v11143_v52 = vcombine.high %v11135_v38, %v11135_v38  ;;  %v3169_v7 = vrot.slane %v342_v56, %v14785_v2 }
 0x53c   :  { %v14211_v36 = vadd.f32 %v14210_v27, %v14209_v31  ;;  %v11125_v27 = vrot.slane %v11111_v8, %v14805_v20  ;;  %v14230_v31 = vsel %vm12926_vm0, %v11118_v9, 0.0  ;;  %v6791_v32 = vcombine.low %v6783_v23, %v6790_v24 }
 0x53d   :  { %v14240_v0 = vsel %vm12926_vm0, %v11143_v52, 0.0  ;;  %v3173_v8 = vrot.slane %v342_v56, %v14787_v4  ;;  %v3177_v9 = vrot.slane %v342_v56, %v14789_v5 }
 0x53e   :  { %v14213_v41 = vadd.f32 %v14212_v35, %v14211_v36  ;;  %v11127_v36 = vcombine.high %v11125_v27, %v11125_v27  ;;  %v8067_v50 = vmul.f32 %v6791_v32, %v204_v40  ;;  %v3197_v40 = vrot.slane %v342_v56, %v14803_v17 }
 0x53f   :  { %v6827_v28 = vcombine.low %v3177_v9, %v3181_v11 }
 0x540   :  { %v14215_v47 = vadd.f32 %v14214_v37, %v14213_v41  ;;  %v11128_v37 = vcombine.high %v8066_v26, %v8066_v26  ;;  %v14236_v53 = vsel %vm12926_vm0, %v11127_v36, 0.0  ;;  %v11145_v62 = vcombine.high %v8067_v50, %v8067_v50 }
 0x541   :  { %v11152_v63 = vrot.slane %v8067_v50, %v14805_v20  ;;  %v3185_v36 = vrot.slane %v342_v56, %v14797_v14  ;;  %v6841_v42 = vrot.slane %v6827_v28, %v14805_v20  ;;  %v343_v50 = vld [vmem:[#allocation5 + $0x2a8] sm:$0xff]  ;;  %v208_v28 = vld [vmem:[#allocation3 + $0x548] sm:$0xff] }
 0x542   :  { %v14217_v55 = vadd.f32 %v14216_v45, %v14215_v47  ;;  %v14234_v45 = vsel %vm12926_vm0, %v11125_v27, 0.0  ;;  %v6800_v47 = vrot.slane %v6792_v33, %v14805_v20  ;;  %v6826_v27 = vcombine.low %v3169_v7, %v3173_v8 }
 0x543   :  { %v11160_v22 = vcombine.high %v11152_v63, %v11152_v63 }
 0x544   :  { %v14219_v60 = vadd.f32 %v14218_v51, %v14217_v55  ;;  %v11142_v51 = vrot.slane %v11128_v37, %v14805_v20  ;;  %v14238_v55 = vsel %vm12926_vm0, %v11135_v38, 0.0  ;;  %v6808_v57 = vcombine.low %v6800_v47, %v6807_v48 }
 0x545   :  { %v14248_v33 = vsel %vm12926_vm0, %v11160_v22, 0.0  ;;  %v3189_v37 = vrot.slane %v342_v56, %v14799_v15  ;;  %v3193_v38 = vrot.slane %v342_v56, %v14801_v16 }
 0x546   :  { %v14221_v3 = vadd.f32 %v14220_v59, %v14219_v60  ;;  %v6810_v59 = vcombine.low %v3161_v44, %v3165_v46  ;;  %v8068_v19 = vmul.f32 %v6808_v57, %v205_v1  ;;  %v3213_v1 = vrot.slane %v343_v50, %v14791_v6 }
 0x547   :  { %v6843_v52 = vcombine.low %v3185_v36, %v3189_v37 }
 0x548   :  { %v14223_v12 = vadd.f32 %v14222_v61, %v14221_v3  ;;  %v11144_v61 = vcombine.high %v11142_v51, %v11142_v51  ;;  %v6824_v13 = vrot.slane %v6810_v59, %v14805_v20  ;;  %v11169_v32 = vrot.slane %v8068_v19, %v14805_v20  ;;  %v207_v59 = vld [vmem:[#allocation3 + $0x540] sm:$0xff] }
 0x54a   :  { %v14225_v25 = vadd.f32 %v14224_v10, %v14223_v12  ;;  %v14242_v10 = vsel %vm12926_vm0, %v11142_v51, 0.0  ;;  %v6817_v12 = vrot.slane %v6809_v58, %v14805_v20  ;;  %v14244_v23 = vsel %vm12926_vm0, %v11144_v61, 0.0 }
 0x54b   :  { %v11177_v46 = vcombine.high %v11169_v32, %v11169_v32  ;;  %v3201_v61 = vrot.slane %v343_v50, %v14785_v2 }
 0x54c   :  { %v14227_v30 = vadd.f32 %v14226_v21, %v14225_v25  ;;  %v11159_v21 = vrot.slane %v11145_v62, %v14805_v20  ;;  %v14246_v25 = vsel %vm12926_vm0, %v11152_v63, 0.0  ;;  %v6825_v26 = vcombine.low %v6817_v12, %v6824_v13 }
 0x54d   :  { %v14256_v58 = vsel %vm12926_vm0, %v11177_v46, 0.0  ;;  %v3205_v62 = vrot.slane %v343_v50, %v14787_v4  ;;  %v3209_v63 = vrot.slane %v343_v50, %v14789_v5 }
 0x54e   :  { %v14229_v35 = vadd.f32 %v14228_v29, %v14227_v30  ;;  %v11161_v30 = vcombine.high %v11159_v21, %v11159_v21  ;;  %v8069_v44 = vmul.f32 %v6825_v26, %v206_v34  ;;  %v3229_v34 = vrot.slane %v343_v50, %v14803_v17 }
 0x54f   :  { %v6861_v22 = vcombine.low %v3209_v63, %v3213_v1 }
 0x550   :  { %v14231_v41 = vadd.f32 %v14230_v31, %v14229_v35  ;;  %v11162_v31 = vcombine.high %v8068_v19, %v8068_v19  ;;  %v14252_v47 = vsel %vm12926_vm0, %v11161_v30, 0.0  ;;  %v11179_v56 = vcombine.high %v8069_v44, %v8069_v44 }
 0x551   :  { %v11186_v57 = vrot.slane %v8069_v44, %v14805_v20  ;;  %v3217_v30 = vrot.slane %v343_v50, %v14797_v14  ;;  %v6875_v36 = vrot.slane %v6861_v22, %v14805_v20  ;;  %v344_v44 = vld [vmem:[#allocation5 + $0x2b0] sm:$0xff]  ;;  %v210_v22 = vld [vmem:[#allocation3 + $0x558] sm:$0xff] }
 0x552   :  { %v14233_v49 = vadd.f32 %v14232_v39, %v14231_v41  ;;  %v14250_v39 = vsel %vm12926_vm0, %v11159_v21, 0.0  ;;  %v6834_v41 = vrot.slane %v6826_v27, %v14805_v20  ;;  %v6860_v21 = vcombine.low %v3201_v61, %v3205_v62 }
 0x553   :  { %v11194_v11 = vcombine.high %v11186_v57, %v11186_v57 }
 0x554   :  { %v14235_v54 = vadd.f32 %v14234_v45, %v14233_v49  ;;  %v11176_v45 = vrot.slane %v11162_v31, %v14805_v20  ;;  %v14254_v49 = vsel %vm12926_vm0, %v11169_v32, 0.0  ;;  %v6842_v51 = vcombine.low %v6834_v41, %v6841_v42 }
 0x555   :  { %v14264_v27 = vsel %vm12926_vm0, %v11194_v11, 0.0  ;;  %v3221_v31 = vrot.slane %v343_v50, %v14799_v15  ;;  %v3225_v32 = vrot.slane %v343_v50, %v14801_v16 }
 0x556   :  { %v14237_v60 = vadd.f32 %v14236_v53, %v14235_v54  ;;  %v6844_v53 = vcombine.low %v3193_v38, %v3197_v40  ;;  %v8070_v9 = vmul.f32 %v6842_v51, %v207_v59  ;;  %v3245_v59 = vrot.slane %v344_v44, %v14791_v6 }
 0x557   :  { %v6877_v46 = vcombine.low %v3217_v30, %v3221_v31 }
 0x558   :  { %v14239_v3 = vadd.f32 %v14238_v55, %v14237_v60  ;;  %v11178_v55 = vcombine.high %v11176_v45, %v11176_v45  ;;  %v6858_v7 = vrot.slane %v6844_v53, %v14805_v20  ;;  %v11203_v26 = vrot.slane %v8070_v9, %v14805_v20  ;;  %v209_v53 = vld [vmem:[#allocation3 + $0x550] sm:$0xff] }
 0x55a   :  { %v14241_v18 = vadd.f32 %v14240_v0, %v14239_v3  ;;  %v14258_v0 = vsel %vm12926_vm0, %v11176_v45, 0.0  ;;  %v6851_v3 = vrot.slane %v6843_v52, %v14805_v20  ;;  %v14260_v12 = vsel %vm12926_vm0, %v11178_v55, 0.0 }
 0x55b   :  { %v11211_v40 = vcombine.high %v11203_v26, %v11203_v26  ;;  %v3233_v55 = vrot.slane %v344_v44, %v14785_v2 }
 0x55c   :  { %v14243_v24 = vadd.f32 %v14242_v10, %v14241_v18  ;;  %v11193_v10 = vrot.slane %v11179_v56, %v14805_v20  ;;  %v14262_v18 = vsel %vm12926_vm0, %v11186_v57, 0.0  ;;  %v6859_v19 = vcombine.low %v6851_v3, %v6858_v7 }
 0x55d   :  { %v14272_v52 = vsel %vm12926_vm0, %v11211_v40, 0.0  ;;  %v3237_v56 = vrot.slane %v344_v44, %v14787_v4  ;;  %v3241_v57 = vrot.slane %v344_v44, %v14789_v5 }
 0x55e   :  { %v14245_v29 = vadd.f32 %v14244_v23, %v14243_v24  ;;  %v11195_v24 = vcombine.high %v11193_v10, %v11193_v10  ;;  %v8071_v38 = vmul.f32 %v6859_v19, %v208_v28  ;;  %v3261_v28 = vrot.slane %v344_v44, %v14803_v17 }
 0x55f   :  { %v6895_v11 = vcombine.low %v3241_v57, %v3245_v59 }
 0x560   :  { %v14247_v35 = vadd.f32 %v14246_v25, %v14245_v29  ;;  %v11196_v25 = vcombine.high %v8070_v9, %v8070_v9  ;;  %v14268_v41 = vsel %vm12926_vm0, %v11195_v24, 0.0  ;;  %v11213_v50 = vcombine.high %v8071_v38, %v8071_v38 }
 0x561   :  { %v11220_v51 = vrot.slane %v8071_v38, %v14805_v20  ;;  %v3249_v24 = vrot.slane %v344_v44, %v14797_v14  ;;  %v6909_v30 = vrot.slane %v6895_v11, %v14805_v20  ;;  %v345_v38 = vld [vmem:[#allocation5 + $0x2b8] sm:$0xff] }
 0x562   :  { %v14249_v43 = vadd.f32 %v14248_v33, %v14247_v35  ;;  %v14266_v33 = vsel %vm12926_vm0, %v11193_v10, 0.0  ;;  %v6868_v35 = vrot.slane %v6860_v21, %v14805_v20  ;;  %v6894_v10 = vcombine.low %v3233_v55, %v3237_v56  ;;  %v212_v11 = vld [vmem:[#allocation3 + $0x568] sm:$0xff] }
 0x563   :  { %v11228_v1 = vcombine.high %v11220_v51, %v11220_v51 }
 0x564   :  { %v14251_v48 = vadd.f32 %v14250_v39, %v14249_v43  ;;  %v11210_v39 = vrot.slane %v11196_v25, %v14805_v20  ;;  %v14270_v43 = vsel %vm12926_vm0, %v11203_v26, 0.0  ;;  %v6876_v45 = vcombine.low %v6868_v35, %v6875_v36 }
 0x565   :  { %v14280_v21 = vsel %vm12926_vm0, %v11228_v1, 0.0  ;;  %v3253_v25 = vrot.slane %v344_v44, %v14799_v15  ;;  %v3257_v26 = vrot.slane %v344_v44, %v14801_v16 }
 0x566   :  { %v14253_v54 = vadd.f32 %v14252_v47, %v14251_v48  ;;  %v6878_v47 = vcombine.low %v3225_v32, %v3229_v34  ;;  %v8072_v63 = vmul.f32 %v6876_v45, %v209_v53  ;;  %v3277_v53 = vrot.slane %v345_v38, %v14791_v6 }
 0x567   :  { %v6911_v40 = vcombine.low %v3249_v24, %v3253_v25 }
 0x568   :  { %v14255_v60 = vadd.f32 %v14254_v49, %v14253_v54  ;;  %v11212_v49 = vcombine.high %v11210_v39, %v11210_v39  ;;  %v6892_v61 = vrot.slane %v6878_v47, %v14805_v20  ;;  %v11237_v19 = vrot.slane %v8072_v63, %v14805_v20  ;;  %v211_v47 = vld [vmem:[#allocation3 + $0x560] sm:$0xff] }
 0x56a   :  { %v14257_v8 = vadd.f32 %v14256_v58, %v14255_v60  ;;  %v14274_v58 = vsel %vm12926_vm0, %v11210_v39, 0.0  ;;  %v6885_v60 = vrot.slane %v6877_v46, %v14805_v20  ;;  %v14276_v3 = vsel %vm12926_vm0, %v11212_v49, 0.0 }
 0x56b   :  { %v11245_v34 = vcombine.high %v11237_v19, %v11237_v19  ;;  %v3265_v49 = vrot.slane %v345_v38, %v14785_v2 }
 0x56c   :  { %v14259_v13 = vadd.f32 %v14258_v0, %v14257_v8  ;;  %v11227_v0 = vrot.slane %v11213_v50, %v14805_v20  ;;  %v14278_v8 = vsel %vm12926_vm0, %v11220_v51, 0.0  ;;  %v6893_v9 = vcombine.low %v6885_v60, %v6892_v61 }
 0x56d   :  { %v14288_v46 = vsel %vm12926_vm0, %v11245_v34, 0.0  ;;  %v3269_v50 = vrot.slane %v345_v38, %v14787_v4  ;;  %v3273_v51 = vrot.slane %v345_v38, %v14789_v5 }
 0x56e   :  { %v14261_v23 = vadd.f32 %v14260_v12, %v14259_v13  ;;  %v11229_v13 = vcombine.high %v11227_v0, %v11227_v0  ;;  %v8073_v32 = vmul.f32 %v6893_v9, %v210_v22  ;;  %v3293_v22 = vrot.slane %v345_v38, %v14803_v17 }
 0x56f   :  { %v6929_v1 = vcombine.low %v3273_v51, %v3277_v53 }
 0x570   :  { %v14263_v29 = vadd.f32 %v14262_v18, %v14261_v23  ;;  %v11230_v18 = vcombine.high %v8072_v63, %v8072_v63  ;;  %v14284_v35 = vsel %vm12926_vm0, %v11229_v13, 0.0  ;;  %v11247_v44 = vcombine.high %v8073_v32, %v8073_v32 }
 0x571   :  { %v11254_v45 = vrot.slane %v8073_v32, %v14805_v20  ;;  %v3281_v13 = vrot.slane %v345_v38, %v14797_v14  ;;  %v6943_v24 = vrot.slane %v6929_v1, %v14805_v20  ;;  %v346_v32 = vld [vmem:[#allocation5 + $0x2c0] sm:$0xff] }
 0x572   :  { %v14265_v37 = vadd.f32 %v14264_v27, %v14263_v29  ;;  %v14282_v27 = vsel %vm12926_vm0, %v11227_v0, 0.0  ;;  %v6902_v29 = vrot.slane %v6894_v10, %v14805_v20  ;;  %v6928_v0 = vcombine.low %v3265_v49, %v3269_v50  ;;  %v214_v1 = vld [vmem:[#allocation3 + $0x578] sm:$0xff] }
 0x573   :  { %v11262_v59 = vcombine.high %v11254_v45, %v11254_v45 }
 0x574   :  { %v14267_v42 = vadd.f32 %v14266_v33, %v14265_v37  ;;  %v11244_v33 = vrot.slane %v11230_v18, %v14805_v20  ;;  %v14286_v37 = vsel %vm12926_vm0, %v11237_v19, 0.0  ;;  %v6910_v39 = vcombine.low %v6902_v29, %v6909_v30 }
 0x575   :  { %v14296_v10 = vsel %vm12926_vm0, %v11262_v59, 0.0  ;;  %v3285_v18 = vrot.slane %v345_v38, %v14799_v15  ;;  %v3289_v19 = vrot.slane %v345_v38, %v14801_v16 }
 0x576   :  { %v14269_v48 = vadd.f32 %v14268_v41, %v14267_v42  ;;  %v6912_v41 = vcombine.low %v3257_v26, %v3261_v28  ;;  %v8074_v57 = vmul.f32 %v6910_v39, %v211_v47  ;;  %v3309_v47 = vrot.slane %v346_v32, %v14791_v6 }
 0x577   :  { %v6945_v34 = vcombine.low %v3281_v13, %v3285_v18 }
 0x578   :  { %v14271_v54 = vadd.f32 %v14270_v43, %v14269_v48  ;;  %v11246_v43 = vcombine.high %v11244_v33, %v11244_v33  ;;  %v6926_v55 = vrot.slane %v6912_v41, %v14805_v20  ;;  %v11271_v9 = vrot.slane %v8074_v57, %v14805_v20  ;;  %v213_v41 = vld [vmem:[#allocation3 + $0x570] sm:$0xff] }
 0x57a   :  { %v14273_v62 = vadd.f32 %v14272_v52, %v14271_v54  ;;  %v14290_v52 = vsel %vm12926_vm0, %v11244_v33, 0.0  ;;  %v6919_v54 = vrot.slane %v6911_v40, %v14805_v20  ;;  %v14292_v60 = vsel %vm12926_vm0, %v11246_v43, 0.0 }
 0x57b   :  { %v11279_v28 = vcombine.high %v11271_v9, %v11271_v9  ;;  %v3297_v43 = vrot.slane %v346_v32, %v14785_v2 }
 0x57c   :  { %v14275_v7 = vadd.f32 %v14274_v58, %v14273_v62  ;;  %v11261_v58 = vrot.slane %v11247_v44, %v14805_v20  ;;  %v14294_v62 = vsel %vm12926_vm0, %v11254_v45, 0.0  ;;  %v6927_v63 = vcombine.low %v6919_v54, %v6926_v55 }
 0x57d   :  { %v14304_v40 = vsel %vm12926_vm0, %v11279_v28, 0.0  ;;  %v3301_v44 = vrot.slane %v346_v32, %v14787_v4  ;;  %v3305_v45 = vrot.slane %v346_v32, %v14789_v5 }
 0x57e   :  { %v14277_v12 = vadd.f32 %v14276_v3, %v14275_v7  ;;  %v11263_v7 = vcombine.high %v11261_v58, %v11261_v58  ;;  %v8075_v26 = vmul.f32 %v6927_v63, %v212_v11  ;;  %v3325_v11 = vrot.slane %v346_v32, %v14803_v17 }
 0x57f   :  { %v6963_v59 = vcombine.low %v3305_v45, %v3309_v47 }
 0x580   :  { %v14279_v23 = vadd.f32 %v14278_v8, %v14277_v12  ;;  %v11264_v8 = vcombine.high %v8074_v57, %v8074_v57  ;;  %v14300_v29 = vsel %vm12926_vm0, %v11263_v7, 0.0  ;;  %v11281_v38 = vcombine.high %v8075_v26, %v8075_v26 }
 0x581   :  { %v11288_v39 = vrot.slane %v8075_v26, %v14805_v20  ;;  %v3313_v7 = vrot.slane %v346_v32, %v14797_v14  ;;  %v6977_v13 = vrot.slane %v6963_v59, %v14805_v20  ;;  %v347_v26 = vld [vmem:[#allocation5 + $0x2c8] sm:$0xff]  ;;  %v216_v59 = vld [vmem:[#allocation3 + $0x588] sm:$0xff] }
 0x582   :  { %v14281_v31 = vadd.f32 %v14280_v21, %v14279_v23  ;;  %v14298_v21 = vsel %vm12926_vm0, %v11261_v58, 0.0  ;;  %v6936_v23 = vrot.slane %v6928_v0, %v14805_v20  ;;  %v6962_v58 = vcombine.low %v3297_v43, %v3301_v44 }
 0x583   :  { %v11296_v53 = vcombine.high %v11288_v39, %v11288_v39 }
 0x584   :  { %v14283_v36 = vadd.f32 %v14282_v27, %v14281_v31  ;;  %v11278_v27 = vrot.slane %v11264_v8, %v14805_v20  ;;  %v14302_v31 = vsel %vm12926_vm0, %v11271_v9, 0.0  ;;  %v6944_v33 = vcombine.low %v6936_v23, %v6943_v24 }
 0x585   :  { %v14312_v0 = vsel %vm12926_vm0, %v11296_v53, 0.0  ;;  %v3317_v8 = vrot.slane %v346_v32, %v14799_v15  ;;  %v3321_v9 = vrot.slane %v346_v32, %v14801_v16 }
 0x586   :  { %v14285_v42 = vadd.f32 %v14284_v35, %v14283_v36  ;;  %v6946_v35 = vcombine.low %v3289_v19, %v3293_v22  ;;  %v8076_v51 = vmul.f32 %v6944_v33, %v213_v41  ;;  %v3341_v41 = vrot.slane %v347_v26, %v14791_v6 }
 0x587   :  { %v6979_v28 = vcombine.low %v3313_v7, %v3317_v8 }
 0x588   :  { %v14287_v48 = vadd.f32 %v14286_v37, %v14285_v42  ;;  %v11280_v37 = vcombine.high %v11278_v27, %v11278_v27  ;;  %v6960_v49 = vrot.slane %v6946_v35, %v14805_v20  ;;  %v11305_v63 = vrot.slane %v8076_v51, %v14805_v20  ;;  %v215_v35 = vld [vmem:[#allocation3 + $0x580] sm:$0xff] }
 0x58a   :  { %v14289_v56 = vadd.f32 %v14288_v46, %v14287_v48  ;;  %v14306_v46 = vsel %vm12926_vm0, %v11278_v27, 0.0  ;;  %v6953_v48 = vrot.slane %v6945_v34, %v14805_v20  ;;  %v14308_v54 = vsel %vm12926_vm0, %v11280_v37, 0.0 }
 0x58b   :  { %v11313_v22 = vcombine.high %v11305_v63, %v11305_v63  ;;  %v3329_v37 = vrot.slane %v347_v26, %v14785_v2 }
 0x58c   :  { %v14291_v61 = vadd.f32 %v14290_v52, %v14289_v56  ;;  %v11295_v52 = vrot.slane %v11281_v38, %v14805_v20  ;;  %v14310_v56 = vsel %vm12926_vm0, %v11288_v39, 0.0  ;;  %v6961_v57 = vcombine.low %v6953_v48, %v6960_v49 }
 0x58d   :  { %v14320_v34 = vsel %vm12926_vm0, %v11313_v22, 0.0  ;;  %v3333_v38 = vrot.slane %v347_v26, %v14787_v4  ;;  %v3337_v39 = vrot.slane %v347_v26, %v14789_v5 }
 0x58e   :  { %v14293_v3 = vadd.f32 %v14292_v60, %v14291_v61  ;;  %v11297_v61 = vcombine.high %v11295_v52, %v11295_v52  ;;  %v8077_v19 = vmul.f32 %v6961_v57, %v214_v1  ;;  %v3357_v1 = vrot.slane %v347_v26, %v14803_v17 }
 0x58f   :  { %v6997_v53 = vcombine.low %v3337_v39, %v3341_v41 }
 0x590   :  { %v14295_v12 = vadd.f32 %v14294_v62, %v14293_v3  ;;  %v11298_v62 = vcombine.high %v8076_v51, %v8076_v51  ;;  %v14316_v23 = vsel %vm12926_vm0, %v11297_v61, 0.0  ;;  %v11315_v32 = vcombine.high %v8077_v19, %v8077_v19 }
 0x591   :  { %v11322_v33 = vrot.slane %v8077_v19, %v14805_v20  ;;  %v3345_v61 = vrot.slane %v347_v26, %v14797_v14  ;;  %v7011_v7 = vrot.slane %v6997_v53, %v14805_v20  ;;  %v348_v19 = vld [vmem:[#allocation5 + $0x2d0] sm:$0xff]  ;;  %v218_v53 = vld [vmem:[#allocation3 + $0x598] sm:$0xff] }
 0x592   :  { %v14297_v25 = vadd.f32 %v14296_v10, %v14295_v12  ;;  %v14314_v10 = vsel %vm12926_vm0, %v11295_v52, 0.0  ;;  %v6970_v12 = vrot.slane %v6962_v58, %v14805_v20  ;;  %v6996_v52 = vcombine.low %v3329_v37, %v3333_v38 }
 0x593   :  { %v11330_v47 = vcombine.high %v11322_v33, %v11322_v33 }
 0x594   :  { %v14299_v30 = vadd.f32 %v14298_v21, %v14297_v25  ;;  %v11312_v21 = vrot.slane %v11298_v62, %v14805_v20  ;;  %v14318_v25 = vsel %vm12926_vm0, %v11305_v63, 0.0  ;;  %v6978_v27 = vcombine.low %v6970_v12, %v6977_v13 }
 0x595   :  { %v14328_v58 = vsel %vm12926_vm0, %v11330_v47, 0.0  ;;  %v3349_v62 = vrot.slane %v347_v26, %v14799_v15  ;;  %v3353_v63 = vrot.slane %v347_v26, %v14801_v16 }
 0x596   :  { %v14301_v36 = vadd.f32 %v14300_v29, %v14299_v30  ;;  %v6980_v29 = vcombine.low %v3321_v9, %v3325_v11  ;;  %v8078_v45 = vmul.f32 %v6978_v27, %v215_v35  ;;  %v3373_v35 = vrot.slane %v348_v19, %v14791_v6 }
 0x597   :  { %v7013_v22 = vcombine.low %v3345_v61, %v3349_v62 }
 0x598   :  { %v14303_v42 = vadd.f32 %v14302_v31, %v14301_v36  ;;  %v11314_v31 = vcombine.high %v11312_v21, %v11312_v21  ;;  %v6994_v43 = vrot.slane %v6980_v29, %v14805_v20  ;;  %v11339_v57 = vrot.slane %v8078_v45, %v14805_v20  ;;  %v217_v29 = vld [vmem:[#allocation3 + $0x590] sm:$0xff] }
 0x59a   :  { %v14305_v50 = vadd.f32 %v14304_v40, %v14303_v42  ;;  %v14322_v40 = vsel %vm12926_vm0, %v11312_v21, 0.0  ;;  %v6987_v42 = vrot.slane %v6979_v28, %v14805_v20  ;;  %v14324_v48 = vsel %vm12926_vm0, %v11314_v31, 0.0 }
 0x59b   :  { %v11347_v11 = vcombine.high %v11339_v57, %v11339_v57  ;;  %v3361_v31 = vrot.slane %v348_v19, %v14785_v2 }
 0x59c   :  { %v14307_v55 = vadd.f32 %v14306_v46, %v14305_v50  ;;  %v11329_v46 = vrot.slane %v11315_v32, %v14805_v20  ;;  %v14326_v50 = vsel %vm12926_vm0, %v11322_v33, 0.0  ;;  %v6995_v51 = vcombine.low %v6987_v42, %v6994_v43 }
 0x59d   :  { %v14336_v28 = vsel %vm12926_vm0, %v11347_v11, 0.0  ;;  %v3365_v32 = vrot.slane %v348_v19, %v14787_v4  ;;  %v3369_v33 = vrot.slane %v348_v19, %v14789_v5 }
 0x59e   :  { %v14309_v60 = vadd.f32 %v14308_v54, %v14307_v55  ;;  %v11331_v55 = vcombine.high %v11329_v46, %v11329_v46  ;;  %v8079_v9 = vmul.f32 %v6995_v51, %v216_v59  ;;  %v3389_v59 = vrot.slane %v348_v19, %v14803_v17 }
 0x59f   :  { %v7031_v47 = vcombine.low %v3369_v33, %v3373_v35 }
 0x5a0   :  { %v14311_v3 = vadd.f32 %v14310_v56, %v14309_v60  ;;  %v11332_v56 = vcombine.high %v8078_v45, %v8078_v45  ;;  %v14332_v12 = vsel %vm12926_vm0, %v11331_v55, 0.0  ;;  %v11349_v26 = vcombine.high %v8079_v9, %v8079_v9 }
 0x5a1   :  { %v11356_v27 = vrot.slane %v8079_v9, %v14805_v20  ;;  %v3377_v55 = vrot.slane %v348_v19, %v14797_v14  ;;  %v7045_v61 = vrot.slane %v7031_v47, %v14805_v20  ;;  %v349_v9 = vld [vmem:[#allocation5 + $0x2d8] sm:$0xff] }
 0x5a2   :  { %v14313_v18 = vadd.f32 %v14312_v0, %v14311_v3  ;;  %v14330_v0 = vsel %vm12926_vm0, %v11329_v46, 0.0  ;;  %v7004_v3 = vrot.slane %v6996_v52, %v14805_v20  ;;  %v7030_v46 = vcombine.low %v3361_v31, %v3365_v32  ;;  %v220_v47 = vld [vmem:[#allocation3 + $0x5a8] sm:$0xff] }
 0x5a3   :  { %v11364_v41 = vcombine.high %v11356_v27, %v11356_v27 }
 0x5a4   :  { %v14315_v24 = vadd.f32 %v14314_v10, %v14313_v18  ;;  %v11346_v10 = vrot.slane %v11332_v56, %v14805_v20  ;;  %v14334_v18 = vsel %vm12926_vm0, %v11339_v57, 0.0  ;;  %v7012_v21 = vcombine.low %v7004_v3, %v7011_v7 }
 0x5a5   :  { %v14344_v52 = vsel %vm12926_vm0, %v11364_v41, 0.0  ;;  %v3381_v56 = vrot.slane %v348_v19, %v14799_v15  ;;  %v3385_v57 = vrot.slane %v348_v19, %v14801_v16 }
 0x5a6   :  { %v14317_v30 = vadd.f32 %v14316_v23, %v14315_v24  ;;  %v7014_v23 = vcombine.low %v3353_v63, %v3357_v1  ;;  %v8080_v39 = vmul.f32 %v7012_v21, %v217_v29  ;;  %v3405_v29 = vrot.slane %v349_v9, %v14791_v6 }
 0x5a7   :  { %v7047_v11 = vcombine.low %v3377_v55, %v3381_v56 }
 0x5a8   :  { %v14319_v36 = vadd.f32 %v14318_v25, %v14317_v30  ;;  %v11348_v25 = vcombine.high %v11346_v10, %v11346_v10  ;;  %v7028_v37 = vrot.slane %v7014_v23, %v14805_v20  ;;  %v11373_v51 = vrot.slane %v8080_v39, %v14805_v20  ;;  %v219_v23 = vld [vmem:[#allocation3 + $0x5a0] sm:$0xff] }
 0x5aa   :  { %v14321_v44 = vadd.f32 %v14320_v34, %v14319_v36  ;;  %v14338_v34 = vsel %vm12926_vm0, %v11346_v10, 0.0  ;;  %v7021_v36 = vrot.slane %v7013_v22, %v14805_v20  ;;  %v14340_v42 = vsel %vm12926_vm0, %v11348_v25, 0.0 }
 0x5ab   :  { %v11381_v1 = vcombine.high %v11373_v51, %v11373_v51  ;;  %v3393_v25 = vrot.slane %v349_v9, %v14785_v2 }
 0x5ac   :  { %v14323_v49 = vadd.f32 %v14322_v40, %v14321_v44  ;;  %v11363_v40 = vrot.slane %v11349_v26, %v14805_v20  ;;  %v14342_v44 = vsel %vm12926_vm0, %v11356_v27, 0.0  ;;  %v7029_v45 = vcombine.low %v7021_v36, %v7028_v37 }
 0x5ad   :  { %v14352_v22 = vsel %vm12926_vm0, %v11381_v1, 0.0  ;;  %v3397_v26 = vrot.slane %v349_v9, %v14787_v4  ;;  %v3401_v27 = vrot.slane %v349_v9, %v14789_v5 }
 0x5ae   :  { %v14325_v54 = vadd.f32 %v14324_v48, %v14323_v49  ;;  %v11365_v49 = vcombine.high %v11363_v40, %v11363_v40  ;;  %v8081_v63 = vmul.f32 %v7029_v45, %v218_v53  ;;  %v3421_v53 = vrot.slane %v349_v9, %v14803_v17 }
 0x5af   :  { %v7065_v41 = vcombine.low %v3401_v27, %v3405_v29 }
 0x5b0   :  { %v14327_v60 = vadd.f32 %v14326_v50, %v14325_v54  ;;  %v11366_v50 = vcombine.high %v8080_v39, %v8080_v39  ;;  %v14348_v3 = vsel %vm12926_vm0, %v11365_v49, 0.0  ;;  %v11383_v19 = vcombine.high %v8081_v63, %v8081_v63 }
 0x5b1   :  { %v11390_v21 = vrot.slane %v8081_v63, %v14805_v20  ;;  %v3409_v49 = vrot.slane %v349_v9, %v14797_v14  ;;  %v7079_v55 = vrot.slane %v7065_v41, %v14805_v20  ;;  %v350_v63 = vld [vmem:[#allocation5 + $0x2e0] sm:$0xff] }
 0x5b2   :  { %v14329_v8 = vadd.f32 %v14328_v58, %v14327_v60  ;;  %v14346_v58 = vsel %vm12926_vm0, %v11363_v40, 0.0  ;;  %v7038_v60 = vrot.slane %v7030_v46, %v14805_v20  ;;  %v7064_v40 = vcombine.low %v3393_v25, %v3397_v26  ;;  %v222_v41 = vld [vmem:[#allocation3 + $0x5b8] sm:$0xff] }
 0x5b3   :  { %v11398_v35 = vcombine.high %v11390_v21, %v11390_v21 }
 0x5b4   :  { %v14331_v13 = vadd.f32 %v14330_v0, %v14329_v8  ;;  %v11380_v0 = vrot.slane %v11366_v50, %v14805_v20  ;;  %v14350_v8 = vsel %vm12926_vm0, %v11373_v51, 0.0  ;;  %v7046_v10 = vcombine.low %v7038_v60, %v7045_v61 }
 0x5b5   :  { %v14360_v46 = vsel %vm12926_vm0, %v11398_v35, 0.0  ;;  %v3413_v50 = vrot.slane %v349_v9, %v14799_v15  ;;  %v3417_v51 = vrot.slane %v349_v9, %v14801_v16 }
 0x5b6   :  { %v14333_v24 = vadd.f32 %v14332_v12, %v14331_v13  ;;  %v7048_v12 = vcombine.low %v3385_v57, %v3389_v59  ;;  %v8082_v33 = vmul.f32 %v7046_v10, %v219_v23  ;;  %v3437_v23 = vrot.slane %v350_v63, %v14791_v6 }
 0x5b7   :  { %v7081_v1 = vcombine.low %v3409_v49, %v3413_v50 }
 0x5b8   :  { %v14335_v30 = vadd.f32 %v14334_v18, %v14333_v24  ;;  %v11382_v18 = vcombine.high %v11380_v0, %v11380_v0  ;;  %v7062_v31 = vrot.slane %v7048_v12, %v14805_v20  ;;  %v11407_v45 = vrot.slane %v8082_v33, %v14805_v20  ;;  %v221_v12 = vld [vmem:[#allocation3 + $0x5b0] sm:$0xff] }
 0x5ba   :  { %v14337_v38 = vadd.f32 %v14336_v28, %v14335_v30  ;;  %v14354_v28 = vsel %vm12926_vm0, %v11380_v0, 0.0  ;;  %v7055_v30 = vrot.slane %v7047_v11, %v14805_v20  ;;  %v14356_v36 = vsel %vm12926_vm0, %v11382_v18, 0.0 }
 0x5bb   :  { %v11415_v59 = vcombine.high %v11407_v45, %v11407_v45  ;;  %v3425_v18 = vrot.slane %v350_v63, %v14785_v2 }
 0x5bc   :  { %v14339_v43 = vadd.f32 %v14338_v34, %v14337_v38  ;;  %v11397_v34 = vrot.slane %v11383_v19, %v14805_v20  ;;  %v14358_v38 = vsel %vm12926_vm0, %v11390_v21, 0.0  ;;  %v7063_v39 = vcombine.low %v7055_v30, %v7062_v31 }
 0x5bd   :  { %v14368_v11 = vsel %vm12926_vm0, %v11415_v59, 0.0  ;;  %v3429_v19 = vrot.slane %v350_v63, %v14787_v4  ;;  %v3433_v21 = vrot.slane %v350_v63, %v14789_v5 }
 0x5be   :  { %v14341_v48 = vadd.f32 %v14340_v42, %v14339_v43  ;;  %v11399_v43 = vcombine.high %v11397_v34, %v11397_v34  ;;  %v8083_v57 = vmul.f32 %v7063_v39, %v220_v47  ;;  %v3453_v47 = vrot.slane %v350_v63, %v14803_v17 }
 0x5bf   :  { %v7099_v35 = vcombine.low %v3433_v21, %v3437_v23 }
 0x5c0   :  { %v14343_v54 = vadd.f32 %v14342_v44, %v14341_v48  ;;  %v11400_v44 = vcombine.high %v8082_v33, %v8082_v33  ;;  %v14364_v60 = vsel %vm12926_vm0, %v11399_v43, 0.0  ;;  %v11417_v9 = vcombine.high %v8083_v57, %v8083_v57 }
 0x5c1   :  { %v11424_v10 = vrot.slane %v8083_v57, %v14805_v20  ;;  %v3441_v43 = vrot.slane %v350_v63, %v14797_v14  ;;  %v7113_v49 = vrot.slane %v7099_v35, %v14805_v20  ;;  %v351_v57 = vld [vmem:[#allocation5 + $0x2e8] sm:$0xff]  ;;  %v224_v35 = vld [vmem:[#allocation3 + $0x5c8] sm:$0xff] }
 0x5c2   :  { %v14345_v62 = vadd.f32 %v14344_v52, %v14343_v54  ;;  %v14362_v52 = vsel %vm12926_vm0, %v11397_v34, 0.0  ;;  %v7072_v54 = vrot.slane %v7064_v40, %v14805_v20  ;;  %v7098_v34 = vcombine.low %v3425_v18, %v3429_v19 }
 0x5c3   :  { %v11432_v29 = vcombine.high %v11424_v10, %v11424_v10 }
 0x5c4   :  { %v14347_v7 = vadd.f32 %v14346_v58, %v14345_v62  ;;  %v11414_v58 = vrot.slane %v11400_v44, %v14805_v20  ;;  %v14366_v62 = vsel %vm12926_vm0, %v11407_v45, 0.0  ;;  %v7080_v0 = vcombine.low %v7072_v54, %v7079_v55 }
 0x5c5   :  { %v14376_v40 = vsel %vm12926_vm0, %v11432_v29, 0.0  ;;  %v3445_v44 = vrot.slane %v350_v63, %v14799_v15  ;;  %v3449_v45 = vrot.slane %v350_v63, %v14801_v16 }
 0x5c6   :  { %v14349_v13 = vadd.f32 %v14348_v3, %v14347_v7  ;;  %v7082_v3 = vcombine.low %v3417_v51, %v3421_v53  ;;  %v8084_v27 = vmul.f32 %v7080_v0, %v221_v12  ;;  %v3469_v12 = vrot.slane %v351_v57, %v14791_v6 }
 0x5c7   :  { %v7115_v59 = vcombine.low %v3441_v43, %v3445_v44 }
 0x5c8   :  { %v14351_v24 = vadd.f32 %v14350_v8, %v14349_v13  ;;  %v11416_v8 = vcombine.high %v11414_v58, %v11414_v58  ;;  %v7096_v25 = vrot.slane %v7082_v3, %v14805_v20  ;;  %v11441_v39 = vrot.slane %v8084_v27, %v14805_v20  ;;  %v223_v3 = vld [vmem:[#allocation3 + $0x5c0] sm:$0xff] }
 0x5ca   :  { %v14353_v32 = vadd.f32 %v14352_v22, %v14351_v24  ;;  %v14370_v22 = vsel %vm12926_vm0, %v11414_v58, 0.0  ;;  %v7089_v24 = vrot.slane %v7081_v1, %v14805_v20  ;;  %v14372_v30 = vsel %vm12926_vm0, %v11416_v8, 0.0 }
 0x5cb   :  { %v11449_v53 = vcombine.high %v11441_v39, %v11441_v39  ;;  %v3457_v8 = vrot.slane %v351_v57, %v14785_v2 }
 0x5cc   :  { %v14355_v37 = vadd.f32 %v14354_v28, %v14353_v32  ;;  %v11431_v28 = vrot.slane %v11417_v9, %v14805_v20  ;;  %v14374_v32 = vsel %vm12926_vm0, %v11424_v10, 0.0  ;;  %v7097_v33 = vcombine.low %v7089_v24, %v7096_v25 }
 0x5cd   :  { %v14384_v1 = vsel %vm12926_vm0, %v11449_v53, 0.0  ;;  %v3461_v9 = vrot.slane %v351_v57, %v14787_v4  ;;  %v3465_v10 = vrot.slane %v351_v57, %v14789_v5 }
 0x5ce   :  { %v14357_v42 = vadd.f32 %v14356_v36, %v14355_v37  ;;  %v11433_v37 = vcombine.high %v11431_v28, %v11431_v28  ;;  %v8085_v51 = vmul.f32 %v7097_v33, %v222_v41  ;;  %v3485_v41 = vrot.slane %v351_v57, %v14803_v17 }
 0x5cf   :  { %v7133_v29 = vcombine.low %v3465_v10, %v3469_v12 }
 0x5d0   :  { %v14359_v48 = vadd.f32 %v14358_v38, %v14357_v42  ;;  %v11434_v38 = vcombine.high %v8084_v27, %v8084_v27  ;;  %v14380_v54 = vsel %vm12926_vm0, %v11433_v37, 0.0  ;;  %v11451_v63 = vcombine.high %v8085_v51, %v8085_v51 }
 0x5d1   :  { %v11458_v0 = vrot.slane %v8085_v51, %v14805_v20  ;;  %v3473_v37 = vrot.slane %v351_v57, %v14797_v14  ;;  %v7147_v43 = vrot.slane %v7133_v29, %v14805_v20  ;;  %v352_v51 = vld [vmem:[#allocation5 + $0x2f0] sm:$0xff]  ;;  %v226_v29 = vld [vmem:[#allocation3 + $0x5d8] sm:$0xff] }
 0x5d2   :  { %v14361_v56 = vadd.f32 %v14360_v46, %v14359_v48  ;;  %v14378_v46 = vsel %vm12926_vm0, %v11431_v28, 0.0  ;;  %v7106_v48 = vrot.slane %v7098_v34, %v14805_v20  ;;  %v7132_v28 = vcombine.low %v3457_v8, %v3461_v9 }
 0x5d3   :  { %v11466_v23 = vcombine.high %v11458_v0, %v11458_v0 }
 0x5d4   :  { %v14363_v61 = vadd.f32 %v14362_v52, %v14361_v56  ;;  %v11448_v52 = vrot.slane %v11434_v38, %v14805_v20  ;;  %v14382_v56 = vsel %vm12926_vm0, %v11441_v39, 0.0  ;;  %v7114_v58 = vcombine.low %v7106_v48, %v7113_v49 }
 0x5d5   :  { %v14392_v34 = vsel %vm12926_vm0, %v11466_v23, 0.0  ;;  %v3477_v38 = vrot.slane %v351_v57, %v14799_v15  ;;  %v3481_v39 = vrot.slane %v351_v57, %v14801_v16 }
 0x5d6   :  { %v14365_v7 = vadd.f32 %v14364_v60, %v14363_v61  ;;  %v7116_v60 = vcombine.low %v3449_v45, %v3453_v47  ;;  %v8086_v21 = vmul.f32 %v7114_v58, %v223_v3  ;;  %v3501_v3 = vrot.slane %v352_v51, %v14791_v6 }
 0x5d7   :  { %v7149_v53 = vcombine.low %v3473_v37, %v3477_v38 }
 0x5d8   :  { %v14367_v13 = vadd.f32 %v14366_v62, %v14365_v7  ;;  %v11450_v62 = vcombine.high %v11448_v52, %v11448_v52  ;;  %v7130_v18 = vrot.slane %v7116_v60, %v14805_v20  ;;  %v11475_v33 = vrot.slane %v8086_v21, %v14805_v20  ;;  %v225_v60 = vld [vmem:[#allocation3 + $0x5d0] sm:$0xff] }
 0x5da   :  { %v14369_v26 = vadd.f32 %v14368_v11, %v14367_v13  ;;  %v14386_v11 = vsel %vm12926_vm0, %v11448_v52, 0.0  ;;  %v7123_v13 = vrot.slane %v7115_v59, %v14805_v20  ;;  %v14388_v24 = vsel %vm12926_vm0, %v11450_v62, 0.0 }
 0x5db   :  { %v11483_v47 = vcombine.high %v11475_v33, %v11475_v33  ;;  %v3489_v62 = vrot.slane %v352_v51, %v14785_v2 }
 0x5dc   :  { %v14371_v31 = vadd.f32 %v14370_v22, %v14369_v26  ;;  %v11465_v22 = vrot.slane %v11451_v63, %v14805_v20  ;;  %v14390_v26 = vsel %vm12926_vm0, %v11458_v0, 0.0  ;;  %v7131_v27 = vcombine.low %v7123_v13, %v7130_v18 }
 0x5dd   :  { %v14400_v59 = vsel %vm12926_vm0, %v11483_v47, 0.0  ;;  %v3493_v63 = vrot.slane %v352_v51, %v14787_v4  ;;  %v3497_v0 = vrot.slane %v352_v51, %v14789_v5 }
 0x5de   :  { %v14373_v36 = vadd.f32 %v14372_v30, %v14371_v31  ;;  %v11467_v31 = vcombine.high %v11465_v22, %v11465_v22  ;;  %v8087_v45 = vmul.f32 %v7131_v27, %v224_v35  ;;  %v3517_v35 = vrot.slane %v352_v51, %v14803_v17 }
 0x5df   :  { %v7167_v23 = vcombine.low %v3497_v0, %v3501_v3 }
 0x5e0   :  { %v14375_v42 = vadd.f32 %v14374_v32, %v14373_v36  ;;  %v11468_v32 = vcombine.high %v8086_v21, %v8086_v21  ;;  %v14396_v48 = vsel %vm12926_vm0, %v11467_v31, 0.0  ;;  %v11485_v57 = vcombine.high %v8087_v45, %v8087_v45 }
 0x5e1   :  { %v11492_v58 = vrot.slane %v8087_v45, %v14805_v20  ;;  %v3505_v31 = vrot.slane %v352_v51, %v14797_v14  ;;  %v7181_v37 = vrot.slane %v7167_v23, %v14805_v20  ;;  %v353_v45 = vld [vmem:[#allocation5 + $0x2f8] sm:$0xff] }
 0x5e2   :  { %v14377_v50 = vadd.f32 %v14376_v40, %v14375_v42  ;;  %v14394_v40 = vsel %vm12926_vm0, %v11465_v22, 0.0  ;;  %v7140_v42 = vrot.slane %v7132_v28, %v14805_v20  ;;  %v7166_v22 = vcombine.low %v3489_v62, %v3493_v63  ;;  %v228_v23 = vld [vmem:[#allocation3 + $0x5e8] sm:$0xff] }
 0x5e3   :  { %v11500_v12 = vcombine.high %v11492_v58, %v11492_v58 }
 0x5e4   :  { %v14379_v55 = vadd.f32 %v14378_v46, %v14377_v50  ;;  %v11482_v46 = vrot.slane %v11468_v32, %v14805_v20  ;;  %v14398_v50 = vsel %vm12926_vm0, %v11475_v33, 0.0  ;;  %v7148_v52 = vcombine.low %v7140_v42, %v7147_v43 }
 0x5e5   :  { %v14408_v28 = vsel %vm12926_vm0, %v11500_v12, 0.0  ;;  %v3509_v32 = vrot.slane %v352_v51, %v14799_v15  ;;  %v3513_v33 = vrot.slane %v352_v51, %v14801_v16 }
 0x5e6   :  { %v14381_v61 = vadd.f32 %v14380_v54, %v14379_v55  ;;  %v7150_v54 = vcombine.low %v3481_v39, %v3485_v41  ;;  %v8088_v10 = vmul.f32 %v7148_v52, %v225_v60  ;;  %v3533_v60 = vrot.slane %v353_v45, %v14791_v6 }
 0x5e7   :  { %v7183_v47 = vcombine.low %v3505_v31, %v3509_v32 }
 0x5e8   :  { %v14383_v7 = vadd.f32 %v14382_v56, %v14381_v61  ;;  %v11484_v56 = vcombine.high %v11482_v46, %v11482_v46  ;;  %v7164_v8 = vrot.slane %v7150_v54, %v14805_v20  ;;  %v11509_v27 = vrot.slane %v8088_v10, %v14805_v20  ;;  %v227_v54 = vld [vmem:[#allocation3 + $0x5e0] sm:$0xff] }
 0x5ea   :  { %v14385_v19 = vadd.f32 %v14384_v1, %v14383_v7  ;;  %v14402_v1 = vsel %vm12926_vm0, %v11482_v46, 0.0  ;;  %v7157_v7 = vrot.slane %v7149_v53, %v14805_v20  ;;  %v14404_v13 = vsel %vm12926_vm0, %v11484_v56, 0.0 }
 0x5eb   :  { %v11517_v41 = vcombine.high %v11509_v27, %v11509_v27  ;;  %v3521_v56 = vrot.slane %v353_v45, %v14785_v2 }
 0x5ec   :  { %v14387_v25 = vadd.f32 %v14386_v11, %v14385_v19  ;;  %v11499_v11 = vrot.slane %v11485_v57, %v14805_v20  ;;  %v14406_v19 = vsel %vm12926_vm0, %v11492_v58, 0.0  ;;  %v7165_v21 = vcombine.low %v7157_v7, %v7164_v8 }
 0x5ed   :  { %v14416_v53 = vsel %vm12926_vm0, %v11517_v41, 0.0  ;;  %v3525_v57 = vrot.slane %v353_v45, %v14787_v4  ;;  %v3529_v58 = vrot.slane %v353_v45, %v14789_v5 }
 0x5ee   :  { %v14389_v30 = vadd.f32 %v14388_v24, %v14387_v25  ;;  %v11501_v25 = vcombine.high %v11499_v11, %v11499_v11  ;;  %v8089_v39 = vmul.f32 %v7165_v21, %v226_v29  ;;  %v3549_v29 = vrot.slane %v353_v45, %v14803_v17 }
 0x5ef   :  { %v7201_v12 = vcombine.low %v3529_v58, %v3533_v60 }
 0x5f0   :  { %v14391_v36 = vadd.f32 %v14390_v26, %v14389_v30  ;;  %v11502_v26 = vcombine.high %v8088_v10, %v8088_v10  ;;  %v14412_v42 = vsel %vm12926_vm0, %v11501_v25, 0.0  ;;  %v11519_v51 = vcombine.high %v8089_v39, %v8089_v39 }
 0x5f1   :  { %v11526_v52 = vrot.slane %v8089_v39, %v14805_v20  ;;  %v3537_v25 = vrot.slane %v353_v45, %v14797_v14  ;;  %v7215_v31 = vrot.slane %v7201_v12, %v14805_v20  ;;  %v354_v39 = vld [vmem:[#allocation5 + $0x300] sm:$0xff] }
 0x5f2   :  { %v14393_v44 = vadd.f32 %v14392_v34, %v14391_v36  ;;  %v14410_v34 = vsel %vm12926_vm0, %v11499_v11, 0.0  ;;  %v7174_v36 = vrot.slane %v7166_v22, %v14805_v20  ;;  %v7200_v11 = vcombine.low %v3521_v56, %v3525_v57  ;;  %v230_v12 = vld [vmem:[#allocation3 + $0x5f8] sm:$0xff] }
 0x5f3   :  { %v11534_v3 = vcombine.high %v11526_v52, %v11526_v52 }
 0x5f4   :  { %v14395_v49 = vadd.f32 %v14394_v40, %v14393_v44  ;;  %v11516_v40 = vrot.slane %v11502_v26, %v14805_v20  ;;  %v14414_v44 = vsel %vm12926_vm0, %v11509_v27, 0.0  ;;  %v7182_v46 = vcombine.low %v7174_v36, %v7181_v37 }
 0x5f5   :  { %v14424_v22 = vsel %vm12926_vm0, %v11534_v3, 0.0  ;;  %v3541_v26 = vrot.slane %v353_v45, %v14799_v15  ;;  %v3545_v27 = vrot.slane %v353_v45, %v14801_v16 }
 0x5f6   :  { %v14397_v55 = vadd.f32 %v14396_v48, %v14395_v49  ;;  %v7184_v48 = vcombine.low %v3513_v33, %v3517_v35  ;;  %v8090_v0 = vmul.f32 %v7182_v46, %v227_v54  ;;  %v3565_v54 = vrot.slane %v354_v39, %v14791_v6 }
 0x5f7   :  { %v7217_v41 = vcombine.low %v3537_v25, %v3541_v26 }
 0x5f8   :  { %v14399_v61 = vadd.f32 %v14398_v50, %v14397_v55  ;;  %v11518_v50 = vcombine.high %v11516_v40, %v11516_v40  ;;  %v7198_v62 = vrot.slane %v7184_v48, %v14805_v20  ;;  %v11543_v21 = vrot.slane %v8090_v0, %v14805_v20  ;;  %v229_v48 = vld [vmem:[#allocation3 + $0x5f0] sm:$0xff] }
 0x5fa   :  { %v14401_v9 = vadd.f32 %v14400_v59, %v14399_v61  ;;  %v14418_v59 = vsel %vm12926_vm0, %v11516_v40, 0.0  ;;  %v7191_v61 = vrot.slane %v7183_v47, %v14805_v20  ;;  %v14420_v7 = vsel %vm12926_vm0, %v11518_v50, 0.0 }
 0x5fb   :  { %v11551_v35 = vcombine.high %v11543_v21, %v11543_v21  ;;  %v3553_v50 = vrot.slane %v354_v39, %v14785_v2 }
 0x5fc   :  { %v14403_v18 = vadd.f32 %v14402_v1, %v14401_v9  ;;  %v11533_v1 = vrot.slane %v11519_v51, %v14805_v20  ;;  %v14422_v9 = vsel %vm12926_vm0, %v11526_v52, 0.0  ;;  %v7199_v10 = vcombine.low %v7191_v61, %v7198_v62 }
 0x5fd   :  { %v14432_v47 = vsel %vm12926_vm0, %v11551_v35, 0.0  ;;  %v3557_v51 = vrot.slane %v354_v39, %v14787_v4  ;;  %v3561_v52 = vrot.slane %v354_v39, %v14789_v5 }
 0x5fe   :  { %v14405_v24 = vadd.f32 %v14404_v13, %v14403_v18  ;;  %v11535_v18 = vcombine.high %v11533_v1, %v11533_v1  ;;  %v8091_v33 = vmul.f32 %v7199_v10, %v228_v23  ;;  %v3581_v23 = vrot.slane %v354_v39, %v14803_v17 }
 0x5ff   :  { %v7235_v3 = vcombine.low %v3561_v52, %v3565_v54 }
 0x600   :  { %v14407_v30 = vadd.f32 %v14406_v19, %v14405_v24  ;;  %v11536_v19 = vcombine.high %v8090_v0, %v8090_v0  ;;  %v14428_v36 = vsel %vm12926_vm0, %v11535_v18, 0.0  ;;  %v11553_v45 = vcombine.high %v8091_v33, %v8091_v33 }
 0x601   :  { %v11560_v46 = vrot.slane %v8091_v33, %v14805_v20  ;;  %v3569_v18 = vrot.slane %v354_v39, %v14797_v14  ;;  %v7249_v25 = vrot.slane %v7235_v3, %v14805_v20  ;;  %v355_v33 = vld [vmem:[#allocation5 + $0x308] sm:$0xff]  ;;  %v232_v3 = vld [vmem:[#allocation3 + $0x608] sm:$0xff] }
 0x602   :  { %v14409_v38 = vadd.f32 %v14408_v28, %v14407_v30  ;;  %v14426_v28 = vsel %vm12926_vm0, %v11533_v1, 0.0  ;;  %v7208_v30 = vrot.slane %v7200_v11, %v14805_v20  ;;  %v7234_v1 = vcombine.low %v3553_v50, %v3557_v51 }
 0x603   :  { %v11568_v60 = vcombine.high %v11560_v46, %v11560_v46 }
 0x604   :  { %v14411_v43 = vadd.f32 %v14410_v34, %v14409_v38  ;;  %v11550_v34 = vrot.slane %v11536_v19, %v14805_v20  ;;  %v14430_v38 = vsel %vm12926_vm0, %v11543_v21, 0.0  ;;  %v7216_v40 = vcombine.low %v7208_v30, %v7215_v31 }
 0x605   :  { %v14440_v11 = vsel %vm12926_vm0, %v11568_v60, 0.0  ;;  %v3573_v19 = vrot.slane %v354_v39, %v14799_v15  ;;  %v3577_v21 = vrot.slane %v354_v39, %v14801_v16 }
 0x606   :  { %v14413_v49 = vadd.f32 %v14412_v42, %v14411_v43  ;;  %v7218_v42 = vcombine.low %v3545_v27, %v3549_v29  ;;  %v8092_v58 = vmul.f32 %v7216_v40, %v229_v48  ;;  %v3597_v48 = vrot.slane %v355_v33, %v14791_v6 }
 0x607   :  { %v7251_v35 = vcombine.low %v3569_v18, %v3573_v19 }
 0x608   :  { %v14415_v55 = vadd.f32 %v14414_v44, %v14413_v49  ;;  %v11552_v44 = vcombine.high %v11550_v34, %v11550_v34  ;;  %v7232_v56 = vrot.slane %v7218_v42, %v14805_v20  ;;  %v11577_v10 = vrot.slane %v8092_v58, %v14805_v20  ;;  %v231_v42 = vld [vmem:[#allocation3 + $0x600] sm:$0xff] }
 0x60a   :  { %v14417_v63 = vadd.f32 %v14416_v53, %v14415_v55  ;;  %v14434_v53 = vsel %vm12926_vm0, %v11550_v34, 0.0  ;;  %v7225_v55 = vrot.slane %v7217_v41, %v14805_v20  ;;  %v14436_v61 = vsel %vm12926_vm0, %v11552_v44, 0.0 }
 0x60b   :  { %v11585_v29 = vcombine.high %v11577_v10, %v11577_v10  ;;  %v3585_v44 = vrot.slane %v355_v33, %v14785_v2 }
 0x60c   :  { %v14419_v8 = vadd.f32 %v14418_v59, %v14417_v63  ;;  %v11567_v59 = vrot.slane %v11553_v45, %v14805_v20  ;;  %v14438_v63 = vsel %vm12926_vm0, %v11560_v46, 0.0  ;;  %v7233_v0 = vcombine.low %v7225_v55, %v7232_v56 }
 0x60d   :  { %v14448_v41 = vsel %vm12926_vm0, %v11585_v29, 0.0  ;;  %v3589_v45 = vrot.slane %v355_v33, %v14787_v4  ;;  %v3593_v46 = vrot.slane %v355_v33, %v14789_v5 }
 0x60e   :  { %v14421_v13 = vadd.f32 %v14420_v7, %v14419_v8  ;;  %v11569_v8 = vcombine.high %v11567_v59, %v11567_v59  ;;  %v8093_v27 = vmul.f32 %v7233_v0, %v230_v12  ;;  %v3613_v12 = vrot.slane %v355_v33, %v14803_v17 }
 0x60f   :  { %v7269_v60 = vcombine.low %v3593_v46, %v3597_v48 }
 0x610   :  { %v14423_v24 = vadd.f32 %v14422_v9, %v14421_v13  ;;  %v11570_v9 = vcombine.high %v8092_v58, %v8092_v58  ;;  %v14444_v30 = vsel %vm12926_vm0, %v11569_v8, 0.0  ;;  %v11587_v39 = vcombine.high %v8093_v27, %v8093_v27 }
 0x611   :  { %v11594_v40 = vrot.slane %v8093_v27, %v14805_v20  ;;  %v3601_v8 = vrot.slane %v355_v33, %v14797_v14  ;;  %v7283_v18 = vrot.slane %v7269_v60, %v14805_v20  ;;  %v356_v27 = vld [vmem:[#allocation5 + $0x310] sm:$0xff]  ;;  %v234_v60 = vld [vmem:[#allocation3 + $0x618] sm:$0xff] }
 0x612   :  { %v14425_v32 = vadd.f32 %v14424_v22, %v14423_v24  ;;  %v14442_v22 = vsel %vm12926_vm0, %v11567_v59, 0.0  ;;  %v7242_v24 = vrot.slane %v7234_v1, %v14805_v20  ;;  %v7268_v59 = vcombine.low %v3585_v44, %v3589_v45 }
 0x613   :  { %v11602_v54 = vcombine.high %v11594_v40, %v11594_v40 }
 0x614   :  { %v14427_v37 = vadd.f32 %v14426_v28, %v14425_v32  ;;  %v11584_v28 = vrot.slane %v11570_v9, %v14805_v20  ;;  %v14446_v32 = vsel %vm12926_vm0, %v11577_v10, 0.0  ;;  %v7250_v34 = vcombine.low %v7242_v24, %v7249_v25 }
 0x615   :  { %v14456_v1 = vsel %vm12926_vm0, %v11602_v54, 0.0  ;;  %v3605_v9 = vrot.slane %v355_v33, %v14799_v15  ;;  %v3609_v10 = vrot.slane %v355_v33, %v14801_v16 }
 0x616   :  { %v14429_v43 = vadd.f32 %v14428_v36, %v14427_v37  ;;  %v7252_v36 = vcombine.low %v3577_v21, %v3581_v23  ;;  %v8094_v52 = vmul.f32 %v7250_v34, %v231_v42  ;;  %v3629_v42 = vrot.slane %v356_v27, %v14791_v6 }
 0x617   :  { %v7285_v29 = vcombine.low %v3601_v8, %v3605_v9 }
 0x618   :  { %v14431_v49 = vadd.f32 %v14430_v38, %v14429_v43  ;;  %v11586_v38 = vcombine.high %v11584_v28, %v11584_v28  ;;  %v7266_v50 = vrot.slane %v7252_v36, %v14805_v20  ;;  %v11611_v0 = vrot.slane %v8094_v52, %v14805_v20  ;;  %v233_v36 = vld [vmem:[#allocation3 + $0x610] sm:$0xff] }
 0x61a   :  { %v14433_v57 = vadd.f32 %v14432_v47, %v14431_v49  ;;  %v14450_v47 = vsel %vm12926_vm0, %v11584_v28, 0.0  ;;  %v7259_v49 = vrot.slane %v7251_v35, %v14805_v20  ;;  %v14452_v55 = vsel %vm12926_vm0, %v11586_v38, 0.0 }
 0x61b   :  { %v11619_v23 = vcombine.high %v11611_v0, %v11611_v0  ;;  %v3617_v38 = vrot.slane %v356_v27, %v14785_v2 }
 0x61c   :  { %v14435_v62 = vadd.f32 %v14434_v53, %v14433_v57  ;;  %v11601_v53 = vrot.slane %v11587_v39, %v14805_v20  ;;  %v14454_v57 = vsel %vm12926_vm0, %v11594_v40, 0.0  ;;  %v7267_v58 = vcombine.low %v7259_v49, %v7266_v50 }
 0x61d   :  { %v14464_v35 = vsel %vm12926_vm0, %v11619_v23, 0.0  ;;  %v3621_v39 = vrot.slane %v356_v27, %v14787_v4  ;;  %v3625_v40 = vrot.slane %v356_v27, %v14789_v5 }
 0x61e   :  { %v14437_v7 = vadd.f32 %v14436_v61, %v14435_v62  ;;  %v11603_v62 = vcombine.high %v11601_v53, %v11601_v53  ;;  %v8095_v21 = vmul.f32 %v7267_v58, %v232_v3  ;;  %v3645_v3 = vrot.slane %v356_v27, %v14803_v17 }
 0x61f   :  { %v7303_v54 = vcombine.low %v3625_v40, %v3629_v42 }
 0x620   :  { %v14439_v13 = vadd.f32 %v14438_v63, %v14437_v7  ;;  %v11604_v63 = vcombine.high %v8094_v52, %v8094_v52  ;;  %v14460_v24 = vsel %vm12926_vm0, %v11603_v62, 0.0  ;;  %v11621_v33 = vcombine.high %v8095_v21, %v8095_v21 }
 0x621   :  { %v11628_v34 = vrot.slane %v8095_v21, %v14805_v20  ;;  %v3633_v62 = vrot.slane %v356_v27, %v14797_v14  ;;  %v7317_v8 = vrot.slane %v7303_v54, %v14805_v20  ;;  %v357_v21 = vld [vmem:[#allocation5 + $0x318] sm:$0xff] }
 0x622   :  { %v14441_v26 = vadd.f32 %v14440_v11, %v14439_v13  ;;  %v14458_v11 = vsel %vm12926_vm0, %v11601_v53, 0.0  ;;  %v7276_v13 = vrot.slane %v7268_v59, %v14805_v20  ;;  %v7302_v53 = vcombine.low %v3617_v38, %v3621_v39  ;;  %v236_v54 = vld [vmem:[#allocation3 + $0x628] sm:$0xff] }
 0x623   :  { %v11636_v48 = vcombine.high %v11628_v34, %v11628_v34 }
 0x624   :  { %v14443_v31 = vadd.f32 %v14442_v22, %v14441_v26  ;;  %v11618_v22 = vrot.slane %v11604_v63, %v14805_v20  ;;  %v14462_v26 = vsel %vm12926_vm0, %v11611_v0, 0.0  ;;  %v7284_v28 = vcombine.low %v7276_v13, %v7283_v18 }
 0x625   :  { %v14472_v59 = vsel %vm12926_vm0, %v11636_v48, 0.0  ;;  %v3637_v63 = vrot.slane %v356_v27, %v14799_v15  ;;  %v3641_v0 = vrot.slane %v356_v27, %v14801_v16 }
 0x626   :  { %v14445_v37 = vadd.f32 %v14444_v30, %v14443_v31  ;;  %v7286_v30 = vcombine.low %v3609_v10, %v3613_v12  ;;  %v8096_v46 = vmul.f32 %v7284_v28, %v233_v36  ;;  %v3661_v36 = vrot.slane %v357_v21, %v14791_v6 }
 0x627   :  { %v7319_v23 = vcombine.low %v3633_v62, %v3637_v63 }
 0x628   :  { %v14447_v43 = vadd.f32 %v14446_v32, %v14445_v37  ;;  %v11620_v32 = vcombine.high %v11618_v22, %v11618_v22  ;;  %v7300_v44 = vrot.slane %v7286_v30, %v14805_v20  ;;  %v11645_v58 = vrot.slane %v8096_v46, %v14805_v20  ;;  %v235_v30 = vld [vmem:[#allocation3 + $0x620] sm:$0xff] }
 0x62a   :  { %v14449_v51 = vadd.f32 %v14448_v41, %v14447_v43  ;;  %v14466_v41 = vsel %vm12926_vm0, %v11618_v22, 0.0  ;;  %v7293_v43 = vrot.slane %v7285_v29, %v14805_v20  ;;  %v14468_v49 = vsel %vm12926_vm0, %v11620_v32, 0.0 }
 0x62b   :  { %v11653_v12 = vcombine.high %v11645_v58, %v11645_v58  ;;  %v3649_v32 = vrot.slane %v357_v21, %v14785_v2 }
 0x62c   :  { %v14451_v56 = vadd.f32 %v14450_v47, %v14449_v51  ;;  %v11635_v47 = vrot.slane %v11621_v33, %v14805_v20  ;;  %v14470_v51 = vsel %vm12926_vm0, %v11628_v34, 0.0  ;;  %v7301_v52 = vcombine.low %v7293_v43, %v7300_v44 }
 0x62d   :  { %v14480_v29 = vsel %vm12926_vm0, %v11653_v12, 0.0  ;;  %v3653_v33 = vrot.slane %v357_v21, %v14787_v4  ;;  %v3657_v34 = vrot.slane %v357_v21, %v14789_v5 }
 0x62e   :  { %v14453_v61 = vadd.f32 %v14452_v55, %v14451_v56  ;;  %v11637_v56 = vcombine.high %v11635_v47, %v11635_v47  ;;  %v8097_v10 = vmul.f32 %v7301_v52, %v234_v60  ;;  %v3677_v60 = vrot.slane %v357_v21, %v14803_v17 }
 0x62f   :  { %v7337_v48 = vcombine.low %v3657_v34, %v3661_v36 }
 0x630   :  { %v14455_v7 = vadd.f32 %v14454_v57, %v14453_v61  ;;  %v11638_v57 = vcombine.high %v8096_v46, %v8096_v46  ;;  %v14476_v13 = vsel %vm12926_vm0, %v11637_v56, 0.0  ;;  %v11655_v27 = vcombine.high %v8097_v10, %v8097_v10 }
 0x631   :  { %v11662_v28 = vrot.slane %v8097_v10, %v14805_v20  ;;  %v3665_v56 = vrot.slane %v357_v21, %v14797_v14  ;;  %v7351_v62 = vrot.slane %v7337_v48, %v14805_v20  ;;  %v358_v10 = vld [vmem:[#allocation5 + $0x320] sm:$0xff] }
 0x632   :  { %v14457_v19 = vadd.f32 %v14456_v1, %v14455_v7  ;;  %v14474_v1 = vsel %vm12926_vm0, %v11635_v47, 0.0  ;;  %v7310_v7 = vrot.slane %v7302_v53, %v14805_v20  ;;  %v7336_v47 = vcombine.low %v3649_v32, %v3653_v33  ;;  %v238_v48 = vld [vmem:[#allocation3 + $0x638] sm:$0xff] }
 0x633   :  { %v11670_v42 = vcombine.high %v11662_v28, %v11662_v28 }
 0x634   :  { %v14459_v25 = vadd.f32 %v14458_v11, %v14457_v19  ;;  %v11652_v11 = vrot.slane %v11638_v57, %v14805_v20  ;;  %v14478_v19 = vsel %vm12926_vm0, %v11645_v58, 0.0  ;;  %v7318_v22 = vcombine.low %v7310_v7, %v7317_v8 }
 0x635   :  { %v14488_v53 = vsel %vm12926_vm0, %v11670_v42, 0.0  ;;  %v3669_v57 = vrot.slane %v357_v21, %v14799_v15  ;;  %v3673_v58 = vrot.slane %v357_v21, %v14801_v16 }
 0x636   :  { %v14461_v31 = vadd.f32 %v14460_v24, %v14459_v25  ;;  %v7320_v24 = vcombine.low %v3641_v0, %v3645_v3  ;;  %v8098_v40 = vmul.f32 %v7318_v22, %v235_v30  ;;  %v3693_v30 = vrot.slane %v358_v10, %v14791_v6 }
 0x637   :  { %v7353_v12 = vcombine.low %v3665_v56, %v3669_v57 }
 0x638   :  { %v14463_v37 = vadd.f32 %v14462_v26, %v14461_v31  ;;  %v11654_v26 = vcombine.high %v11652_v11, %v11652_v11  ;;  %v7334_v38 = vrot.slane %v7320_v24, %v14805_v20  ;;  %v11679_v52 = vrot.slane %v8098_v40, %v14805_v20  ;;  %v237_v24 = vld [vmem:[#allocation3 + $0x630] sm:$0xff] }
 0x63a   :  { %v14465_v45 = vadd.f32 %v14464_v35, %v14463_v37  ;;  %v14482_v35 = vsel %vm12926_vm0, %v11652_v11, 0.0  ;;  %v7327_v37 = vrot.slane %v7319_v23, %v14805_v20  ;;  %v14484_v43 = vsel %vm12926_vm0, %v11654_v26, 0.0 }
 0x63b   :  { %v11687_v3 = vcombine.high %v11679_v52, %v11679_v52  ;;  %v3681_v26 = vrot.slane %v358_v10, %v14785_v2 }
 0x63c   :  { %v14467_v50 = vadd.f32 %v14466_v41, %v14465_v45  ;;  %v11669_v41 = vrot.slane %v11655_v27, %v14805_v20  ;;  %v14486_v45 = vsel %vm12926_vm0, %v11662_v28, 0.0  ;;  %v7335_v46 = vcombine.low %v7327_v37, %v7334_v38 }
 0x63d   :  { %v14496_v23 = vsel %vm12926_vm0, %v11687_v3, 0.0  ;;  %v3685_v27 = vrot.slane %v358_v10, %v14787_v4  ;;  %v3689_v28 = vrot.slane %v358_v10, %v14789_v5 }
 0x63e   :  { %v14469_v55 = vadd.f32 %v14468_v49, %v14467_v50  ;;  %v11671_v50 = vcombine.high %v11669_v41, %v11669_v41  ;;  %v8099_v0 = vmul.f32 %v7335_v46, %v236_v54  ;;  %v3709_v54 = vrot.slane %v358_v10, %v14803_v17 }
 0x63f   :  { %v7371_v42 = vcombine.low %v3689_v28, %v3693_v30 }
 0x640   :  { %v14471_v61 = vadd.f32 %v14470_v51, %v14469_v55  ;;  %v11672_v51 = vcombine.high %v8098_v40, %v8098_v40  ;;  %v14492_v7 = vsel %vm12926_vm0, %v11671_v50, 0.0  ;;  %v11689_v21 = vcombine.high %v8099_v0, %v8099_v0 }
 0x641   :  { %v11696_v22 = vrot.slane %v8099_v0, %v14805_v20  ;;  %v3697_v50 = vrot.slane %v358_v10, %v14797_v14  ;;  %v7385_v56 = vrot.slane %v7371_v42, %v14805_v20  ;;  %v359_v0 = vld [vmem:[#allocation5 + $0x328] sm:$0xff]  ;;  %v240_v42 = vld [vmem:[#allocation3 + $0x648] sm:$0xff] }
 0x642   :  { %v14473_v9 = vadd.f32 %v14472_v59, %v14471_v61  ;;  %v14490_v59 = vsel %vm12926_vm0, %v11669_v41, 0.0  ;;  %v7344_v61 = vrot.slane %v7336_v47, %v14805_v20  ;;  %v7370_v41 = vcombine.low %v3681_v26, %v3685_v27 }
 0x643   :  { %v11704_v36 = vcombine.high %v11696_v22, %v11696_v22 }
 0x644   :  { %v14475_v18 = vadd.f32 %v14474_v1, %v14473_v9  ;;  %v11686_v1 = vrot.slane %v11672_v51, %v14805_v20  ;;  %v14494_v9 = vsel %vm12926_vm0, %v11679_v52, 0.0  ;;  %v7352_v11 = vcombine.low %v7344_v61, %v7351_v62 }
 0x645   :  { %v14504_v47 = vsel %vm12926_vm0, %v11704_v36, 0.0  ;;  %v3701_v51 = vrot.slane %v358_v10, %v14799_v15  ;;  %v3705_v52 = vrot.slane %v358_v10, %v14801_v16 }
 0x646   :  { %v14477_v25 = vadd.f32 %v14476_v13, %v14475_v18  ;;  %v7354_v13 = vcombine.low %v3673_v58, %v3677_v60  ;;  %v8100_v34 = vmul.f32 %v7352_v11, %v237_v24  ;;  %v3725_v24 = vrot.slane %v359_v0, %v14791_v6 }
 0x647   :  { %v7387_v3 = vcombine.low %v3697_v50, %v3701_v51 }
 0x648   :  { %v14479_v31 = vadd.f32 %v14478_v19, %v14477_v25  ;;  %v11688_v19 = vcombine.high %v11686_v1, %v11686_v1  ;;  %v7368_v32 = vrot.slane %v7354_v13, %v14805_v20  ;;  %v11713_v46 = vrot.slane %v8100_v34, %v14805_v20  ;;  %v239_v13 = vld [vmem:[#allocation3 + $0x640] sm:$0xff] }
 0x64a   :  { %v14481_v39 = vadd.f32 %v14480_v29, %v14479_v31  ;;  %v14498_v29 = vsel %vm12926_vm0, %v11686_v1, 0.0  ;;  %v7361_v31 = vrot.slane %v7353_v12, %v14805_v20  ;;  %v14500_v37 = vsel %vm12926_vm0, %v11688_v19, 0.0 }
 0x64b   :  { %v11721_v60 = vcombine.high %v11713_v46, %v11713_v46  ;;  %v3713_v19 = vrot.slane %v359_v0, %v14785_v2 }
 0x64c   :  { %v14483_v44 = vadd.f32 %v14482_v35, %v14481_v39  ;;  %v11703_v35 = vrot.slane %v11689_v21, %v14805_v20  ;;  %v14502_v39 = vsel %vm12926_vm0, %v11696_v22, 0.0  ;;  %v7369_v40 = vcombine.low %v7361_v31, %v7368_v32 }
 0x64d   :  { %v14512_v12 = vsel %vm12926_vm0, %v11721_v60, 0.0  ;;  %v3717_v21 = vrot.slane %v359_v0, %v14787_v4  ;;  %v3721_v22 = vrot.slane %v359_v0, %v14789_v5 }
 0x64e   :  { %v14485_v49 = vadd.f32 %v14484_v43, %v14483_v44  ;;  %v11705_v44 = vcombine.high %v11703_v35, %v11703_v35  ;;  %v8101_v58 = vmul.f32 %v7369_v40, %v238_v48  ;;  %v3741_v48 = vrot.slane %v359_v0, %v14803_v17 }
 0x64f   :  { %v7405_v36 = vcombine.low %v3721_v22, %v3725_v24 }
 0x650   :  { %v14487_v55 = vadd.f32 %v14486_v45, %v14485_v49  ;;  %v11706_v45 = vcombine.high %v8100_v34, %v8100_v34  ;;  %v14508_v61 = vsel %vm12926_vm0, %v11705_v44, 0.0  ;;  %v11723_v10 = vcombine.high %v8101_v58, %v8101_v58 }
 0x651   :  { %v11730_v11 = vrot.slane %v8101_v58, %v14805_v20  ;;  %v3729_v44 = vrot.slane %v359_v0, %v14797_v14  ;;  %v7419_v50 = vrot.slane %v7405_v36, %v14805_v20  ;;  %v360_v58 = vld [vmem:[#allocation5 + $0x330] sm:$0xff]  ;;  %v242_v36 = vld [vmem:[#allocation3 + $0x658] sm:$0xff] }
 0x652   :  { %v14489_v63 = vadd.f32 %v14488_v53, %v14487_v55  ;;  %v14506_v53 = vsel %vm12926_vm0, %v11703_v35, 0.0  ;;  %v7378_v55 = vrot.slane %v7370_v41, %v14805_v20  ;;  %v7404_v35 = vcombine.low %v3713_v19, %v3717_v21 }
 0x653   :  { %v11738_v30 = vcombine.high %v11730_v11, %v11730_v11 }
 0x654   :  { %v14491_v8 = vadd.f32 %v14490_v59, %v14489_v63  ;;  %v11720_v59 = vrot.slane %v11706_v45, %v14805_v20  ;;  %v14510_v63 = vsel %vm12926_vm0, %v11713_v46, 0.0  ;;  %v7386_v1 = vcombine.low %v7378_v55, %v7385_v56 }
 0x655   :  { %v14520_v41 = vsel %vm12926_vm0, %v11738_v30, 0.0  ;;  %v3733_v45 = vrot.slane %v359_v0, %v14799_v15  ;;  %v3737_v46 = vrot.slane %v359_v0, %v14801_v16 }
 0x656   :  { %v14493_v18 = vadd.f32 %v14492_v7, %v14491_v8  ;;  %v7388_v7 = vcombine.low %v3705_v52, %v3709_v54  ;;  %v8102_v28 = vmul.f32 %v7386_v1, %v239_v13  ;;  %v3757_v13 = vrot.slane %v360_v58, %v14791_v6 }
 0x657   :  { %v7421_v60 = vcombine.low %v3729_v44, %v3733_v45 }
 0x658   :  { %v14495_v25 = vadd.f32 %v14494_v9, %v14493_v18  ;;  %v11722_v9 = vcombine.high %v11720_v59, %v11720_v59  ;;  %v7402_v26 = vrot.slane %v7388_v7, %v14805_v20  ;;  %v11747_v40 = vrot.slane %v8102_v28, %v14805_v20  ;;  %v241_v7 = vld [vmem:[#allocation3 + $0x650] sm:$0xff] }
 0x65a   :  { %v14497_v33 = vadd.f32 %v14496_v23, %v14495_v25  ;;  %v14514_v23 = vsel %vm12926_vm0, %v11720_v59, 0.0  ;;  %v7395_v25 = vrot.slane %v7387_v3, %v14805_v20  ;;  %v14516_v31 = vsel %vm12926_vm0, %v11722_v9, 0.0 }
 0x65b   :  { %v11755_v54 = vcombine.high %v11747_v40, %v11747_v40  ;;  %v3745_v9 = vrot.slane %v360_v58, %v14785_v2 }
 0x65c   :  { %v14499_v38 = vadd.f32 %v14498_v29, %v14497_v33  ;;  %v11737_v29 = vrot.slane %v11723_v10, %v14805_v20  ;;  %v14518_v33 = vsel %vm12926_vm0, %v11730_v11, 0.0  ;;  %v7403_v34 = vcombine.low %v7395_v25, %v7402_v26 }
 0x65d   :  { %v14528_v3 = vsel %vm12926_vm0, %v11755_v54, 0.0  ;;  %v3749_v10 = vrot.slane %v360_v58, %v14787_v4  ;;  %v3753_v11 = vrot.slane %v360_v58, %v14789_v5 }
 0x65e   :  { %v14501_v43 = vadd.f32 %v14500_v37, %v14499_v38  ;;  %v11739_v38 = vcombine.high %v11737_v29, %v11737_v29  ;;  %v8103_v52 = vmul.f32 %v7403_v34, %v240_v42  ;;  %v3773_v42 = vrot.slane %v360_v58, %v14803_v17 }
 0x65f   :  { %v7439_v30 = vcombine.low %v3753_v11, %v3757_v13 }
 0x660   :  { %v14503_v49 = vadd.f32 %v14502_v39, %v14501_v43  ;;  %v11740_v39 = vcombine.high %v8102_v28, %v8102_v28  ;;  %v14524_v55 = vsel %vm12926_vm0, %v11739_v38, 0.0  ;;  %v11757_v0 = vcombine.high %v8103_v52, %v8103_v52 }
 0x661   :  { %v11764_v1 = vrot.slane %v8103_v52, %v14805_v20  ;;  %v3761_v38 = vrot.slane %v360_v58, %v14797_v14  ;;  %v7453_v44 = vrot.slane %v7439_v30, %v14805_v20  ;;  %v361_v52 = vld [vmem:[#allocation5 + $0x338] sm:$0xff] }
 0x662   :  { %v14505_v57 = vadd.f32 %v14504_v47, %v14503_v49  ;;  %v14522_v47 = vsel %vm12926_vm0, %v11737_v29, 0.0  ;;  %v7412_v49 = vrot.slane %v7404_v35, %v14805_v20  ;;  %v7438_v29 = vcombine.low %v3745_v9, %v3749_v10  ;;  %v244_v30 = vld [vmem:[#allocation3 + $0x668] sm:$0xff] }
 0x663   :  { %v11772_v24 = vcombine.high %v11764_v1, %v11764_v1 }
 0x664   :  { %v14507_v62 = vadd.f32 %v14506_v53, %v14505_v57  ;;  %v11754_v53 = vrot.slane %v11740_v39, %v14805_v20  ;;  %v14526_v57 = vsel %vm12926_vm0, %v11747_v40, 0.0  ;;  %v7420_v59 = vcombine.low %v7412_v49, %v7419_v50 }
 0x665   :  { %v14536_v35 = vsel %vm12926_vm0, %v11772_v24, 0.0  ;;  %v3765_v39 = vrot.slane %v360_v58, %v14799_v15  ;;  %v3769_v40 = vrot.slane %v360_v58, %v14801_v16 }
 0x666   :  { %v14509_v8 = vadd.f32 %v14508_v61, %v14507_v62  ;;  %v7422_v61 = vcombine.low %v3737_v46, %v3741_v48  ;;  %v8104_v22 = vmul.f32 %v7420_v59, %v241_v7  ;;  %v3789_v7 = vrot.slane %v361_v52, %v14791_v6 }
 0x667   :  { %v7455_v54 = vcombine.low %v3761_v38, %v3765_v39 }
 0x668   :  { %v14511_v18 = vadd.f32 %v14510_v63, %v14509_v8  ;;  %v11756_v63 = vcombine.high %v11754_v53, %v11754_v53  ;;  %v7436_v19 = vrot.slane %v7422_v61, %v14805_v20  ;;  %v11781_v34 = vrot.slane %v8104_v22, %v14805_v20  ;;  %v243_v61 = vld [vmem:[#allocation3 + $0x660] sm:$0xff] }
 0x66a   :  { %v14513_v27 = vadd.f32 %v14512_v12, %v14511_v18  ;;  %v14530_v12 = vsel %vm12926_vm0, %v11754_v53, 0.0  ;;  %v7429_v18 = vrot.slane %v7421_v60, %v14805_v20  ;;  %v14532_v25 = vsel %vm12926_vm0, %v11756_v63, 0.0 }
 0x66b   :  { %v11789_v48 = vcombine.high %v11781_v34, %v11781_v34  ;;  %v3777_v63 = vrot.slane %v361_v52, %v14785_v2 }
 0x66c   :  { %v14515_v32 = vadd.f32 %v14514_v23, %v14513_v27  ;;  %v11771_v23 = vrot.slane %v11757_v0, %v14805_v20  ;;  %v14534_v27 = vsel %vm12926_vm0, %v11764_v1, 0.0  ;;  %v7437_v28 = vcombine.low %v7429_v18, %v7436_v19 }
 0x66d   :  { %v14544_v60 = vsel %vm12926_vm0, %v11789_v48, 0.0  ;;  %v3781_v0 = vrot.slane %v361_v52, %v14787_v4  ;;  %v3785_v1 = vrot.slane %v361_v52, %v14789_v5 }
 0x66e   :  { %v14517_v37 = vadd.f32 %v14516_v31, %v14515_v32  ;;  %v11773_v32 = vcombine.high %v11771_v23, %v11771_v23  ;;  %v8105_v46 = vmul.f32 %v7437_v28, %v242_v36  ;;  %v3805_v36 = vrot.slane %v361_v52, %v14803_v17 }
 0x66f   :  { %v7473_v24 = vcombine.low %v3785_v1, %v3789_v7 }
 0x670   :  { %v14519_v43 = vadd.f32 %v14518_v33, %v14517_v37  ;;  %v11774_v33 = vcombine.high %v8104_v22, %v8104_v22  ;;  %v14540_v49 = vsel %vm12926_vm0, %v11773_v32, 0.0  ;;  %v11791_v58 = vcombine.high %v8105_v46, %v8105_v46 }
 0x671   :  { %v11798_v59 = vrot.slane %v8105_v46, %v14805_v20  ;;  %v3793_v32 = vrot.slane %v361_v52, %v14797_v14  ;;  %v7487_v38 = vrot.slane %v7473_v24, %v14805_v20  ;;  %v362_v46 = vld [vmem:[#allocation5 + $0x340] sm:$0xff] }
 0x672   :  { %v14521_v51 = vadd.f32 %v14520_v41, %v14519_v43  ;;  %v14538_v41 = vsel %vm12926_vm0, %v11771_v23, 0.0  ;;  %v7446_v43 = vrot.slane %v7438_v29, %v14805_v20  ;;  %v7472_v23 = vcombine.low %v3777_v63, %v3781_v0  ;;  %v246_v24 = vld [vmem:[#allocation3 + $0x678] sm:$0xff] }
 0x673   :  { %v11806_v13 = vcombine.high %v11798_v59, %v11798_v59 }
 0x674   :  { %v14523_v56 = vadd.f32 %v14522_v47, %v14521_v51  ;;  %v11788_v47 = vrot.slane %v11774_v33, %v14805_v20  ;;  %v14542_v51 = vsel %vm12926_vm0, %v11781_v34, 0.0  ;;  %v7454_v53 = vcombine.low %v7446_v43, %v7453_v44 }
 0x675   :  { %v14552_v29 = vsel %vm12926_vm0, %v11806_v13, 0.0  ;;  %v3797_v33 = vrot.slane %v361_v52, %v14799_v15  ;;  %v3801_v34 = vrot.slane %v361_v52, %v14801_v16 }
 0x676   :  { %v14525_v62 = vadd.f32 %v14524_v55, %v14523_v56  ;;  %v7456_v55 = vcombine.low %v3769_v40, %v3773_v42  ;;  %v8106_v11 = vmul.f32 %v7454_v53, %v243_v61  ;;  %v3821_v61 = vrot.slane %v362_v46, %v14791_v6 }
 0x677   :  { %v7489_v48 = vcombine.low %v3793_v32, %v3797_v33 }
 0x678   :  { %v14527_v8 = vadd.f32 %v14526_v57, %v14525_v62  ;;  %v11790_v57 = vcombine.high %v11788_v47, %v11788_v47  ;;  %v7470_v9 = vrot.slane %v7456_v55, %v14805_v20  ;;  %v11815_v28 = vrot.slane %v8106_v11, %v14805_v20  ;;  %v245_v55 = vld [vmem:[#allocation3 + $0x670] sm:$0xff] }
 0x67a   :  { %v14529_v21 = vadd.f32 %v14528_v3, %v14527_v8  ;;  %v14546_v3 = vsel %vm12926_vm0, %v11788_v47, 0.0  ;;  %v7463_v8 = vrot.slane %v7455_v54, %v14805_v20  ;;  %v14548_v18 = vsel %vm12926_vm0, %v11790_v57, 0.0 }
 0x67b   :  { %v11823_v42 = vcombine.high %v11815_v28, %v11815_v28  ;;  %v3809_v57 = vrot.slane %v362_v46, %v14785_v2 }
 0x67c   :  { %v14531_v26 = vadd.f32 %v14530_v12, %v14529_v21  ;;  %v11805_v12 = vrot.slane %v11791_v58, %v14805_v20  ;;  %v14550_v21 = vsel %vm12926_vm0, %v11798_v59, 0.0  ;;  %v7471_v22 = vcombine.low %v7463_v8, %v7470_v9 }
 0x67d   :  { %v14560_v54 = vsel %vm12926_vm0, %v11823_v42, 0.0  ;;  %v3813_v58 = vrot.slane %v362_v46, %v14787_v4  ;;  %v3817_v59 = vrot.slane %v362_v46, %v14789_v5 }
 0x67e   :  { %v14533_v31 = vadd.f32 %v14532_v25, %v14531_v26  ;;  %v11807_v26 = vcombine.high %v11805_v12, %v11805_v12  ;;  %v8107_v40 = vmul.f32 %v7471_v22, %v244_v30  ;;  %v3837_v30 = vrot.slane %v362_v46, %v14803_v17 }
 0x67f   :  { %v7507_v13 = vcombine.low %v3817_v59, %v3821_v61 }
 0x680   :  { %v14535_v37 = vadd.f32 %v14534_v27, %v14533_v31  ;;  %v11808_v27 = vcombine.high %v8106_v11, %v8106_v11  ;;  %v14556_v43 = vsel %vm12926_vm0, %v11807_v26, 0.0  ;;  %v11825_v52 = vcombine.high %v8107_v40, %v8107_v40 }
 0x681   :  { %v11832_v53 = vrot.slane %v8107_v40, %v14805_v20  ;;  %v3825_v26 = vrot.slane %v362_v46, %v14797_v14  ;;  %v7521_v32 = vrot.slane %v7507_v13, %v14805_v20  ;;  %v363_v40 = vld [vmem:[#allocation5 + $0x348] sm:$0xff]  ;;  %v248_v13 = vld [vmem:[#allocation3 + $0x688] sm:$0xff] }
 0x682   :  { %v14537_v45 = vadd.f32 %v14536_v35, %v14535_v37  ;;  %v14554_v35 = vsel %vm12926_vm0, %v11805_v12, 0.0  ;;  %v7480_v37 = vrot.slane %v7472_v23, %v14805_v20  ;;  %v7506_v12 = vcombine.low %v3809_v57, %v3813_v58 }
 0x683   :  { %v11840_v7 = vcombine.high %v11832_v53, %v11832_v53 }
 0x684   :  { %v14539_v50 = vadd.f32 %v14538_v41, %v14537_v45  ;;  %v11822_v41 = vrot.slane %v11808_v27, %v14805_v20  ;;  %v14558_v45 = vsel %vm12926_vm0, %v11815_v28, 0.0  ;;  %v7488_v47 = vcombine.low %v7480_v37, %v7487_v38 }
 0x685   :  { %v14568_v23 = vsel %vm12926_vm0, %v11840_v7, 0.0  ;;  %v3829_v27 = vrot.slane %v362_v46, %v14799_v15  ;;  %v3833_v28 = vrot.slane %v362_v46, %v14801_v16 }
 0x686   :  { %v14541_v56 = vadd.f32 %v14540_v49, %v14539_v50  ;;  %v7490_v49 = vcombine.low %v3801_v34, %v3805_v36  ;;  %v8108_v1 = vmul.f32 %v7488_v47, %v245_v55  ;;  %v3853_v55 = vrot.slane %v363_v40, %v14791_v6 }
 0x687   :  { %v7523_v42 = vcombine.low %v3825_v26, %v3829_v27 }
 0x688   :  { %v14543_v62 = vadd.f32 %v14542_v51, %v14541_v56  ;;  %v11824_v51 = vcombine.high %v11822_v41, %v11822_v41  ;;  %v7504_v63 = vrot.slane %v7490_v49, %v14805_v20  ;;  %v11849_v22 = vrot.slane %v8108_v1, %v14805_v20  ;;  %v247_v49 = vld [vmem:[#allocation3 + $0x680] sm:$0xff] }
 0x68a   :  { %v14545_v10 = vadd.f32 %v14544_v60, %v14543_v62  ;;  %v14562_v60 = vsel %vm12926_vm0, %v11822_v41, 0.0  ;;  %v7497_v62 = vrot.slane %v7489_v48, %v14805_v20  ;;  %v14564_v8 = vsel %vm12926_vm0, %v11824_v51, 0.0 }
 0x68b   :  { %v11857_v36 = vcombine.high %v11849_v22, %v11849_v22  ;;  %v3841_v51 = vrot.slane %v363_v40, %v14785_v2 }
 0x68c   :  { %v14547_v19 = vadd.f32 %v14546_v3, %v14545_v10  ;;  %v11839_v3 = vrot.slane %v11825_v52, %v14805_v20  ;;  %v14566_v10 = vsel %vm12926_vm0, %v11832_v53, 0.0  ;;  %v7505_v11 = vcombine.low %v7497_v62, %v7504_v63 }
 0x68d   :  { %v14576_v48 = vsel %vm12926_vm0, %v11857_v36, 0.0  ;;  %v3845_v52 = vrot.slane %v363_v40, %v14787_v4  ;;  %v3849_v53 = vrot.slane %v363_v40, %v14789_v5 }
 0x68e   :  { %v14549_v25 = vadd.f32 %v14548_v18, %v14547_v19  ;;  %v11841_v19 = vcombine.high %v11839_v3, %v11839_v3  ;;  %v8109_v34 = vmul.f32 %v7505_v11, %v246_v24  ;;  %v3869_v24 = vrot.slane %v363_v40, %v14803_v17 }
 0x68f   :  { %v7541_v7 = vcombine.low %v3849_v53, %v3853_v55 }
 0x690   :  { %v14551_v31 = vadd.f32 %v14550_v21, %v14549_v25  ;;  %v11842_v21 = vcombine.high %v8108_v1, %v8108_v1  ;;  %v14572_v37 = vsel %vm12926_vm0, %v11841_v19, 0.0  ;;  %v11859_v46 = vcombine.high %v8109_v34, %v8109_v34 }
 0x691   :  { %v11866_v47 = vrot.slane %v8109_v34, %v14805_v20  ;;  %v3857_v19 = vrot.slane %v363_v40, %v14797_v14  ;;  %v7555_v26 = vrot.slane %v7541_v7, %v14805_v20  ;;  %v364_v34 = vld [vmem:[#allocation5 + $0x350] sm:$0xff]  ;;  %v250_v7 = vld [vmem:[#allocation3 + $0x698] sm:$0xff] }
 0x692   :  { %v14553_v39 = vadd.f32 %v14552_v29, %v14551_v31  ;;  %v14570_v29 = vsel %vm12926_vm0, %v11839_v3, 0.0  ;;  %v7514_v31 = vrot.slane %v7506_v12, %v14805_v20  ;;  %v7540_v3 = vcombine.low %v3841_v51, %v3845_v52 }
 0x693   :  { %v11874_v61 = vcombine.high %v11866_v47, %v11866_v47 }
 0x694   :  { %v14555_v44 = vadd.f32 %v14554_v35, %v14553_v39  ;;  %v11856_v35 = vrot.slane %v11842_v21, %v14805_v20  ;;  %v14574_v39 = vsel %vm12926_vm0, %v11849_v22, 0.0  ;;  %v7522_v41 = vcombine.low %v7514_v31, %v7521_v32 }
 0x695   :  { %v14584_v12 = vsel %vm12926_vm0, %v11874_v61, 0.0  ;;  %v3861_v21 = vrot.slane %v363_v40, %v14799_v15  ;;  %v3865_v22 = vrot.slane %v363_v40, %v14801_v16 }
 0x696   :  { %v14557_v50 = vadd.f32 %v14556_v43, %v14555_v44  ;;  %v7524_v43 = vcombine.low %v3833_v28, %v3837_v30  ;;  %v8110_v59 = vmul.f32 %v7522_v41, %v247_v49  ;;  %v3885_v49 = vrot.slane %v364_v34, %v14791_v6 }
 0x697   :  { %v7557_v36 = vcombine.low %v3857_v19, %v3861_v21 }
 0x698   :  { %v14559_v56 = vadd.f32 %v14558_v45, %v14557_v50  ;;  %v11858_v45 = vcombine.high %v11856_v35, %v11856_v35  ;;  %v7538_v57 = vrot.slane %v7524_v43, %v14805_v20  ;;  %v11883_v11 = vrot.slane %v8110_v59, %v14805_v20  ;;  %v249_v43 = vld [vmem:[#allocation3 + $0x690] sm:$0xff] }
 0x69a   :  { %v14561_v0 = vadd.f32 %v14560_v54, %v14559_v56  ;;  %v14578_v54 = vsel %vm12926_vm0, %v11856_v35, 0.0  ;;  %v7531_v56 = vrot.slane %v7523_v42, %v14805_v20  ;;  %v14580_v62 = vsel %vm12926_vm0, %v11858_v45, 0.0 }
 0x69b   :  { %v11891_v30 = vcombine.high %v11883_v11, %v11883_v11  ;;  %v3873_v45 = vrot.slane %v364_v34, %v14785_v2 }
 0x69c   :  { %v14563_v9 = vadd.f32 %v14562_v60, %v14561_v0  ;;  %v11873_v60 = vrot.slane %v11859_v46, %v14805_v20  ;;  %v14582_v0 = vsel %vm12926_vm0, %v11866_v47, 0.0  ;;  %v7539_v1 = vcombine.low %v7531_v56, %v7538_v57 }
 0x69d   :  { %v14592_v42 = vsel %vm12926_vm0, %v11891_v30, 0.0  ;;  %v3877_v46 = vrot.slane %v364_v34, %v14787_v4  ;;  %v3881_v47 = vrot.slane %v364_v34, %v14789_v5 }
 0x69e   :  { %v14565_v18 = vadd.f32 %v14564_v8, %v14563_v9  ;;  %v11875_v9 = vcombine.high %v11873_v60, %v11873_v60  ;;  %v8111_v28 = vmul.f32 %v7539_v1, %v248_v13  ;;  %v3901_v13 = vrot.slane %v364_v34, %v14803_v17 }
 0x69f   :  { %v7575_v61 = vcombine.low %v3881_v47, %v3885_v49 }
 0x6a0   :  { %v14567_v25 = vadd.f32 %v14566_v10, %v14565_v18  ;;  %v11876_v10 = vcombine.high %v8110_v59, %v8110_v59  ;;  %v14588_v31 = vsel %vm12926_vm0, %v11875_v9, 0.0  ;;  %v11893_v40 = vcombine.high %v8111_v28, %v8111_v28 }
 0x6a1   :  { %v11900_v41 = vrot.slane %v8111_v28, %v14805_v20  ;;  %v3889_v9 = vrot.slane %v364_v34, %v14797_v14  ;;  %v7589_v19 = vrot.slane %v7575_v61, %v14805_v20  ;;  %v365_v28 = vld [vmem:[#allocation5 + $0x358] sm:$0xff] }
 0x6a2   :  { %v14569_v33 = vadd.f32 %v14568_v23, %v14567_v25  ;;  %v14586_v23 = vsel %vm12926_vm0, %v11873_v60, 0.0  ;;  %v7548_v25 = vrot.slane %v7540_v3, %v14805_v20  ;;  %v7574_v60 = vcombine.low %v3873_v45, %v3877_v46  ;;  %v252_v61 = vld [vmem:[#allocation3 + $0x6a8] sm:$0xff] }
 0x6a3   :  { %v11908_v55 = vcombine.high %v11900_v41, %v11900_v41 }
 0x6a4   :  { %v14571_v38 = vadd.f32 %v14570_v29, %v14569_v33  ;;  %v11890_v29 = vrot.slane %v11876_v10, %v14805_v20  ;;  %v14590_v33 = vsel %vm12926_vm0, %v11883_v11, 0.0  ;;  %v7556_v35 = vcombine.low %v7548_v25, %v7555_v26 }
 0x6a5   :  { %v14600_v3 = vsel %vm12926_vm0, %v11908_v55, 0.0  ;;  %v3893_v10 = vrot.slane %v364_v34, %v14799_v15  ;;  %v3897_v11 = vrot.slane %v364_v34, %v14801_v16 }
 0x6a6   :  { %v14573_v44 = vadd.f32 %v14572_v37, %v14571_v38  ;;  %v7558_v37 = vcombine.low %v3865_v22, %v3869_v24  ;;  %v8112_v53 = vmul.f32 %v7556_v35, %v249_v43  ;;  %v3917_v43 = vrot.slane %v365_v28, %v14791_v6 }
 0x6a7   :  { %v7591_v30 = vcombine.low %v3889_v9, %v3893_v10 }
 0x6a8   :  { %v14575_v50 = vadd.f32 %v14574_v39, %v14573_v44  ;;  %v11892_v39 = vcombine.high %v11890_v29, %v11890_v29  ;;  %v7572_v51 = vrot.slane %v7558_v37, %v14805_v20  ;;  %v11917_v1 = vrot.slane %v8112_v53, %v14805_v20  ;;  %v251_v37 = vld [vmem:[#allocation3 + $0x6a0] sm:$0xff] }
 0x6aa   :  { %v14577_v58 = vadd.f32 %v14576_v48, %v14575_v50  ;;  %v14594_v48 = vsel %vm12926_vm0, %v11890_v29, 0.0  ;;  %v7565_v50 = vrot.slane %v7557_v36, %v14805_v20  ;;  %v14596_v56 = vsel %vm12926_vm0, %v11892_v39, 0.0 }
 0x6ab   :  { %v11925_v24 = vcombine.high %v11917_v1, %v11917_v1  ;;  %v3905_v39 = vrot.slane %v365_v28, %v14785_v2 }
 0x6ac   :  { %v14579_v63 = vadd.f32 %v14578_v54, %v14577_v58  ;;  %v11907_v54 = vrot.slane %v11893_v40, %v14805_v20  ;;  %v14598_v58 = vsel %vm12926_vm0, %v11900_v41, 0.0  ;;  %v7573_v59 = vcombine.low %v7565_v50, %v7572_v51 }
 0x6ad   :  { %v14608_v36 = vsel %vm12926_vm0, %v11925_v24, 0.0  ;;  %v3909_v40 = vrot.slane %v365_v28, %v14787_v4  ;;  %v3913_v41 = vrot.slane %v365_v28, %v14789_v5 }
 0x6ae   :  { %v14581_v8 = vadd.f32 %v14580_v62, %v14579_v63  ;;  %v11909_v63 = vcombine.high %v11907_v54, %v11907_v54  ;;  %v8113_v22 = vmul.f32 %v7573_v59, %v250_v7  ;;  %v3933_v7 = vrot.slane %v365_v28, %v14803_v17 }
 0x6af   :  { %v7609_v55 = vcombine.low %v3913_v41, %v3917_v43 }
 0x6b0   :  { %v14583_v18 = vadd.f32 %v14582_v0, %v14581_v8  ;;  %v11910_v0 = vcombine.high %v8112_v53, %v8112_v53  ;;  %v14604_v25 = vsel %vm12926_vm0, %v11909_v63, 0.0  ;;  %v11927_v34 = vcombine.high %v8113_v22, %v8113_v22 }
 0x6b1   :  { %v11934_v35 = vrot.slane %v8113_v22, %v14805_v20  ;;  %v3921_v63 = vrot.slane %v365_v28, %v14797_v14  ;;  %v7623_v9 = vrot.slane %v7609_v55, %v14805_v20  ;;  %v366_v22 = vld [vmem:[#allocation5 + $0x360] sm:$0xff] }
 0x6b2   :  { %v14585_v27 = vadd.f32 %v14584_v12, %v14583_v18  ;;  %v14602_v12 = vsel %vm12926_vm0, %v11907_v54, 0.0  ;;  %v7582_v18 = vrot.slane %v7574_v60, %v14805_v20  ;;  %v7608_v54 = vcombine.low %v3905_v39, %v3909_v40 }
 0x6b3   :  { %v11942_v49 = vcombine.high %v11934_v35, %v11934_v35  ;;  %v3961_v55 = vrot.slane %v366_v22, %v14801_v16 }
 0x6b4   :  { %v14587_v32 = vadd.f32 %v14586_v23, %v14585_v27  ;;  %v11924_v23 = vrot.slane %v11910_v0, %v14805_v20  ;;  %v14606_v27 = vsel %vm12926_vm0, %v11917_v1, 0.0  ;;  %v7590_v29 = vcombine.low %v7582_v18, %v7589_v19 }
 0x6b5   :  { %v14616_v60 = vsel %vm12926_vm0, %v11942_v49, 0.0  ;;  %v3925_v0 = vrot.slane %v365_v28, %v14799_v15  ;;  %v3929_v1 = vrot.slane %v365_v28, %v14801_v16 }
 0x6b6   :  { %v14589_v38 = vadd.f32 %v14588_v31, %v14587_v32  ;;  %v7592_v31 = vcombine.low %v3897_v11, %v3901_v13  ;;  %v8114_v47 = vmul.f32 %v7590_v29, %v251_v37  ;;  %v3949_v37 = vrot.slane %v366_v22, %v14791_v6 }
 0x6b7   :  { %v7625_v24 = vcombine.low %v3921_v63, %v3925_v0 }
 0x6b8   :  { %v14591_v44 = vadd.f32 %v14590_v33, %v14589_v38  ;;  %v11926_v33 = vcombine.high %v11924_v23, %v11924_v23  ;;  %v7606_v45 = vrot.slane %v7592_v31, %v14805_v20  ;;  %v11951_v59 = vrot.slane %v8114_v47, %v14805_v20  ;;  %v253_v31 = vld [vmem:[#allocation3 + $0x6b0] sm:$0xff] }
 0x6ba   :  { %v14593_v52 = vadd.f32 %v14592_v42, %v14591_v44  ;;  %v14610_v42 = vsel %vm12926_vm0, %v11924_v23, 0.0  ;;  %v7599_v44 = vrot.slane %v7591_v30, %v14805_v20  ;;  %v14612_v50 = vsel %vm12926_vm0, %v11926_v33, 0.0 }
 0x6bb   :  { %v11959_v13 = vcombine.high %v11951_v59, %v11951_v59  ;;  %v3937_v33 = vrot.slane %v366_v22, %v14785_v2 }
 0x6bc   :  { %v14595_v57 = vadd.f32 %v14594_v48, %v14593_v52  ;;  %v11941_v48 = vrot.slane %v11927_v34, %v14805_v20  ;;  %v14614_v52 = vsel %vm12926_vm0, %v11934_v35, 0.0  ;;  %v7607_v53 = vcombine.low %v7599_v44, %v7606_v45 }
 0x6bd   :  { %v14624_v30 = vsel %vm12926_vm0, %v11959_v13, 0.0  ;;  %v3941_v34 = vrot.slane %v366_v22, %v14787_v4  ;;  %v3945_v35 = vrot.slane %v366_v22, %v14789_v5 }
 0x6be   :  { %v14597_v62 = vadd.f32 %v14596_v56, %v14595_v57  ;;  %v11943_v57 = vcombine.high %v11941_v48, %v11941_v48  ;;  %v8115_v11 = vmul.f32 %v7607_v53, %v252_v61  ;;  %v3953_v53 = vrot.slane %v366_v22, %v14797_v14 }
 0x6bf   :  { %v7642_v5 = vcombine.low %v3937_v33, %v3941_v34  ;;  %v256_v34 = vld [vmem:[#allocation3 + $0x6c8] sm:$0xff] }
 0x6c0   :  { %v14599_v8 = vadd.f32 %v14598_v58, %v14597_v62  ;;  %v11944_v58 = vcombine.high %v8114_v47, %v8114_v47  ;;  %v14620_v18 = vsel %vm12926_vm0, %v11943_v57, 0.0  ;;  %v11961_v28 = vcombine.high %v8115_v11, %v8115_v11 }
 0x6c1   :  { %v11968_v29 = vrot.slane %v8115_v11, %v14805_v20  ;;  %v3965_v57 = vrot.slane %v366_v22, %v14803_v17  ;;  %v255_v11 = vld [vmem:[#allocation3 + $0x6c0] sm:$0xff] }
 0x6c2   :  { %v14601_v21 = vadd.f32 %v14600_v3, %v14599_v8  ;;  %v14618_v3 = vsel %vm12926_vm0, %v11941_v48, 0.0  ;;  %v7616_v8 = vrot.slane %v7608_v54, %v14805_v20  ;;  %v3957_v54 = vrot.slane %v366_v22, %v14799_v15 }
 0x6c3   :  { %v11976_v43 = vcombine.high %v11968_v29, %v11968_v29  ;;  %v14630_v4 = vsel %vm12926_vm0, %v11968_v29, 0.0 }
 0x6c4   :  { %v14603_v26 = vadd.f32 %v14602_v12, %v14601_v21  ;;  %v11958_v12 = vrot.slane %v11944_v58, %v14805_v20  ;;  %v14622_v21 = vsel %vm12926_vm0, %v11951_v59, 0.0  ;;  %v7624_v23 = vcombine.low %v7616_v8, %v7623_v9 }
 0x6c5   :  { %v7650_v58 = vrot.slane %v7642_v5, %v14805_v20  ;;  %v7659_v16 = vcombine.low %v3953_v53, %v3957_v54 }
 0x6c6   :  { %v14605_v32 = vadd.f32 %v14604_v25, %v14603_v26  ;;  %v7626_v25 = vcombine.low %v3929_v1, %v3933_v7  ;;  %v8116_v41 = vmul.f32 %v7624_v23, %v253_v31 }
 0x6c8   :  { %v14607_v38 = vadd.f32 %v14606_v27, %v14605_v32  ;;  %v11960_v27 = vcombine.high %v11958_v12, %v11958_v12  ;;  %v7640_v39 = vrot.slane %v7626_v25, %v14805_v20  ;;  %v11978_v6 = vcombine.high %v8116_v41, %v8116_v41 }
 0x6c9   :  { %v11985_v49 = vrot.slane %v8116_v41, %v14805_v20 }
 0x6ca   :  { %v14609_v46 = vadd.f32 %v14608_v36, %v14607_v38  ;;  %v14626_v36 = vsel %vm12926_vm0, %v11958_v12, 0.0  ;;  %v7633_v38 = vrot.slane %v7625_v24, %v14805_v20  ;;  %v14628_v44 = vsel %vm12926_vm0, %v11960_v27, 0.0 }
 0x6cb   :  { %v11993_v63 = vcombine.high %v11985_v49, %v11985_v49  ;;  %v14638_v15 = vsel %vm12926_vm0, %v11985_v49, 0.0  ;;  %v257_v49 = vld [vmem:[#allocation3 + $0x6d0] sm:$0x3] }
 0x6cc   :  { %v14611_v51 = vadd.f32 %v14610_v42, %v14609_v46  ;;  %v11975_v42 = vrot.slane %v11961_v28, %v14805_v20  ;;  %v7641_v45 = vcombine.low %v7633_v38, %v7640_v39  ;;  %v7643_v46 = vcombine.low %v3945_v35, %v3949_v37 }
 0x6ce   :  { %v14613_v56 = vadd.f32 %v14612_v50, %v14611_v51  ;;  %v11977_v48 = vcombine.high %v11975_v42, %v11975_v42  ;;  %v14632_v50 = vsel %vm12926_vm0, %v11976_v43, 0.0  ;;  %v254_v51 = vld [vmem:[#allocation3 + $0x6b8] sm:$0xff]  ;;  %v7657_v59 = vrot.slane %v7643_v46, %v14805_v20 }
 0x6cf   :  { %v8117_v61 = vmul.f32 %v7641_v45, %v254_v51 }
 0x6d0   :  { %v14615_v62 = vadd.f32 %v14614_v52, %v14613_v56  ;;  %v14634_v56 = vsel %vm12926_vm0, %v11975_v42, 0.0  ;;  %v14636_v0 = vsel %vm12926_vm0, %v11977_v48, 0.0  ;;  %v7658_v1 = vcombine.low %v7650_v58, %v7657_v59 }
 0x6d1   :  { %v11995_v17 = vcombine.high %v8117_v61, %v8117_v61  ;;  %v12002_v9 = vrot.slane %v8117_v61, %v14805_v20 }
 0x6d2   :  { %v14617_v10 = vadd.f32 %v14616_v60, %v14615_v62  ;;  %v11992_v62 = vrot.slane %v11978_v6, %v14805_v20  ;;  %v8118_v22 = vmul.f32 %v7658_v1, %v255_v11 }
 0x6d3   :  { %v12009_v23 = vrot.slane %v11995_v17, %v14805_v20  ;;  %v12010_v24 = vcombine.high %v12002_v9, %v12002_v9  ;;  %v14646_v27 = vsel %vm12926_vm0, %v12002_v9, 0.0 }
 0x6d4   :  { %v14619_v19 = vadd.f32 %v14618_v3, %v14617_v10  ;;  %v7660_v3 = vcombine.low %v3961_v55, %v3965_v57  ;;  %v11994_v8 = vcombine.high %v11992_v62, %v11992_v62  ;;  %v14640_v10 = vsel %vm12926_vm0, %v11993_v63, 0.0 }
 0x6d5   :  { %v14642_v13 = vsel %vm12926_vm0, %v11992_v62, 0.0  ;;  %v12012_v31 = vcombine.high %v8118_v22, %v8118_v22  ;;  %v14648_v33 = vsel %vm12926_vm0, %v12010_v24, 0.0 }
 0x6d6   :  { %v14621_v26 = vadd.f32 %v14620_v18, %v14619_v19  ;;  %v7667_v18 = vrot.slane %v7659_v16, %v14805_v20  ;;  %v7674_v19 = vrot.slane %v7660_v3, %v14805_v20  ;;  %v14644_v25 = vsel %vm12926_vm0, %v11994_v8, 0.0 }
 0x6d7   :  { %v12026_v39 = vrot.slane %v12012_v31, %v14805_v20  ;;  %v14676_v3 = vstv %s17429_s2 }
 0x6d8   :  { %v14623_v32 = vadd.f32 %v14622_v21, %v14621_v26  ;;  %v7675_v28 = vcombine.low %v7667_v18, %v7674_v19 }
 0x6d9   :  { %v14658_v6 = vsel %vm12926_vm0, %v12026_v39, 0.0 }
 0x6da   :  { %v14625_v40 = vadd.f32 %v14624_v30, %v14623_v32  ;;  %v12011_v30 = vcombine.high %v12009_v23, %v12009_v23  ;;  %v12019_v32 = vrot.slane %v8118_v22, %v14805_v20  ;;  %v8119_v38 = vmul.f32 %v7675_v28, %v256_v34 }
 0x6dc   :  { %v14627_v2 = vadd.f32 %v14626_v36, %v14625_v40  ;;  %v14650_v36 = vsel %vm12926_vm0, %v12009_v23, 0.0  ;;  %v12027_v40 = vcombine.high %v12019_v32, %v12019_v32  ;;  %v14652_v41 = vsel %vm12926_vm0, %v12011_v30, 0.0 }
 0x6dd   :  { %v14654_v43 = vsel %vm12926_vm0, %v12019_v32, 0.0  ;;  %v12029_v45 = vcombine.high %v8119_v38, %v8119_v38  ;;  %v12036_v5 = vrot.slane %v8119_v38, %v14805_v20 }
 0x6de   :  { %v14629_v47 = vadd.f32 %v14628_v44, %v14627_v2  ;;  %v14686_v44 = vld [vmem:[#allocation5 + $0x368] ss:$0 sm:$0xff]  ;;  %v14656_v46 = vsel %vm12926_vm0, %v12027_v40, 0.0 }
 0x6df   :  { %v7682_v48 = vrot.slane %v14686_v44, %v14805_v20  ;;  %v12043_v51 = vrot.slane %v12029_v45, %v14805_v20 }
 0x6e0   :  { %v14631_v52 = vadd.f32 %v14630_v4, %v14629_v47  ;;  %v12028_v4 = vcombine.high %v12026_v39, %v12026_v39 }
 0x6e1   :  { %v8120_v55 = vmul.f32 %v7682_v48, %v257_v49  ;;  %v12045_v58 = vcombine.high %v12043_v51, %v12043_v51  ;;  %v14666_v62 = vsel %vm12926_vm0, %v12043_v51, 0.0 }
 0x6e2   :  { %v14633_v60 = vadd.f32 %v14632_v50, %v14631_v52  ;;  %v12044_v52 = vcombine.high %v12036_v5, %v12036_v5  ;;  %v14660_v53 = vsel %vm12926_vm0, %v12028_v4, 0.0 }
 0x6e3   :  { %v12052_v61 = vrot.slane %v8120_v55, %v14805_v20 }
 0x6e4   :  { %v14635_v14 = vadd.f32 %v14634_v56, %v14633_v60  ;;  %v14662_v56 = vsel %vm12926_vm0, %v12036_v5, 0.0  ;;  %v14664_v59 = vsel %vm12926_vm0, %v12044_v52, 0.0 }
 0x6e6   :  { %v14637_v7 = vadd.f32 %v14636_v0, %v14635_v14  ;;  %v14668_v0 = vsel %vm12926_vm0, %v12045_v58, 0.0 }
 0x6e8   :  { %v14639_v12 = vadd.f32 %v14638_v15, %v14637_v7  ;;  %v14671_v15 = vsel %vm14670_vm1, %v12052_v61, 0.0 }
 0x6ea   :  { %v14641_v21 = vadd.f32 %v14640_v10, %v14639_v12 }
 0x6ec   :  { %v14643_v26 = vadd.f32 %v14642_v13, %v14641_v21 }
 0x6ee   :  { %v14645_v29 = vadd.f32 %v14644_v25, %v14643_v26 }
 0x6f0   :  { %v14647_v35 = vadd.f32 %v14646_v27, %v14645_v29 }
 0x6f2   :  { %v14649_v37 = vadd.f32 %v14648_v33, %v14647_v35 }
 0x6f4   :  { %v14651_v42 = vadd.f32 %v14650_v36, %v14649_v37 }
 0x6f6   :  { %v14653_v2 = vadd.f32 %v14652_v41, %v14651_v42 }
 0x6f8   :  { %v14655_v47 = vadd.f32 %v14654_v43, %v14653_v2 }
 0x6fa   :  { %v14657_v50 = vadd.f32 %v14656_v46, %v14655_v47 }
 0x6fc   :  { %v14659_v54 = vadd.f32 %v14658_v6, %v14657_v50 }
 0x6fe   :  { %v14661_v57 = vadd.f32 %v14660_v53, %v14659_v54 }
 0x700   :  { %v14663_v60 = vadd.f32 %v14662_v56, %v14661_v57 }
 0x702   :  { %v14665_v63 = vadd.f32 %v14664_v59, %v14663_v60 }
 0x704   :  { %v14667_v14 = vadd.f32 %v14666_v62, %v14665_v63 }
 0x706   :  { %v14669_v1 = vadd.f32 %v14668_v0, %v14667_v14 }
 0x708   :  { %v14672_v16 = vadd.f32 %v14671_v15, %v14669_v1 }
 0x70a   :  { %14673 = vadd.xlane.f32.xlu0 %v14672_v16 }
 0x797   :  { %v14674_v7 = vpop.xlane.xlu0 %14673 }
 0x798   :  { %v14677_v8 = vadd.f32 %v14676_v3, %v14674_v7 }
 0x79a   :  { %14679 = vst.msk [vmem:[%s17430_s3] sm:$0x3] %vm14678_vm2, %v14677_v8 }
 0x79b   :  { %14684 = vsyncpa [#allocation4], 1 }
 0x79c   :  { %14685 = vsyncpa [#allocation6], 1 }

</bundles_post_ra>
